<compile_context>
chip_gen: v6e
topology: v6e:2x2x1
jax: 0.10.0
libtpu: 0.0.40
codegen_flags: <defaults>
</compile_context>

<pallas_src>
import functools

import jax
import jax.numpy as jnp
from jax import lax
from jax.experimental import pallas as pl
from jax.experimental.pallas import tpu as pltpu

C_PAD = 12          # every channel count (1/8/10/12) padded to 12
N_LAYERS = 9
NUM_CLASSES = 10


def _full_spec(shape):
    # whole-array block, no grid
    return pl.BlockSpec(shape, lambda: (0,) * len(shape))


def _ilog2(v):
    assert v > 0 and (v & (v - 1)) == 0, v
    return v.bit_length() - 1


# ---------------------------------------------------------------------------
# Fully fused network kernel
# ---------------------------------------------------------------------------
def fused_kernel(x_ref, w_ref, b_ref, o_ref, *, N, H0, W0):
    f32 = jnp.float32
    bf16 = jnp.bfloat16

    def conv_bn_relu(act, l, H, W, taps):
        """act: (cin, P) f32  ->  (C_PAD, P) f32.  P is the lane container."""
        cin, P = act.shape
        if taps == 1:                                        # 1x1 conv
            w_t = w_ref[l, 0]                                # (C_PAD, C_PAD) bf16
            acc = jnp.dot(w_t, act.astype(bf16),
                          preferred_element_type=f32)
        else:                                                # 3x3 conv, SAME pad
            pos = lax.broadcasted_iota(jnp.int32, (1, P), 1)
            xc = pos & (W - 1)                               # x coordinate
            yc = (pos >> _ilog2(W)) & (H - 1)                # y coordinate
            acc = jnp.zeros((C_PAD, P), f32)
            for t in range(9):                               # unrolled taps
                oy, ox = t // 3 - 1, t % 3 - 1
                off = oy * W + ox
                if off == 0:
                    tap = act
                else:
                    rolled = pltpu.roll(act, shift=(-off) % P, axis=1)
                    m = ((xc + ox >= 0) & (xc + ox < W) &
                         (yc + oy >= 0) & (yc + oy < H))
                    tap = jnp.where(m, rolled, 0.0)
                w_t = w_ref[l, t]                            # (C_PAD, C_PAD) bf16
                if cin == 1:
                    # first layer (K=1): cheap VPU outer product
                    acc = acc + w_t[:, 0:1].astype(f32) * tap
                else:
                    acc = acc + jnp.dot(w_t, tap.astype(bf16),
                                        preferred_element_type=f32)
        # folded BN bias + ReLU
        return jnp.maximum(acc + b_ref[l], 0.0)

    def maxpool2x2(act, H, W):
        """2x2 / stride-2 max pool on the (C_PAD, P) flat layout."""
        _, P = act.shape
        r1 = pltpu.roll(act, shift=P - 1, axis=1)            # (y,   x+1)
        r2 = pltpu.roll(act, shift=P - W, axis=1)            # (y+1, x  )
        r3 = pltpu.roll(act, shift=P - W - 1, axis=1)        # (y+1, x+1)
        v = jnp.maximum(jnp.maximum(act, r1), jnp.maximum(r2, r3))
        Ho, Wo = H // 2, W // 2
        Po = P // 4                                          # logical pooled size
        Pc = max(Po, 128)                                    # keep >=128 lanes
        p_i = lax.broadcasted_iota(jnp.int32, (P, Pc), 0)
        q_i = lax.broadcasted_iota(jnp.int32, (P, Pc), 1)
        n_o = q_i >> _ilog2(Ho * Wo)
        rem = q_i & (Ho * Wo - 1)
        src = (n_o * (H * W)
               + (rem >> _ilog2(Wo)) * (2 * W)
               + (rem & (Wo - 1)) * 2)
        sel = (p_i == src) & (q_i < Po)
        S = jnp.where(sel, 1.0, 0.0).astype(bf16)            # (P, Pc) selection
        # gather + down-sample in one MXU matmul; padded lanes come out as 0
        return jnp.dot(v.astype(bf16), S, preferred_element_type=f32)

    # --------------------------- forward ---------------------------------
    act = x_ref[...]                                         # (1, N*H0*W0) f32
    act = conv_bn_relu(act, 0, H0, W0, taps=9)               # convblock1
    act = conv_bn_relu(act, 1, H0, W0, taps=9)               # convblock2
    act = maxpool2x2(act, H0, W0)                            # pool1
    H1, W1 = H0 // 2, W0 // 2
    act = conv_bn_relu(act, 2, H1, W1, taps=1)               # convblock3 (1x1)
    act = conv_bn_relu(act, 3, H1, W1, taps=9)               # convblock4 a
    act = conv_bn_relu(act, 4, H1, W1, taps=9)               # convblock4 b
    act = maxpool2x2(act, H1, W1)                            # pool2
    H2, W2 = H1 // 2, W1 // 2
    act = conv_bn_relu(act, 5, H2, W2, taps=1)               # convblock5 (1x1)
    act = conv_bn_relu(act, 6, H2, W2, taps=9)               # convblock6 a
    act = conv_bn_relu(act, 7, H2, W2, taps=9)               # convblock6 b
    act = conv_bn_relu(act, 8, H2, W2, taps=9)               # convblock6 c

    # ---------------- global average pool + log_softmax -------------------
    Pc = act.shape[1]
    per = H2 * W2                                            # pixels per image
    img = lax.broadcasted_iota(jnp.int32, (N, Pc), 0)
    pos = lax.broadcasted_iota(jnp.int32, (N, Pc), 1)
    G = jnp.where((pos >> _ilog2(per)) == img, 1.0 / per, 0.0)   # (N, Pc) f32
    # (N, Pc) x (C_PAD, Pc) contracted over lanes -> (N, C_PAD)
    gap = lax.dot_general(G, act, (((1,), (1,)), ((), ())),
                          preferred_element_type=f32)
    logits = gap[:, :NUM_CLASSES]                            # (N, 10)
    mx = jnp.max(logits, axis=-1, keepdims=True)
    s = logits - mx
    lse = jnp.log(jnp.sum(jnp.exp(s), axis=-1, keepdims=True))
    o_ref[...] = s - lse                                     # log-probs


# ---------------------------------------------------------------------------
# Wrapper: single pallas_call for the whole network
# ---------------------------------------------------------------------------
def forward(x_nchw, w_packed, b_packed):
    Nb, Cin, H, W = x_nchw.shape
    assert Cin == 1 and H == W
    assert (H & (H - 1)) == 0 and H % 4 == 0
    assert (Nb * H * W) % 128 == 0
    # With a single input channel, NCHW flattens (bitcast) directly to the
    # (C=1, N*H*W) flat layout used inside the kernel.
    x_flat = x_nchw.astype(jnp.float32).reshape(1, Nb * H * W)
    kernel = functools.partial(fused_kernel, N=Nb, H0=H, W0=W)
    # TODO(synk): add a batch-parallel grid axis (dimension_semantics=("parallel",))
    # to engage both v7x TensorCores; omitted at N=2 where the call is launch-bound.
    return pl.pallas_call(
        kernel,
        out_shape=jax.ShapeDtypeStruct((Nb, NUM_CLASSES), jnp.float32),
        in_specs=[_full_spec(x_flat.shape),
                  _full_spec(w_packed.shape),
                  _full_spec(b_packed.shape)],
        out_specs=_full_spec((Nb, NUM_CLASSES)),
    )(x_flat, w_packed, b_packed)


# ---------------------------------------------------------------------------
# Parameters (deterministic synthetic init; BN folded to scale/bias)
# ---------------------------------------------------------------------------
_CONV_SHAPES = [
    (3, 3, 1, 8),    # convblock1
    (3, 3, 8, 8),    # convblock2
    (1, 1, 8, 12),   # convblock3 (1x1)
    (3, 3, 12, 12),  # convblock4 conv a
    (3, 3, 12, 12),  # convblock4 conv b
    (1, 1, 12, 12),  # convblock5 (1x1)
    (3, 3, 12, 12),  # convblock6 conv a
    (3, 3, 12, 12),  # convblock6 conv b
    (3, 3, 12, 10),  # convblock6 conv c
]


def make_params(key):
    params = []
    eps = 1e-5
    for (kh, kw, ci, co) in _CONV_SHAPES:
        key, k1, k2, k3 = jax.random.split(key, 4)
        fan_in = kh * kw * ci
        w = jax.random.normal(k1, (kh, kw, ci, co), jnp.float32) / jnp.sqrt(fan_in)
        gamma = 1.0 + 0.1 * jax.random.normal(k2, (co,), jnp.float32)
        beta = 0.1 * jax.random.normal(k3, (co,), jnp.float32)
        running_mean = jnp.zeros((co,), jnp.float32)
        running_var = jnp.ones((co,), jnp.float32)
        scale = gamma / jnp.sqrt(running_var + eps)
        bias = beta - running_mean * scale
        params.append((w, scale, bias))
    return params


def pack_params(params):
    """Fold BN scale into the conv weights and stack all layers into one
    (L, 9, C_PAD, C_PAD) bf16 weight tensor + one (L, C_PAD, 1) f32 bias."""
    w_all = jnp.zeros((N_LAYERS, 9, C_PAD, C_PAD), jnp.float32)
    b_all = jnp.zeros((N_LAYERS, C_PAD, 1), jnp.float32)
    for l, (w, scale, bias) in enumerate(params):
        kh, kw, ci, co = w.shape
        wf = w * scale[None, None, None, :]                       # fold BN scale
        wt = jnp.transpose(wf.reshape(kh * kw, ci, co), (0, 2, 1))  # (taps, co, ci)
        w_all = w_all.at[l, :kh * kw, :co, :ci].set(wt)
        b_all = b_all.at[l, :co, 0].set(bias)
    return w_all.astype(jnp.bfloat16), b_all


# ---------------------------------------------------------------------------
# Pure-JAX (XLA, f32) reference
# ---------------------------------------------------------------------------
def ref_forward(x_nchw, params):
    x = jnp.transpose(x_nchw, (0, 2, 3, 1)).astype(jnp.float32)

    def cbr(x, w, scale, bias):
        y = lax.conv_general_dilated(
            x, w, (1, 1), "SAME",
            dimension_numbers=("NHWC", "HWIO", "NHWC"))
        return jnp.maximum(y * scale + bias, 0.0)

    def pool(x):
        return lax.reduce_window(x, -jnp.inf, lax.max,
                                 (1, 2, 2, 1), (1, 2, 2, 1), "VALID")

    x = cbr(x, *params[0]); x = cbr(x, *params[1]); x = pool(x)
    x = cbr(x, *params[2]); x = cbr(x, *params[3]); x = cbr(x, *params[4]); x = pool(x)
    x = cbr(x, *params[5]); x = cbr(x, *params[6]); x = cbr(x, *params[7]); x = cbr(x, *params[8])
    g = jnp.mean(x, axis=(1, 2))
    return jax.nn.log_softmax(g, axis=-1)


if __name__ == "__main__":
    key = jax.random.PRNGKey(0)
    kx, kp = jax.random.split(key)
    # shape consistent with the module: batch=2, 1 input channel, 16x16
    x = jax.random.normal(kx, (2, 1, 16, 16), jnp.float32)
    params = make_params(kp)
    w_packed, b_packed = pack_params(params)

    fwd = jax.jit(forward)
    out = jax.block_until_ready(fwd(x, w_packed, b_packed))
    assert out.shape == (2, NUM_CLASSES)
    assert bool(jnp.all(jnp.isfinite(out)))
    # each row of exp(log_softmax) must sum to 1
    assert bool(jnp.allclose(jnp.sum(jnp.exp(out), axis=-1), 1.0, atol=1e-3))

    ref = jax.block_until_ready(ref_forward(x, params))
    max_err = float(jnp.max(jnp.abs(out - ref)))
    # matmuls use bf16 operands (f32 accumulation) -> slightly looser tolerance
    assert bool(jnp.allclose(out, ref, atol=3e-2, rtol=3e-2)), (
        "mismatch vs reference, max abs err = %g" % max_err)

    print("KERNEL_OK")
</pallas_src>

<mosaic_0001>
module attributes {stable_mosaic.version = 11 : i64} {
  func.func @fused_kernel(%arg0: memref<1x512xf32, #tpu.memory_space<vmem>>, %arg1: memref<9x9x12x12xbf16, #tpu.memory_space<vmem>>, %arg2: memref<9x12x1xf32, #tpu.memory_space<vmem>>, %arg3: memref<2x10xf32, #tpu.memory_space<vmem>>) attributes {dimension_semantics = [], scalar_prefetch = 0 : i64, scratch_operands = 0 : i64, tpu.core_type = #tpu.core_type<tc>} {
    %c0 = arith.constant 0 : index
    %c0_0 = arith.constant 0 : index
    %0 = vector.load %arg0[%c0, %c0_0] : memref<1x512xf32, #tpu.memory_space<vmem>>, vector<1x512xf32>
    %1 = tpu.iota {dimensions = array<i32: 1>} : vector<1x512xi32>
    %c15_i32 = arith.constant 15 : i32
    %2 = vector.broadcast %c15_i32 : i32 to vector<1x512xi32>
    %3 = arith.andi %1, %2 : vector<1x512xi32>
    %c4_i32 = arith.constant 4 : i32
    %4 = vector.broadcast %c4_i32 : i32 to vector<1x512xi32>
    %5 = arith.shrsi %1, %4 : vector<1x512xi32>
    %c15_i32_1 = arith.constant 15 : i32
    %6 = vector.broadcast %c15_i32_1 : i32 to vector<1x512xi32>
    %7 = arith.andi %5, %6 : vector<1x512xi32>
    %cst = arith.constant 0.000000e+00 : f32
    %8 = vector.broadcast %cst : f32 to vector<12x512xf32>
    %c17_i32 = arith.constant 17 : i32
    %9 = tpu.dynamic_rotate %0 by %c17_i32 dim 1 : vector<1x512xf32>, i32 -> vector<1x512xf32>
    %c-1_i32 = arith.constant -1 : i32
    %10 = vector.broadcast %c-1_i32 : i32 to vector<1x512xi32>
    %11 = arith.addi %3, %10 : vector<1x512xi32>
    %c0_i32 = arith.constant 0 : i32
    %12 = vector.broadcast %c0_i32 : i32 to vector<1x512xi32>
    %13 = arith.cmpi sge, %11, %12 : vector<1x512xi32>
    %c-1_i32_2 = arith.constant -1 : i32
    %14 = vector.broadcast %c-1_i32_2 : i32 to vector<1x512xi32>
    %15 = arith.addi %3, %14 : vector<1x512xi32>
    %c16_i32 = arith.constant 16 : i32
    %16 = vector.broadcast %c16_i32 : i32 to vector<1x512xi32>
    %17 = arith.cmpi slt, %15, %16 : vector<1x512xi32>
    %18 = arith.andi %13, %17 : vector<1x512xi1>
    %c-1_i32_3 = arith.constant -1 : i32
    %19 = vector.broadcast %c-1_i32_3 : i32 to vector<1x512xi32>
    %20 = arith.addi %7, %19 : vector<1x512xi32>
    %c0_i32_4 = arith.constant 0 : i32
    %21 = vector.broadcast %c0_i32_4 : i32 to vector<1x512xi32>
    %22 = arith.cmpi sge, %20, %21 : vector<1x512xi32>
    %23 = arith.andi %18, %22 : vector<1x512xi1>
    %c-1_i32_5 = arith.constant -1 : i32
    %24 = vector.broadcast %c-1_i32_5 : i32 to vector<1x512xi32>
    %25 = arith.addi %7, %24 : vector<1x512xi32>
    %c16_i32_6 = arith.constant 16 : i32
    %26 = vector.broadcast %c16_i32_6 : i32 to vector<1x512xi32>
    %27 = arith.cmpi slt, %25, %26 : vector<1x512xi32>
    %28 = arith.andi %23, %27 : vector<1x512xi1>
    %cst_7 = arith.constant 0.000000e+00 : f32
    %29 = vector.broadcast %cst_7 : f32 to vector<1x512xf32>
    %30 = arith.select %28, %9, %29 : vector<1x512xi1>, vector<1x512xf32>
    %c0_8 = arith.constant 0 : index
    %c0_9 = arith.constant 0 : index
    %c0_10 = arith.constant 0 : index
    %c0_11 = arith.constant 0 : index
    %31 = vector.load %arg1[%c0_8, %c0_9, %c0_10, %c0_11] : memref<9x9x12x12xbf16, #tpu.memory_space<vmem>>, vector<1x1x12x12xbf16>
    %32 = vector.shape_cast %31 : vector<1x1x12x12xbf16> to vector<12x12xbf16>
    %33 = vector.extract_strided_slice %32 {offsets = [0, 0], sizes = [12, 1], strides = [1, 1]} : vector<12x12xbf16> to vector<12x1xbf16>
    %34 = arith.extf %33 : vector<12x1xbf16> to vector<12x1xf32>
    %35 = vector.broadcast %34 : vector<12x1xf32> to vector<12x512xf32>
    %36 = vector.broadcast %30 : vector<1x512xf32> to vector<12x512xf32>
    %37 = arith.mulf %35, %36 : vector<12x512xf32>
    %38 = arith.addf %8, %37 : vector<12x512xf32>
    %c16_i32_12 = arith.constant 16 : i32
    %39 = tpu.dynamic_rotate %0 by %c16_i32_12 dim 1 : vector<1x512xf32>, i32 -> vector<1x512xf32>
    %c0_i32_13 = arith.constant 0 : i32
    %40 = vector.broadcast %c0_i32_13 : i32 to vector<1x512xi32>
    %41 = arith.addi %3, %40 : vector<1x512xi32>
    %c0_i32_14 = arith.constant 0 : i32
    %42 = vector.broadcast %c0_i32_14 : i32 to vector<1x512xi32>
    %43 = arith.cmpi sge, %41, %42 : vector<1x512xi32>
    %c0_i32_15 = arith.constant 0 : i32
    %44 = vector.broadcast %c0_i32_15 : i32 to vector<1x512xi32>
    %45 = arith.addi %3, %44 : vector<1x512xi32>
    %c16_i32_16 = arith.constant 16 : i32
    %46 = vector.broadcast %c16_i32_16 : i32 to vector<1x512xi32>
    %47 = arith.cmpi slt, %45, %46 : vector<1x512xi32>
    %48 = arith.andi %43, %47 : vector<1x512xi1>
    %c-1_i32_17 = arith.constant -1 : i32
    %49 = vector.broadcast %c-1_i32_17 : i32 to vector<1x512xi32>
    %50 = arith.addi %7, %49 : vector<1x512xi32>
    %c0_i32_18 = arith.constant 0 : i32
    %51 = vector.broadcast %c0_i32_18 : i32 to vector<1x512xi32>
    %52 = arith.cmpi sge, %50, %51 : vector<1x512xi32>
    %53 = arith.andi %48, %52 : vector<1x512xi1>
    %c-1_i32_19 = arith.constant -1 : i32
    %54 = vector.broadcast %c-1_i32_19 : i32 to vector<1x512xi32>
    %55 = arith.addi %7, %54 : vector<1x512xi32>
    %c16_i32_20 = arith.constant 16 : i32
    %56 = vector.broadcast %c16_i32_20 : i32 to vector<1x512xi32>
    %57 = arith.cmpi slt, %55, %56 : vector<1x512xi32>
    %58 = arith.andi %53, %57 : vector<1x512xi1>
    %cst_21 = arith.constant 0.000000e+00 : f32
    %59 = vector.broadcast %cst_21 : f32 to vector<1x512xf32>
    %60 = arith.select %58, %39, %59 : vector<1x512xi1>, vector<1x512xf32>
    %c0_22 = arith.constant 0 : index
    %c1 = arith.constant 1 : index
    %c0_23 = arith.constant 0 : index
    %c0_24 = arith.constant 0 : index
    %61 = vector.load %arg1[%c0_22, %c1, %c0_23, %c0_24] : memref<9x9x12x12xbf16, #tpu.memory_space<vmem>>, vector<1x1x12x12xbf16>
    %62 = vector.shape_cast %61 : vector<1x1x12x12xbf16> to vector<12x12xbf16>
    %63 = vector.extract_strided_slice %62 {offsets = [0, 0], sizes = [12, 1], strides = [1, 1]} : vector<12x12xbf16> to vector<12x1xbf16>
    %64 = arith.extf %63 : vector<12x1xbf16> to vector<12x1xf32>
    %65 = vector.broadcast %64 : vector<12x1xf32> to vector<12x512xf32>
    %66 = vector.broadcast %60 : vector<1x512xf32> to vector<12x512xf32>
    %67 = arith.mulf %65, %66 : vector<12x512xf32>
    %68 = arith.addf %38, %67 : vector<12x512xf32>
    %c15_i32_25 = arith.constant 15 : i32
    %69 = tpu.dynamic_rotate %0 by %c15_i32_25 dim 1 : vector<1x512xf32>, i32 -> vector<1x512xf32>
    %c1_i32 = arith.constant 1 : i32
    %70 = vector.broadcast %c1_i32 : i32 to vector<1x512xi32>
    %71 = arith.addi %3, %70 : vector<1x512xi32>
    %c0_i32_26 = arith.constant 0 : i32
    %72 = vector.broadcast %c0_i32_26 : i32 to vector<1x512xi32>
    %73 = arith.cmpi sge, %71, %72 : vector<1x512xi32>
    %c1_i32_27 = arith.constant 1 : i32
    %74 = vector.broadcast %c1_i32_27 : i32 to vector<1x512xi32>
    %75 = arith.addi %3, %74 : vector<1x512xi32>
    %c16_i32_28 = arith.constant 16 : i32
    %76 = vector.broadcast %c16_i32_28 : i32 to vector<1x512xi32>
    %77 = arith.cmpi slt, %75, %76 : vector<1x512xi32>
    %78 = arith.andi %73, %77 : vector<1x512xi1>
    %c-1_i32_29 = arith.constant -1 : i32
    %79 = vector.broadcast %c-1_i32_29 : i32 to vector<1x512xi32>
    %80 = arith.addi %7, %79 : vector<1x512xi32>
    %c0_i32_30 = arith.constant 0 : i32
    %81 = vector.broadcast %c0_i32_30 : i32 to vector<1x512xi32>
    %82 = arith.cmpi sge, %80, %81 : vector<1x512xi32>
    %83 = arith.andi %78, %82 : vector<1x512xi1>
    %c-1_i32_31 = arith.constant -1 : i32
    %84 = vector.broadcast %c-1_i32_31 : i32 to vector<1x512xi32>
    %85 = arith.addi %7, %84 : vector<1x512xi32>
    %c16_i32_32 = arith.constant 16 : i32
    %86 = vector.broadcast %c16_i32_32 : i32 to vector<1x512xi32>
    %87 = arith.cmpi slt, %85, %86 : vector<1x512xi32>
    %88 = arith.andi %83, %87 : vector<1x512xi1>
    %cst_33 = arith.constant 0.000000e+00 : f32
    %89 = vector.broadcast %cst_33 : f32 to vector<1x512xf32>
    %90 = arith.select %88, %69, %89 : vector<1x512xi1>, vector<1x512xf32>
    %c0_34 = arith.constant 0 : index
    %c2 = arith.constant 2 : index
    %c0_35 = arith.constant 0 : index
    %c0_36 = arith.constant 0 : index
    %91 = vector.load %arg1[%c0_34, %c2, %c0_35, %c0_36] : memref<9x9x12x12xbf16, #tpu.memory_space<vmem>>, vector<1x1x12x12xbf16>
    %92 = vector.shape_cast %91 : vector<1x1x12x12xbf16> to vector<12x12xbf16>
    %93 = vector.extract_strided_slice %92 {offsets = [0, 0], sizes = [12, 1], strides = [1, 1]} : vector<12x12xbf16> to vector<12x1xbf16>
    %94 = arith.extf %93 : vector<12x1xbf16> to vector<12x1xf32>
    %95 = vector.broadcast %94 : vector<12x1xf32> to vector<12x512xf32>
    %96 = vector.broadcast %90 : vector<1x512xf32> to vector<12x512xf32>
    %97 = arith.mulf %95, %96 : vector<12x512xf32>
    %98 = arith.addf %68, %97 : vector<12x512xf32>
    %c1_i32_37 = arith.constant 1 : i32
    %99 = tpu.dynamic_rotate %0 by %c1_i32_37 dim 1 : vector<1x512xf32>, i32 -> vector<1x512xf32>
    %c-1_i32_38 = arith.constant -1 : i32
    %100 = vector.broadcast %c-1_i32_38 : i32 to vector<1x512xi32>
    %101 = arith.addi %3, %100 : vector<1x512xi32>
    %c0_i32_39 = arith.constant 0 : i32
    %102 = vector.broadcast %c0_i32_39 : i32 to vector<1x512xi32>
    %103 = arith.cmpi sge, %101, %102 : vector<1x512xi32>
    %c-1_i32_40 = arith.constant -1 : i32
    %104 = vector.broadcast %c-1_i32_40 : i32 to vector<1x512xi32>
    %105 = arith.addi %3, %104 : vector<1x512xi32>
    %c16_i32_41 = arith.constant 16 : i32
    %106 = vector.broadcast %c16_i32_41 : i32 to vector<1x512xi32>
    %107 = arith.cmpi slt, %105, %106 : vector<1x512xi32>
    %108 = arith.andi %103, %107 : vector<1x512xi1>
    %c0_i32_42 = arith.constant 0 : i32
    %109 = vector.broadcast %c0_i32_42 : i32 to vector<1x512xi32>
    %110 = arith.addi %7, %109 : vector<1x512xi32>
    %c0_i32_43 = arith.constant 0 : i32
    %111 = vector.broadcast %c0_i32_43 : i32 to vector<1x512xi32>
    %112 = arith.cmpi sge, %110, %111 : vector<1x512xi32>
    %113 = arith.andi %108, %112 : vector<1x512xi1>
    %c0_i32_44 = arith.constant 0 : i32
    %114 = vector.broadcast %c0_i32_44 : i32 to vector<1x512xi32>
    %115 = arith.addi %7, %114 : vector<1x512xi32>
    %c16_i32_45 = arith.constant 16 : i32
    %116 = vector.broadcast %c16_i32_45 : i32 to vector<1x512xi32>
    %117 = arith.cmpi slt, %115, %116 : vector<1x512xi32>
    %118 = arith.andi %113, %117 : vector<1x512xi1>
    %cst_46 = arith.constant 0.000000e+00 : f32
    %119 = vector.broadcast %cst_46 : f32 to vector<1x512xf32>
    %120 = arith.select %118, %99, %119 : vector<1x512xi1>, vector<1x512xf32>
    %c0_47 = arith.constant 0 : index
    %c3 = arith.constant 3 : index
    %c0_48 = arith.constant 0 : index
    %c0_49 = arith.constant 0 : index
    %121 = vector.load %arg1[%c0_47, %c3, %c0_48, %c0_49] : memref<9x9x12x12xbf16, #tpu.memory_space<vmem>>, vector<1x1x12x12xbf16>
    %122 = vector.shape_cast %121 : vector<1x1x12x12xbf16> to vector<12x12xbf16>
    %123 = vector.extract_strided_slice %122 {offsets = [0, 0], sizes = [12, 1], strides = [1, 1]} : vector<12x12xbf16> to vector<12x1xbf16>
    %124 = arith.extf %123 : vector<12x1xbf16> to vector<12x1xf32>
    %125 = vector.broadcast %124 : vector<12x1xf32> to vector<12x512xf32>
    %126 = vector.broadcast %120 : vector<1x512xf32> to vector<12x512xf32>
    %127 = arith.mulf %125, %126 : vector<12x512xf32>
    %128 = arith.addf %98, %127 : vector<12x512xf32>
    %c0_50 = arith.constant 0 : index
    %c4 = arith.constant 4 : index
    %c0_51 = arith.constant 0 : index
    %c0_52 = arith.constant 0 : index
    %129 = vector.load %arg1[%c0_50, %c4, %c0_51, %c0_52] : memref<9x9x12x12xbf16, #tpu.memory_space<vmem>>, vector<1x1x12x12xbf16>
    %130 = vector.shape_cast %129 : vector<1x1x12x12xbf16> to vector<12x12xbf16>
    %131 = vector.extract_strided_slice %130 {offsets = [0, 0], sizes = [12, 1], strides = [1, 1]} : vector<12x12xbf16> to vector<12x1xbf16>
    %132 = arith.extf %131 : vector<12x1xbf16> to vector<12x1xf32>
    %133 = vector.broadcast %132 : vector<12x1xf32> to vector<12x512xf32>
    %134 = vector.broadcast %0 : vector<1x512xf32> to vector<12x512xf32>
    %135 = arith.mulf %133, %134 : vector<12x512xf32>
    %136 = arith.addf %128, %135 : vector<12x512xf32>
    %c511_i32 = arith.constant 511 : i32
    %137 = tpu.dynamic_rotate %0 by %c511_i32 dim 1 : vector<1x512xf32>, i32 -> vector<1x512xf32>
    %c1_i32_53 = arith.constant 1 : i32
    %138 = vector.broadcast %c1_i32_53 : i32 to vector<1x512xi32>
    %139 = arith.addi %3, %138 : vector<1x512xi32>
    %c0_i32_54 = arith.constant 0 : i32
    %140 = vector.broadcast %c0_i32_54 : i32 to vector<1x512xi32>
    %141 = arith.cmpi sge, %139, %140 : vector<1x512xi32>
    %c1_i32_55 = arith.constant 1 : i32
    %142 = vector.broadcast %c1_i32_55 : i32 to vector<1x512xi32>
    %143 = arith.addi %3, %142 : vector<1x512xi32>
    %c16_i32_56 = arith.constant 16 : i32
    %144 = vector.broadcast %c16_i32_56 : i32 to vector<1x512xi32>
    %145 = arith.cmpi slt, %143, %144 : vector<1x512xi32>
    %146 = arith.andi %141, %145 : vector<1x512xi1>
    %c0_i32_57 = arith.constant 0 : i32
    %147 = vector.broadcast %c0_i32_57 : i32 to vector<1x512xi32>
    %148 = arith.addi %7, %147 : vector<1x512xi32>
    %c0_i32_58 = arith.constant 0 : i32
    %149 = vector.broadcast %c0_i32_58 : i32 to vector<1x512xi32>
    %150 = arith.cmpi sge, %148, %149 : vector<1x512xi32>
    %151 = arith.andi %146, %150 : vector<1x512xi1>
    %c0_i32_59 = arith.constant 0 : i32
    %152 = vector.broadcast %c0_i32_59 : i32 to vector<1x512xi32>
    %153 = arith.addi %7, %152 : vector<1x512xi32>
    %c16_i32_60 = arith.constant 16 : i32
    %154 = vector.broadcast %c16_i32_60 : i32 to vector<1x512xi32>
    %155 = arith.cmpi slt, %153, %154 : vector<1x512xi32>
    %156 = arith.andi %151, %155 : vector<1x512xi1>
    %cst_61 = arith.constant 0.000000e+00 : f32
    %157 = vector.broadcast %cst_61 : f32 to vector<1x512xf32>
    %158 = arith.select %156, %137, %157 : vector<1x512xi1>, vector<1x512xf32>
    %c0_62 = arith.constant 0 : index
    %c5 = arith.constant 5 : index
    %c0_63 = arith.constant 0 : index
    %c0_64 = arith.constant 0 : index
    %159 = vector.load %arg1[%c0_62, %c5, %c0_63, %c0_64] : memref<9x9x12x12xbf16, #tpu.memory_space<vmem>>, vector<1x1x12x12xbf16>
    %160 = vector.shape_cast %159 : vector<1x1x12x12xbf16> to vector<12x12xbf16>
    %161 = vector.extract_strided_slice %160 {offsets = [0, 0], sizes = [12, 1], strides = [1, 1]} : vector<12x12xbf16> to vector<12x1xbf16>
    %162 = arith.extf %161 : vector<12x1xbf16> to vector<12x1xf32>
    %163 = vector.broadcast %162 : vector<12x1xf32> to vector<12x512xf32>
    %164 = vector.broadcast %158 : vector<1x512xf32> to vector<12x512xf32>
    %165 = arith.mulf %163, %164 : vector<12x512xf32>
    %166 = arith.addf %136, %165 : vector<12x512xf32>
    %c497_i32 = arith.constant 497 : i32
    %167 = tpu.dynamic_rotate %0 by %c497_i32 dim 1 : vector<1x512xf32>, i32 -> vector<1x512xf32>
    %c-1_i32_65 = arith.constant -1 : i32
    %168 = vector.broadcast %c-1_i32_65 : i32 to vector<1x512xi32>
    %169 = arith.addi %3, %168 : vector<1x512xi32>
    %c0_i32_66 = arith.constant 0 : i32
    %170 = vector.broadcast %c0_i32_66 : i32 to vector<1x512xi32>
    %171 = arith.cmpi sge, %169, %170 : vector<1x512xi32>
    %c-1_i32_67 = arith.constant -1 : i32
    %172 = vector.broadcast %c-1_i32_67 : i32 to vector<1x512xi32>
    %173 = arith.addi %3, %172 : vector<1x512xi32>
    %c16_i32_68 = arith.constant 16 : i32
    %174 = vector.broadcast %c16_i32_68 : i32 to vector<1x512xi32>
    %175 = arith.cmpi slt, %173, %174 : vector<1x512xi32>
    %176 = arith.andi %171, %175 : vector<1x512xi1>
    %c1_i32_69 = arith.constant 1 : i32
    %177 = vector.broadcast %c1_i32_69 : i32 to vector<1x512xi32>
    %178 = arith.addi %7, %177 : vector<1x512xi32>
    %c0_i32_70 = arith.constant 0 : i32
    %179 = vector.broadcast %c0_i32_70 : i32 to vector<1x512xi32>
    %180 = arith.cmpi sge, %178, %179 : vector<1x512xi32>
    %181 = arith.andi %176, %180 : vector<1x512xi1>
    %c1_i32_71 = arith.constant 1 : i32
    %182 = vector.broadcast %c1_i32_71 : i32 to vector<1x512xi32>
    %183 = arith.addi %7, %182 : vector<1x512xi32>
    %c16_i32_72 = arith.constant 16 : i32
    %184 = vector.broadcast %c16_i32_72 : i32 to vector<1x512xi32>
    %185 = arith.cmpi slt, %183, %184 : vector<1x512xi32>
    %186 = arith.andi %181, %185 : vector<1x512xi1>
    %cst_73 = arith.constant 0.000000e+00 : f32
    %187 = vector.broadcast %cst_73 : f32 to vector<1x512xf32>
    %188 = arith.select %186, %167, %187 : vector<1x512xi1>, vector<1x512xf32>
    %c0_74 = arith.constant 0 : index
    %c6 = arith.constant 6 : index
    %c0_75 = arith.constant 0 : index
    %c0_76 = arith.constant 0 : index
    %189 = vector.load %arg1[%c0_74, %c6, %c0_75, %c0_76] : memref<9x9x12x12xbf16, #tpu.memory_space<vmem>>, vector<1x1x12x12xbf16>
    %190 = vector.shape_cast %189 : vector<1x1x12x12xbf16> to vector<12x12xbf16>
    %191 = vector.extract_strided_slice %190 {offsets = [0, 0], sizes = [12, 1], strides = [1, 1]} : vector<12x12xbf16> to vector<12x1xbf16>
    %192 = arith.extf %191 : vector<12x1xbf16> to vector<12x1xf32>
    %193 = vector.broadcast %192 : vector<12x1xf32> to vector<12x512xf32>
    %194 = vector.broadcast %188 : vector<1x512xf32> to vector<12x512xf32>
    %195 = arith.mulf %193, %194 : vector<12x512xf32>
    %196 = arith.addf %166, %195 : vector<12x512xf32>
    %c496_i32 = arith.constant 496 : i32
    %197 = tpu.dynamic_rotate %0 by %c496_i32 dim 1 : vector<1x512xf32>, i32 -> vector<1x512xf32>
    %c0_i32_77 = arith.constant 0 : i32
    %198 = vector.broadcast %c0_i32_77 : i32 to vector<1x512xi32>
    %199 = arith.addi %3, %198 : vector<1x512xi32>
    %c0_i32_78 = arith.constant 0 : i32
    %200 = vector.broadcast %c0_i32_78 : i32 to vector<1x512xi32>
    %201 = arith.cmpi sge, %199, %200 : vector<1x512xi32>
    %c0_i32_79 = arith.constant 0 : i32
    %202 = vector.broadcast %c0_i32_79 : i32 to vector<1x512xi32>
    %203 = arith.addi %3, %202 : vector<1x512xi32>
    %c16_i32_80 = arith.constant 16 : i32
    %204 = vector.broadcast %c16_i32_80 : i32 to vector<1x512xi32>
    %205 = arith.cmpi slt, %203, %204 : vector<1x512xi32>
    %206 = arith.andi %201, %205 : vector<1x512xi1>
    %c1_i32_81 = arith.constant 1 : i32
    %207 = vector.broadcast %c1_i32_81 : i32 to vector<1x512xi32>
    %208 = arith.addi %7, %207 : vector<1x512xi32>
    %c0_i32_82 = arith.constant 0 : i32
    %209 = vector.broadcast %c0_i32_82 : i32 to vector<1x512xi32>
    %210 = arith.cmpi sge, %208, %209 : vector<1x512xi32>
    %211 = arith.andi %206, %210 : vector<1x512xi1>
    %c1_i32_83 = arith.constant 1 : i32
    %212 = vector.broadcast %c1_i32_83 : i32 to vector<1x512xi32>
    %213 = arith.addi %7, %212 : vector<1x512xi32>
    %c16_i32_84 = arith.constant 16 : i32
    %214 = vector.broadcast %c16_i32_84 : i32 to vector<1x512xi32>
    %215 = arith.cmpi slt, %213, %214 : vector<1x512xi32>
    %216 = arith.andi %211, %215 : vector<1x512xi1>
    %cst_85 = arith.constant 0.000000e+00 : f32
    %217 = vector.broadcast %cst_85 : f32 to vector<1x512xf32>
    %218 = arith.select %216, %197, %217 : vector<1x512xi1>, vector<1x512xf32>
    %c0_86 = arith.constant 0 : index
    %c7 = arith.constant 7 : index
    %c0_87 = arith.constant 0 : index
    %c0_88 = arith.constant 0 : index
    %219 = vector.load %arg1[%c0_86, %c7, %c0_87, %c0_88] : memref<9x9x12x12xbf16, #tpu.memory_space<vmem>>, vector<1x1x12x12xbf16>
    %220 = vector.shape_cast %219 : vector<1x1x12x12xbf16> to vector<12x12xbf16>
    %221 = vector.extract_strided_slice %220 {offsets = [0, 0], sizes = [12, 1], strides = [1, 1]} : vector<12x12xbf16> to vector<12x1xbf16>
    %222 = arith.extf %221 : vector<12x1xbf16> to vector<12x1xf32>
    %223 = vector.broadcast %222 : vector<12x1xf32> to vector<12x512xf32>
    %224 = vector.broadcast %218 : vector<1x512xf32> to vector<12x512xf32>
    %225 = arith.mulf %223, %224 : vector<12x512xf32>
    %226 = arith.addf %196, %225 : vector<12x512xf32>
    %c495_i32 = arith.constant 495 : i32
    %227 = tpu.dynamic_rotate %0 by %c495_i32 dim 1 : vector<1x512xf32>, i32 -> vector<1x512xf32>
    %c1_i32_89 = arith.constant 1 : i32
    %228 = vector.broadcast %c1_i32_89 : i32 to vector<1x512xi32>
    %229 = arith.addi %3, %228 : vector<1x512xi32>
    %c0_i32_90 = arith.constant 0 : i32
    %230 = vector.broadcast %c0_i32_90 : i32 to vector<1x512xi32>
    %231 = arith.cmpi sge, %229, %230 : vector<1x512xi32>
    %c1_i32_91 = arith.constant 1 : i32
    %232 = vector.broadcast %c1_i32_91 : i32 to vector<1x512xi32>
    %233 = arith.addi %3, %232 : vector<1x512xi32>
    %c16_i32_92 = arith.constant 16 : i32
    %234 = vector.broadcast %c16_i32_92 : i32 to vector<1x512xi32>
    %235 = arith.cmpi slt, %233, %234 : vector<1x512xi32>
    %236 = arith.andi %231, %235 : vector<1x512xi1>
    %c1_i32_93 = arith.constant 1 : i32
    %237 = vector.broadcast %c1_i32_93 : i32 to vector<1x512xi32>
    %238 = arith.addi %7, %237 : vector<1x512xi32>
    %c0_i32_94 = arith.constant 0 : i32
    %239 = vector.broadcast %c0_i32_94 : i32 to vector<1x512xi32>
    %240 = arith.cmpi sge, %238, %239 : vector<1x512xi32>
    %241 = arith.andi %236, %240 : vector<1x512xi1>
    %c1_i32_95 = arith.constant 1 : i32
    %242 = vector.broadcast %c1_i32_95 : i32 to vector<1x512xi32>
    %243 = arith.addi %7, %242 : vector<1x512xi32>
    %c16_i32_96 = arith.constant 16 : i32
    %244 = vector.broadcast %c16_i32_96 : i32 to vector<1x512xi32>
    %245 = arith.cmpi slt, %243, %244 : vector<1x512xi32>
    %246 = arith.andi %241, %245 : vector<1x512xi1>
    %cst_97 = arith.constant 0.000000e+00 : f32
    %247 = vector.broadcast %cst_97 : f32 to vector<1x512xf32>
    %248 = arith.select %246, %227, %247 : vector<1x512xi1>, vector<1x512xf32>
    %c0_98 = arith.constant 0 : index
    %c8 = arith.constant 8 : index
    %c0_99 = arith.constant 0 : index
    %c0_100 = arith.constant 0 : index
    %249 = vector.load %arg1[%c0_98, %c8, %c0_99, %c0_100] : memref<9x9x12x12xbf16, #tpu.memory_space<vmem>>, vector<1x1x12x12xbf16>
    %250 = vector.shape_cast %249 : vector<1x1x12x12xbf16> to vector<12x12xbf16>
    %251 = vector.extract_strided_slice %250 {offsets = [0, 0], sizes = [12, 1], strides = [1, 1]} : vector<12x12xbf16> to vector<12x1xbf16>
    %252 = arith.extf %251 : vector<12x1xbf16> to vector<12x1xf32>
    %253 = vector.broadcast %252 : vector<12x1xf32> to vector<12x512xf32>
    %254 = vector.broadcast %248 : vector<1x512xf32> to vector<12x512xf32>
    %255 = arith.mulf %253, %254 : vector<12x512xf32>
    %256 = arith.addf %226, %255 : vector<12x512xf32>
    %c0_101 = arith.constant 0 : index
    %c0_102 = arith.constant 0 : index
    %c0_103 = arith.constant 0 : index
    %257 = vector.load %arg2[%c0_101, %c0_102, %c0_103] : memref<9x12x1xf32, #tpu.memory_space<vmem>>, vector<1x12x1xf32>
    %258 = vector.shape_cast %257 : vector<1x12x1xf32> to vector<12x1xf32>
    %259 = vector.broadcast %258 : vector<12x1xf32> to vector<12x512xf32>
    %260 = arith.addf %256, %259 : vector<12x512xf32>
    %cst_104 = arith.constant 0.000000e+00 : f32
    %261 = vector.broadcast %cst_104 : f32 to vector<12x512xf32>
    %262 = arith.maximumf %260, %261 : vector<12x512xf32>
    %263 = tpu.iota {dimensions = array<i32: 1>} : vector<1x512xi32>
    %c15_i32_105 = arith.constant 15 : i32
    %264 = vector.broadcast %c15_i32_105 : i32 to vector<1x512xi32>
    %265 = arith.andi %263, %264 : vector<1x512xi32>
    %c4_i32_106 = arith.constant 4 : i32
    %266 = vector.broadcast %c4_i32_106 : i32 to vector<1x512xi32>
    %267 = arith.shrsi %263, %266 : vector<1x512xi32>
    %c15_i32_107 = arith.constant 15 : i32
    %268 = vector.broadcast %c15_i32_107 : i32 to vector<1x512xi32>
    %269 = arith.andi %267, %268 : vector<1x512xi32>
    %cst_108 = arith.constant 0.000000e+00 : f32
    %270 = vector.broadcast %cst_108 : f32 to vector<12x512xf32>
    %c17_i32_109 = arith.constant 17 : i32
    %271 = tpu.dynamic_rotate %262 by %c17_i32_109 dim 1 : vector<12x512xf32>, i32 -> vector<12x512xf32>
    %c-1_i32_110 = arith.constant -1 : i32
    %272 = vector.broadcast %c-1_i32_110 : i32 to vector<1x512xi32>
    %273 = arith.addi %265, %272 : vector<1x512xi32>
    %c0_i32_111 = arith.constant 0 : i32
    %274 = vector.broadcast %c0_i32_111 : i32 to vector<1x512xi32>
    %275 = arith.cmpi sge, %273, %274 : vector<1x512xi32>
    %c-1_i32_112 = arith.constant -1 : i32
    %276 = vector.broadcast %c-1_i32_112 : i32 to vector<1x512xi32>
    %277 = arith.addi %265, %276 : vector<1x512xi32>
    %c16_i32_113 = arith.constant 16 : i32
    %278 = vector.broadcast %c16_i32_113 : i32 to vector<1x512xi32>
    %279 = arith.cmpi slt, %277, %278 : vector<1x512xi32>
    %280 = arith.andi %275, %279 : vector<1x512xi1>
    %c-1_i32_114 = arith.constant -1 : i32
    %281 = vector.broadcast %c-1_i32_114 : i32 to vector<1x512xi32>
    %282 = arith.addi %269, %281 : vector<1x512xi32>
    %c0_i32_115 = arith.constant 0 : i32
    %283 = vector.broadcast %c0_i32_115 : i32 to vector<1x512xi32>
    %284 = arith.cmpi sge, %282, %283 : vector<1x512xi32>
    %285 = arith.andi %280, %284 : vector<1x512xi1>
    %c-1_i32_116 = arith.constant -1 : i32
    %286 = vector.broadcast %c-1_i32_116 : i32 to vector<1x512xi32>
    %287 = arith.addi %269, %286 : vector<1x512xi32>
    %c16_i32_117 = arith.constant 16 : i32
    %288 = vector.broadcast %c16_i32_117 : i32 to vector<1x512xi32>
    %289 = arith.cmpi slt, %287, %288 : vector<1x512xi32>
    %290 = arith.andi %285, %289 : vector<1x512xi1>
    %cst_118 = arith.constant 0.000000e+00 : f32
    %291 = vector.shape_cast %290 : vector<1x512xi1> to vector<1x512xi1>
    %292 = vector.broadcast %291 : vector<1x512xi1> to vector<12x512xi1>
    %293 = vector.broadcast %cst_118 : f32 to vector<12x512xf32>
    %294 = arith.select %292, %271, %293 : vector<12x512xi1>, vector<12x512xf32>
    %c1_119 = arith.constant 1 : index
    %c0_120 = arith.constant 0 : index
    %c0_121 = arith.constant 0 : index
    %c0_122 = arith.constant 0 : index
    %295 = vector.load %arg1[%c1_119, %c0_120, %c0_121, %c0_122] : memref<9x9x12x12xbf16, #tpu.memory_space<vmem>>, vector<1x1x12x12xbf16>
    %296 = vector.shape_cast %295 : vector<1x1x12x12xbf16> to vector<12x12xbf16>
    %297 = arith.truncf %294 : vector<12x512xf32> to vector<12x512xbf16>
    %cst_123 = arith.constant dense<0.000000e+00> : vector<12x512xf32>
    %298 = tpu.matmul %296, %297, %cst_123 {dimension_numbers = #tpu.dot_dimension_numbers<[1], [0], [0], [1], [0, 0, 1, 1], [], []>} : vector<12x12xbf16>, vector<12x512xbf16>, vector<12x512xf32> -> vector<12x512xf32>
    %299 = arith.addf %270, %298 : vector<12x512xf32>
    %c16_i32_124 = arith.constant 16 : i32
    %300 = tpu.dynamic_rotate %262 by %c16_i32_124 dim 1 : vector<12x512xf32>, i32 -> vector<12x512xf32>
    %c0_i32_125 = arith.constant 0 : i32
    %301 = vector.broadcast %c0_i32_125 : i32 to vector<1x512xi32>
    %302 = arith.addi %265, %301 : vector<1x512xi32>
    %c0_i32_126 = arith.constant 0 : i32
    %303 = vector.broadcast %c0_i32_126 : i32 to vector<1x512xi32>
    %304 = arith.cmpi sge, %302, %303 : vector<1x512xi32>
    %c0_i32_127 = arith.constant 0 : i32
    %305 = vector.broadcast %c0_i32_127 : i32 to vector<1x512xi32>
    %306 = arith.addi %265, %305 : vector<1x512xi32>
    %c16_i32_128 = arith.constant 16 : i32
    %307 = vector.broadcast %c16_i32_128 : i32 to vector<1x512xi32>
    %308 = arith.cmpi slt, %306, %307 : vector<1x512xi32>
    %309 = arith.andi %304, %308 : vector<1x512xi1>
    %c-1_i32_129 = arith.constant -1 : i32
    %310 = vector.broadcast %c-1_i32_129 : i32 to vector<1x512xi32>
    %311 = arith.addi %269, %310 : vector<1x512xi32>
    %c0_i32_130 = arith.constant 0 : i32
    %312 = vector.broadcast %c0_i32_130 : i32 to vector<1x512xi32>
    %313 = arith.cmpi sge, %311, %312 : vector<1x512xi32>
    %314 = arith.andi %309, %313 : vector<1x512xi1>
    %c-1_i32_131 = arith.constant -1 : i32
    %315 = vector.broadcast %c-1_i32_131 : i32 to vector<1x512xi32>
    %316 = arith.addi %269, %315 : vector<1x512xi32>
    %c16_i32_132 = arith.constant 16 : i32
    %317 = vector.broadcast %c16_i32_132 : i32 to vector<1x512xi32>
    %318 = arith.cmpi slt, %316, %317 : vector<1x512xi32>
    %319 = arith.andi %314, %318 : vector<1x512xi1>
    %cst_133 = arith.constant 0.000000e+00 : f32
    %320 = vector.shape_cast %319 : vector<1x512xi1> to vector<1x512xi1>
    %321 = vector.broadcast %320 : vector<1x512xi1> to vector<12x512xi1>
    %322 = vector.broadcast %cst_133 : f32 to vector<12x512xf32>
    %323 = arith.select %321, %300, %322 : vector<12x512xi1>, vector<12x512xf32>
    %c1_134 = arith.constant 1 : index
    %c1_135 = arith.constant 1 : index
    %c0_136 = arith.constant 0 : index
    %c0_137 = arith.constant 0 : index
    %324 = vector.load %arg1[%c1_134, %c1_135, %c0_136, %c0_137] : memref<9x9x12x12xbf16, #tpu.memory_space<vmem>>, vector<1x1x12x12xbf16>
    %325 = vector.shape_cast %324 : vector<1x1x12x12xbf16> to vector<12x12xbf16>
    %326 = arith.truncf %323 : vector<12x512xf32> to vector<12x512xbf16>
    %cst_138 = arith.constant dense<0.000000e+00> : vector<12x512xf32>
    %327 = tpu.matmul %325, %326, %cst_138 {dimension_numbers = #tpu.dot_dimension_numbers<[1], [0], [0], [1], [0, 0, 1, 1], [], []>} : vector<12x12xbf16>, vector<12x512xbf16>, vector<12x512xf32> -> vector<12x512xf32>
    %328 = arith.addf %299, %327 : vector<12x512xf32>
    %c15_i32_139 = arith.constant 15 : i32
    %329 = tpu.dynamic_rotate %262 by %c15_i32_139 dim 1 : vector<12x512xf32>, i32 -> vector<12x512xf32>
    %c1_i32_140 = arith.constant 1 : i32
    %330 = vector.broadcast %c1_i32_140 : i32 to vector<1x512xi32>
    %331 = arith.addi %265, %330 : vector<1x512xi32>
    %c0_i32_141 = arith.constant 0 : i32
    %332 = vector.broadcast %c0_i32_141 : i32 to vector<1x512xi32>
    %333 = arith.cmpi sge, %331, %332 : vector<1x512xi32>
    %c1_i32_142 = arith.constant 1 : i32
    %334 = vector.broadcast %c1_i32_142 : i32 to vector<1x512xi32>
    %335 = arith.addi %265, %334 : vector<1x512xi32>
    %c16_i32_143 = arith.constant 16 : i32
    %336 = vector.broadcast %c16_i32_143 : i32 to vector<1x512xi32>
    %337 = arith.cmpi slt, %335, %336 : vector<1x512xi32>
    %338 = arith.andi %333, %337 : vector<1x512xi1>
    %c-1_i32_144 = arith.constant -1 : i32
    %339 = vector.broadcast %c-1_i32_144 : i32 to vector<1x512xi32>
    %340 = arith.addi %269, %339 : vector<1x512xi32>
    %c0_i32_145 = arith.constant 0 : i32
    %341 = vector.broadcast %c0_i32_145 : i32 to vector<1x512xi32>
    %342 = arith.cmpi sge, %340, %341 : vector<1x512xi32>
    %343 = arith.andi %338, %342 : vector<1x512xi1>
    %c-1_i32_146 = arith.constant -1 : i32
    %344 = vector.broadcast %c-1_i32_146 : i32 to vector<1x512xi32>
    %345 = arith.addi %269, %344 : vector<1x512xi32>
    %c16_i32_147 = arith.constant 16 : i32
    %346 = vector.broadcast %c16_i32_147 : i32 to vector<1x512xi32>
    %347 = arith.cmpi slt, %345, %346 : vector<1x512xi32>
    %348 = arith.andi %343, %347 : vector<1x512xi1>
    %cst_148 = arith.constant 0.000000e+00 : f32
    %349 = vector.shape_cast %348 : vector<1x512xi1> to vector<1x512xi1>
    %350 = vector.broadcast %349 : vector<1x512xi1> to vector<12x512xi1>
    %351 = vector.broadcast %cst_148 : f32 to vector<12x512xf32>
    %352 = arith.select %350, %329, %351 : vector<12x512xi1>, vector<12x512xf32>
    %c1_149 = arith.constant 1 : index
    %c2_150 = arith.constant 2 : index
    %c0_151 = arith.constant 0 : index
    %c0_152 = arith.constant 0 : index
    %353 = vector.load %arg1[%c1_149, %c2_150, %c0_151, %c0_152] : memref<9x9x12x12xbf16, #tpu.memory_space<vmem>>, vector<1x1x12x12xbf16>
    %354 = vector.shape_cast %353 : vector<1x1x12x12xbf16> to vector<12x12xbf16>
    %355 = arith.truncf %352 : vector<12x512xf32> to vector<12x512xbf16>
    %cst_153 = arith.constant dense<0.000000e+00> : vector<12x512xf32>
    %356 = tpu.matmul %354, %355, %cst_153 {dimension_numbers = #tpu.dot_dimension_numbers<[1], [0], [0], [1], [0, 0, 1, 1], [], []>} : vector<12x12xbf16>, vector<12x512xbf16>, vector<12x512xf32> -> vector<12x512xf32>
    %357 = arith.addf %328, %356 : vector<12x512xf32>
    %c1_i32_154 = arith.constant 1 : i32
    %358 = tpu.dynamic_rotate %262 by %c1_i32_154 dim 1 : vector<12x512xf32>, i32 -> vector<12x512xf32>
    %c-1_i32_155 = arith.constant -1 : i32
    %359 = vector.broadcast %c-1_i32_155 : i32 to vector<1x512xi32>
    %360 = arith.addi %265, %359 : vector<1x512xi32>
    %c0_i32_156 = arith.constant 0 : i32
    %361 = vector.broadcast %c0_i32_156 : i32 to vector<1x512xi32>
    %362 = arith.cmpi sge, %360, %361 : vector<1x512xi32>
    %c-1_i32_157 = arith.constant -1 : i32
    %363 = vector.broadcast %c-1_i32_157 : i32 to vector<1x512xi32>
    %364 = arith.addi %265, %363 : vector<1x512xi32>
    %c16_i32_158 = arith.constant 16 : i32
    %365 = vector.broadcast %c16_i32_158 : i32 to vector<1x512xi32>
    %366 = arith.cmpi slt, %364, %365 : vector<1x512xi32>
    %367 = arith.andi %362, %366 : vector<1x512xi1>
    %c0_i32_159 = arith.constant 0 : i32
    %368 = vector.broadcast %c0_i32_159 : i32 to vector<1x512xi32>
    %369 = arith.addi %269, %368 : vector<1x512xi32>
    %c0_i32_160 = arith.constant 0 : i32
    %370 = vector.broadcast %c0_i32_160 : i32 to vector<1x512xi32>
    %371 = arith.cmpi sge, %369, %370 : vector<1x512xi32>
    %372 = arith.andi %367, %371 : vector<1x512xi1>
    %c0_i32_161 = arith.constant 0 : i32
    %373 = vector.broadcast %c0_i32_161 : i32 to vector<1x512xi32>
    %374 = arith.addi %269, %373 : vector<1x512xi32>
    %c16_i32_162 = arith.constant 16 : i32
    %375 = vector.broadcast %c16_i32_162 : i32 to vector<1x512xi32>
    %376 = arith.cmpi slt, %374, %375 : vector<1x512xi32>
    %377 = arith.andi %372, %376 : vector<1x512xi1>
    %cst_163 = arith.constant 0.000000e+00 : f32
    %378 = vector.shape_cast %377 : vector<1x512xi1> to vector<1x512xi1>
    %379 = vector.broadcast %378 : vector<1x512xi1> to vector<12x512xi1>
    %380 = vector.broadcast %cst_163 : f32 to vector<12x512xf32>
    %381 = arith.select %379, %358, %380 : vector<12x512xi1>, vector<12x512xf32>
    %c1_164 = arith.constant 1 : index
    %c3_165 = arith.constant 3 : index
    %c0_166 = arith.constant 0 : index
    %c0_167 = arith.constant 0 : index
    %382 = vector.load %arg1[%c1_164, %c3_165, %c0_166, %c0_167] : memref<9x9x12x12xbf16, #tpu.memory_space<vmem>>, vector<1x1x12x12xbf16>
    %383 = vector.shape_cast %382 : vector<1x1x12x12xbf16> to vector<12x12xbf16>
    %384 = arith.truncf %381 : vector<12x512xf32> to vector<12x512xbf16>
    %cst_168 = arith.constant dense<0.000000e+00> : vector<12x512xf32>
    %385 = tpu.matmul %383, %384, %cst_168 {dimension_numbers = #tpu.dot_dimension_numbers<[1], [0], [0], [1], [0, 0, 1, 1], [], []>} : vector<12x12xbf16>, vector<12x512xbf16>, vector<12x512xf32> -> vector<12x512xf32>
    %386 = arith.addf %357, %385 : vector<12x512xf32>
    %c1_169 = arith.constant 1 : index
    %c4_170 = arith.constant 4 : index
    %c0_171 = arith.constant 0 : index
    %c0_172 = arith.constant 0 : index
    %387 = vector.load %arg1[%c1_169, %c4_170, %c0_171, %c0_172] : memref<9x9x12x12xbf16, #tpu.memory_space<vmem>>, vector<1x1x12x12xbf16>
    %388 = vector.shape_cast %387 : vector<1x1x12x12xbf16> to vector<12x12xbf16>
    %389 = arith.truncf %262 : vector<12x512xf32> to vector<12x512xbf16>
    %cst_173 = arith.constant dense<0.000000e+00> : vector<12x512xf32>
    %390 = tpu.matmul %388, %389, %cst_173 {dimension_numbers = #tpu.dot_dimension_numbers<[1], [0], [0], [1], [0, 0, 1, 1], [], []>} : vector<12x12xbf16>, vector<12x512xbf16>, vector<12x512xf32> -> vector<12x512xf32>
    %391 = arith.addf %386, %390 : vector<12x512xf32>
    %c511_i32_174 = arith.constant 511 : i32
    %392 = tpu.dynamic_rotate %262 by %c511_i32_174 dim 1 : vector<12x512xf32>, i32 -> vector<12x512xf32>
    %c1_i32_175 = arith.constant 1 : i32
    %393 = vector.broadcast %c1_i32_175 : i32 to vector<1x512xi32>
    %394 = arith.addi %265, %393 : vector<1x512xi32>
    %c0_i32_176 = arith.constant 0 : i32
    %395 = vector.broadcast %c0_i32_176 : i32 to vector<1x512xi32>
    %396 = arith.cmpi sge, %394, %395 : vector<1x512xi32>
    %c1_i32_177 = arith.constant 1 : i32
    %397 = vector.broadcast %c1_i32_177 : i32 to vector<1x512xi32>
    %398 = arith.addi %265, %397 : vector<1x512xi32>
    %c16_i32_178 = arith.constant 16 : i32
    %399 = vector.broadcast %c16_i32_178 : i32 to vector<1x512xi32>
    %400 = arith.cmpi slt, %398, %399 : vector<1x512xi32>
    %401 = arith.andi %396, %400 : vector<1x512xi1>
    %c0_i32_179 = arith.constant 0 : i32
    %402 = vector.broadcast %c0_i32_179 : i32 to vector<1x512xi32>
    %403 = arith.addi %269, %402 : vector<1x512xi32>
    %c0_i32_180 = arith.constant 0 : i32
    %404 = vector.broadcast %c0_i32_180 : i32 to vector<1x512xi32>
    %405 = arith.cmpi sge, %403, %404 : vector<1x512xi32>
    %406 = arith.andi %401, %405 : vector<1x512xi1>
    %c0_i32_181 = arith.constant 0 : i32
    %407 = vector.broadcast %c0_i32_181 : i32 to vector<1x512xi32>
    %408 = arith.addi %269, %407 : vector<1x512xi32>
    %c16_i32_182 = arith.constant 16 : i32
    %409 = vector.broadcast %c16_i32_182 : i32 to vector<1x512xi32>
    %410 = arith.cmpi slt, %408, %409 : vector<1x512xi32>
    %411 = arith.andi %406, %410 : vector<1x512xi1>
    %cst_183 = arith.constant 0.000000e+00 : f32
    %412 = vector.shape_cast %411 : vector<1x512xi1> to vector<1x512xi1>
    %413 = vector.broadcast %412 : vector<1x512xi1> to vector<12x512xi1>
    %414 = vector.broadcast %cst_183 : f32 to vector<12x512xf32>
    %415 = arith.select %413, %392, %414 : vector<12x512xi1>, vector<12x512xf32>
    %c1_184 = arith.constant 1 : index
    %c5_185 = arith.constant 5 : index
    %c0_186 = arith.constant 0 : index
    %c0_187 = arith.constant 0 : index
    %416 = vector.load %arg1[%c1_184, %c5_185, %c0_186, %c0_187] : memref<9x9x12x12xbf16, #tpu.memory_space<vmem>>, vector<1x1x12x12xbf16>
    %417 = vector.shape_cast %416 : vector<1x1x12x12xbf16> to vector<12x12xbf16>
    %418 = arith.truncf %415 : vector<12x512xf32> to vector<12x512xbf16>
    %cst_188 = arith.constant dense<0.000000e+00> : vector<12x512xf32>
    %419 = tpu.matmul %417, %418, %cst_188 {dimension_numbers = #tpu.dot_dimension_numbers<[1], [0], [0], [1], [0, 0, 1, 1], [], []>} : vector<12x12xbf16>, vector<12x512xbf16>, vector<12x512xf32> -> vector<12x512xf32>
    %420 = arith.addf %391, %419 : vector<12x512xf32>
    %c497_i32_189 = arith.constant 497 : i32
    %421 = tpu.dynamic_rotate %262 by %c497_i32_189 dim 1 : vector<12x512xf32>, i32 -> vector<12x512xf32>
    %c-1_i32_190 = arith.constant -1 : i32
    %422 = vector.broadcast %c-1_i32_190 : i32 to vector<1x512xi32>
    %423 = arith.addi %265, %422 : vector<1x512xi32>
    %c0_i32_191 = arith.constant 0 : i32
    %424 = vector.broadcast %c0_i32_191 : i32 to vector<1x512xi32>
    %425 = arith.cmpi sge, %423, %424 : vector<1x512xi32>
    %c-1_i32_192 = arith.constant -1 : i32
    %426 = vector.broadcast %c-1_i32_192 : i32 to vector<1x512xi32>
    %427 = arith.addi %265, %426 : vector<1x512xi32>
    %c16_i32_193 = arith.constant 16 : i32
    %428 = vector.broadcast %c16_i32_193 : i32 to vector<1x512xi32>
    %429 = arith.cmpi slt, %427, %428 : vector<1x512xi32>
    %430 = arith.andi %425, %429 : vector<1x512xi1>
    %c1_i32_194 = arith.constant 1 : i32
    %431 = vector.broadcast %c1_i32_194 : i32 to vector<1x512xi32>
    %432 = arith.addi %269, %431 : vector<1x512xi32>
    %c0_i32_195 = arith.constant 0 : i32
    %433 = vector.broadcast %c0_i32_195 : i32 to vector<1x512xi32>
    %434 = arith.cmpi sge, %432, %433 : vector<1x512xi32>
    %435 = arith.andi %430, %434 : vector<1x512xi1>
    %c1_i32_196 = arith.constant 1 : i32
    %436 = vector.broadcast %c1_i32_196 : i32 to vector<1x512xi32>
    %437 = arith.addi %269, %436 : vector<1x512xi32>
    %c16_i32_197 = arith.constant 16 : i32
    %438 = vector.broadcast %c16_i32_197 : i32 to vector<1x512xi32>
    %439 = arith.cmpi slt, %437, %438 : vector<1x512xi32>
    %440 = arith.andi %435, %439 : vector<1x512xi1>
    %cst_198 = arith.constant 0.000000e+00 : f32
    %441 = vector.shape_cast %440 : vector<1x512xi1> to vector<1x512xi1>
    %442 = vector.broadcast %441 : vector<1x512xi1> to vector<12x512xi1>
    %443 = vector.broadcast %cst_198 : f32 to vector<12x512xf32>
    %444 = arith.select %442, %421, %443 : vector<12x512xi1>, vector<12x512xf32>
    %c1_199 = arith.constant 1 : index
    %c6_200 = arith.constant 6 : index
    %c0_201 = arith.constant 0 : index
    %c0_202 = arith.constant 0 : index
    %445 = vector.load %arg1[%c1_199, %c6_200, %c0_201, %c0_202] : memref<9x9x12x12xbf16, #tpu.memory_space<vmem>>, vector<1x1x12x12xbf16>
    %446 = vector.shape_cast %445 : vector<1x1x12x12xbf16> to vector<12x12xbf16>
    %447 = arith.truncf %444 : vector<12x512xf32> to vector<12x512xbf16>
    %cst_203 = arith.constant dense<0.000000e+00> : vector<12x512xf32>
    %448 = tpu.matmul %446, %447, %cst_203 {dimension_numbers = #tpu.dot_dimension_numbers<[1], [0], [0], [1], [0, 0, 1, 1], [], []>} : vector<12x12xbf16>, vector<12x512xbf16>, vector<12x512xf32> -> vector<12x512xf32>
    %449 = arith.addf %420, %448 : vector<12x512xf32>
    %c496_i32_204 = arith.constant 496 : i32
    %450 = tpu.dynamic_rotate %262 by %c496_i32_204 dim 1 : vector<12x512xf32>, i32 -> vector<12x512xf32>
    %c0_i32_205 = arith.constant 0 : i32
    %451 = vector.broadcast %c0_i32_205 : i32 to vector<1x512xi32>
    %452 = arith.addi %265, %451 : vector<1x512xi32>
    %c0_i32_206 = arith.constant 0 : i32
    %453 = vector.broadcast %c0_i32_206 : i32 to vector<1x512xi32>
    %454 = arith.cmpi sge, %452, %453 : vector<1x512xi32>
    %c0_i32_207 = arith.constant 0 : i32
    %455 = vector.broadcast %c0_i32_207 : i32 to vector<1x512xi32>
    %456 = arith.addi %265, %455 : vector<1x512xi32>
    %c16_i32_208 = arith.constant 16 : i32
    %457 = vector.broadcast %c16_i32_208 : i32 to vector<1x512xi32>
    %458 = arith.cmpi slt, %456, %457 : vector<1x512xi32>
    %459 = arith.andi %454, %458 : vector<1x512xi1>
    %c1_i32_209 = arith.constant 1 : i32
    %460 = vector.broadcast %c1_i32_209 : i32 to vector<1x512xi32>
    %461 = arith.addi %269, %460 : vector<1x512xi32>
    %c0_i32_210 = arith.constant 0 : i32
    %462 = vector.broadcast %c0_i32_210 : i32 to vector<1x512xi32>
    %463 = arith.cmpi sge, %461, %462 : vector<1x512xi32>
    %464 = arith.andi %459, %463 : vector<1x512xi1>
    %c1_i32_211 = arith.constant 1 : i32
    %465 = vector.broadcast %c1_i32_211 : i32 to vector<1x512xi32>
    %466 = arith.addi %269, %465 : vector<1x512xi32>
    %c16_i32_212 = arith.constant 16 : i32
    %467 = vector.broadcast %c16_i32_212 : i32 to vector<1x512xi32>
    %468 = arith.cmpi slt, %466, %467 : vector<1x512xi32>
    %469 = arith.andi %464, %468 : vector<1x512xi1>
    %cst_213 = arith.constant 0.000000e+00 : f32
    %470 = vector.shape_cast %469 : vector<1x512xi1> to vector<1x512xi1>
    %471 = vector.broadcast %470 : vector<1x512xi1> to vector<12x512xi1>
    %472 = vector.broadcast %cst_213 : f32 to vector<12x512xf32>
    %473 = arith.select %471, %450, %472 : vector<12x512xi1>, vector<12x512xf32>
    %c1_214 = arith.constant 1 : index
    %c7_215 = arith.constant 7 : index
    %c0_216 = arith.constant 0 : index
    %c0_217 = arith.constant 0 : index
    %474 = vector.load %arg1[%c1_214, %c7_215, %c0_216, %c0_217] : memref<9x9x12x12xbf16, #tpu.memory_space<vmem>>, vector<1x1x12x12xbf16>
    %475 = vector.shape_cast %474 : vector<1x1x12x12xbf16> to vector<12x12xbf16>
    %476 = arith.truncf %473 : vector<12x512xf32> to vector<12x512xbf16>
    %cst_218 = arith.constant dense<0.000000e+00> : vector<12x512xf32>
    %477 = tpu.matmul %475, %476, %cst_218 {dimension_numbers = #tpu.dot_dimension_numbers<[1], [0], [0], [1], [0, 0, 1, 1], [], []>} : vector<12x12xbf16>, vector<12x512xbf16>, vector<12x512xf32> -> vector<12x512xf32>
    %478 = arith.addf %449, %477 : vector<12x512xf32>
    %c495_i32_219 = arith.constant 495 : i32
    %479 = tpu.dynamic_rotate %262 by %c495_i32_219 dim 1 : vector<12x512xf32>, i32 -> vector<12x512xf32>
    %c1_i32_220 = arith.constant 1 : i32
    %480 = vector.broadcast %c1_i32_220 : i32 to vector<1x512xi32>
    %481 = arith.addi %265, %480 : vector<1x512xi32>
    %c0_i32_221 = arith.constant 0 : i32
    %482 = vector.broadcast %c0_i32_221 : i32 to vector<1x512xi32>
    %483 = arith.cmpi sge, %481, %482 : vector<1x512xi32>
    %c1_i32_222 = arith.constant 1 : i32
    %484 = vector.broadcast %c1_i32_222 : i32 to vector<1x512xi32>
    %485 = arith.addi %265, %484 : vector<1x512xi32>
    %c16_i32_223 = arith.constant 16 : i32
    %486 = vector.broadcast %c16_i32_223 : i32 to vector<1x512xi32>
    %487 = arith.cmpi slt, %485, %486 : vector<1x512xi32>
    %488 = arith.andi %483, %487 : vector<1x512xi1>
    %c1_i32_224 = arith.constant 1 : i32
    %489 = vector.broadcast %c1_i32_224 : i32 to vector<1x512xi32>
    %490 = arith.addi %269, %489 : vector<1x512xi32>
    %c0_i32_225 = arith.constant 0 : i32
    %491 = vector.broadcast %c0_i32_225 : i32 to vector<1x512xi32>
    %492 = arith.cmpi sge, %490, %491 : vector<1x512xi32>
    %493 = arith.andi %488, %492 : vector<1x512xi1>
    %c1_i32_226 = arith.constant 1 : i32
    %494 = vector.broadcast %c1_i32_226 : i32 to vector<1x512xi32>
    %495 = arith.addi %269, %494 : vector<1x512xi32>
    %c16_i32_227 = arith.constant 16 : i32
    %496 = vector.broadcast %c16_i32_227 : i32 to vector<1x512xi32>
    %497 = arith.cmpi slt, %495, %496 : vector<1x512xi32>
    %498 = arith.andi %493, %497 : vector<1x512xi1>
    %cst_228 = arith.constant 0.000000e+00 : f32
    %499 = vector.shape_cast %498 : vector<1x512xi1> to vector<1x512xi1>
    %500 = vector.broadcast %499 : vector<1x512xi1> to vector<12x512xi1>
    %501 = vector.broadcast %cst_228 : f32 to vector<12x512xf32>
    %502 = arith.select %500, %479, %501 : vector<12x512xi1>, vector<12x512xf32>
    %c1_229 = arith.constant 1 : index
    %c8_230 = arith.constant 8 : index
    %c0_231 = arith.constant 0 : index
    %c0_232 = arith.constant 0 : index
    %503 = vector.load %arg1[%c1_229, %c8_230, %c0_231, %c0_232] : memref<9x9x12x12xbf16, #tpu.memory_space<vmem>>, vector<1x1x12x12xbf16>
    %504 = vector.shape_cast %503 : vector<1x1x12x12xbf16> to vector<12x12xbf16>
    %505 = arith.truncf %502 : vector<12x512xf32> to vector<12x512xbf16>
    %cst_233 = arith.constant dense<0.000000e+00> : vector<12x512xf32>
    %506 = tpu.matmul %504, %505, %cst_233 {dimension_numbers = #tpu.dot_dimension_numbers<[1], [0], [0], [1], [0, 0, 1, 1], [], []>} : vector<12x12xbf16>, vector<12x512xbf16>, vector<12x512xf32> -> vector<12x512xf32>
    %507 = arith.addf %478, %506 : vector<12x512xf32>
    %c1_234 = arith.constant 1 : index
    %c0_235 = arith.constant 0 : index
    %c0_236 = arith.constant 0 : index
    %508 = vector.load %arg2[%c1_234, %c0_235, %c0_236] : memref<9x12x1xf32, #tpu.memory_space<vmem>>, vector<1x12x1xf32>
    %509 = vector.shape_cast %508 : vector<1x12x1xf32> to vector<12x1xf32>
    %510 = vector.broadcast %509 : vector<12x1xf32> to vector<12x512xf32>
    %511 = arith.addf %507, %510 : vector<12x512xf32>
    %cst_237 = arith.constant 0.000000e+00 : f32
    %512 = vector.broadcast %cst_237 : f32 to vector<12x512xf32>
    %513 = arith.maximumf %511, %512 : vector<12x512xf32>
    %c511_i32_238 = arith.constant 511 : i32
    %514 = tpu.dynamic_rotate %513 by %c511_i32_238 dim 1 : vector<12x512xf32>, i32 -> vector<12x512xf32>
    %c496_i32_239 = arith.constant 496 : i32
    %515 = tpu.dynamic_rotate %513 by %c496_i32_239 dim 1 : vector<12x512xf32>, i32 -> vector<12x512xf32>
    %c495_i32_240 = arith.constant 495 : i32
    %516 = tpu.dynamic_rotate %513 by %c495_i32_240 dim 1 : vector<12x512xf32>, i32 -> vector<12x512xf32>
    %517 = arith.maximumf %513, %514 : vector<12x512xf32>
    %518 = arith.maximumf %515, %516 : vector<12x512xf32>
    %519 = arith.maximumf %517, %518 : vector<12x512xf32>
    %520 = tpu.iota {dimensions = array<i32: 0>} : vector<512x128xi32>
    %521 = tpu.iota {dimensions = array<i32: 1>} : vector<512x128xi32>
    %c6_i32 = arith.constant 6 : i32
    %522 = vector.broadcast %c6_i32 : i32 to vector<512x128xi32>
    %523 = arith.shrsi %521, %522 : vector<512x128xi32>
    %c63_i32 = arith.constant 63 : i32
    %524 = vector.broadcast %c63_i32 : i32 to vector<512x128xi32>
    %525 = arith.andi %521, %524 : vector<512x128xi32>
    %c256_i32 = arith.constant 256 : i32
    %526 = vector.broadcast %c256_i32 : i32 to vector<512x128xi32>
    %527 = arith.muli %523, %526 : vector<512x128xi32>
    %c3_i32 = arith.constant 3 : i32
    %528 = vector.broadcast %c3_i32 : i32 to vector<512x128xi32>
    %529 = arith.shrsi %525, %528 : vector<512x128xi32>
    %c32_i32 = arith.constant 32 : i32
    %530 = vector.broadcast %c32_i32 : i32 to vector<512x128xi32>
    %531 = arith.muli %529, %530 : vector<512x128xi32>
    %532 = arith.addi %527, %531 : vector<512x128xi32>
    %c7_i32 = arith.constant 7 : i32
    %533 = vector.broadcast %c7_i32 : i32 to vector<512x128xi32>
    %534 = arith.andi %525, %533 : vector<512x128xi32>
    %c2_i32 = arith.constant 2 : i32
    %535 = vector.broadcast %c2_i32 : i32 to vector<512x128xi32>
    %536 = arith.muli %534, %535 : vector<512x128xi32>
    %537 = arith.addi %532, %536 : vector<512x128xi32>
    %538 = arith.cmpi eq, %520, %537 : vector<512x128xi32>
    %c128_i32 = arith.constant 128 : i32
    %539 = vector.broadcast %c128_i32 : i32 to vector<512x128xi32>
    %540 = arith.cmpi slt, %521, %539 : vector<512x128xi32>
    %541 = arith.andi %538, %540 : vector<512x128xi1>
    %cst_241 = arith.constant 1.000000e+00 : f32
    %cst_242 = arith.constant 0.000000e+00 : f32
    %542 = vector.broadcast %cst_241 : f32 to vector<512x128xf32>
    %543 = vector.broadcast %cst_242 : f32 to vector<512x128xf32>
    %544 = arith.select %541, %542, %543 : vector<512x128xi1>, vector<512x128xf32>
    %545 = arith.truncf %544 : vector<512x128xf32> to vector<512x128xbf16>
    %546 = arith.truncf %519 : vector<12x512xf32> to vector<12x512xbf16>
    %cst_243 = arith.constant dense<0.000000e+00> : vector<12x128xf32>
    %547 = tpu.matmul %546, %545, %cst_243 {dimension_numbers = #tpu.dot_dimension_numbers<[1], [0], [0], [1], [0, 0, 1, 1], [], []>} : vector<12x512xbf16>, vector<512x128xbf16>, vector<12x128xf32> -> vector<12x128xf32>
    %c2_244 = arith.constant 2 : index
    %c0_245 = arith.constant 0 : index
    %c0_246 = arith.constant 0 : index
    %c0_247 = arith.constant 0 : index
    %548 = vector.load %arg1[%c2_244, %c0_245, %c0_246, %c0_247] : memref<9x9x12x12xbf16, #tpu.memory_space<vmem>>, vector<1x1x12x12xbf16>
    %549 = vector.shape_cast %548 : vector<1x1x12x12xbf16> to vector<12x12xbf16>
    %550 = arith.truncf %547 : vector<12x128xf32> to vector<12x128xbf16>
    %cst_248 = arith.constant dense<0.000000e+00> : vector<12x128xf32>
    %551 = tpu.matmul %549, %550, %cst_248 {dimension_numbers = #tpu.dot_dimension_numbers<[1], [0], [0], [1], [0, 0, 1, 1], [], []>} : vector<12x12xbf16>, vector<12x128xbf16>, vector<12x128xf32> -> vector<12x128xf32>
    %c2_249 = arith.constant 2 : index
    %c0_250 = arith.constant 0 : index
    %c0_251 = arith.constant 0 : index
    %552 = vector.load %arg2[%c2_249, %c0_250, %c0_251] : memref<9x12x1xf32, #tpu.memory_space<vmem>>, vector<1x12x1xf32>
    %553 = vector.shape_cast %552 : vector<1x12x1xf32> to vector<12x1xf32>
    %554 = vector.broadcast %553 : vector<12x1xf32> to vector<12x128xf32>
    %555 = arith.addf %551, %554 : vector<12x128xf32>
    %cst_252 = arith.constant 0.000000e+00 : f32
    %556 = vector.broadcast %cst_252 : f32 to vector<12x128xf32>
    %557 = arith.maximumf %555, %556 : vector<12x128xf32>
    %558 = tpu.iota {dimensions = array<i32: 1>} : vector<1x128xi32>
    %c7_i32_253 = arith.constant 7 : i32
    %559 = vector.broadcast %c7_i32_253 : i32 to vector<1x128xi32>
    %560 = arith.andi %558, %559 : vector<1x128xi32>
    %c3_i32_254 = arith.constant 3 : i32
    %561 = vector.broadcast %c3_i32_254 : i32 to vector<1x128xi32>
    %562 = arith.shrsi %558, %561 : vector<1x128xi32>
    %c7_i32_255 = arith.constant 7 : i32
    %563 = vector.broadcast %c7_i32_255 : i32 to vector<1x128xi32>
    %564 = arith.andi %562, %563 : vector<1x128xi32>
    %cst_256 = arith.constant 0.000000e+00 : f32
    %565 = vector.broadcast %cst_256 : f32 to vector<12x128xf32>
    %c9_i32 = arith.constant 9 : i32
    %566 = tpu.dynamic_rotate %557 by %c9_i32 dim 1 : vector<12x128xf32>, i32 -> vector<12x128xf32>
    %c-1_i32_257 = arith.constant -1 : i32
    %567 = vector.broadcast %c-1_i32_257 : i32 to vector<1x128xi32>
    %568 = arith.addi %560, %567 : vector<1x128xi32>
    %c0_i32_258 = arith.constant 0 : i32
    %569 = vector.broadcast %c0_i32_258 : i32 to vector<1x128xi32>
    %570 = arith.cmpi sge, %568, %569 : vector<1x128xi32>
    %c-1_i32_259 = arith.constant -1 : i32
    %571 = vector.broadcast %c-1_i32_259 : i32 to vector<1x128xi32>
    %572 = arith.addi %560, %571 : vector<1x128xi32>
    %c8_i32 = arith.constant 8 : i32
    %573 = vector.broadcast %c8_i32 : i32 to vector<1x128xi32>
    %574 = arith.cmpi slt, %572, %573 : vector<1x128xi32>
    %575 = arith.andi %570, %574 : vector<1x128xi1>
    %c-1_i32_260 = arith.constant -1 : i32
    %576 = vector.broadcast %c-1_i32_260 : i32 to vector<1x128xi32>
    %577 = arith.addi %564, %576 : vector<1x128xi32>
    %c0_i32_261 = arith.constant 0 : i32
    %578 = vector.broadcast %c0_i32_261 : i32 to vector<1x128xi32>
    %579 = arith.cmpi sge, %577, %578 : vector<1x128xi32>
    %580 = arith.andi %575, %579 : vector<1x128xi1>
    %c-1_i32_262 = arith.constant -1 : i32
    %581 = vector.broadcast %c-1_i32_262 : i32 to vector<1x128xi32>
    %582 = arith.addi %564, %581 : vector<1x128xi32>
    %c8_i32_263 = arith.constant 8 : i32
    %583 = vector.broadcast %c8_i32_263 : i32 to vector<1x128xi32>
    %584 = arith.cmpi slt, %582, %583 : vector<1x128xi32>
    %585 = arith.andi %580, %584 : vector<1x128xi1>
    %cst_264 = arith.constant 0.000000e+00 : f32
    %586 = vector.shape_cast %585 : vector<1x128xi1> to vector<1x128xi1>
    %587 = vector.broadcast %586 : vector<1x128xi1> to vector<12x128xi1>
    %588 = vector.broadcast %cst_264 : f32 to vector<12x128xf32>
    %589 = arith.select %587, %566, %588 : vector<12x128xi1>, vector<12x128xf32>
    %c3_265 = arith.constant 3 : index
    %c0_266 = arith.constant 0 : index
    %c0_267 = arith.constant 0 : index
    %c0_268 = arith.constant 0 : index
    %590 = vector.load %arg1[%c3_265, %c0_266, %c0_267, %c0_268] : memref<9x9x12x12xbf16, #tpu.memory_space<vmem>>, vector<1x1x12x12xbf16>
    %591 = vector.shape_cast %590 : vector<1x1x12x12xbf16> to vector<12x12xbf16>
    %592 = arith.truncf %589 : vector<12x128xf32> to vector<12x128xbf16>
    %cst_269 = arith.constant dense<0.000000e+00> : vector<12x128xf32>
    %593 = tpu.matmul %591, %592, %cst_269 {dimension_numbers = #tpu.dot_dimension_numbers<[1], [0], [0], [1], [0, 0, 1, 1], [], []>} : vector<12x12xbf16>, vector<12x128xbf16>, vector<12x128xf32> -> vector<12x128xf32>
    %594 = arith.addf %565, %593 : vector<12x128xf32>
    %c8_i32_270 = arith.constant 8 : i32
    %595 = tpu.dynamic_rotate %557 by %c8_i32_270 dim 1 : vector<12x128xf32>, i32 -> vector<12x128xf32>
    %c0_i32_271 = arith.constant 0 : i32
    %596 = vector.broadcast %c0_i32_271 : i32 to vector<1x128xi32>
    %597 = arith.addi %560, %596 : vector<1x128xi32>
    %c0_i32_272 = arith.constant 0 : i32
    %598 = vector.broadcast %c0_i32_272 : i32 to vector<1x128xi32>
    %599 = arith.cmpi sge, %597, %598 : vector<1x128xi32>
    %c0_i32_273 = arith.constant 0 : i32
    %600 = vector.broadcast %c0_i32_273 : i32 to vector<1x128xi32>
    %601 = arith.addi %560, %600 : vector<1x128xi32>
    %c8_i32_274 = arith.constant 8 : i32
    %602 = vector.broadcast %c8_i32_274 : i32 to vector<1x128xi32>
    %603 = arith.cmpi slt, %601, %602 : vector<1x128xi32>
    %604 = arith.andi %599, %603 : vector<1x128xi1>
    %c-1_i32_275 = arith.constant -1 : i32
    %605 = vector.broadcast %c-1_i32_275 : i32 to vector<1x128xi32>
    %606 = arith.addi %564, %605 : vector<1x128xi32>
    %c0_i32_276 = arith.constant 0 : i32
    %607 = vector.broadcast %c0_i32_276 : i32 to vector<1x128xi32>
    %608 = arith.cmpi sge, %606, %607 : vector<1x128xi32>
    %609 = arith.andi %604, %608 : vector<1x128xi1>
    %c-1_i32_277 = arith.constant -1 : i32
    %610 = vector.broadcast %c-1_i32_277 : i32 to vector<1x128xi32>
    %611 = arith.addi %564, %610 : vector<1x128xi32>
    %c8_i32_278 = arith.constant 8 : i32
    %612 = vector.broadcast %c8_i32_278 : i32 to vector<1x128xi32>
    %613 = arith.cmpi slt, %611, %612 : vector<1x128xi32>
    %614 = arith.andi %609, %613 : vector<1x128xi1>
    %cst_279 = arith.constant 0.000000e+00 : f32
    %615 = vector.shape_cast %614 : vector<1x128xi1> to vector<1x128xi1>
    %616 = vector.broadcast %615 : vector<1x128xi1> to vector<12x128xi1>
    %617 = vector.broadcast %cst_279 : f32 to vector<12x128xf32>
    %618 = arith.select %616, %595, %617 : vector<12x128xi1>, vector<12x128xf32>
    %c3_280 = arith.constant 3 : index
    %c1_281 = arith.constant 1 : index
    %c0_282 = arith.constant 0 : index
    %c0_283 = arith.constant 0 : index
    %619 = vector.load %arg1[%c3_280, %c1_281, %c0_282, %c0_283] : memref<9x9x12x12xbf16, #tpu.memory_space<vmem>>, vector<1x1x12x12xbf16>
    %620 = vector.shape_cast %619 : vector<1x1x12x12xbf16> to vector<12x12xbf16>
    %621 = arith.truncf %618 : vector<12x128xf32> to vector<12x128xbf16>
    %cst_284 = arith.constant dense<0.000000e+00> : vector<12x128xf32>
    %622 = tpu.matmul %620, %621, %cst_284 {dimension_numbers = #tpu.dot_dimension_numbers<[1], [0], [0], [1], [0, 0, 1, 1], [], []>} : vector<12x12xbf16>, vector<12x128xbf16>, vector<12x128xf32> -> vector<12x128xf32>
    %623 = arith.addf %594, %622 : vector<12x128xf32>
    %c7_i32_285 = arith.constant 7 : i32
    %624 = tpu.dynamic_rotate %557 by %c7_i32_285 dim 1 : vector<12x128xf32>, i32 -> vector<12x128xf32>
    %c1_i32_286 = arith.constant 1 : i32
    %625 = vector.broadcast %c1_i32_286 : i32 to vector<1x128xi32>
    %626 = arith.addi %560, %625 : vector<1x128xi32>
    %c0_i32_287 = arith.constant 0 : i32
    %627 = vector.broadcast %c0_i32_287 : i32 to vector<1x128xi32>
    %628 = arith.cmpi sge, %626, %627 : vector<1x128xi32>
    %c1_i32_288 = arith.constant 1 : i32
    %629 = vector.broadcast %c1_i32_288 : i32 to vector<1x128xi32>
    %630 = arith.addi %560, %629 : vector<1x128xi32>
    %c8_i32_289 = arith.constant 8 : i32
    %631 = vector.broadcast %c8_i32_289 : i32 to vector<1x128xi32>
    %632 = arith.cmpi slt, %630, %631 : vector<1x128xi32>
    %633 = arith.andi %628, %632 : vector<1x128xi1>
    %c-1_i32_290 = arith.constant -1 : i32
    %634 = vector.broadcast %c-1_i32_290 : i32 to vector<1x128xi32>
    %635 = arith.addi %564, %634 : vector<1x128xi32>
    %c0_i32_291 = arith.constant 0 : i32
    %636 = vector.broadcast %c0_i32_291 : i32 to vector<1x128xi32>
    %637 = arith.cmpi sge, %635, %636 : vector<1x128xi32>
    %638 = arith.andi %633, %637 : vector<1x128xi1>
    %c-1_i32_292 = arith.constant -1 : i32
    %639 = vector.broadcast %c-1_i32_292 : i32 to vector<1x128xi32>
    %640 = arith.addi %564, %639 : vector<1x128xi32>
    %c8_i32_293 = arith.constant 8 : i32
    %641 = vector.broadcast %c8_i32_293 : i32 to vector<1x128xi32>
    %642 = arith.cmpi slt, %640, %641 : vector<1x128xi32>
    %643 = arith.andi %638, %642 : vector<1x128xi1>
    %cst_294 = arith.constant 0.000000e+00 : f32
    %644 = vector.shape_cast %643 : vector<1x128xi1> to vector<1x128xi1>
    %645 = vector.broadcast %644 : vector<1x128xi1> to vector<12x128xi1>
    %646 = vector.broadcast %cst_294 : f32 to vector<12x128xf32>
    %647 = arith.select %645, %624, %646 : vector<12x128xi1>, vector<12x128xf32>
    %c3_295 = arith.constant 3 : index
    %c2_296 = arith.constant 2 : index
    %c0_297 = arith.constant 0 : index
    %c0_298 = arith.constant 0 : index
    %648 = vector.load %arg1[%c3_295, %c2_296, %c0_297, %c0_298] : memref<9x9x12x12xbf16, #tpu.memory_space<vmem>>, vector<1x1x12x12xbf16>
    %649 = vector.shape_cast %648 : vector<1x1x12x12xbf16> to vector<12x12xbf16>
    %650 = arith.truncf %647 : vector<12x128xf32> to vector<12x128xbf16>
    %cst_299 = arith.constant dense<0.000000e+00> : vector<12x128xf32>
    %651 = tpu.matmul %649, %650, %cst_299 {dimension_numbers = #tpu.dot_dimension_numbers<[1], [0], [0], [1], [0, 0, 1, 1], [], []>} : vector<12x12xbf16>, vector<12x128xbf16>, vector<12x128xf32> -> vector<12x128xf32>
    %652 = arith.addf %623, %651 : vector<12x128xf32>
    %c1_i32_300 = arith.constant 1 : i32
    %653 = tpu.dynamic_rotate %557 by %c1_i32_300 dim 1 : vector<12x128xf32>, i32 -> vector<12x128xf32>
    %c-1_i32_301 = arith.constant -1 : i32
    %654 = vector.broadcast %c-1_i32_301 : i32 to vector<1x128xi32>
    %655 = arith.addi %560, %654 : vector<1x128xi32>
    %c0_i32_302 = arith.constant 0 : i32
    %656 = vector.broadcast %c0_i32_302 : i32 to vector<1x128xi32>
    %657 = arith.cmpi sge, %655, %656 : vector<1x128xi32>
    %c-1_i32_303 = arith.constant -1 : i32
    %658 = vector.broadcast %c-1_i32_303 : i32 to vector<1x128xi32>
    %659 = arith.addi %560, %658 : vector<1x128xi32>
    %c8_i32_304 = arith.constant 8 : i32
    %660 = vector.broadcast %c8_i32_304 : i32 to vector<1x128xi32>
    %661 = arith.cmpi slt, %659, %660 : vector<1x128xi32>
    %662 = arith.andi %657, %661 : vector<1x128xi1>
    %c0_i32_305 = arith.constant 0 : i32
    %663 = vector.broadcast %c0_i32_305 : i32 to vector<1x128xi32>
    %664 = arith.addi %564, %663 : vector<1x128xi32>
    %c0_i32_306 = arith.constant 0 : i32
    %665 = vector.broadcast %c0_i32_306 : i32 to vector<1x128xi32>
    %666 = arith.cmpi sge, %664, %665 : vector<1x128xi32>
    %667 = arith.andi %662, %666 : vector<1x128xi1>
    %c0_i32_307 = arith.constant 0 : i32
    %668 = vector.broadcast %c0_i32_307 : i32 to vector<1x128xi32>
    %669 = arith.addi %564, %668 : vector<1x128xi32>
    %c8_i32_308 = arith.constant 8 : i32
    %670 = vector.broadcast %c8_i32_308 : i32 to vector<1x128xi32>
    %671 = arith.cmpi slt, %669, %670 : vector<1x128xi32>
    %672 = arith.andi %667, %671 : vector<1x128xi1>
    %cst_309 = arith.constant 0.000000e+00 : f32
    %673 = vector.shape_cast %672 : vector<1x128xi1> to vector<1x128xi1>
    %674 = vector.broadcast %673 : vector<1x128xi1> to vector<12x128xi1>
    %675 = vector.broadcast %cst_309 : f32 to vector<12x128xf32>
    %676 = arith.select %674, %653, %675 : vector<12x128xi1>, vector<12x128xf32>
    %c3_310 = arith.constant 3 : index
    %c3_311 = arith.constant 3 : index
    %c0_312 = arith.constant 0 : index
    %c0_313 = arith.constant 0 : index
    %677 = vector.load %arg1[%c3_310, %c3_311, %c0_312, %c0_313] : memref<9x9x12x12xbf16, #tpu.memory_space<vmem>>, vector<1x1x12x12xbf16>
    %678 = vector.shape_cast %677 : vector<1x1x12x12xbf16> to vector<12x12xbf16>
    %679 = arith.truncf %676 : vector<12x128xf32> to vector<12x128xbf16>
    %cst_314 = arith.constant dense<0.000000e+00> : vector<12x128xf32>
    %680 = tpu.matmul %678, %679, %cst_314 {dimension_numbers = #tpu.dot_dimension_numbers<[1], [0], [0], [1], [0, 0, 1, 1], [], []>} : vector<12x12xbf16>, vector<12x128xbf16>, vector<12x128xf32> -> vector<12x128xf32>
    %681 = arith.addf %652, %680 : vector<12x128xf32>
    %c3_315 = arith.constant 3 : index
    %c4_316 = arith.constant 4 : index
    %c0_317 = arith.constant 0 : index
    %c0_318 = arith.constant 0 : index
    %682 = vector.load %arg1[%c3_315, %c4_316, %c0_317, %c0_318] : memref<9x9x12x12xbf16, #tpu.memory_space<vmem>>, vector<1x1x12x12xbf16>
    %683 = vector.shape_cast %682 : vector<1x1x12x12xbf16> to vector<12x12xbf16>
    %684 = arith.truncf %557 : vector<12x128xf32> to vector<12x128xbf16>
    %cst_319 = arith.constant dense<0.000000e+00> : vector<12x128xf32>
    %685 = tpu.matmul %683, %684, %cst_319 {dimension_numbers = #tpu.dot_dimension_numbers<[1], [0], [0], [1], [0, 0, 1, 1], [], []>} : vector<12x12xbf16>, vector<12x128xbf16>, vector<12x128xf32> -> vector<12x128xf32>
    %686 = arith.addf %681, %685 : vector<12x128xf32>
    %c127_i32 = arith.constant 127 : i32
    %687 = tpu.dynamic_rotate %557 by %c127_i32 dim 1 : vector<12x128xf32>, i32 -> vector<12x128xf32>
    %c1_i32_320 = arith.constant 1 : i32
    %688 = vector.broadcast %c1_i32_320 : i32 to vector<1x128xi32>
    %689 = arith.addi %560, %688 : vector<1x128xi32>
    %c0_i32_321 = arith.constant 0 : i32
    %690 = vector.broadcast %c0_i32_321 : i32 to vector<1x128xi32>
    %691 = arith.cmpi sge, %689, %690 : vector<1x128xi32>
    %c1_i32_322 = arith.constant 1 : i32
    %692 = vector.broadcast %c1_i32_322 : i32 to vector<1x128xi32>
    %693 = arith.addi %560, %692 : vector<1x128xi32>
    %c8_i32_323 = arith.constant 8 : i32
    %694 = vector.broadcast %c8_i32_323 : i32 to vector<1x128xi32>
    %695 = arith.cmpi slt, %693, %694 : vector<1x128xi32>
    %696 = arith.andi %691, %695 : vector<1x128xi1>
    %c0_i32_324 = arith.constant 0 : i32
    %697 = vector.broadcast %c0_i32_324 : i32 to vector<1x128xi32>
    %698 = arith.addi %564, %697 : vector<1x128xi32>
    %c0_i32_325 = arith.constant 0 : i32
    %699 = vector.broadcast %c0_i32_325 : i32 to vector<1x128xi32>
    %700 = arith.cmpi sge, %698, %699 : vector<1x128xi32>
    %701 = arith.andi %696, %700 : vector<1x128xi1>
    %c0_i32_326 = arith.constant 0 : i32
    %702 = vector.broadcast %c0_i32_326 : i32 to vector<1x128xi32>
    %703 = arith.addi %564, %702 : vector<1x128xi32>
    %c8_i32_327 = arith.constant 8 : i32
    %704 = vector.broadcast %c8_i32_327 : i32 to vector<1x128xi32>
    %705 = arith.cmpi slt, %703, %704 : vector<1x128xi32>
    %706 = arith.andi %701, %705 : vector<1x128xi1>
    %cst_328 = arith.constant 0.000000e+00 : f32
    %707 = vector.shape_cast %706 : vector<1x128xi1> to vector<1x128xi1>
    %708 = vector.broadcast %707 : vector<1x128xi1> to vector<12x128xi1>
    %709 = vector.broadcast %cst_328 : f32 to vector<12x128xf32>
    %710 = arith.select %708, %687, %709 : vector<12x128xi1>, vector<12x128xf32>
    %c3_329 = arith.constant 3 : index
    %c5_330 = arith.constant 5 : index
    %c0_331 = arith.constant 0 : index
    %c0_332 = arith.constant 0 : index
    %711 = vector.load %arg1[%c3_329, %c5_330, %c0_331, %c0_332] : memref<9x9x12x12xbf16, #tpu.memory_space<vmem>>, vector<1x1x12x12xbf16>
    %712 = vector.shape_cast %711 : vector<1x1x12x12xbf16> to vector<12x12xbf16>
    %713 = arith.truncf %710 : vector<12x128xf32> to vector<12x128xbf16>
    %cst_333 = arith.constant dense<0.000000e+00> : vector<12x128xf32>
    %714 = tpu.matmul %712, %713, %cst_333 {dimension_numbers = #tpu.dot_dimension_numbers<[1], [0], [0], [1], [0, 0, 1, 1], [], []>} : vector<12x12xbf16>, vector<12x128xbf16>, vector<12x128xf32> -> vector<12x128xf32>
    %715 = arith.addf %686, %714 : vector<12x128xf32>
    %c121_i32 = arith.constant 121 : i32
    %716 = tpu.dynamic_rotate %557 by %c121_i32 dim 1 : vector<12x128xf32>, i32 -> vector<12x128xf32>
    %c-1_i32_334 = arith.constant -1 : i32
    %717 = vector.broadcast %c-1_i32_334 : i32 to vector<1x128xi32>
    %718 = arith.addi %560, %717 : vector<1x128xi32>
    %c0_i32_335 = arith.constant 0 : i32
    %719 = vector.broadcast %c0_i32_335 : i32 to vector<1x128xi32>
    %720 = arith.cmpi sge, %718, %719 : vector<1x128xi32>
    %c-1_i32_336 = arith.constant -1 : i32
    %721 = vector.broadcast %c-1_i32_336 : i32 to vector<1x128xi32>
    %722 = arith.addi %560, %721 : vector<1x128xi32>
    %c8_i32_337 = arith.constant 8 : i32
    %723 = vector.broadcast %c8_i32_337 : i32 to vector<1x128xi32>
    %724 = arith.cmpi slt, %722, %723 : vector<1x128xi32>
    %725 = arith.andi %720, %724 : vector<1x128xi1>
    %c1_i32_338 = arith.constant 1 : i32
    %726 = vector.broadcast %c1_i32_338 : i32 to vector<1x128xi32>
    %727 = arith.addi %564, %726 : vector<1x128xi32>
    %c0_i32_339 = arith.constant 0 : i32
    %728 = vector.broadcast %c0_i32_339 : i32 to vector<1x128xi32>
    %729 = arith.cmpi sge, %727, %728 : vector<1x128xi32>
    %730 = arith.andi %725, %729 : vector<1x128xi1>
    %c1_i32_340 = arith.constant 1 : i32
    %731 = vector.broadcast %c1_i32_340 : i32 to vector<1x128xi32>
    %732 = arith.addi %564, %731 : vector<1x128xi32>
    %c8_i32_341 = arith.constant 8 : i32
    %733 = vector.broadcast %c8_i32_341 : i32 to vector<1x128xi32>
    %734 = arith.cmpi slt, %732, %733 : vector<1x128xi32>
    %735 = arith.andi %730, %734 : vector<1x128xi1>
    %cst_342 = arith.constant 0.000000e+00 : f32
    %736 = vector.shape_cast %735 : vector<1x128xi1> to vector<1x128xi1>
    %737 = vector.broadcast %736 : vector<1x128xi1> to vector<12x128xi1>
    %738 = vector.broadcast %cst_342 : f32 to vector<12x128xf32>
    %739 = arith.select %737, %716, %738 : vector<12x128xi1>, vector<12x128xf32>
    %c3_343 = arith.constant 3 : index
    %c6_344 = arith.constant 6 : index
    %c0_345 = arith.constant 0 : index
    %c0_346 = arith.constant 0 : index
    %740 = vector.load %arg1[%c3_343, %c6_344, %c0_345, %c0_346] : memref<9x9x12x12xbf16, #tpu.memory_space<vmem>>, vector<1x1x12x12xbf16>
    %741 = vector.shape_cast %740 : vector<1x1x12x12xbf16> to vector<12x12xbf16>
    %742 = arith.truncf %739 : vector<12x128xf32> to vector<12x128xbf16>
    %cst_347 = arith.constant dense<0.000000e+00> : vector<12x128xf32>
    %743 = tpu.matmul %741, %742, %cst_347 {dimension_numbers = #tpu.dot_dimension_numbers<[1], [0], [0], [1], [0, 0, 1, 1], [], []>} : vector<12x12xbf16>, vector<12x128xbf16>, vector<12x128xf32> -> vector<12x128xf32>
    %744 = arith.addf %715, %743 : vector<12x128xf32>
    %c120_i32 = arith.constant 120 : i32
    %745 = tpu.dynamic_rotate %557 by %c120_i32 dim 1 : vector<12x128xf32>, i32 -> vector<12x128xf32>
    %c0_i32_348 = arith.constant 0 : i32
    %746 = vector.broadcast %c0_i32_348 : i32 to vector<1x128xi32>
    %747 = arith.addi %560, %746 : vector<1x128xi32>
    %c0_i32_349 = arith.constant 0 : i32
    %748 = vector.broadcast %c0_i32_349 : i32 to vector<1x128xi32>
    %749 = arith.cmpi sge, %747, %748 : vector<1x128xi32>
    %c0_i32_350 = arith.constant 0 : i32
    %750 = vector.broadcast %c0_i32_350 : i32 to vector<1x128xi32>
    %751 = arith.addi %560, %750 : vector<1x128xi32>
    %c8_i32_351 = arith.constant 8 : i32
    %752 = vector.broadcast %c8_i32_351 : i32 to vector<1x128xi32>
    %753 = arith.cmpi slt, %751, %752 : vector<1x128xi32>
    %754 = arith.andi %749, %753 : vector<1x128xi1>
    %c1_i32_352 = arith.constant 1 : i32
    %755 = vector.broadcast %c1_i32_352 : i32 to vector<1x128xi32>
    %756 = arith.addi %564, %755 : vector<1x128xi32>
    %c0_i32_353 = arith.constant 0 : i32
    %757 = vector.broadcast %c0_i32_353 : i32 to vector<1x128xi32>
    %758 = arith.cmpi sge, %756, %757 : vector<1x128xi32>
    %759 = arith.andi %754, %758 : vector<1x128xi1>
    %c1_i32_354 = arith.constant 1 : i32
    %760 = vector.broadcast %c1_i32_354 : i32 to vector<1x128xi32>
    %761 = arith.addi %564, %760 : vector<1x128xi32>
    %c8_i32_355 = arith.constant 8 : i32
    %762 = vector.broadcast %c8_i32_355 : i32 to vector<1x128xi32>
    %763 = arith.cmpi slt, %761, %762 : vector<1x128xi32>
    %764 = arith.andi %759, %763 : vector<1x128xi1>
    %cst_356 = arith.constant 0.000000e+00 : f32
    %765 = vector.shape_cast %764 : vector<1x128xi1> to vector<1x128xi1>
    %766 = vector.broadcast %765 : vector<1x128xi1> to vector<12x128xi1>
    %767 = vector.broadcast %cst_356 : f32 to vector<12x128xf32>
    %768 = arith.select %766, %745, %767 : vector<12x128xi1>, vector<12x128xf32>
    %c3_357 = arith.constant 3 : index
    %c7_358 = arith.constant 7 : index
    %c0_359 = arith.constant 0 : index
    %c0_360 = arith.constant 0 : index
    %769 = vector.load %arg1[%c3_357, %c7_358, %c0_359, %c0_360] : memref<9x9x12x12xbf16, #tpu.memory_space<vmem>>, vector<1x1x12x12xbf16>
    %770 = vector.shape_cast %769 : vector<1x1x12x12xbf16> to vector<12x12xbf16>
    %771 = arith.truncf %768 : vector<12x128xf32> to vector<12x128xbf16>
    %cst_361 = arith.constant dense<0.000000e+00> : vector<12x128xf32>
    %772 = tpu.matmul %770, %771, %cst_361 {dimension_numbers = #tpu.dot_dimension_numbers<[1], [0], [0], [1], [0, 0, 1, 1], [], []>} : vector<12x12xbf16>, vector<12x128xbf16>, vector<12x128xf32> -> vector<12x128xf32>
    %773 = arith.addf %744, %772 : vector<12x128xf32>
    %c119_i32 = arith.constant 119 : i32
    %774 = tpu.dynamic_rotate %557 by %c119_i32 dim 1 : vector<12x128xf32>, i32 -> vector<12x128xf32>
    %c1_i32_362 = arith.constant 1 : i32
    %775 = vector.broadcast %c1_i32_362 : i32 to vector<1x128xi32>
    %776 = arith.addi %560, %775 : vector<1x128xi32>
    %c0_i32_363 = arith.constant 0 : i32
    %777 = vector.broadcast %c0_i32_363 : i32 to vector<1x128xi32>
    %778 = arith.cmpi sge, %776, %777 : vector<1x128xi32>
    %c1_i32_364 = arith.constant 1 : i32
    %779 = vector.broadcast %c1_i32_364 : i32 to vector<1x128xi32>
    %780 = arith.addi %560, %779 : vector<1x128xi32>
    %c8_i32_365 = arith.constant 8 : i32
    %781 = vector.broadcast %c8_i32_365 : i32 to vector<1x128xi32>
    %782 = arith.cmpi slt, %780, %781 : vector<1x128xi32>
    %783 = arith.andi %778, %782 : vector<1x128xi1>
    %c1_i32_366 = arith.constant 1 : i32
    %784 = vector.broadcast %c1_i32_366 : i32 to vector<1x128xi32>
    %785 = arith.addi %564, %784 : vector<1x128xi32>
    %c0_i32_367 = arith.constant 0 : i32
    %786 = vector.broadcast %c0_i32_367 : i32 to vector<1x128xi32>
    %787 = arith.cmpi sge, %785, %786 : vector<1x128xi32>
    %788 = arith.andi %783, %787 : vector<1x128xi1>
    %c1_i32_368 = arith.constant 1 : i32
    %789 = vector.broadcast %c1_i32_368 : i32 to vector<1x128xi32>
    %790 = arith.addi %564, %789 : vector<1x128xi32>
    %c8_i32_369 = arith.constant 8 : i32
    %791 = vector.broadcast %c8_i32_369 : i32 to vector<1x128xi32>
    %792 = arith.cmpi slt, %790, %791 : vector<1x128xi32>
    %793 = arith.andi %788, %792 : vector<1x128xi1>
    %cst_370 = arith.constant 0.000000e+00 : f32
    %794 = vector.shape_cast %793 : vector<1x128xi1> to vector<1x128xi1>
    %795 = vector.broadcast %794 : vector<1x128xi1> to vector<12x128xi1>
    %796 = vector.broadcast %cst_370 : f32 to vector<12x128xf32>
    %797 = arith.select %795, %774, %796 : vector<12x128xi1>, vector<12x128xf32>
    %c3_371 = arith.constant 3 : index
    %c8_372 = arith.constant 8 : index
    %c0_373 = arith.constant 0 : index
    %c0_374 = arith.constant 0 : index
    %798 = vector.load %arg1[%c3_371, %c8_372, %c0_373, %c0_374] : memref<9x9x12x12xbf16, #tpu.memory_space<vmem>>, vector<1x1x12x12xbf16>
    %799 = vector.shape_cast %798 : vector<1x1x12x12xbf16> to vector<12x12xbf16>
    %800 = arith.truncf %797 : vector<12x128xf32> to vector<12x128xbf16>
    %cst_375 = arith.constant dense<0.000000e+00> : vector<12x128xf32>
    %801 = tpu.matmul %799, %800, %cst_375 {dimension_numbers = #tpu.dot_dimension_numbers<[1], [0], [0], [1], [0, 0, 1, 1], [], []>} : vector<12x12xbf16>, vector<12x128xbf16>, vector<12x128xf32> -> vector<12x128xf32>
    %802 = arith.addf %773, %801 : vector<12x128xf32>
    %c3_376 = arith.constant 3 : index
    %c0_377 = arith.constant 0 : index
    %c0_378 = arith.constant 0 : index
    %803 = vector.load %arg2[%c3_376, %c0_377, %c0_378] : memref<9x12x1xf32, #tpu.memory_space<vmem>>, vector<1x12x1xf32>
    %804 = vector.shape_cast %803 : vector<1x12x1xf32> to vector<12x1xf32>
    %805 = vector.broadcast %804 : vector<12x1xf32> to vector<12x128xf32>
    %806 = arith.addf %802, %805 : vector<12x128xf32>
    %cst_379 = arith.constant 0.000000e+00 : f32
    %807 = vector.broadcast %cst_379 : f32 to vector<12x128xf32>
    %808 = arith.maximumf %806, %807 : vector<12x128xf32>
    %809 = tpu.iota {dimensions = array<i32: 1>} : vector<1x128xi32>
    %c7_i32_380 = arith.constant 7 : i32
    %810 = vector.broadcast %c7_i32_380 : i32 to vector<1x128xi32>
    %811 = arith.andi %809, %810 : vector<1x128xi32>
    %c3_i32_381 = arith.constant 3 : i32
    %812 = vector.broadcast %c3_i32_381 : i32 to vector<1x128xi32>
    %813 = arith.shrsi %809, %812 : vector<1x128xi32>
    %c7_i32_382 = arith.constant 7 : i32
    %814 = vector.broadcast %c7_i32_382 : i32 to vector<1x128xi32>
    %815 = arith.andi %813, %814 : vector<1x128xi32>
    %cst_383 = arith.constant 0.000000e+00 : f32
    %816 = vector.broadcast %cst_383 : f32 to vector<12x128xf32>
    %c9_i32_384 = arith.constant 9 : i32
    %817 = tpu.dynamic_rotate %808 by %c9_i32_384 dim 1 : vector<12x128xf32>, i32 -> vector<12x128xf32>
    %c-1_i32_385 = arith.constant -1 : i32
    %818 = vector.broadcast %c-1_i32_385 : i32 to vector<1x128xi32>
    %819 = arith.addi %811, %818 : vector<1x128xi32>
    %c0_i32_386 = arith.constant 0 : i32
    %820 = vector.broadcast %c0_i32_386 : i32 to vector<1x128xi32>
    %821 = arith.cmpi sge, %819, %820 : vector<1x128xi32>
    %c-1_i32_387 = arith.constant -1 : i32
    %822 = vector.broadcast %c-1_i32_387 : i32 to vector<1x128xi32>
    %823 = arith.addi %811, %822 : vector<1x128xi32>
    %c8_i32_388 = arith.constant 8 : i32
    %824 = vector.broadcast %c8_i32_388 : i32 to vector<1x128xi32>
    %825 = arith.cmpi slt, %823, %824 : vector<1x128xi32>
    %826 = arith.andi %821, %825 : vector<1x128xi1>
    %c-1_i32_389 = arith.constant -1 : i32
    %827 = vector.broadcast %c-1_i32_389 : i32 to vector<1x128xi32>
    %828 = arith.addi %815, %827 : vector<1x128xi32>
    %c0_i32_390 = arith.constant 0 : i32
    %829 = vector.broadcast %c0_i32_390 : i32 to vector<1x128xi32>
    %830 = arith.cmpi sge, %828, %829 : vector<1x128xi32>
    %831 = arith.andi %826, %830 : vector<1x128xi1>
    %c-1_i32_391 = arith.constant -1 : i32
    %832 = vector.broadcast %c-1_i32_391 : i32 to vector<1x128xi32>
    %833 = arith.addi %815, %832 : vector<1x128xi32>
    %c8_i32_392 = arith.constant 8 : i32
    %834 = vector.broadcast %c8_i32_392 : i32 to vector<1x128xi32>
    %835 = arith.cmpi slt, %833, %834 : vector<1x128xi32>
    %836 = arith.andi %831, %835 : vector<1x128xi1>
    %cst_393 = arith.constant 0.000000e+00 : f32
    %837 = vector.shape_cast %836 : vector<1x128xi1> to vector<1x128xi1>
    %838 = vector.broadcast %837 : vector<1x128xi1> to vector<12x128xi1>
    %839 = vector.broadcast %cst_393 : f32 to vector<12x128xf32>
    %840 = arith.select %838, %817, %839 : vector<12x128xi1>, vector<12x128xf32>
    %c4_394 = arith.constant 4 : index
    %c0_395 = arith.constant 0 : index
    %c0_396 = arith.constant 0 : index
    %c0_397 = arith.constant 0 : index
    %841 = vector.load %arg1[%c4_394, %c0_395, %c0_396, %c0_397] : memref<9x9x12x12xbf16, #tpu.memory_space<vmem>>, vector<1x1x12x12xbf16>
    %842 = vector.shape_cast %841 : vector<1x1x12x12xbf16> to vector<12x12xbf16>
    %843 = arith.truncf %840 : vector<12x128xf32> to vector<12x128xbf16>
    %cst_398 = arith.constant dense<0.000000e+00> : vector<12x128xf32>
    %844 = tpu.matmul %842, %843, %cst_398 {dimension_numbers = #tpu.dot_dimension_numbers<[1], [0], [0], [1], [0, 0, 1, 1], [], []>} : vector<12x12xbf16>, vector<12x128xbf16>, vector<12x128xf32> -> vector<12x128xf32>
    %845 = arith.addf %816, %844 : vector<12x128xf32>
    %c8_i32_399 = arith.constant 8 : i32
    %846 = tpu.dynamic_rotate %808 by %c8_i32_399 dim 1 : vector<12x128xf32>, i32 -> vector<12x128xf32>
    %c0_i32_400 = arith.constant 0 : i32
    %847 = vector.broadcast %c0_i32_400 : i32 to vector<1x128xi32>
    %848 = arith.addi %811, %847 : vector<1x128xi32>
    %c0_i32_401 = arith.constant 0 : i32
    %849 = vector.broadcast %c0_i32_401 : i32 to vector<1x128xi32>
    %850 = arith.cmpi sge, %848, %849 : vector<1x128xi32>
    %c0_i32_402 = arith.constant 0 : i32
    %851 = vector.broadcast %c0_i32_402 : i32 to vector<1x128xi32>
    %852 = arith.addi %811, %851 : vector<1x128xi32>
    %c8_i32_403 = arith.constant 8 : i32
    %853 = vector.broadcast %c8_i32_403 : i32 to vector<1x128xi32>
    %854 = arith.cmpi slt, %852, %853 : vector<1x128xi32>
    %855 = arith.andi %850, %854 : vector<1x128xi1>
    %c-1_i32_404 = arith.constant -1 : i32
    %856 = vector.broadcast %c-1_i32_404 : i32 to vector<1x128xi32>
    %857 = arith.addi %815, %856 : vector<1x128xi32>
    %c0_i32_405 = arith.constant 0 : i32
    %858 = vector.broadcast %c0_i32_405 : i32 to vector<1x128xi32>
    %859 = arith.cmpi sge, %857, %858 : vector<1x128xi32>
    %860 = arith.andi %855, %859 : vector<1x128xi1>
    %c-1_i32_406 = arith.constant -1 : i32
    %861 = vector.broadcast %c-1_i32_406 : i32 to vector<1x128xi32>
    %862 = arith.addi %815, %861 : vector<1x128xi32>
    %c8_i32_407 = arith.constant 8 : i32
    %863 = vector.broadcast %c8_i32_407 : i32 to vector<1x128xi32>
    %864 = arith.cmpi slt, %862, %863 : vector<1x128xi32>
    %865 = arith.andi %860, %864 : vector<1x128xi1>
    %cst_408 = arith.constant 0.000000e+00 : f32
    %866 = vector.shape_cast %865 : vector<1x128xi1> to vector<1x128xi1>
    %867 = vector.broadcast %866 : vector<1x128xi1> to vector<12x128xi1>
    %868 = vector.broadcast %cst_408 : f32 to vector<12x128xf32>
    %869 = arith.select %867, %846, %868 : vector<12x128xi1>, vector<12x128xf32>
    %c4_409 = arith.constant 4 : index
    %c1_410 = arith.constant 1 : index
    %c0_411 = arith.constant 0 : index
    %c0_412 = arith.constant 0 : index
    %870 = vector.load %arg1[%c4_409, %c1_410, %c0_411, %c0_412] : memref<9x9x12x12xbf16, #tpu.memory_space<vmem>>, vector<1x1x12x12xbf16>
    %871 = vector.shape_cast %870 : vector<1x1x12x12xbf16> to vector<12x12xbf16>
    %872 = arith.truncf %869 : vector<12x128xf32> to vector<12x128xbf16>
    %cst_413 = arith.constant dense<0.000000e+00> : vector<12x128xf32>
    %873 = tpu.matmul %871, %872, %cst_413 {dimension_numbers = #tpu.dot_dimension_numbers<[1], [0], [0], [1], [0, 0, 1, 1], [], []>} : vector<12x12xbf16>, vector<12x128xbf16>, vector<12x128xf32> -> vector<12x128xf32>
    %874 = arith.addf %845, %873 : vector<12x128xf32>
    %c7_i32_414 = arith.constant 7 : i32
    %875 = tpu.dynamic_rotate %808 by %c7_i32_414 dim 1 : vector<12x128xf32>, i32 -> vector<12x128xf32>
    %c1_i32_415 = arith.constant 1 : i32
    %876 = vector.broadcast %c1_i32_415 : i32 to vector<1x128xi32>
    %877 = arith.addi %811, %876 : vector<1x128xi32>
    %c0_i32_416 = arith.constant 0 : i32
    %878 = vector.broadcast %c0_i32_416 : i32 to vector<1x128xi32>
    %879 = arith.cmpi sge, %877, %878 : vector<1x128xi32>
    %c1_i32_417 = arith.constant 1 : i32
    %880 = vector.broadcast %c1_i32_417 : i32 to vector<1x128xi32>
    %881 = arith.addi %811, %880 : vector<1x128xi32>
    %c8_i32_418 = arith.constant 8 : i32
    %882 = vector.broadcast %c8_i32_418 : i32 to vector<1x128xi32>
    %883 = arith.cmpi slt, %881, %882 : vector<1x128xi32>
    %884 = arith.andi %879, %883 : vector<1x128xi1>
    %c-1_i32_419 = arith.constant -1 : i32
    %885 = vector.broadcast %c-1_i32_419 : i32 to vector<1x128xi32>
    %886 = arith.addi %815, %885 : vector<1x128xi32>
    %c0_i32_420 = arith.constant 0 : i32
    %887 = vector.broadcast %c0_i32_420 : i32 to vector<1x128xi32>
    %888 = arith.cmpi sge, %886, %887 : vector<1x128xi32>
    %889 = arith.andi %884, %888 : vector<1x128xi1>
    %c-1_i32_421 = arith.constant -1 : i32
    %890 = vector.broadcast %c-1_i32_421 : i32 to vector<1x128xi32>
    %891 = arith.addi %815, %890 : vector<1x128xi32>
    %c8_i32_422 = arith.constant 8 : i32
    %892 = vector.broadcast %c8_i32_422 : i32 to vector<1x128xi32>
    %893 = arith.cmpi slt, %891, %892 : vector<1x128xi32>
    %894 = arith.andi %889, %893 : vector<1x128xi1>
    %cst_423 = arith.constant 0.000000e+00 : f32
    %895 = vector.shape_cast %894 : vector<1x128xi1> to vector<1x128xi1>
    %896 = vector.broadcast %895 : vector<1x128xi1> to vector<12x128xi1>
    %897 = vector.broadcast %cst_423 : f32 to vector<12x128xf32>
    %898 = arith.select %896, %875, %897 : vector<12x128xi1>, vector<12x128xf32>
    %c4_424 = arith.constant 4 : index
    %c2_425 = arith.constant 2 : index
    %c0_426 = arith.constant 0 : index
    %c0_427 = arith.constant 0 : index
    %899 = vector.load %arg1[%c4_424, %c2_425, %c0_426, %c0_427] : memref<9x9x12x12xbf16, #tpu.memory_space<vmem>>, vector<1x1x12x12xbf16>
    %900 = vector.shape_cast %899 : vector<1x1x12x12xbf16> to vector<12x12xbf16>
    %901 = arith.truncf %898 : vector<12x128xf32> to vector<12x128xbf16>
    %cst_428 = arith.constant dense<0.000000e+00> : vector<12x128xf32>
    %902 = tpu.matmul %900, %901, %cst_428 {dimension_numbers = #tpu.dot_dimension_numbers<[1], [0], [0], [1], [0, 0, 1, 1], [], []>} : vector<12x12xbf16>, vector<12x128xbf16>, vector<12x128xf32> -> vector<12x128xf32>
    %903 = arith.addf %874, %902 : vector<12x128xf32>
    %c1_i32_429 = arith.constant 1 : i32
    %904 = tpu.dynamic_rotate %808 by %c1_i32_429 dim 1 : vector<12x128xf32>, i32 -> vector<12x128xf32>
    %c-1_i32_430 = arith.constant -1 : i32
    %905 = vector.broadcast %c-1_i32_430 : i32 to vector<1x128xi32>
    %906 = arith.addi %811, %905 : vector<1x128xi32>
    %c0_i32_431 = arith.constant 0 : i32
    %907 = vector.broadcast %c0_i32_431 : i32 to vector<1x128xi32>
    %908 = arith.cmpi sge, %906, %907 : vector<1x128xi32>
    %c-1_i32_432 = arith.constant -1 : i32
    %909 = vector.broadcast %c-1_i32_432 : i32 to vector<1x128xi32>
    %910 = arith.addi %811, %909 : vector<1x128xi32>
    %c8_i32_433 = arith.constant 8 : i32
    %911 = vector.broadcast %c8_i32_433 : i32 to vector<1x128xi32>
    %912 = arith.cmpi slt, %910, %911 : vector<1x128xi32>
    %913 = arith.andi %908, %912 : vector<1x128xi1>
    %c0_i32_434 = arith.constant 0 : i32
    %914 = vector.broadcast %c0_i32_434 : i32 to vector<1x128xi32>
    %915 = arith.addi %815, %914 : vector<1x128xi32>
    %c0_i32_435 = arith.constant 0 : i32
    %916 = vector.broadcast %c0_i32_435 : i32 to vector<1x128xi32>
    %917 = arith.cmpi sge, %915, %916 : vector<1x128xi32>
    %918 = arith.andi %913, %917 : vector<1x128xi1>
    %c0_i32_436 = arith.constant 0 : i32
    %919 = vector.broadcast %c0_i32_436 : i32 to vector<1x128xi32>
    %920 = arith.addi %815, %919 : vector<1x128xi32>
    %c8_i32_437 = arith.constant 8 : i32
    %921 = vector.broadcast %c8_i32_437 : i32 to vector<1x128xi32>
    %922 = arith.cmpi slt, %920, %921 : vector<1x128xi32>
    %923 = arith.andi %918, %922 : vector<1x128xi1>
    %cst_438 = arith.constant 0.000000e+00 : f32
    %924 = vector.shape_cast %923 : vector<1x128xi1> to vector<1x128xi1>
    %925 = vector.broadcast %924 : vector<1x128xi1> to vector<12x128xi1>
    %926 = vector.broadcast %cst_438 : f32 to vector<12x128xf32>
    %927 = arith.select %925, %904, %926 : vector<12x128xi1>, vector<12x128xf32>
    %c4_439 = arith.constant 4 : index
    %c3_440 = arith.constant 3 : index
    %c0_441 = arith.constant 0 : index
    %c0_442 = arith.constant 0 : index
    %928 = vector.load %arg1[%c4_439, %c3_440, %c0_441, %c0_442] : memref<9x9x12x12xbf16, #tpu.memory_space<vmem>>, vector<1x1x12x12xbf16>
    %929 = vector.shape_cast %928 : vector<1x1x12x12xbf16> to vector<12x12xbf16>
    %930 = arith.truncf %927 : vector<12x128xf32> to vector<12x128xbf16>
    %cst_443 = arith.constant dense<0.000000e+00> : vector<12x128xf32>
    %931 = tpu.matmul %929, %930, %cst_443 {dimension_numbers = #tpu.dot_dimension_numbers<[1], [0], [0], [1], [0, 0, 1, 1], [], []>} : vector<12x12xbf16>, vector<12x128xbf16>, vector<12x128xf32> -> vector<12x128xf32>
    %932 = arith.addf %903, %931 : vector<12x128xf32>
    %c4_444 = arith.constant 4 : index
    %c4_445 = arith.constant 4 : index
    %c0_446 = arith.constant 0 : index
    %c0_447 = arith.constant 0 : index
    %933 = vector.load %arg1[%c4_444, %c4_445, %c0_446, %c0_447] : memref<9x9x12x12xbf16, #tpu.memory_space<vmem>>, vector<1x1x12x12xbf16>
    %934 = vector.shape_cast %933 : vector<1x1x12x12xbf16> to vector<12x12xbf16>
    %935 = arith.truncf %808 : vector<12x128xf32> to vector<12x128xbf16>
    %cst_448 = arith.constant dense<0.000000e+00> : vector<12x128xf32>
    %936 = tpu.matmul %934, %935, %cst_448 {dimension_numbers = #tpu.dot_dimension_numbers<[1], [0], [0], [1], [0, 0, 1, 1], [], []>} : vector<12x12xbf16>, vector<12x128xbf16>, vector<12x128xf32> -> vector<12x128xf32>
    %937 = arith.addf %932, %936 : vector<12x128xf32>
    %c127_i32_449 = arith.constant 127 : i32
    %938 = tpu.dynamic_rotate %808 by %c127_i32_449 dim 1 : vector<12x128xf32>, i32 -> vector<12x128xf32>
    %c1_i32_450 = arith.constant 1 : i32
    %939 = vector.broadcast %c1_i32_450 : i32 to vector<1x128xi32>
    %940 = arith.addi %811, %939 : vector<1x128xi32>
    %c0_i32_451 = arith.constant 0 : i32
    %941 = vector.broadcast %c0_i32_451 : i32 to vector<1x128xi32>
    %942 = arith.cmpi sge, %940, %941 : vector<1x128xi32>
    %c1_i32_452 = arith.constant 1 : i32
    %943 = vector.broadcast %c1_i32_452 : i32 to vector<1x128xi32>
    %944 = arith.addi %811, %943 : vector<1x128xi32>
    %c8_i32_453 = arith.constant 8 : i32
    %945 = vector.broadcast %c8_i32_453 : i32 to vector<1x128xi32>
    %946 = arith.cmpi slt, %944, %945 : vector<1x128xi32>
    %947 = arith.andi %942, %946 : vector<1x128xi1>
    %c0_i32_454 = arith.constant 0 : i32
    %948 = vector.broadcast %c0_i32_454 : i32 to vector<1x128xi32>
    %949 = arith.addi %815, %948 : vector<1x128xi32>
    %c0_i32_455 = arith.constant 0 : i32
    %950 = vector.broadcast %c0_i32_455 : i32 to vector<1x128xi32>
    %951 = arith.cmpi sge, %949, %950 : vector<1x128xi32>
    %952 = arith.andi %947, %951 : vector<1x128xi1>
    %c0_i32_456 = arith.constant 0 : i32
    %953 = vector.broadcast %c0_i32_456 : i32 to vector<1x128xi32>
    %954 = arith.addi %815, %953 : vector<1x128xi32>
    %c8_i32_457 = arith.constant 8 : i32
    %955 = vector.broadcast %c8_i32_457 : i32 to vector<1x128xi32>
    %956 = arith.cmpi slt, %954, %955 : vector<1x128xi32>
    %957 = arith.andi %952, %956 : vector<1x128xi1>
    %cst_458 = arith.constant 0.000000e+00 : f32
    %958 = vector.shape_cast %957 : vector<1x128xi1> to vector<1x128xi1>
    %959 = vector.broadcast %958 : vector<1x128xi1> to vector<12x128xi1>
    %960 = vector.broadcast %cst_458 : f32 to vector<12x128xf32>
    %961 = arith.select %959, %938, %960 : vector<12x128xi1>, vector<12x128xf32>
    %c4_459 = arith.constant 4 : index
    %c5_460 = arith.constant 5 : index
    %c0_461 = arith.constant 0 : index
    %c0_462 = arith.constant 0 : index
    %962 = vector.load %arg1[%c4_459, %c5_460, %c0_461, %c0_462] : memref<9x9x12x12xbf16, #tpu.memory_space<vmem>>, vector<1x1x12x12xbf16>
    %963 = vector.shape_cast %962 : vector<1x1x12x12xbf16> to vector<12x12xbf16>
    %964 = arith.truncf %961 : vector<12x128xf32> to vector<12x128xbf16>
    %cst_463 = arith.constant dense<0.000000e+00> : vector<12x128xf32>
    %965 = tpu.matmul %963, %964, %cst_463 {dimension_numbers = #tpu.dot_dimension_numbers<[1], [0], [0], [1], [0, 0, 1, 1], [], []>} : vector<12x12xbf16>, vector<12x128xbf16>, vector<12x128xf32> -> vector<12x128xf32>
    %966 = arith.addf %937, %965 : vector<12x128xf32>
    %c121_i32_464 = arith.constant 121 : i32
    %967 = tpu.dynamic_rotate %808 by %c121_i32_464 dim 1 : vector<12x128xf32>, i32 -> vector<12x128xf32>
    %c-1_i32_465 = arith.constant -1 : i32
    %968 = vector.broadcast %c-1_i32_465 : i32 to vector<1x128xi32>
    %969 = arith.addi %811, %968 : vector<1x128xi32>
    %c0_i32_466 = arith.constant 0 : i32
    %970 = vector.broadcast %c0_i32_466 : i32 to vector<1x128xi32>
    %971 = arith.cmpi sge, %969, %970 : vector<1x128xi32>
    %c-1_i32_467 = arith.constant -1 : i32
    %972 = vector.broadcast %c-1_i32_467 : i32 to vector<1x128xi32>
    %973 = arith.addi %811, %972 : vector<1x128xi32>
    %c8_i32_468 = arith.constant 8 : i32
    %974 = vector.broadcast %c8_i32_468 : i32 to vector<1x128xi32>
    %975 = arith.cmpi slt, %973, %974 : vector<1x128xi32>
    %976 = arith.andi %971, %975 : vector<1x128xi1>
    %c1_i32_469 = arith.constant 1 : i32
    %977 = vector.broadcast %c1_i32_469 : i32 to vector<1x128xi32>
    %978 = arith.addi %815, %977 : vector<1x128xi32>
    %c0_i32_470 = arith.constant 0 : i32
    %979 = vector.broadcast %c0_i32_470 : i32 to vector<1x128xi32>
    %980 = arith.cmpi sge, %978, %979 : vector<1x128xi32>
    %981 = arith.andi %976, %980 : vector<1x128xi1>
    %c1_i32_471 = arith.constant 1 : i32
    %982 = vector.broadcast %c1_i32_471 : i32 to vector<1x128xi32>
    %983 = arith.addi %815, %982 : vector<1x128xi32>
    %c8_i32_472 = arith.constant 8 : i32
    %984 = vector.broadcast %c8_i32_472 : i32 to vector<1x128xi32>
    %985 = arith.cmpi slt, %983, %984 : vector<1x128xi32>
    %986 = arith.andi %981, %985 : vector<1x128xi1>
    %cst_473 = arith.constant 0.000000e+00 : f32
    %987 = vector.shape_cast %986 : vector<1x128xi1> to vector<1x128xi1>
    %988 = vector.broadcast %987 : vector<1x128xi1> to vector<12x128xi1>
    %989 = vector.broadcast %cst_473 : f32 to vector<12x128xf32>
    %990 = arith.select %988, %967, %989 : vector<12x128xi1>, vector<12x128xf32>
    %c4_474 = arith.constant 4 : index
    %c6_475 = arith.constant 6 : index
    %c0_476 = arith.constant 0 : index
    %c0_477 = arith.constant 0 : index
    %991 = vector.load %arg1[%c4_474, %c6_475, %c0_476, %c0_477] : memref<9x9x12x12xbf16, #tpu.memory_space<vmem>>, vector<1x1x12x12xbf16>
    %992 = vector.shape_cast %991 : vector<1x1x12x12xbf16> to vector<12x12xbf16>
    %993 = arith.truncf %990 : vector<12x128xf32> to vector<12x128xbf16>
    %cst_478 = arith.constant dense<0.000000e+00> : vector<12x128xf32>
    %994 = tpu.matmul %992, %993, %cst_478 {dimension_numbers = #tpu.dot_dimension_numbers<[1], [0], [0], [1], [0, 0, 1, 1], [], []>} : vector<12x12xbf16>, vector<12x128xbf16>, vector<12x128xf32> -> vector<12x128xf32>
    %995 = arith.addf %966, %994 : vector<12x128xf32>
    %c120_i32_479 = arith.constant 120 : i32
    %996 = tpu.dynamic_rotate %808 by %c120_i32_479 dim 1 : vector<12x128xf32>, i32 -> vector<12x128xf32>
    %c0_i32_480 = arith.constant 0 : i32
    %997 = vector.broadcast %c0_i32_480 : i32 to vector<1x128xi32>
    %998 = arith.addi %811, %997 : vector<1x128xi32>
    %c0_i32_481 = arith.constant 0 : i32
    %999 = vector.broadcast %c0_i32_481 : i32 to vector<1x128xi32>
    %1000 = arith.cmpi sge, %998, %999 : vector<1x128xi32>
    %c0_i32_482 = arith.constant 0 : i32
    %1001 = vector.broadcast %c0_i32_482 : i32 to vector<1x128xi32>
    %1002 = arith.addi %811, %1001 : vector<1x128xi32>
    %c8_i32_483 = arith.constant 8 : i32
    %1003 = vector.broadcast %c8_i32_483 : i32 to vector<1x128xi32>
    %1004 = arith.cmpi slt, %1002, %1003 : vector<1x128xi32>
    %1005 = arith.andi %1000, %1004 : vector<1x128xi1>
    %c1_i32_484 = arith.constant 1 : i32
    %1006 = vector.broadcast %c1_i32_484 : i32 to vector<1x128xi32>
    %1007 = arith.addi %815, %1006 : vector<1x128xi32>
    %c0_i32_485 = arith.constant 0 : i32
    %1008 = vector.broadcast %c0_i32_485 : i32 to vector<1x128xi32>
    %1009 = arith.cmpi sge, %1007, %1008 : vector<1x128xi32>
    %1010 = arith.andi %1005, %1009 : vector<1x128xi1>
    %c1_i32_486 = arith.constant 1 : i32
    %1011 = vector.broadcast %c1_i32_486 : i32 to vector<1x128xi32>
    %1012 = arith.addi %815, %1011 : vector<1x128xi32>
    %c8_i32_487 = arith.constant 8 : i32
    %1013 = vector.broadcast %c8_i32_487 : i32 to vector<1x128xi32>
    %1014 = arith.cmpi slt, %1012, %1013 : vector<1x128xi32>
    %1015 = arith.andi %1010, %1014 : vector<1x128xi1>
    %cst_488 = arith.constant 0.000000e+00 : f32
    %1016 = vector.shape_cast %1015 : vector<1x128xi1> to vector<1x128xi1>
    %1017 = vector.broadcast %1016 : vector<1x128xi1> to vector<12x128xi1>
    %1018 = vector.broadcast %cst_488 : f32 to vector<12x128xf32>
    %1019 = arith.select %1017, %996, %1018 : vector<12x128xi1>, vector<12x128xf32>
    %c4_489 = arith.constant 4 : index
    %c7_490 = arith.constant 7 : index
    %c0_491 = arith.constant 0 : index
    %c0_492 = arith.constant 0 : index
    %1020 = vector.load %arg1[%c4_489, %c7_490, %c0_491, %c0_492] : memref<9x9x12x12xbf16, #tpu.memory_space<vmem>>, vector<1x1x12x12xbf16>
    %1021 = vector.shape_cast %1020 : vector<1x1x12x12xbf16> to vector<12x12xbf16>
    %1022 = arith.truncf %1019 : vector<12x128xf32> to vector<12x128xbf16>
    %cst_493 = arith.constant dense<0.000000e+00> : vector<12x128xf32>
    %1023 = tpu.matmul %1021, %1022, %cst_493 {dimension_numbers = #tpu.dot_dimension_numbers<[1], [0], [0], [1], [0, 0, 1, 1], [], []>} : vector<12x12xbf16>, vector<12x128xbf16>, vector<12x128xf32> -> vector<12x128xf32>
    %1024 = arith.addf %995, %1023 : vector<12x128xf32>
    %c119_i32_494 = arith.constant 119 : i32
    %1025 = tpu.dynamic_rotate %808 by %c119_i32_494 dim 1 : vector<12x128xf32>, i32 -> vector<12x128xf32>
    %c1_i32_495 = arith.constant 1 : i32
    %1026 = vector.broadcast %c1_i32_495 : i32 to vector<1x128xi32>
    %1027 = arith.addi %811, %1026 : vector<1x128xi32>
    %c0_i32_496 = arith.constant 0 : i32
    %1028 = vector.broadcast %c0_i32_496 : i32 to vector<1x128xi32>
    %1029 = arith.cmpi sge, %1027, %1028 : vector<1x128xi32>
    %c1_i32_497 = arith.constant 1 : i32
    %1030 = vector.broadcast %c1_i32_497 : i32 to vector<1x128xi32>
    %1031 = arith.addi %811, %1030 : vector<1x128xi32>
    %c8_i32_498 = arith.constant 8 : i32
    %1032 = vector.broadcast %c8_i32_498 : i32 to vector<1x128xi32>
    %1033 = arith.cmpi slt, %1031, %1032 : vector<1x128xi32>
    %1034 = arith.andi %1029, %1033 : vector<1x128xi1>
    %c1_i32_499 = arith.constant 1 : i32
    %1035 = vector.broadcast %c1_i32_499 : i32 to vector<1x128xi32>
    %1036 = arith.addi %815, %1035 : vector<1x128xi32>
    %c0_i32_500 = arith.constant 0 : i32
    %1037 = vector.broadcast %c0_i32_500 : i32 to vector<1x128xi32>
    %1038 = arith.cmpi sge, %1036, %1037 : vector<1x128xi32>
    %1039 = arith.andi %1034, %1038 : vector<1x128xi1>
    %c1_i32_501 = arith.constant 1 : i32
    %1040 = vector.broadcast %c1_i32_501 : i32 to vector<1x128xi32>
    %1041 = arith.addi %815, %1040 : vector<1x128xi32>
    %c8_i32_502 = arith.constant 8 : i32
    %1042 = vector.broadcast %c8_i32_502 : i32 to vector<1x128xi32>
    %1043 = arith.cmpi slt, %1041, %1042 : vector<1x128xi32>
    %1044 = arith.andi %1039, %1043 : vector<1x128xi1>
    %cst_503 = arith.constant 0.000000e+00 : f32
    %1045 = vector.shape_cast %1044 : vector<1x128xi1> to vector<1x128xi1>
    %1046 = vector.broadcast %1045 : vector<1x128xi1> to vector<12x128xi1>
    %1047 = vector.broadcast %cst_503 : f32 to vector<12x128xf32>
    %1048 = arith.select %1046, %1025, %1047 : vector<12x128xi1>, vector<12x128xf32>
    %c4_504 = arith.constant 4 : index
    %c8_505 = arith.constant 8 : index
    %c0_506 = arith.constant 0 : index
    %c0_507 = arith.constant 0 : index
    %1049 = vector.load %arg1[%c4_504, %c8_505, %c0_506, %c0_507] : memref<9x9x12x12xbf16, #tpu.memory_space<vmem>>, vector<1x1x12x12xbf16>
    %1050 = vector.shape_cast %1049 : vector<1x1x12x12xbf16> to vector<12x12xbf16>
    %1051 = arith.truncf %1048 : vector<12x128xf32> to vector<12x128xbf16>
    %cst_508 = arith.constant dense<0.000000e+00> : vector<12x128xf32>
    %1052 = tpu.matmul %1050, %1051, %cst_508 {dimension_numbers = #tpu.dot_dimension_numbers<[1], [0], [0], [1], [0, 0, 1, 1], [], []>} : vector<12x12xbf16>, vector<12x128xbf16>, vector<12x128xf32> -> vector<12x128xf32>
    %1053 = arith.addf %1024, %1052 : vector<12x128xf32>
    %c4_509 = arith.constant 4 : index
    %c0_510 = arith.constant 0 : index
    %c0_511 = arith.constant 0 : index
    %1054 = vector.load %arg2[%c4_509, %c0_510, %c0_511] : memref<9x12x1xf32, #tpu.memory_space<vmem>>, vector<1x12x1xf32>
    %1055 = vector.shape_cast %1054 : vector<1x12x1xf32> to vector<12x1xf32>
    %1056 = vector.broadcast %1055 : vector<12x1xf32> to vector<12x128xf32>
    %1057 = arith.addf %1053, %1056 : vector<12x128xf32>
    %cst_512 = arith.constant 0.000000e+00 : f32
    %1058 = vector.broadcast %cst_512 : f32 to vector<12x128xf32>
    %1059 = arith.maximumf %1057, %1058 : vector<12x128xf32>
    %c127_i32_513 = arith.constant 127 : i32
    %1060 = tpu.dynamic_rotate %1059 by %c127_i32_513 dim 1 : vector<12x128xf32>, i32 -> vector<12x128xf32>
    %c120_i32_514 = arith.constant 120 : i32
    %1061 = tpu.dynamic_rotate %1059 by %c120_i32_514 dim 1 : vector<12x128xf32>, i32 -> vector<12x128xf32>
    %c119_i32_515 = arith.constant 119 : i32
    %1062 = tpu.dynamic_rotate %1059 by %c119_i32_515 dim 1 : vector<12x128xf32>, i32 -> vector<12x128xf32>
    %1063 = arith.maximumf %1059, %1060 : vector<12x128xf32>
    %1064 = arith.maximumf %1061, %1062 : vector<12x128xf32>
    %1065 = arith.maximumf %1063, %1064 : vector<12x128xf32>
    %1066 = tpu.iota {dimensions = array<i32: 0>} : vector<128x128xi32>
    %1067 = tpu.iota {dimensions = array<i32: 1>} : vector<128x128xi32>
    %c4_i32_516 = arith.constant 4 : i32
    %1068 = vector.broadcast %c4_i32_516 : i32 to vector<128x128xi32>
    %1069 = arith.shrsi %1067, %1068 : vector<128x128xi32>
    %c15_i32_517 = arith.constant 15 : i32
    %1070 = vector.broadcast %c15_i32_517 : i32 to vector<128x128xi32>
    %1071 = arith.andi %1067, %1070 : vector<128x128xi32>
    %c64_i32 = arith.constant 64 : i32
    %1072 = vector.broadcast %c64_i32 : i32 to vector<128x128xi32>
    %1073 = arith.muli %1069, %1072 : vector<128x128xi32>
    %c2_i32_518 = arith.constant 2 : i32
    %1074 = vector.broadcast %c2_i32_518 : i32 to vector<128x128xi32>
    %1075 = arith.shrsi %1071, %1074 : vector<128x128xi32>
    %c16_i32_519 = arith.constant 16 : i32
    %1076 = vector.broadcast %c16_i32_519 : i32 to vector<128x128xi32>
    %1077 = arith.muli %1075, %1076 : vector<128x128xi32>
    %1078 = arith.addi %1073, %1077 : vector<128x128xi32>
    %c3_i32_520 = arith.constant 3 : i32
    %1079 = vector.broadcast %c3_i32_520 : i32 to vector<128x128xi32>
    %1080 = arith.andi %1071, %1079 : vector<128x128xi32>
    %c2_i32_521 = arith.constant 2 : i32
    %1081 = vector.broadcast %c2_i32_521 : i32 to vector<128x128xi32>
    %1082 = arith.muli %1080, %1081 : vector<128x128xi32>
    %1083 = arith.addi %1078, %1082 : vector<128x128xi32>
    %1084 = arith.cmpi eq, %1066, %1083 : vector<128x128xi32>
    %c32_i32_522 = arith.constant 32 : i32
    %1085 = vector.broadcast %c32_i32_522 : i32 to vector<128x128xi32>
    %1086 = arith.cmpi slt, %1067, %1085 : vector<128x128xi32>
    %1087 = arith.andi %1084, %1086 : vector<128x128xi1>
    %cst_523 = arith.constant 1.000000e+00 : f32
    %cst_524 = arith.constant 0.000000e+00 : f32
    %1088 = vector.broadcast %cst_523 : f32 to vector<128x128xf32>
    %1089 = vector.broadcast %cst_524 : f32 to vector<128x128xf32>
    %1090 = arith.select %1087, %1088, %1089 : vector<128x128xi1>, vector<128x128xf32>
    %1091 = arith.truncf %1090 : vector<128x128xf32> to vector<128x128xbf16>
    %1092 = arith.truncf %1065 : vector<12x128xf32> to vector<12x128xbf16>
    %cst_525 = arith.constant dense<0.000000e+00> : vector<12x128xf32>
    %1093 = tpu.matmul %1092, %1091, %cst_525 {dimension_numbers = #tpu.dot_dimension_numbers<[1], [0], [0], [1], [0, 0, 1, 1], [], []>} : vector<12x128xbf16>, vector<128x128xbf16>, vector<12x128xf32> -> vector<12x128xf32>
    %c5_526 = arith.constant 5 : index
    %c0_527 = arith.constant 0 : index
    %c0_528 = arith.constant 0 : index
    %c0_529 = arith.constant 0 : index
    %1094 = vector.load %arg1[%c5_526, %c0_527, %c0_528, %c0_529] : memref<9x9x12x12xbf16, #tpu.memory_space<vmem>>, vector<1x1x12x12xbf16>
    %1095 = vector.shape_cast %1094 : vector<1x1x12x12xbf16> to vector<12x12xbf16>
    %1096 = arith.truncf %1093 : vector<12x128xf32> to vector<12x128xbf16>
    %cst_530 = arith.constant dense<0.000000e+00> : vector<12x128xf32>
    %1097 = tpu.matmul %1095, %1096, %cst_530 {dimension_numbers = #tpu.dot_dimension_numbers<[1], [0], [0], [1], [0, 0, 1, 1], [], []>} : vector<12x12xbf16>, vector<12x128xbf16>, vector<12x128xf32> -> vector<12x128xf32>
    %c5_531 = arith.constant 5 : index
    %c0_532 = arith.constant 0 : index
    %c0_533 = arith.constant 0 : index
    %1098 = vector.load %arg2[%c5_531, %c0_532, %c0_533] : memref<9x12x1xf32, #tpu.memory_space<vmem>>, vector<1x12x1xf32>
    %1099 = vector.shape_cast %1098 : vector<1x12x1xf32> to vector<12x1xf32>
    %1100 = vector.broadcast %1099 : vector<12x1xf32> to vector<12x128xf32>
    %1101 = arith.addf %1097, %1100 : vector<12x128xf32>
    %cst_534 = arith.constant 0.000000e+00 : f32
    %1102 = vector.broadcast %cst_534 : f32 to vector<12x128xf32>
    %1103 = arith.maximumf %1101, %1102 : vector<12x128xf32>
    %1104 = tpu.iota {dimensions = array<i32: 1>} : vector<1x128xi32>
    %c3_i32_535 = arith.constant 3 : i32
    %1105 = vector.broadcast %c3_i32_535 : i32 to vector<1x128xi32>
    %1106 = arith.andi %1104, %1105 : vector<1x128xi32>
    %c2_i32_536 = arith.constant 2 : i32
    %1107 = vector.broadcast %c2_i32_536 : i32 to vector<1x128xi32>
    %1108 = arith.shrsi %1104, %1107 : vector<1x128xi32>
    %c3_i32_537 = arith.constant 3 : i32
    %1109 = vector.broadcast %c3_i32_537 : i32 to vector<1x128xi32>
    %1110 = arith.andi %1108, %1109 : vector<1x128xi32>
    %cst_538 = arith.constant 0.000000e+00 : f32
    %1111 = vector.broadcast %cst_538 : f32 to vector<12x128xf32>
    %c5_i32 = arith.constant 5 : i32
    %1112 = tpu.dynamic_rotate %1103 by %c5_i32 dim 1 : vector<12x128xf32>, i32 -> vector<12x128xf32>
    %c-1_i32_539 = arith.constant -1 : i32
    %1113 = vector.broadcast %c-1_i32_539 : i32 to vector<1x128xi32>
    %1114 = arith.addi %1106, %1113 : vector<1x128xi32>
    %c0_i32_540 = arith.constant 0 : i32
    %1115 = vector.broadcast %c0_i32_540 : i32 to vector<1x128xi32>
    %1116 = arith.cmpi sge, %1114, %1115 : vector<1x128xi32>
    %c-1_i32_541 = arith.constant -1 : i32
    %1117 = vector.broadcast %c-1_i32_541 : i32 to vector<1x128xi32>
    %1118 = arith.addi %1106, %1117 : vector<1x128xi32>
    %c4_i32_542 = arith.constant 4 : i32
    %1119 = vector.broadcast %c4_i32_542 : i32 to vector<1x128xi32>
    %1120 = arith.cmpi slt, %1118, %1119 : vector<1x128xi32>
    %1121 = arith.andi %1116, %1120 : vector<1x128xi1>
    %c-1_i32_543 = arith.constant -1 : i32
    %1122 = vector.broadcast %c-1_i32_543 : i32 to vector<1x128xi32>
    %1123 = arith.addi %1110, %1122 : vector<1x128xi32>
    %c0_i32_544 = arith.constant 0 : i32
    %1124 = vector.broadcast %c0_i32_544 : i32 to vector<1x128xi32>
    %1125 = arith.cmpi sge, %1123, %1124 : vector<1x128xi32>
    %1126 = arith.andi %1121, %1125 : vector<1x128xi1>
    %c-1_i32_545 = arith.constant -1 : i32
    %1127 = vector.broadcast %c-1_i32_545 : i32 to vector<1x128xi32>
    %1128 = arith.addi %1110, %1127 : vector<1x128xi32>
    %c4_i32_546 = arith.constant 4 : i32
    %1129 = vector.broadcast %c4_i32_546 : i32 to vector<1x128xi32>
    %1130 = arith.cmpi slt, %1128, %1129 : vector<1x128xi32>
    %1131 = arith.andi %1126, %1130 : vector<1x128xi1>
    %cst_547 = arith.constant 0.000000e+00 : f32
    %1132 = vector.shape_cast %1131 : vector<1x128xi1> to vector<1x128xi1>
    %1133 = vector.broadcast %1132 : vector<1x128xi1> to vector<12x128xi1>
    %1134 = vector.broadcast %cst_547 : f32 to vector<12x128xf32>
    %1135 = arith.select %1133, %1112, %1134 : vector<12x128xi1>, vector<12x128xf32>
    %c6_548 = arith.constant 6 : index
    %c0_549 = arith.constant 0 : index
    %c0_550 = arith.constant 0 : index
    %c0_551 = arith.constant 0 : index
    %1136 = vector.load %arg1[%c6_548, %c0_549, %c0_550, %c0_551] : memref<9x9x12x12xbf16, #tpu.memory_space<vmem>>, vector<1x1x12x12xbf16>
    %1137 = vector.shape_cast %1136 : vector<1x1x12x12xbf16> to vector<12x12xbf16>
    %1138 = arith.truncf %1135 : vector<12x128xf32> to vector<12x128xbf16>
    %cst_552 = arith.constant dense<0.000000e+00> : vector<12x128xf32>
    %1139 = tpu.matmul %1137, %1138, %cst_552 {dimension_numbers = #tpu.dot_dimension_numbers<[1], [0], [0], [1], [0, 0, 1, 1], [], []>} : vector<12x12xbf16>, vector<12x128xbf16>, vector<12x128xf32> -> vector<12x128xf32>
    %1140 = arith.addf %1111, %1139 : vector<12x128xf32>
    %c4_i32_553 = arith.constant 4 : i32
    %1141 = tpu.dynamic_rotate %1103 by %c4_i32_553 dim 1 : vector<12x128xf32>, i32 -> vector<12x128xf32>
    %c0_i32_554 = arith.constant 0 : i32
    %1142 = vector.broadcast %c0_i32_554 : i32 to vector<1x128xi32>
    %1143 = arith.addi %1106, %1142 : vector<1x128xi32>
    %c0_i32_555 = arith.constant 0 : i32
    %1144 = vector.broadcast %c0_i32_555 : i32 to vector<1x128xi32>
    %1145 = arith.cmpi sge, %1143, %1144 : vector<1x128xi32>
    %c0_i32_556 = arith.constant 0 : i32
    %1146 = vector.broadcast %c0_i32_556 : i32 to vector<1x128xi32>
    %1147 = arith.addi %1106, %1146 : vector<1x128xi32>
    %c4_i32_557 = arith.constant 4 : i32
    %1148 = vector.broadcast %c4_i32_557 : i32 to vector<1x128xi32>
    %1149 = arith.cmpi slt, %1147, %1148 : vector<1x128xi32>
    %1150 = arith.andi %1145, %1149 : vector<1x128xi1>
    %c-1_i32_558 = arith.constant -1 : i32
    %1151 = vector.broadcast %c-1_i32_558 : i32 to vector<1x128xi32>
    %1152 = arith.addi %1110, %1151 : vector<1x128xi32>
    %c0_i32_559 = arith.constant 0 : i32
    %1153 = vector.broadcast %c0_i32_559 : i32 to vector<1x128xi32>
    %1154 = arith.cmpi sge, %1152, %1153 : vector<1x128xi32>
    %1155 = arith.andi %1150, %1154 : vector<1x128xi1>
    %c-1_i32_560 = arith.constant -1 : i32
    %1156 = vector.broadcast %c-1_i32_560 : i32 to vector<1x128xi32>
    %1157 = arith.addi %1110, %1156 : vector<1x128xi32>
    %c4_i32_561 = arith.constant 4 : i32
    %1158 = vector.broadcast %c4_i32_561 : i32 to vector<1x128xi32>
    %1159 = arith.cmpi slt, %1157, %1158 : vector<1x128xi32>
    %1160 = arith.andi %1155, %1159 : vector<1x128xi1>
    %cst_562 = arith.constant 0.000000e+00 : f32
    %1161 = vector.shape_cast %1160 : vector<1x128xi1> to vector<1x128xi1>
    %1162 = vector.broadcast %1161 : vector<1x128xi1> to vector<12x128xi1>
    %1163 = vector.broadcast %cst_562 : f32 to vector<12x128xf32>
    %1164 = arith.select %1162, %1141, %1163 : vector<12x128xi1>, vector<12x128xf32>
    %c6_563 = arith.constant 6 : index
    %c1_564 = arith.constant 1 : index
    %c0_565 = arith.constant 0 : index
    %c0_566 = arith.constant 0 : index
    %1165 = vector.load %arg1[%c6_563, %c1_564, %c0_565, %c0_566] : memref<9x9x12x12xbf16, #tpu.memory_space<vmem>>, vector<1x1x12x12xbf16>
    %1166 = vector.shape_cast %1165 : vector<1x1x12x12xbf16> to vector<12x12xbf16>
    %1167 = arith.truncf %1164 : vector<12x128xf32> to vector<12x128xbf16>
    %cst_567 = arith.constant dense<0.000000e+00> : vector<12x128xf32>
    %1168 = tpu.matmul %1166, %1167, %cst_567 {dimension_numbers = #tpu.dot_dimension_numbers<[1], [0], [0], [1], [0, 0, 1, 1], [], []>} : vector<12x12xbf16>, vector<12x128xbf16>, vector<12x128xf32> -> vector<12x128xf32>
    %1169 = arith.addf %1140, %1168 : vector<12x128xf32>
    %c3_i32_568 = arith.constant 3 : i32
    %1170 = tpu.dynamic_rotate %1103 by %c3_i32_568 dim 1 : vector<12x128xf32>, i32 -> vector<12x128xf32>
    %c1_i32_569 = arith.constant 1 : i32
    %1171 = vector.broadcast %c1_i32_569 : i32 to vector<1x128xi32>
    %1172 = arith.addi %1106, %1171 : vector<1x128xi32>
    %c0_i32_570 = arith.constant 0 : i32
    %1173 = vector.broadcast %c0_i32_570 : i32 to vector<1x128xi32>
    %1174 = arith.cmpi sge, %1172, %1173 : vector<1x128xi32>
    %c1_i32_571 = arith.constant 1 : i32
    %1175 = vector.broadcast %c1_i32_571 : i32 to vector<1x128xi32>
    %1176 = arith.addi %1106, %1175 : vector<1x128xi32>
    %c4_i32_572 = arith.constant 4 : i32
    %1177 = vector.broadcast %c4_i32_572 : i32 to vector<1x128xi32>
    %1178 = arith.cmpi slt, %1176, %1177 : vector<1x128xi32>
    %1179 = arith.andi %1174, %1178 : vector<1x128xi1>
    %c-1_i32_573 = arith.constant -1 : i32
    %1180 = vector.broadcast %c-1_i32_573 : i32 to vector<1x128xi32>
    %1181 = arith.addi %1110, %1180 : vector<1x128xi32>
    %c0_i32_574 = arith.constant 0 : i32
    %1182 = vector.broadcast %c0_i32_574 : i32 to vector<1x128xi32>
    %1183 = arith.cmpi sge, %1181, %1182 : vector<1x128xi32>
    %1184 = arith.andi %1179, %1183 : vector<1x128xi1>
    %c-1_i32_575 = arith.constant -1 : i32
    %1185 = vector.broadcast %c-1_i32_575 : i32 to vector<1x128xi32>
    %1186 = arith.addi %1110, %1185 : vector<1x128xi32>
    %c4_i32_576 = arith.constant 4 : i32
    %1187 = vector.broadcast %c4_i32_576 : i32 to vector<1x128xi32>
    %1188 = arith.cmpi slt, %1186, %1187 : vector<1x128xi32>
    %1189 = arith.andi %1184, %1188 : vector<1x128xi1>
    %cst_577 = arith.constant 0.000000e+00 : f32
    %1190 = vector.shape_cast %1189 : vector<1x128xi1> to vector<1x128xi1>
    %1191 = vector.broadcast %1190 : vector<1x128xi1> to vector<12x128xi1>
    %1192 = vector.broadcast %cst_577 : f32 to vector<12x128xf32>
    %1193 = arith.select %1191, %1170, %1192 : vector<12x128xi1>, vector<12x128xf32>
    %c6_578 = arith.constant 6 : index
    %c2_579 = arith.constant 2 : index
    %c0_580 = arith.constant 0 : index
    %c0_581 = arith.constant 0 : index
    %1194 = vector.load %arg1[%c6_578, %c2_579, %c0_580, %c0_581] : memref<9x9x12x12xbf16, #tpu.memory_space<vmem>>, vector<1x1x12x12xbf16>
    %1195 = vector.shape_cast %1194 : vector<1x1x12x12xbf16> to vector<12x12xbf16>
    %1196 = arith.truncf %1193 : vector<12x128xf32> to vector<12x128xbf16>
    %cst_582 = arith.constant dense<0.000000e+00> : vector<12x128xf32>
    %1197 = tpu.matmul %1195, %1196, %cst_582 {dimension_numbers = #tpu.dot_dimension_numbers<[1], [0], [0], [1], [0, 0, 1, 1], [], []>} : vector<12x12xbf16>, vector<12x128xbf16>, vector<12x128xf32> -> vector<12x128xf32>
    %1198 = arith.addf %1169, %1197 : vector<12x128xf32>
    %c1_i32_583 = arith.constant 1 : i32
    %1199 = tpu.dynamic_rotate %1103 by %c1_i32_583 dim 1 : vector<12x128xf32>, i32 -> vector<12x128xf32>
    %c-1_i32_584 = arith.constant -1 : i32
    %1200 = vector.broadcast %c-1_i32_584 : i32 to vector<1x128xi32>
    %1201 = arith.addi %1106, %1200 : vector<1x128xi32>
    %c0_i32_585 = arith.constant 0 : i32
    %1202 = vector.broadcast %c0_i32_585 : i32 to vector<1x128xi32>
    %1203 = arith.cmpi sge, %1201, %1202 : vector<1x128xi32>
    %c-1_i32_586 = arith.constant -1 : i32
    %1204 = vector.broadcast %c-1_i32_586 : i32 to vector<1x128xi32>
    %1205 = arith.addi %1106, %1204 : vector<1x128xi32>
    %c4_i32_587 = arith.constant 4 : i32
    %1206 = vector.broadcast %c4_i32_587 : i32 to vector<1x128xi32>
    %1207 = arith.cmpi slt, %1205, %1206 : vector<1x128xi32>
    %1208 = arith.andi %1203, %1207 : vector<1x128xi1>
    %c0_i32_588 = arith.constant 0 : i32
    %1209 = vector.broadcast %c0_i32_588 : i32 to vector<1x128xi32>
    %1210 = arith.addi %1110, %1209 : vector<1x128xi32>
    %c0_i32_589 = arith.constant 0 : i32
    %1211 = vector.broadcast %c0_i32_589 : i32 to vector<1x128xi32>
    %1212 = arith.cmpi sge, %1210, %1211 : vector<1x128xi32>
    %1213 = arith.andi %1208, %1212 : vector<1x128xi1>
    %c0_i32_590 = arith.constant 0 : i32
    %1214 = vector.broadcast %c0_i32_590 : i32 to vector<1x128xi32>
    %1215 = arith.addi %1110, %1214 : vector<1x128xi32>
    %c4_i32_591 = arith.constant 4 : i32
    %1216 = vector.broadcast %c4_i32_591 : i32 to vector<1x128xi32>
    %1217 = arith.cmpi slt, %1215, %1216 : vector<1x128xi32>
    %1218 = arith.andi %1213, %1217 : vector<1x128xi1>
    %cst_592 = arith.constant 0.000000e+00 : f32
    %1219 = vector.shape_cast %1218 : vector<1x128xi1> to vector<1x128xi1>
    %1220 = vector.broadcast %1219 : vector<1x128xi1> to vector<12x128xi1>
    %1221 = vector.broadcast %cst_592 : f32 to vector<12x128xf32>
    %1222 = arith.select %1220, %1199, %1221 : vector<12x128xi1>, vector<12x128xf32>
    %c6_593 = arith.constant 6 : index
    %c3_594 = arith.constant 3 : index
    %c0_595 = arith.constant 0 : index
    %c0_596 = arith.constant 0 : index
    %1223 = vector.load %arg1[%c6_593, %c3_594, %c0_595, %c0_596] : memref<9x9x12x12xbf16, #tpu.memory_space<vmem>>, vector<1x1x12x12xbf16>
    %1224 = vector.shape_cast %1223 : vector<1x1x12x12xbf16> to vector<12x12xbf16>
    %1225 = arith.truncf %1222 : vector<12x128xf32> to vector<12x128xbf16>
    %cst_597 = arith.constant dense<0.000000e+00> : vector<12x128xf32>
    %1226 = tpu.matmul %1224, %1225, %cst_597 {dimension_numbers = #tpu.dot_dimension_numbers<[1], [0], [0], [1], [0, 0, 1, 1], [], []>} : vector<12x12xbf16>, vector<12x128xbf16>, vector<12x128xf32> -> vector<12x128xf32>
    %1227 = arith.addf %1198, %1226 : vector<12x128xf32>
    %c6_598 = arith.constant 6 : index
    %c4_599 = arith.constant 4 : index
    %c0_600 = arith.constant 0 : index
    %c0_601 = arith.constant 0 : index
    %1228 = vector.load %arg1[%c6_598, %c4_599, %c0_600, %c0_601] : memref<9x9x12x12xbf16, #tpu.memory_space<vmem>>, vector<1x1x12x12xbf16>
    %1229 = vector.shape_cast %1228 : vector<1x1x12x12xbf16> to vector<12x12xbf16>
    %1230 = arith.truncf %1103 : vector<12x128xf32> to vector<12x128xbf16>
    %cst_602 = arith.constant dense<0.000000e+00> : vector<12x128xf32>
    %1231 = tpu.matmul %1229, %1230, %cst_602 {dimension_numbers = #tpu.dot_dimension_numbers<[1], [0], [0], [1], [0, 0, 1, 1], [], []>} : vector<12x12xbf16>, vector<12x128xbf16>, vector<12x128xf32> -> vector<12x128xf32>
    %1232 = arith.addf %1227, %1231 : vector<12x128xf32>
    %c127_i32_603 = arith.constant 127 : i32
    %1233 = tpu.dynamic_rotate %1103 by %c127_i32_603 dim 1 : vector<12x128xf32>, i32 -> vector<12x128xf32>
    %c1_i32_604 = arith.constant 1 : i32
    %1234 = vector.broadcast %c1_i32_604 : i32 to vector<1x128xi32>
    %1235 = arith.addi %1106, %1234 : vector<1x128xi32>
    %c0_i32_605 = arith.constant 0 : i32
    %1236 = vector.broadcast %c0_i32_605 : i32 to vector<1x128xi32>
    %1237 = arith.cmpi sge, %1235, %1236 : vector<1x128xi32>
    %c1_i32_606 = arith.constant 1 : i32
    %1238 = vector.broadcast %c1_i32_606 : i32 to vector<1x128xi32>
    %1239 = arith.addi %1106, %1238 : vector<1x128xi32>
    %c4_i32_607 = arith.constant 4 : i32
    %1240 = vector.broadcast %c4_i32_607 : i32 to vector<1x128xi32>
    %1241 = arith.cmpi slt, %1239, %1240 : vector<1x128xi32>
    %1242 = arith.andi %1237, %1241 : vector<1x128xi1>
    %c0_i32_608 = arith.constant 0 : i32
    %1243 = vector.broadcast %c0_i32_608 : i32 to vector<1x128xi32>
    %1244 = arith.addi %1110, %1243 : vector<1x128xi32>
    %c0_i32_609 = arith.constant 0 : i32
    %1245 = vector.broadcast %c0_i32_609 : i32 to vector<1x128xi32>
    %1246 = arith.cmpi sge, %1244, %1245 : vector<1x128xi32>
    %1247 = arith.andi %1242, %1246 : vector<1x128xi1>
    %c0_i32_610 = arith.constant 0 : i32
    %1248 = vector.broadcast %c0_i32_610 : i32 to vector<1x128xi32>
    %1249 = arith.addi %1110, %1248 : vector<1x128xi32>
    %c4_i32_611 = arith.constant 4 : i32
    %1250 = vector.broadcast %c4_i32_611 : i32 to vector<1x128xi32>
    %1251 = arith.cmpi slt, %1249, %1250 : vector<1x128xi32>
    %1252 = arith.andi %1247, %1251 : vector<1x128xi1>
    %cst_612 = arith.constant 0.000000e+00 : f32
    %1253 = vector.shape_cast %1252 : vector<1x128xi1> to vector<1x128xi1>
    %1254 = vector.broadcast %1253 : vector<1x128xi1> to vector<12x128xi1>
    %1255 = vector.broadcast %cst_612 : f32 to vector<12x128xf32>
    %1256 = arith.select %1254, %1233, %1255 : vector<12x128xi1>, vector<12x128xf32>
    %c6_613 = arith.constant 6 : index
    %c5_614 = arith.constant 5 : index
    %c0_615 = arith.constant 0 : index
    %c0_616 = arith.constant 0 : index
    %1257 = vector.load %arg1[%c6_613, %c5_614, %c0_615, %c0_616] : memref<9x9x12x12xbf16, #tpu.memory_space<vmem>>, vector<1x1x12x12xbf16>
    %1258 = vector.shape_cast %1257 : vector<1x1x12x12xbf16> to vector<12x12xbf16>
    %1259 = arith.truncf %1256 : vector<12x128xf32> to vector<12x128xbf16>
    %cst_617 = arith.constant dense<0.000000e+00> : vector<12x128xf32>
    %1260 = tpu.matmul %1258, %1259, %cst_617 {dimension_numbers = #tpu.dot_dimension_numbers<[1], [0], [0], [1], [0, 0, 1, 1], [], []>} : vector<12x12xbf16>, vector<12x128xbf16>, vector<12x128xf32> -> vector<12x128xf32>
    %1261 = arith.addf %1232, %1260 : vector<12x128xf32>
    %c125_i32 = arith.constant 125 : i32
    %1262 = tpu.dynamic_rotate %1103 by %c125_i32 dim 1 : vector<12x128xf32>, i32 -> vector<12x128xf32>
    %c-1_i32_618 = arith.constant -1 : i32
    %1263 = vector.broadcast %c-1_i32_618 : i32 to vector<1x128xi32>
    %1264 = arith.addi %1106, %1263 : vector<1x128xi32>
    %c0_i32_619 = arith.constant 0 : i32
    %1265 = vector.broadcast %c0_i32_619 : i32 to vector<1x128xi32>
    %1266 = arith.cmpi sge, %1264, %1265 : vector<1x128xi32>
    %c-1_i32_620 = arith.constant -1 : i32
    %1267 = vector.broadcast %c-1_i32_620 : i32 to vector<1x128xi32>
    %1268 = arith.addi %1106, %1267 : vector<1x128xi32>
    %c4_i32_621 = arith.constant 4 : i32
    %1269 = vector.broadcast %c4_i32_621 : i32 to vector<1x128xi32>
    %1270 = arith.cmpi slt, %1268, %1269 : vector<1x128xi32>
    %1271 = arith.andi %1266, %1270 : vector<1x128xi1>
    %c1_i32_622 = arith.constant 1 : i32
    %1272 = vector.broadcast %c1_i32_622 : i32 to vector<1x128xi32>
    %1273 = arith.addi %1110, %1272 : vector<1x128xi32>
    %c0_i32_623 = arith.constant 0 : i32
    %1274 = vector.broadcast %c0_i32_623 : i32 to vector<1x128xi32>
    %1275 = arith.cmpi sge, %1273, %1274 : vector<1x128xi32>
    %1276 = arith.andi %1271, %1275 : vector<1x128xi1>
    %c1_i32_624 = arith.constant 1 : i32
    %1277 = vector.broadcast %c1_i32_624 : i32 to vector<1x128xi32>
    %1278 = arith.addi %1110, %1277 : vector<1x128xi32>
    %c4_i32_625 = arith.constant 4 : i32
    %1279 = vector.broadcast %c4_i32_625 : i32 to vector<1x128xi32>
    %1280 = arith.cmpi slt, %1278, %1279 : vector<1x128xi32>
    %1281 = arith.andi %1276, %1280 : vector<1x128xi1>
    %cst_626 = arith.constant 0.000000e+00 : f32
    %1282 = vector.shape_cast %1281 : vector<1x128xi1> to vector<1x128xi1>
    %1283 = vector.broadcast %1282 : vector<1x128xi1> to vector<12x128xi1>
    %1284 = vector.broadcast %cst_626 : f32 to vector<12x128xf32>
    %1285 = arith.select %1283, %1262, %1284 : vector<12x128xi1>, vector<12x128xf32>
    %c6_627 = arith.constant 6 : index
    %c6_628 = arith.constant 6 : index
    %c0_629 = arith.constant 0 : index
    %c0_630 = arith.constant 0 : index
    %1286 = vector.load %arg1[%c6_627, %c6_628, %c0_629, %c0_630] : memref<9x9x12x12xbf16, #tpu.memory_space<vmem>>, vector<1x1x12x12xbf16>
    %1287 = vector.shape_cast %1286 : vector<1x1x12x12xbf16> to vector<12x12xbf16>
    %1288 = arith.truncf %1285 : vector<12x128xf32> to vector<12x128xbf16>
    %cst_631 = arith.constant dense<0.000000e+00> : vector<12x128xf32>
    %1289 = tpu.matmul %1287, %1288, %cst_631 {dimension_numbers = #tpu.dot_dimension_numbers<[1], [0], [0], [1], [0, 0, 1, 1], [], []>} : vector<12x12xbf16>, vector<12x128xbf16>, vector<12x128xf32> -> vector<12x128xf32>
    %1290 = arith.addf %1261, %1289 : vector<12x128xf32>
    %c124_i32 = arith.constant 124 : i32
    %1291 = tpu.dynamic_rotate %1103 by %c124_i32 dim 1 : vector<12x128xf32>, i32 -> vector<12x128xf32>
    %c0_i32_632 = arith.constant 0 : i32
    %1292 = vector.broadcast %c0_i32_632 : i32 to vector<1x128xi32>
    %1293 = arith.addi %1106, %1292 : vector<1x128xi32>
    %c0_i32_633 = arith.constant 0 : i32
    %1294 = vector.broadcast %c0_i32_633 : i32 to vector<1x128xi32>
    %1295 = arith.cmpi sge, %1293, %1294 : vector<1x128xi32>
    %c0_i32_634 = arith.constant 0 : i32
    %1296 = vector.broadcast %c0_i32_634 : i32 to vector<1x128xi32>
    %1297 = arith.addi %1106, %1296 : vector<1x128xi32>
    %c4_i32_635 = arith.constant 4 : i32
    %1298 = vector.broadcast %c4_i32_635 : i32 to vector<1x128xi32>
    %1299 = arith.cmpi slt, %1297, %1298 : vector<1x128xi32>
    %1300 = arith.andi %1295, %1299 : vector<1x128xi1>
    %c1_i32_636 = arith.constant 1 : i32
    %1301 = vector.broadcast %c1_i32_636 : i32 to vector<1x128xi32>
    %1302 = arith.addi %1110, %1301 : vector<1x128xi32>
    %c0_i32_637 = arith.constant 0 : i32
    %1303 = vector.broadcast %c0_i32_637 : i32 to vector<1x128xi32>
    %1304 = arith.cmpi sge, %1302, %1303 : vector<1x128xi32>
    %1305 = arith.andi %1300, %1304 : vector<1x128xi1>
    %c1_i32_638 = arith.constant 1 : i32
    %1306 = vector.broadcast %c1_i32_638 : i32 to vector<1x128xi32>
    %1307 = arith.addi %1110, %1306 : vector<1x128xi32>
    %c4_i32_639 = arith.constant 4 : i32
    %1308 = vector.broadcast %c4_i32_639 : i32 to vector<1x128xi32>
    %1309 = arith.cmpi slt, %1307, %1308 : vector<1x128xi32>
    %1310 = arith.andi %1305, %1309 : vector<1x128xi1>
    %cst_640 = arith.constant 0.000000e+00 : f32
    %1311 = vector.shape_cast %1310 : vector<1x128xi1> to vector<1x128xi1>
    %1312 = vector.broadcast %1311 : vector<1x128xi1> to vector<12x128xi1>
    %1313 = vector.broadcast %cst_640 : f32 to vector<12x128xf32>
    %1314 = arith.select %1312, %1291, %1313 : vector<12x128xi1>, vector<12x128xf32>
    %c6_641 = arith.constant 6 : index
    %c7_642 = arith.constant 7 : index
    %c0_643 = arith.constant 0 : index
    %c0_644 = arith.constant 0 : index
    %1315 = vector.load %arg1[%c6_641, %c7_642, %c0_643, %c0_644] : memref<9x9x12x12xbf16, #tpu.memory_space<vmem>>, vector<1x1x12x12xbf16>
    %1316 = vector.shape_cast %1315 : vector<1x1x12x12xbf16> to vector<12x12xbf16>
    %1317 = arith.truncf %1314 : vector<12x128xf32> to vector<12x128xbf16>
    %cst_645 = arith.constant dense<0.000000e+00> : vector<12x128xf32>
    %1318 = tpu.matmul %1316, %1317, %cst_645 {dimension_numbers = #tpu.dot_dimension_numbers<[1], [0], [0], [1], [0, 0, 1, 1], [], []>} : vector<12x12xbf16>, vector<12x128xbf16>, vector<12x128xf32> -> vector<12x128xf32>
    %1319 = arith.addf %1290, %1318 : vector<12x128xf32>
    %c123_i32 = arith.constant 123 : i32
    %1320 = tpu.dynamic_rotate %1103 by %c123_i32 dim 1 : vector<12x128xf32>, i32 -> vector<12x128xf32>
    %c1_i32_646 = arith.constant 1 : i32
    %1321 = vector.broadcast %c1_i32_646 : i32 to vector<1x128xi32>
    %1322 = arith.addi %1106, %1321 : vector<1x128xi32>
    %c0_i32_647 = arith.constant 0 : i32
    %1323 = vector.broadcast %c0_i32_647 : i32 to vector<1x128xi32>
    %1324 = arith.cmpi sge, %1322, %1323 : vector<1x128xi32>
    %c1_i32_648 = arith.constant 1 : i32
    %1325 = vector.broadcast %c1_i32_648 : i32 to vector<1x128xi32>
    %1326 = arith.addi %1106, %1325 : vector<1x128xi32>
    %c4_i32_649 = arith.constant 4 : i32
    %1327 = vector.broadcast %c4_i32_649 : i32 to vector<1x128xi32>
    %1328 = arith.cmpi slt, %1326, %1327 : vector<1x128xi32>
    %1329 = arith.andi %1324, %1328 : vector<1x128xi1>
    %c1_i32_650 = arith.constant 1 : i32
    %1330 = vector.broadcast %c1_i32_650 : i32 to vector<1x128xi32>
    %1331 = arith.addi %1110, %1330 : vector<1x128xi32>
    %c0_i32_651 = arith.constant 0 : i32
    %1332 = vector.broadcast %c0_i32_651 : i32 to vector<1x128xi32>
    %1333 = arith.cmpi sge, %1331, %1332 : vector<1x128xi32>
    %1334 = arith.andi %1329, %1333 : vector<1x128xi1>
    %c1_i32_652 = arith.constant 1 : i32
    %1335 = vector.broadcast %c1_i32_652 : i32 to vector<1x128xi32>
    %1336 = arith.addi %1110, %1335 : vector<1x128xi32>
    %c4_i32_653 = arith.constant 4 : i32
    %1337 = vector.broadcast %c4_i32_653 : i32 to vector<1x128xi32>
    %1338 = arith.cmpi slt, %1336, %1337 : vector<1x128xi32>
    %1339 = arith.andi %1334, %1338 : vector<1x128xi1>
    %cst_654 = arith.constant 0.000000e+00 : f32
    %1340 = vector.shape_cast %1339 : vector<1x128xi1> to vector<1x128xi1>
    %1341 = vector.broadcast %1340 : vector<1x128xi1> to vector<12x128xi1>
    %1342 = vector.broadcast %cst_654 : f32 to vector<12x128xf32>
    %1343 = arith.select %1341, %1320, %1342 : vector<12x128xi1>, vector<12x128xf32>
    %c6_655 = arith.constant 6 : index
    %c8_656 = arith.constant 8 : index
    %c0_657 = arith.constant 0 : index
    %c0_658 = arith.constant 0 : index
    %1344 = vector.load %arg1[%c6_655, %c8_656, %c0_657, %c0_658] : memref<9x9x12x12xbf16, #tpu.memory_space<vmem>>, vector<1x1x12x12xbf16>
    %1345 = vector.shape_cast %1344 : vector<1x1x12x12xbf16> to vector<12x12xbf16>
    %1346 = arith.truncf %1343 : vector<12x128xf32> to vector<12x128xbf16>
    %cst_659 = arith.constant dense<0.000000e+00> : vector<12x128xf32>
    %1347 = tpu.matmul %1345, %1346, %cst_659 {dimension_numbers = #tpu.dot_dimension_numbers<[1], [0], [0], [1], [0, 0, 1, 1], [], []>} : vector<12x12xbf16>, vector<12x128xbf16>, vector<12x128xf32> -> vector<12x128xf32>
    %1348 = arith.addf %1319, %1347 : vector<12x128xf32>
    %c6_660 = arith.constant 6 : index
    %c0_661 = arith.constant 0 : index
    %c0_662 = arith.constant 0 : index
    %1349 = vector.load %arg2[%c6_660, %c0_661, %c0_662] : memref<9x12x1xf32, #tpu.memory_space<vmem>>, vector<1x12x1xf32>
    %1350 = vector.shape_cast %1349 : vector<1x12x1xf32> to vector<12x1xf32>
    %1351 = vector.broadcast %1350 : vector<12x1xf32> to vector<12x128xf32>
    %1352 = arith.addf %1348, %1351 : vector<12x128xf32>
    %cst_663 = arith.constant 0.000000e+00 : f32
    %1353 = vector.broadcast %cst_663 : f32 to vector<12x128xf32>
    %1354 = arith.maximumf %1352, %1353 : vector<12x128xf32>
    %1355 = tpu.iota {dimensions = array<i32: 1>} : vector<1x128xi32>
    %c3_i32_664 = arith.constant 3 : i32
    %1356 = vector.broadcast %c3_i32_664 : i32 to vector<1x128xi32>
    %1357 = arith.andi %1355, %1356 : vector<1x128xi32>
    %c2_i32_665 = arith.constant 2 : i32
    %1358 = vector.broadcast %c2_i32_665 : i32 to vector<1x128xi32>
    %1359 = arith.shrsi %1355, %1358 : vector<1x128xi32>
    %c3_i32_666 = arith.constant 3 : i32
    %1360 = vector.broadcast %c3_i32_666 : i32 to vector<1x128xi32>
    %1361 = arith.andi %1359, %1360 : vector<1x128xi32>
    %cst_667 = arith.constant 0.000000e+00 : f32
    %1362 = vector.broadcast %cst_667 : f32 to vector<12x128xf32>
    %c5_i32_668 = arith.constant 5 : i32
    %1363 = tpu.dynamic_rotate %1354 by %c5_i32_668 dim 1 : vector<12x128xf32>, i32 -> vector<12x128xf32>
    %c-1_i32_669 = arith.constant -1 : i32
    %1364 = vector.broadcast %c-1_i32_669 : i32 to vector<1x128xi32>
    %1365 = arith.addi %1357, %1364 : vector<1x128xi32>
    %c0_i32_670 = arith.constant 0 : i32
    %1366 = vector.broadcast %c0_i32_670 : i32 to vector<1x128xi32>
    %1367 = arith.cmpi sge, %1365, %1366 : vector<1x128xi32>
    %c-1_i32_671 = arith.constant -1 : i32
    %1368 = vector.broadcast %c-1_i32_671 : i32 to vector<1x128xi32>
    %1369 = arith.addi %1357, %1368 : vector<1x128xi32>
    %c4_i32_672 = arith.constant 4 : i32
    %1370 = vector.broadcast %c4_i32_672 : i32 to vector<1x128xi32>
    %1371 = arith.cmpi slt, %1369, %1370 : vector<1x128xi32>
    %1372 = arith.andi %1367, %1371 : vector<1x128xi1>
    %c-1_i32_673 = arith.constant -1 : i32
    %1373 = vector.broadcast %c-1_i32_673 : i32 to vector<1x128xi32>
    %1374 = arith.addi %1361, %1373 : vector<1x128xi32>
    %c0_i32_674 = arith.constant 0 : i32
    %1375 = vector.broadcast %c0_i32_674 : i32 to vector<1x128xi32>
    %1376 = arith.cmpi sge, %1374, %1375 : vector<1x128xi32>
    %1377 = arith.andi %1372, %1376 : vector<1x128xi1>
    %c-1_i32_675 = arith.constant -1 : i32
    %1378 = vector.broadcast %c-1_i32_675 : i32 to vector<1x128xi32>
    %1379 = arith.addi %1361, %1378 : vector<1x128xi32>
    %c4_i32_676 = arith.constant 4 : i32
    %1380 = vector.broadcast %c4_i32_676 : i32 to vector<1x128xi32>
    %1381 = arith.cmpi slt, %1379, %1380 : vector<1x128xi32>
    %1382 = arith.andi %1377, %1381 : vector<1x128xi1>
    %cst_677 = arith.constant 0.000000e+00 : f32
    %1383 = vector.shape_cast %1382 : vector<1x128xi1> to vector<1x128xi1>
    %1384 = vector.broadcast %1383 : vector<1x128xi1> to vector<12x128xi1>
    %1385 = vector.broadcast %cst_677 : f32 to vector<12x128xf32>
    %1386 = arith.select %1384, %1363, %1385 : vector<12x128xi1>, vector<12x128xf32>
    %c7_678 = arith.constant 7 : index
    %c0_679 = arith.constant 0 : index
    %c0_680 = arith.constant 0 : index
    %c0_681 = arith.constant 0 : index
    %1387 = vector.load %arg1[%c7_678, %c0_679, %c0_680, %c0_681] : memref<9x9x12x12xbf16, #tpu.memory_space<vmem>>, vector<1x1x12x12xbf16>
    %1388 = vector.shape_cast %1387 : vector<1x1x12x12xbf16> to vector<12x12xbf16>
    %1389 = arith.truncf %1386 : vector<12x128xf32> to vector<12x128xbf16>
    %cst_682 = arith.constant dense<0.000000e+00> : vector<12x128xf32>
    %1390 = tpu.matmul %1388, %1389, %cst_682 {dimension_numbers = #tpu.dot_dimension_numbers<[1], [0], [0], [1], [0, 0, 1, 1], [], []>} : vector<12x12xbf16>, vector<12x128xbf16>, vector<12x128xf32> -> vector<12x128xf32>
    %1391 = arith.addf %1362, %1390 : vector<12x128xf32>
    %c4_i32_683 = arith.constant 4 : i32
    %1392 = tpu.dynamic_rotate %1354 by %c4_i32_683 dim 1 : vector<12x128xf32>, i32 -> vector<12x128xf32>
    %c0_i32_684 = arith.constant 0 : i32
    %1393 = vector.broadcast %c0_i32_684 : i32 to vector<1x128xi32>
    %1394 = arith.addi %1357, %1393 : vector<1x128xi32>
    %c0_i32_685 = arith.constant 0 : i32
    %1395 = vector.broadcast %c0_i32_685 : i32 to vector<1x128xi32>
    %1396 = arith.cmpi sge, %1394, %1395 : vector<1x128xi32>
    %c0_i32_686 = arith.constant 0 : i32
    %1397 = vector.broadcast %c0_i32_686 : i32 to vector<1x128xi32>
    %1398 = arith.addi %1357, %1397 : vector<1x128xi32>
    %c4_i32_687 = arith.constant 4 : i32
    %1399 = vector.broadcast %c4_i32_687 : i32 to vector<1x128xi32>
    %1400 = arith.cmpi slt, %1398, %1399 : vector<1x128xi32>
    %1401 = arith.andi %1396, %1400 : vector<1x128xi1>
    %c-1_i32_688 = arith.constant -1 : i32
    %1402 = vector.broadcast %c-1_i32_688 : i32 to vector<1x128xi32>
    %1403 = arith.addi %1361, %1402 : vector<1x128xi32>
    %c0_i32_689 = arith.constant 0 : i32
    %1404 = vector.broadcast %c0_i32_689 : i32 to vector<1x128xi32>
    %1405 = arith.cmpi sge, %1403, %1404 : vector<1x128xi32>
    %1406 = arith.andi %1401, %1405 : vector<1x128xi1>
    %c-1_i32_690 = arith.constant -1 : i32
    %1407 = vector.broadcast %c-1_i32_690 : i32 to vector<1x128xi32>
    %1408 = arith.addi %1361, %1407 : vector<1x128xi32>
    %c4_i32_691 = arith.constant 4 : i32
    %1409 = vector.broadcast %c4_i32_691 : i32 to vector<1x128xi32>
    %1410 = arith.cmpi slt, %1408, %1409 : vector<1x128xi32>
    %1411 = arith.andi %1406, %1410 : vector<1x128xi1>
    %cst_692 = arith.constant 0.000000e+00 : f32
    %1412 = vector.shape_cast %1411 : vector<1x128xi1> to vector<1x128xi1>
    %1413 = vector.broadcast %1412 : vector<1x128xi1> to vector<12x128xi1>
    %1414 = vector.broadcast %cst_692 : f32 to vector<12x128xf32>
    %1415 = arith.select %1413, %1392, %1414 : vector<12x128xi1>, vector<12x128xf32>
    %c7_693 = arith.constant 7 : index
    %c1_694 = arith.constant 1 : index
    %c0_695 = arith.constant 0 : index
    %c0_696 = arith.constant 0 : index
    %1416 = vector.load %arg1[%c7_693, %c1_694, %c0_695, %c0_696] : memref<9x9x12x12xbf16, #tpu.memory_space<vmem>>, vector<1x1x12x12xbf16>
    %1417 = vector.shape_cast %1416 : vector<1x1x12x12xbf16> to vector<12x12xbf16>
    %1418 = arith.truncf %1415 : vector<12x128xf32> to vector<12x128xbf16>
    %cst_697 = arith.constant dense<0.000000e+00> : vector<12x128xf32>
    %1419 = tpu.matmul %1417, %1418, %cst_697 {dimension_numbers = #tpu.dot_dimension_numbers<[1], [0], [0], [1], [0, 0, 1, 1], [], []>} : vector<12x12xbf16>, vector<12x128xbf16>, vector<12x128xf32> -> vector<12x128xf32>
    %1420 = arith.addf %1391, %1419 : vector<12x128xf32>
    %c3_i32_698 = arith.constant 3 : i32
    %1421 = tpu.dynamic_rotate %1354 by %c3_i32_698 dim 1 : vector<12x128xf32>, i32 -> vector<12x128xf32>
    %c1_i32_699 = arith.constant 1 : i32
    %1422 = vector.broadcast %c1_i32_699 : i32 to vector<1x128xi32>
    %1423 = arith.addi %1357, %1422 : vector<1x128xi32>
    %c0_i32_700 = arith.constant 0 : i32
    %1424 = vector.broadcast %c0_i32_700 : i32 to vector<1x128xi32>
    %1425 = arith.cmpi sge, %1423, %1424 : vector<1x128xi32>
    %c1_i32_701 = arith.constant 1 : i32
    %1426 = vector.broadcast %c1_i32_701 : i32 to vector<1x128xi32>
    %1427 = arith.addi %1357, %1426 : vector<1x128xi32>
    %c4_i32_702 = arith.constant 4 : i32
    %1428 = vector.broadcast %c4_i32_702 : i32 to vector<1x128xi32>
    %1429 = arith.cmpi slt, %1427, %1428 : vector<1x128xi32>
    %1430 = arith.andi %1425, %1429 : vector<1x128xi1>
    %c-1_i32_703 = arith.constant -1 : i32
    %1431 = vector.broadcast %c-1_i32_703 : i32 to vector<1x128xi32>
    %1432 = arith.addi %1361, %1431 : vector<1x128xi32>
    %c0_i32_704 = arith.constant 0 : i32
    %1433 = vector.broadcast %c0_i32_704 : i32 to vector<1x128xi32>
    %1434 = arith.cmpi sge, %1432, %1433 : vector<1x128xi32>
    %1435 = arith.andi %1430, %1434 : vector<1x128xi1>
    %c-1_i32_705 = arith.constant -1 : i32
    %1436 = vector.broadcast %c-1_i32_705 : i32 to vector<1x128xi32>
    %1437 = arith.addi %1361, %1436 : vector<1x128xi32>
    %c4_i32_706 = arith.constant 4 : i32
    %1438 = vector.broadcast %c4_i32_706 : i32 to vector<1x128xi32>
    %1439 = arith.cmpi slt, %1437, %1438 : vector<1x128xi32>
    %1440 = arith.andi %1435, %1439 : vector<1x128xi1>
    %cst_707 = arith.constant 0.000000e+00 : f32
    %1441 = vector.shape_cast %1440 : vector<1x128xi1> to vector<1x128xi1>
    %1442 = vector.broadcast %1441 : vector<1x128xi1> to vector<12x128xi1>
    %1443 = vector.broadcast %cst_707 : f32 to vector<12x128xf32>
    %1444 = arith.select %1442, %1421, %1443 : vector<12x128xi1>, vector<12x128xf32>
    %c7_708 = arith.constant 7 : index
    %c2_709 = arith.constant 2 : index
    %c0_710 = arith.constant 0 : index
    %c0_711 = arith.constant 0 : index
    %1445 = vector.load %arg1[%c7_708, %c2_709, %c0_710, %c0_711] : memref<9x9x12x12xbf16, #tpu.memory_space<vmem>>, vector<1x1x12x12xbf16>
    %1446 = vector.shape_cast %1445 : vector<1x1x12x12xbf16> to vector<12x12xbf16>
    %1447 = arith.truncf %1444 : vector<12x128xf32> to vector<12x128xbf16>
    %cst_712 = arith.constant dense<0.000000e+00> : vector<12x128xf32>
    %1448 = tpu.matmul %1446, %1447, %cst_712 {dimension_numbers = #tpu.dot_dimension_numbers<[1], [0], [0], [1], [0, 0, 1, 1], [], []>} : vector<12x12xbf16>, vector<12x128xbf16>, vector<12x128xf32> -> vector<12x128xf32>
    %1449 = arith.addf %1420, %1448 : vector<12x128xf32>
    %c1_i32_713 = arith.constant 1 : i32
    %1450 = tpu.dynamic_rotate %1354 by %c1_i32_713 dim 1 : vector<12x128xf32>, i32 -> vector<12x128xf32>
    %c-1_i32_714 = arith.constant -1 : i32
    %1451 = vector.broadcast %c-1_i32_714 : i32 to vector<1x128xi32>
    %1452 = arith.addi %1357, %1451 : vector<1x128xi32>
    %c0_i32_715 = arith.constant 0 : i32
    %1453 = vector.broadcast %c0_i32_715 : i32 to vector<1x128xi32>
    %1454 = arith.cmpi sge, %1452, %1453 : vector<1x128xi32>
    %c-1_i32_716 = arith.constant -1 : i32
    %1455 = vector.broadcast %c-1_i32_716 : i32 to vector<1x128xi32>
    %1456 = arith.addi %1357, %1455 : vector<1x128xi32>
    %c4_i32_717 = arith.constant 4 : i32
    %1457 = vector.broadcast %c4_i32_717 : i32 to vector<1x128xi32>
    %1458 = arith.cmpi slt, %1456, %1457 : vector<1x128xi32>
    %1459 = arith.andi %1454, %1458 : vector<1x128xi1>
    %c0_i32_718 = arith.constant 0 : i32
    %1460 = vector.broadcast %c0_i32_718 : i32 to vector<1x128xi32>
    %1461 = arith.addi %1361, %1460 : vector<1x128xi32>
    %c0_i32_719 = arith.constant 0 : i32
    %1462 = vector.broadcast %c0_i32_719 : i32 to vector<1x128xi32>
    %1463 = arith.cmpi sge, %1461, %1462 : vector<1x128xi32>
    %1464 = arith.andi %1459, %1463 : vector<1x128xi1>
    %c0_i32_720 = arith.constant 0 : i32
    %1465 = vector.broadcast %c0_i32_720 : i32 to vector<1x128xi32>
    %1466 = arith.addi %1361, %1465 : vector<1x128xi32>
    %c4_i32_721 = arith.constant 4 : i32
    %1467 = vector.broadcast %c4_i32_721 : i32 to vector<1x128xi32>
    %1468 = arith.cmpi slt, %1466, %1467 : vector<1x128xi32>
    %1469 = arith.andi %1464, %1468 : vector<1x128xi1>
    %cst_722 = arith.constant 0.000000e+00 : f32
    %1470 = vector.shape_cast %1469 : vector<1x128xi1> to vector<1x128xi1>
    %1471 = vector.broadcast %1470 : vector<1x128xi1> to vector<12x128xi1>
    %1472 = vector.broadcast %cst_722 : f32 to vector<12x128xf32>
    %1473 = arith.select %1471, %1450, %1472 : vector<12x128xi1>, vector<12x128xf32>
    %c7_723 = arith.constant 7 : index
    %c3_724 = arith.constant 3 : index
    %c0_725 = arith.constant 0 : index
    %c0_726 = arith.constant 0 : index
    %1474 = vector.load %arg1[%c7_723, %c3_724, %c0_725, %c0_726] : memref<9x9x12x12xbf16, #tpu.memory_space<vmem>>, vector<1x1x12x12xbf16>
    %1475 = vector.shape_cast %1474 : vector<1x1x12x12xbf16> to vector<12x12xbf16>
    %1476 = arith.truncf %1473 : vector<12x128xf32> to vector<12x128xbf16>
    %cst_727 = arith.constant dense<0.000000e+00> : vector<12x128xf32>
    %1477 = tpu.matmul %1475, %1476, %cst_727 {dimension_numbers = #tpu.dot_dimension_numbers<[1], [0], [0], [1], [0, 0, 1, 1], [], []>} : vector<12x12xbf16>, vector<12x128xbf16>, vector<12x128xf32> -> vector<12x128xf32>
    %1478 = arith.addf %1449, %1477 : vector<12x128xf32>
    %c7_728 = arith.constant 7 : index
    %c4_729 = arith.constant 4 : index
    %c0_730 = arith.constant 0 : index
    %c0_731 = arith.constant 0 : index
    %1479 = vector.load %arg1[%c7_728, %c4_729, %c0_730, %c0_731] : memref<9x9x12x12xbf16, #tpu.memory_space<vmem>>, vector<1x1x12x12xbf16>
    %1480 = vector.shape_cast %1479 : vector<1x1x12x12xbf16> to vector<12x12xbf16>
    %1481 = arith.truncf %1354 : vector<12x128xf32> to vector<12x128xbf16>
    %cst_732 = arith.constant dense<0.000000e+00> : vector<12x128xf32>
    %1482 = tpu.matmul %1480, %1481, %cst_732 {dimension_numbers = #tpu.dot_dimension_numbers<[1], [0], [0], [1], [0, 0, 1, 1], [], []>} : vector<12x12xbf16>, vector<12x128xbf16>, vector<12x128xf32> -> vector<12x128xf32>
    %1483 = arith.addf %1478, %1482 : vector<12x128xf32>
    %c127_i32_733 = arith.constant 127 : i32
    %1484 = tpu.dynamic_rotate %1354 by %c127_i32_733 dim 1 : vector<12x128xf32>, i32 -> vector<12x128xf32>
    %c1_i32_734 = arith.constant 1 : i32
    %1485 = vector.broadcast %c1_i32_734 : i32 to vector<1x128xi32>
    %1486 = arith.addi %1357, %1485 : vector<1x128xi32>
    %c0_i32_735 = arith.constant 0 : i32
    %1487 = vector.broadcast %c0_i32_735 : i32 to vector<1x128xi32>
    %1488 = arith.cmpi sge, %1486, %1487 : vector<1x128xi32>
    %c1_i32_736 = arith.constant 1 : i32
    %1489 = vector.broadcast %c1_i32_736 : i32 to vector<1x128xi32>
    %1490 = arith.addi %1357, %1489 : vector<1x128xi32>
    %c4_i32_737 = arith.constant 4 : i32
    %1491 = vector.broadcast %c4_i32_737 : i32 to vector<1x128xi32>
    %1492 = arith.cmpi slt, %1490, %1491 : vector<1x128xi32>
    %1493 = arith.andi %1488, %1492 : vector<1x128xi1>
    %c0_i32_738 = arith.constant 0 : i32
    %1494 = vector.broadcast %c0_i32_738 : i32 to vector<1x128xi32>
    %1495 = arith.addi %1361, %1494 : vector<1x128xi32>
    %c0_i32_739 = arith.constant 0 : i32
    %1496 = vector.broadcast %c0_i32_739 : i32 to vector<1x128xi32>
    %1497 = arith.cmpi sge, %1495, %1496 : vector<1x128xi32>
    %1498 = arith.andi %1493, %1497 : vector<1x128xi1>
    %c0_i32_740 = arith.constant 0 : i32
    %1499 = vector.broadcast %c0_i32_740 : i32 to vector<1x128xi32>
    %1500 = arith.addi %1361, %1499 : vector<1x128xi32>
    %c4_i32_741 = arith.constant 4 : i32
    %1501 = vector.broadcast %c4_i32_741 : i32 to vector<1x128xi32>
    %1502 = arith.cmpi slt, %1500, %1501 : vector<1x128xi32>
    %1503 = arith.andi %1498, %1502 : vector<1x128xi1>
    %cst_742 = arith.constant 0.000000e+00 : f32
    %1504 = vector.shape_cast %1503 : vector<1x128xi1> to vector<1x128xi1>
    %1505 = vector.broadcast %1504 : vector<1x128xi1> to vector<12x128xi1>
    %1506 = vector.broadcast %cst_742 : f32 to vector<12x128xf32>
    %1507 = arith.select %1505, %1484, %1506 : vector<12x128xi1>, vector<12x128xf32>
    %c7_743 = arith.constant 7 : index
    %c5_744 = arith.constant 5 : index
    %c0_745 = arith.constant 0 : index
    %c0_746 = arith.constant 0 : index
    %1508 = vector.load %arg1[%c7_743, %c5_744, %c0_745, %c0_746] : memref<9x9x12x12xbf16, #tpu.memory_space<vmem>>, vector<1x1x12x12xbf16>
    %1509 = vector.shape_cast %1508 : vector<1x1x12x12xbf16> to vector<12x12xbf16>
    %1510 = arith.truncf %1507 : vector<12x128xf32> to vector<12x128xbf16>
    %cst_747 = arith.constant dense<0.000000e+00> : vector<12x128xf32>
    %1511 = tpu.matmul %1509, %1510, %cst_747 {dimension_numbers = #tpu.dot_dimension_numbers<[1], [0], [0], [1], [0, 0, 1, 1], [], []>} : vector<12x12xbf16>, vector<12x128xbf16>, vector<12x128xf32> -> vector<12x128xf32>
    %1512 = arith.addf %1483, %1511 : vector<12x128xf32>
    %c125_i32_748 = arith.constant 125 : i32
    %1513 = tpu.dynamic_rotate %1354 by %c125_i32_748 dim 1 : vector<12x128xf32>, i32 -> vector<12x128xf32>
    %c-1_i32_749 = arith.constant -1 : i32
    %1514 = vector.broadcast %c-1_i32_749 : i32 to vector<1x128xi32>
    %1515 = arith.addi %1357, %1514 : vector<1x128xi32>
    %c0_i32_750 = arith.constant 0 : i32
    %1516 = vector.broadcast %c0_i32_750 : i32 to vector<1x128xi32>
    %1517 = arith.cmpi sge, %1515, %1516 : vector<1x128xi32>
    %c-1_i32_751 = arith.constant -1 : i32
    %1518 = vector.broadcast %c-1_i32_751 : i32 to vector<1x128xi32>
    %1519 = arith.addi %1357, %1518 : vector<1x128xi32>
    %c4_i32_752 = arith.constant 4 : i32
    %1520 = vector.broadcast %c4_i32_752 : i32 to vector<1x128xi32>
    %1521 = arith.cmpi slt, %1519, %1520 : vector<1x128xi32>
    %1522 = arith.andi %1517, %1521 : vector<1x128xi1>
    %c1_i32_753 = arith.constant 1 : i32
    %1523 = vector.broadcast %c1_i32_753 : i32 to vector<1x128xi32>
    %1524 = arith.addi %1361, %1523 : vector<1x128xi32>
    %c0_i32_754 = arith.constant 0 : i32
    %1525 = vector.broadcast %c0_i32_754 : i32 to vector<1x128xi32>
    %1526 = arith.cmpi sge, %1524, %1525 : vector<1x128xi32>
    %1527 = arith.andi %1522, %1526 : vector<1x128xi1>
    %c1_i32_755 = arith.constant 1 : i32
    %1528 = vector.broadcast %c1_i32_755 : i32 to vector<1x128xi32>
    %1529 = arith.addi %1361, %1528 : vector<1x128xi32>
    %c4_i32_756 = arith.constant 4 : i32
    %1530 = vector.broadcast %c4_i32_756 : i32 to vector<1x128xi32>
    %1531 = arith.cmpi slt, %1529, %1530 : vector<1x128xi32>
    %1532 = arith.andi %1527, %1531 : vector<1x128xi1>
    %cst_757 = arith.constant 0.000000e+00 : f32
    %1533 = vector.shape_cast %1532 : vector<1x128xi1> to vector<1x128xi1>
    %1534 = vector.broadcast %1533 : vector<1x128xi1> to vector<12x128xi1>
    %1535 = vector.broadcast %cst_757 : f32 to vector<12x128xf32>
    %1536 = arith.select %1534, %1513, %1535 : vector<12x128xi1>, vector<12x128xf32>
    %c7_758 = arith.constant 7 : index
    %c6_759 = arith.constant 6 : index
    %c0_760 = arith.constant 0 : index
    %c0_761 = arith.constant 0 : index
    %1537 = vector.load %arg1[%c7_758, %c6_759, %c0_760, %c0_761] : memref<9x9x12x12xbf16, #tpu.memory_space<vmem>>, vector<1x1x12x12xbf16>
    %1538 = vector.shape_cast %1537 : vector<1x1x12x12xbf16> to vector<12x12xbf16>
    %1539 = arith.truncf %1536 : vector<12x128xf32> to vector<12x128xbf16>
    %cst_762 = arith.constant dense<0.000000e+00> : vector<12x128xf32>
    %1540 = tpu.matmul %1538, %1539, %cst_762 {dimension_numbers = #tpu.dot_dimension_numbers<[1], [0], [0], [1], [0, 0, 1, 1], [], []>} : vector<12x12xbf16>, vector<12x128xbf16>, vector<12x128xf32> -> vector<12x128xf32>
    %1541 = arith.addf %1512, %1540 : vector<12x128xf32>
    %c124_i32_763 = arith.constant 124 : i32
    %1542 = tpu.dynamic_rotate %1354 by %c124_i32_763 dim 1 : vector<12x128xf32>, i32 -> vector<12x128xf32>
    %c0_i32_764 = arith.constant 0 : i32
    %1543 = vector.broadcast %c0_i32_764 : i32 to vector<1x128xi32>
    %1544 = arith.addi %1357, %1543 : vector<1x128xi32>
    %c0_i32_765 = arith.constant 0 : i32
    %1545 = vector.broadcast %c0_i32_765 : i32 to vector<1x128xi32>
    %1546 = arith.cmpi sge, %1544, %1545 : vector<1x128xi32>
    %c0_i32_766 = arith.constant 0 : i32
    %1547 = vector.broadcast %c0_i32_766 : i32 to vector<1x128xi32>
    %1548 = arith.addi %1357, %1547 : vector<1x128xi32>
    %c4_i32_767 = arith.constant 4 : i32
    %1549 = vector.broadcast %c4_i32_767 : i32 to vector<1x128xi32>
    %1550 = arith.cmpi slt, %1548, %1549 : vector<1x128xi32>
    %1551 = arith.andi %1546, %1550 : vector<1x128xi1>
    %c1_i32_768 = arith.constant 1 : i32
    %1552 = vector.broadcast %c1_i32_768 : i32 to vector<1x128xi32>
    %1553 = arith.addi %1361, %1552 : vector<1x128xi32>
    %c0_i32_769 = arith.constant 0 : i32
    %1554 = vector.broadcast %c0_i32_769 : i32 to vector<1x128xi32>
    %1555 = arith.cmpi sge, %1553, %1554 : vector<1x128xi32>
    %1556 = arith.andi %1551, %1555 : vector<1x128xi1>
    %c1_i32_770 = arith.constant 1 : i32
    %1557 = vector.broadcast %c1_i32_770 : i32 to vector<1x128xi32>
    %1558 = arith.addi %1361, %1557 : vector<1x128xi32>
    %c4_i32_771 = arith.constant 4 : i32
    %1559 = vector.broadcast %c4_i32_771 : i32 to vector<1x128xi32>
    %1560 = arith.cmpi slt, %1558, %1559 : vector<1x128xi32>
    %1561 = arith.andi %1556, %1560 : vector<1x128xi1>
    %cst_772 = arith.constant 0.000000e+00 : f32
    %1562 = vector.shape_cast %1561 : vector<1x128xi1> to vector<1x128xi1>
    %1563 = vector.broadcast %1562 : vector<1x128xi1> to vector<12x128xi1>
    %1564 = vector.broadcast %cst_772 : f32 to vector<12x128xf32>
    %1565 = arith.select %1563, %1542, %1564 : vector<12x128xi1>, vector<12x128xf32>
    %c7_773 = arith.constant 7 : index
    %c7_774 = arith.constant 7 : index
    %c0_775 = arith.constant 0 : index
    %c0_776 = arith.constant 0 : index
    %1566 = vector.load %arg1[%c7_773, %c7_774, %c0_775, %c0_776] : memref<9x9x12x12xbf16, #tpu.memory_space<vmem>>, vector<1x1x12x12xbf16>
    %1567 = vector.shape_cast %1566 : vector<1x1x12x12xbf16> to vector<12x12xbf16>
    %1568 = arith.truncf %1565 : vector<12x128xf32> to vector<12x128xbf16>
    %cst_777 = arith.constant dense<0.000000e+00> : vector<12x128xf32>
    %1569 = tpu.matmul %1567, %1568, %cst_777 {dimension_numbers = #tpu.dot_dimension_numbers<[1], [0], [0], [1], [0, 0, 1, 1], [], []>} : vector<12x12xbf16>, vector<12x128xbf16>, vector<12x128xf32> -> vector<12x128xf32>
    %1570 = arith.addf %1541, %1569 : vector<12x128xf32>
    %c123_i32_778 = arith.constant 123 : i32
    %1571 = tpu.dynamic_rotate %1354 by %c123_i32_778 dim 1 : vector<12x128xf32>, i32 -> vector<12x128xf32>
    %c1_i32_779 = arith.constant 1 : i32
    %1572 = vector.broadcast %c1_i32_779 : i32 to vector<1x128xi32>
    %1573 = arith.addi %1357, %1572 : vector<1x128xi32>
    %c0_i32_780 = arith.constant 0 : i32
    %1574 = vector.broadcast %c0_i32_780 : i32 to vector<1x128xi32>
    %1575 = arith.cmpi sge, %1573, %1574 : vector<1x128xi32>
    %c1_i32_781 = arith.constant 1 : i32
    %1576 = vector.broadcast %c1_i32_781 : i32 to vector<1x128xi32>
    %1577 = arith.addi %1357, %1576 : vector<1x128xi32>
    %c4_i32_782 = arith.constant 4 : i32
    %1578 = vector.broadcast %c4_i32_782 : i32 to vector<1x128xi32>
    %1579 = arith.cmpi slt, %1577, %1578 : vector<1x128xi32>
    %1580 = arith.andi %1575, %1579 : vector<1x128xi1>
    %c1_i32_783 = arith.constant 1 : i32
    %1581 = vector.broadcast %c1_i32_783 : i32 to vector<1x128xi32>
    %1582 = arith.addi %1361, %1581 : vector<1x128xi32>
    %c0_i32_784 = arith.constant 0 : i32
    %1583 = vector.broadcast %c0_i32_784 : i32 to vector<1x128xi32>
    %1584 = arith.cmpi sge, %1582, %1583 : vector<1x128xi32>
    %1585 = arith.andi %1580, %1584 : vector<1x128xi1>
    %c1_i32_785 = arith.constant 1 : i32
    %1586 = vector.broadcast %c1_i32_785 : i32 to vector<1x128xi32>
    %1587 = arith.addi %1361, %1586 : vector<1x128xi32>
    %c4_i32_786 = arith.constant 4 : i32
    %1588 = vector.broadcast %c4_i32_786 : i32 to vector<1x128xi32>
    %1589 = arith.cmpi slt, %1587, %1588 : vector<1x128xi32>
    %1590 = arith.andi %1585, %1589 : vector<1x128xi1>
    %cst_787 = arith.constant 0.000000e+00 : f32
    %1591 = vector.shape_cast %1590 : vector<1x128xi1> to vector<1x128xi1>
    %1592 = vector.broadcast %1591 : vector<1x128xi1> to vector<12x128xi1>
    %1593 = vector.broadcast %cst_787 : f32 to vector<12x128xf32>
    %1594 = arith.select %1592, %1571, %1593 : vector<12x128xi1>, vector<12x128xf32>
    %c7_788 = arith.constant 7 : index
    %c8_789 = arith.constant 8 : index
    %c0_790 = arith.constant 0 : index
    %c0_791 = arith.constant 0 : index
    %1595 = vector.load %arg1[%c7_788, %c8_789, %c0_790, %c0_791] : memref<9x9x12x12xbf16, #tpu.memory_space<vmem>>, vector<1x1x12x12xbf16>
    %1596 = vector.shape_cast %1595 : vector<1x1x12x12xbf16> to vector<12x12xbf16>
    %1597 = arith.truncf %1594 : vector<12x128xf32> to vector<12x128xbf16>
    %cst_792 = arith.constant dense<0.000000e+00> : vector<12x128xf32>
    %1598 = tpu.matmul %1596, %1597, %cst_792 {dimension_numbers = #tpu.dot_dimension_numbers<[1], [0], [0], [1], [0, 0, 1, 1], [], []>} : vector<12x12xbf16>, vector<12x128xbf16>, vector<12x128xf32> -> vector<12x128xf32>
    %1599 = arith.addf %1570, %1598 : vector<12x128xf32>
    %c7_793 = arith.constant 7 : index
    %c0_794 = arith.constant 0 : index
    %c0_795 = arith.constant 0 : index
    %1600 = vector.load %arg2[%c7_793, %c0_794, %c0_795] : memref<9x12x1xf32, #tpu.memory_space<vmem>>, vector<1x12x1xf32>
    %1601 = vector.shape_cast %1600 : vector<1x12x1xf32> to vector<12x1xf32>
    %1602 = vector.broadcast %1601 : vector<12x1xf32> to vector<12x128xf32>
    %1603 = arith.addf %1599, %1602 : vector<12x128xf32>
    %cst_796 = arith.constant 0.000000e+00 : f32
    %1604 = vector.broadcast %cst_796 : f32 to vector<12x128xf32>
    %1605 = arith.maximumf %1603, %1604 : vector<12x128xf32>
    %1606 = tpu.iota {dimensions = array<i32: 1>} : vector<1x128xi32>
    %c3_i32_797 = arith.constant 3 : i32
    %1607 = vector.broadcast %c3_i32_797 : i32 to vector<1x128xi32>
    %1608 = arith.andi %1606, %1607 : vector<1x128xi32>
    %c2_i32_798 = arith.constant 2 : i32
    %1609 = vector.broadcast %c2_i32_798 : i32 to vector<1x128xi32>
    %1610 = arith.shrsi %1606, %1609 : vector<1x128xi32>
    %c3_i32_799 = arith.constant 3 : i32
    %1611 = vector.broadcast %c3_i32_799 : i32 to vector<1x128xi32>
    %1612 = arith.andi %1610, %1611 : vector<1x128xi32>
    %cst_800 = arith.constant 0.000000e+00 : f32
    %1613 = vector.broadcast %cst_800 : f32 to vector<12x128xf32>
    %c5_i32_801 = arith.constant 5 : i32
    %1614 = tpu.dynamic_rotate %1605 by %c5_i32_801 dim 1 : vector<12x128xf32>, i32 -> vector<12x128xf32>
    %c-1_i32_802 = arith.constant -1 : i32
    %1615 = vector.broadcast %c-1_i32_802 : i32 to vector<1x128xi32>
    %1616 = arith.addi %1608, %1615 : vector<1x128xi32>
    %c0_i32_803 = arith.constant 0 : i32
    %1617 = vector.broadcast %c0_i32_803 : i32 to vector<1x128xi32>
    %1618 = arith.cmpi sge, %1616, %1617 : vector<1x128xi32>
    %c-1_i32_804 = arith.constant -1 : i32
    %1619 = vector.broadcast %c-1_i32_804 : i32 to vector<1x128xi32>
    %1620 = arith.addi %1608, %1619 : vector<1x128xi32>
    %c4_i32_805 = arith.constant 4 : i32
    %1621 = vector.broadcast %c4_i32_805 : i32 to vector<1x128xi32>
    %1622 = arith.cmpi slt, %1620, %1621 : vector<1x128xi32>
    %1623 = arith.andi %1618, %1622 : vector<1x128xi1>
    %c-1_i32_806 = arith.constant -1 : i32
    %1624 = vector.broadcast %c-1_i32_806 : i32 to vector<1x128xi32>
    %1625 = arith.addi %1612, %1624 : vector<1x128xi32>
    %c0_i32_807 = arith.constant 0 : i32
    %1626 = vector.broadcast %c0_i32_807 : i32 to vector<1x128xi32>
    %1627 = arith.cmpi sge, %1625, %1626 : vector<1x128xi32>
    %1628 = arith.andi %1623, %1627 : vector<1x128xi1>
    %c-1_i32_808 = arith.constant -1 : i32
    %1629 = vector.broadcast %c-1_i32_808 : i32 to vector<1x128xi32>
    %1630 = arith.addi %1612, %1629 : vector<1x128xi32>
    %c4_i32_809 = arith.constant 4 : i32
    %1631 = vector.broadcast %c4_i32_809 : i32 to vector<1x128xi32>
    %1632 = arith.cmpi slt, %1630, %1631 : vector<1x128xi32>
    %1633 = arith.andi %1628, %1632 : vector<1x128xi1>
    %cst_810 = arith.constant 0.000000e+00 : f32
    %1634 = vector.shape_cast %1633 : vector<1x128xi1> to vector<1x128xi1>
    %1635 = vector.broadcast %1634 : vector<1x128xi1> to vector<12x128xi1>
    %1636 = vector.broadcast %cst_810 : f32 to vector<12x128xf32>
    %1637 = arith.select %1635, %1614, %1636 : vector<12x128xi1>, vector<12x128xf32>
    %c8_811 = arith.constant 8 : index
    %c0_812 = arith.constant 0 : index
    %c0_813 = arith.constant 0 : index
    %c0_814 = arith.constant 0 : index
    %1638 = vector.load %arg1[%c8_811, %c0_812, %c0_813, %c0_814] : memref<9x9x12x12xbf16, #tpu.memory_space<vmem>>, vector<1x1x12x12xbf16>
    %1639 = vector.shape_cast %1638 : vector<1x1x12x12xbf16> to vector<12x12xbf16>
    %1640 = arith.truncf %1637 : vector<12x128xf32> to vector<12x128xbf16>
    %cst_815 = arith.constant dense<0.000000e+00> : vector<12x128xf32>
    %1641 = tpu.matmul %1639, %1640, %cst_815 {dimension_numbers = #tpu.dot_dimension_numbers<[1], [0], [0], [1], [0, 0, 1, 1], [], []>} : vector<12x12xbf16>, vector<12x128xbf16>, vector<12x128xf32> -> vector<12x128xf32>
    %1642 = arith.addf %1613, %1641 : vector<12x128xf32>
    %c4_i32_816 = arith.constant 4 : i32
    %1643 = tpu.dynamic_rotate %1605 by %c4_i32_816 dim 1 : vector<12x128xf32>, i32 -> vector<12x128xf32>
    %c0_i32_817 = arith.constant 0 : i32
    %1644 = vector.broadcast %c0_i32_817 : i32 to vector<1x128xi32>
    %1645 = arith.addi %1608, %1644 : vector<1x128xi32>
    %c0_i32_818 = arith.constant 0 : i32
    %1646 = vector.broadcast %c0_i32_818 : i32 to vector<1x128xi32>
    %1647 = arith.cmpi sge, %1645, %1646 : vector<1x128xi32>
    %c0_i32_819 = arith.constant 0 : i32
    %1648 = vector.broadcast %c0_i32_819 : i32 to vector<1x128xi32>
    %1649 = arith.addi %1608, %1648 : vector<1x128xi32>
    %c4_i32_820 = arith.constant 4 : i32
    %1650 = vector.broadcast %c4_i32_820 : i32 to vector<1x128xi32>
    %1651 = arith.cmpi slt, %1649, %1650 : vector<1x128xi32>
    %1652 = arith.andi %1647, %1651 : vector<1x128xi1>
    %c-1_i32_821 = arith.constant -1 : i32
    %1653 = vector.broadcast %c-1_i32_821 : i32 to vector<1x128xi32>
    %1654 = arith.addi %1612, %1653 : vector<1x128xi32>
    %c0_i32_822 = arith.constant 0 : i32
    %1655 = vector.broadcast %c0_i32_822 : i32 to vector<1x128xi32>
    %1656 = arith.cmpi sge, %1654, %1655 : vector<1x128xi32>
    %1657 = arith.andi %1652, %1656 : vector<1x128xi1>
    %c-1_i32_823 = arith.constant -1 : i32
    %1658 = vector.broadcast %c-1_i32_823 : i32 to vector<1x128xi32>
    %1659 = arith.addi %1612, %1658 : vector<1x128xi32>
    %c4_i32_824 = arith.constant 4 : i32
    %1660 = vector.broadcast %c4_i32_824 : i32 to vector<1x128xi32>
    %1661 = arith.cmpi slt, %1659, %1660 : vector<1x128xi32>
    %1662 = arith.andi %1657, %1661 : vector<1x128xi1>
    %cst_825 = arith.constant 0.000000e+00 : f32
    %1663 = vector.shape_cast %1662 : vector<1x128xi1> to vector<1x128xi1>
    %1664 = vector.broadcast %1663 : vector<1x128xi1> to vector<12x128xi1>
    %1665 = vector.broadcast %cst_825 : f32 to vector<12x128xf32>
    %1666 = arith.select %1664, %1643, %1665 : vector<12x128xi1>, vector<12x128xf32>
    %c8_826 = arith.constant 8 : index
    %c1_827 = arith.constant 1 : index
    %c0_828 = arith.constant 0 : index
    %c0_829 = arith.constant 0 : index
    %1667 = vector.load %arg1[%c8_826, %c1_827, %c0_828, %c0_829] : memref<9x9x12x12xbf16, #tpu.memory_space<vmem>>, vector<1x1x12x12xbf16>
    %1668 = vector.shape_cast %1667 : vector<1x1x12x12xbf16> to vector<12x12xbf16>
    %1669 = arith.truncf %1666 : vector<12x128xf32> to vector<12x128xbf16>
    %cst_830 = arith.constant dense<0.000000e+00> : vector<12x128xf32>
    %1670 = tpu.matmul %1668, %1669, %cst_830 {dimension_numbers = #tpu.dot_dimension_numbers<[1], [0], [0], [1], [0, 0, 1, 1], [], []>} : vector<12x12xbf16>, vector<12x128xbf16>, vector<12x128xf32> -> vector<12x128xf32>
    %1671 = arith.addf %1642, %1670 : vector<12x128xf32>
    %c3_i32_831 = arith.constant 3 : i32
    %1672 = tpu.dynamic_rotate %1605 by %c3_i32_831 dim 1 : vector<12x128xf32>, i32 -> vector<12x128xf32>
    %c1_i32_832 = arith.constant 1 : i32
    %1673 = vector.broadcast %c1_i32_832 : i32 to vector<1x128xi32>
    %1674 = arith.addi %1608, %1673 : vector<1x128xi32>
    %c0_i32_833 = arith.constant 0 : i32
    %1675 = vector.broadcast %c0_i32_833 : i32 to vector<1x128xi32>
    %1676 = arith.cmpi sge, %1674, %1675 : vector<1x128xi32>
    %c1_i32_834 = arith.constant 1 : i32
    %1677 = vector.broadcast %c1_i32_834 : i32 to vector<1x128xi32>
    %1678 = arith.addi %1608, %1677 : vector<1x128xi32>
    %c4_i32_835 = arith.constant 4 : i32
    %1679 = vector.broadcast %c4_i32_835 : i32 to vector<1x128xi32>
    %1680 = arith.cmpi slt, %1678, %1679 : vector<1x128xi32>
    %1681 = arith.andi %1676, %1680 : vector<1x128xi1>
    %c-1_i32_836 = arith.constant -1 : i32
    %1682 = vector.broadcast %c-1_i32_836 : i32 to vector<1x128xi32>
    %1683 = arith.addi %1612, %1682 : vector<1x128xi32>
    %c0_i32_837 = arith.constant 0 : i32
    %1684 = vector.broadcast %c0_i32_837 : i32 to vector<1x128xi32>
    %1685 = arith.cmpi sge, %1683, %1684 : vector<1x128xi32>
    %1686 = arith.andi %1681, %1685 : vector<1x128xi1>
    %c-1_i32_838 = arith.constant -1 : i32
    %1687 = vector.broadcast %c-1_i32_838 : i32 to vector<1x128xi32>
    %1688 = arith.addi %1612, %1687 : vector<1x128xi32>
    %c4_i32_839 = arith.constant 4 : i32
    %1689 = vector.broadcast %c4_i32_839 : i32 to vector<1x128xi32>
    %1690 = arith.cmpi slt, %1688, %1689 : vector<1x128xi32>
    %1691 = arith.andi %1686, %1690 : vector<1x128xi1>
    %cst_840 = arith.constant 0.000000e+00 : f32
    %1692 = vector.shape_cast %1691 : vector<1x128xi1> to vector<1x128xi1>
    %1693 = vector.broadcast %1692 : vector<1x128xi1> to vector<12x128xi1>
    %1694 = vector.broadcast %cst_840 : f32 to vector<12x128xf32>
    %1695 = arith.select %1693, %1672, %1694 : vector<12x128xi1>, vector<12x128xf32>
    %c8_841 = arith.constant 8 : index
    %c2_842 = arith.constant 2 : index
    %c0_843 = arith.constant 0 : index
    %c0_844 = arith.constant 0 : index
    %1696 = vector.load %arg1[%c8_841, %c2_842, %c0_843, %c0_844] : memref<9x9x12x12xbf16, #tpu.memory_space<vmem>>, vector<1x1x12x12xbf16>
    %1697 = vector.shape_cast %1696 : vector<1x1x12x12xbf16> to vector<12x12xbf16>
    %1698 = arith.truncf %1695 : vector<12x128xf32> to vector<12x128xbf16>
    %cst_845 = arith.constant dense<0.000000e+00> : vector<12x128xf32>
    %1699 = tpu.matmul %1697, %1698, %cst_845 {dimension_numbers = #tpu.dot_dimension_numbers<[1], [0], [0], [1], [0, 0, 1, 1], [], []>} : vector<12x12xbf16>, vector<12x128xbf16>, vector<12x128xf32> -> vector<12x128xf32>
    %1700 = arith.addf %1671, %1699 : vector<12x128xf32>
    %c1_i32_846 = arith.constant 1 : i32
    %1701 = tpu.dynamic_rotate %1605 by %c1_i32_846 dim 1 : vector<12x128xf32>, i32 -> vector<12x128xf32>
    %c-1_i32_847 = arith.constant -1 : i32
    %1702 = vector.broadcast %c-1_i32_847 : i32 to vector<1x128xi32>
    %1703 = arith.addi %1608, %1702 : vector<1x128xi32>
    %c0_i32_848 = arith.constant 0 : i32
    %1704 = vector.broadcast %c0_i32_848 : i32 to vector<1x128xi32>
    %1705 = arith.cmpi sge, %1703, %1704 : vector<1x128xi32>
    %c-1_i32_849 = arith.constant -1 : i32
    %1706 = vector.broadcast %c-1_i32_849 : i32 to vector<1x128xi32>
    %1707 = arith.addi %1608, %1706 : vector<1x128xi32>
    %c4_i32_850 = arith.constant 4 : i32
    %1708 = vector.broadcast %c4_i32_850 : i32 to vector<1x128xi32>
    %1709 = arith.cmpi slt, %1707, %1708 : vector<1x128xi32>
    %1710 = arith.andi %1705, %1709 : vector<1x128xi1>
    %c0_i32_851 = arith.constant 0 : i32
    %1711 = vector.broadcast %c0_i32_851 : i32 to vector<1x128xi32>
    %1712 = arith.addi %1612, %1711 : vector<1x128xi32>
    %c0_i32_852 = arith.constant 0 : i32
    %1713 = vector.broadcast %c0_i32_852 : i32 to vector<1x128xi32>
    %1714 = arith.cmpi sge, %1712, %1713 : vector<1x128xi32>
    %1715 = arith.andi %1710, %1714 : vector<1x128xi1>
    %c0_i32_853 = arith.constant 0 : i32
    %1716 = vector.broadcast %c0_i32_853 : i32 to vector<1x128xi32>
    %1717 = arith.addi %1612, %1716 : vector<1x128xi32>
    %c4_i32_854 = arith.constant 4 : i32
    %1718 = vector.broadcast %c4_i32_854 : i32 to vector<1x128xi32>
    %1719 = arith.cmpi slt, %1717, %1718 : vector<1x128xi32>
    %1720 = arith.andi %1715, %1719 : vector<1x128xi1>
    %cst_855 = arith.constant 0.000000e+00 : f32
    %1721 = vector.shape_cast %1720 : vector<1x128xi1> to vector<1x128xi1>
    %1722 = vector.broadcast %1721 : vector<1x128xi1> to vector<12x128xi1>
    %1723 = vector.broadcast %cst_855 : f32 to vector<12x128xf32>
    %1724 = arith.select %1722, %1701, %1723 : vector<12x128xi1>, vector<12x128xf32>
    %c8_856 = arith.constant 8 : index
    %c3_857 = arith.constant 3 : index
    %c0_858 = arith.constant 0 : index
    %c0_859 = arith.constant 0 : index
    %1725 = vector.load %arg1[%c8_856, %c3_857, %c0_858, %c0_859] : memref<9x9x12x12xbf16, #tpu.memory_space<vmem>>, vector<1x1x12x12xbf16>
    %1726 = vector.shape_cast %1725 : vector<1x1x12x12xbf16> to vector<12x12xbf16>
    %1727 = arith.truncf %1724 : vector<12x128xf32> to vector<12x128xbf16>
    %cst_860 = arith.constant dense<0.000000e+00> : vector<12x128xf32>
    %1728 = tpu.matmul %1726, %1727, %cst_860 {dimension_numbers = #tpu.dot_dimension_numbers<[1], [0], [0], [1], [0, 0, 1, 1], [], []>} : vector<12x12xbf16>, vector<12x128xbf16>, vector<12x128xf32> -> vector<12x128xf32>
    %1729 = arith.addf %1700, %1728 : vector<12x128xf32>
    %c8_861 = arith.constant 8 : index
    %c4_862 = arith.constant 4 : index
    %c0_863 = arith.constant 0 : index
    %c0_864 = arith.constant 0 : index
    %1730 = vector.load %arg1[%c8_861, %c4_862, %c0_863, %c0_864] : memref<9x9x12x12xbf16, #tpu.memory_space<vmem>>, vector<1x1x12x12xbf16>
    %1731 = vector.shape_cast %1730 : vector<1x1x12x12xbf16> to vector<12x12xbf16>
    %1732 = arith.truncf %1605 : vector<12x128xf32> to vector<12x128xbf16>
    %cst_865 = arith.constant dense<0.000000e+00> : vector<12x128xf32>
    %1733 = tpu.matmul %1731, %1732, %cst_865 {dimension_numbers = #tpu.dot_dimension_numbers<[1], [0], [0], [1], [0, 0, 1, 1], [], []>} : vector<12x12xbf16>, vector<12x128xbf16>, vector<12x128xf32> -> vector<12x128xf32>
    %1734 = arith.addf %1729, %1733 : vector<12x128xf32>
    %c127_i32_866 = arith.constant 127 : i32
    %1735 = tpu.dynamic_rotate %1605 by %c127_i32_866 dim 1 : vector<12x128xf32>, i32 -> vector<12x128xf32>
    %c1_i32_867 = arith.constant 1 : i32
    %1736 = vector.broadcast %c1_i32_867 : i32 to vector<1x128xi32>
    %1737 = arith.addi %1608, %1736 : vector<1x128xi32>
    %c0_i32_868 = arith.constant 0 : i32
    %1738 = vector.broadcast %c0_i32_868 : i32 to vector<1x128xi32>
    %1739 = arith.cmpi sge, %1737, %1738 : vector<1x128xi32>
    %c1_i32_869 = arith.constant 1 : i32
    %1740 = vector.broadcast %c1_i32_869 : i32 to vector<1x128xi32>
    %1741 = arith.addi %1608, %1740 : vector<1x128xi32>
    %c4_i32_870 = arith.constant 4 : i32
    %1742 = vector.broadcast %c4_i32_870 : i32 to vector<1x128xi32>
    %1743 = arith.cmpi slt, %1741, %1742 : vector<1x128xi32>
    %1744 = arith.andi %1739, %1743 : vector<1x128xi1>
    %c0_i32_871 = arith.constant 0 : i32
    %1745 = vector.broadcast %c0_i32_871 : i32 to vector<1x128xi32>
    %1746 = arith.addi %1612, %1745 : vector<1x128xi32>
    %c0_i32_872 = arith.constant 0 : i32
    %1747 = vector.broadcast %c0_i32_872 : i32 to vector<1x128xi32>
    %1748 = arith.cmpi sge, %1746, %1747 : vector<1x128xi32>
    %1749 = arith.andi %1744, %1748 : vector<1x128xi1>
    %c0_i32_873 = arith.constant 0 : i32
    %1750 = vector.broadcast %c0_i32_873 : i32 to vector<1x128xi32>
    %1751 = arith.addi %1612, %1750 : vector<1x128xi32>
    %c4_i32_874 = arith.constant 4 : i32
    %1752 = vector.broadcast %c4_i32_874 : i32 to vector<1x128xi32>
    %1753 = arith.cmpi slt, %1751, %1752 : vector<1x128xi32>
    %1754 = arith.andi %1749, %1753 : vector<1x128xi1>
    %cst_875 = arith.constant 0.000000e+00 : f32
    %1755 = vector.shape_cast %1754 : vector<1x128xi1> to vector<1x128xi1>
    %1756 = vector.broadcast %1755 : vector<1x128xi1> to vector<12x128xi1>
    %1757 = vector.broadcast %cst_875 : f32 to vector<12x128xf32>
    %1758 = arith.select %1756, %1735, %1757 : vector<12x128xi1>, vector<12x128xf32>
    %c8_876 = arith.constant 8 : index
    %c5_877 = arith.constant 5 : index
    %c0_878 = arith.constant 0 : index
    %c0_879 = arith.constant 0 : index
    %1759 = vector.load %arg1[%c8_876, %c5_877, %c0_878, %c0_879] : memref<9x9x12x12xbf16, #tpu.memory_space<vmem>>, vector<1x1x12x12xbf16>
    %1760 = vector.shape_cast %1759 : vector<1x1x12x12xbf16> to vector<12x12xbf16>
    %1761 = arith.truncf %1758 : vector<12x128xf32> to vector<12x128xbf16>
    %cst_880 = arith.constant dense<0.000000e+00> : vector<12x128xf32>
    %1762 = tpu.matmul %1760, %1761, %cst_880 {dimension_numbers = #tpu.dot_dimension_numbers<[1], [0], [0], [1], [0, 0, 1, 1], [], []>} : vector<12x12xbf16>, vector<12x128xbf16>, vector<12x128xf32> -> vector<12x128xf32>
    %1763 = arith.addf %1734, %1762 : vector<12x128xf32>
    %c125_i32_881 = arith.constant 125 : i32
    %1764 = tpu.dynamic_rotate %1605 by %c125_i32_881 dim 1 : vector<12x128xf32>, i32 -> vector<12x128xf32>
    %c-1_i32_882 = arith.constant -1 : i32
    %1765 = vector.broadcast %c-1_i32_882 : i32 to vector<1x128xi32>
    %1766 = arith.addi %1608, %1765 : vector<1x128xi32>
    %c0_i32_883 = arith.constant 0 : i32
    %1767 = vector.broadcast %c0_i32_883 : i32 to vector<1x128xi32>
    %1768 = arith.cmpi sge, %1766, %1767 : vector<1x128xi32>
    %c-1_i32_884 = arith.constant -1 : i32
    %1769 = vector.broadcast %c-1_i32_884 : i32 to vector<1x128xi32>
    %1770 = arith.addi %1608, %1769 : vector<1x128xi32>
    %c4_i32_885 = arith.constant 4 : i32
    %1771 = vector.broadcast %c4_i32_885 : i32 to vector<1x128xi32>
    %1772 = arith.cmpi slt, %1770, %1771 : vector<1x128xi32>
    %1773 = arith.andi %1768, %1772 : vector<1x128xi1>
    %c1_i32_886 = arith.constant 1 : i32
    %1774 = vector.broadcast %c1_i32_886 : i32 to vector<1x128xi32>
    %1775 = arith.addi %1612, %1774 : vector<1x128xi32>
    %c0_i32_887 = arith.constant 0 : i32
    %1776 = vector.broadcast %c0_i32_887 : i32 to vector<1x128xi32>
    %1777 = arith.cmpi sge, %1775, %1776 : vector<1x128xi32>
    %1778 = arith.andi %1773, %1777 : vector<1x128xi1>
    %c1_i32_888 = arith.constant 1 : i32
    %1779 = vector.broadcast %c1_i32_888 : i32 to vector<1x128xi32>
    %1780 = arith.addi %1612, %1779 : vector<1x128xi32>
    %c4_i32_889 = arith.constant 4 : i32
    %1781 = vector.broadcast %c4_i32_889 : i32 to vector<1x128xi32>
    %1782 = arith.cmpi slt, %1780, %1781 : vector<1x128xi32>
    %1783 = arith.andi %1778, %1782 : vector<1x128xi1>
    %cst_890 = arith.constant 0.000000e+00 : f32
    %1784 = vector.shape_cast %1783 : vector<1x128xi1> to vector<1x128xi1>
    %1785 = vector.broadcast %1784 : vector<1x128xi1> to vector<12x128xi1>
    %1786 = vector.broadcast %cst_890 : f32 to vector<12x128xf32>
    %1787 = arith.select %1785, %1764, %1786 : vector<12x128xi1>, vector<12x128xf32>
    %c8_891 = arith.constant 8 : index
    %c6_892 = arith.constant 6 : index
    %c0_893 = arith.constant 0 : index
    %c0_894 = arith.constant 0 : index
    %1788 = vector.load %arg1[%c8_891, %c6_892, %c0_893, %c0_894] : memref<9x9x12x12xbf16, #tpu.memory_space<vmem>>, vector<1x1x12x12xbf16>
    %1789 = vector.shape_cast %1788 : vector<1x1x12x12xbf16> to vector<12x12xbf16>
    %1790 = arith.truncf %1787 : vector<12x128xf32> to vector<12x128xbf16>
    %cst_895 = arith.constant dense<0.000000e+00> : vector<12x128xf32>
    %1791 = tpu.matmul %1789, %1790, %cst_895 {dimension_numbers = #tpu.dot_dimension_numbers<[1], [0], [0], [1], [0, 0, 1, 1], [], []>} : vector<12x12xbf16>, vector<12x128xbf16>, vector<12x128xf32> -> vector<12x128xf32>
    %1792 = arith.addf %1763, %1791 : vector<12x128xf32>
    %c124_i32_896 = arith.constant 124 : i32
    %1793 = tpu.dynamic_rotate %1605 by %c124_i32_896 dim 1 : vector<12x128xf32>, i32 -> vector<12x128xf32>
    %c0_i32_897 = arith.constant 0 : i32
    %1794 = vector.broadcast %c0_i32_897 : i32 to vector<1x128xi32>
    %1795 = arith.addi %1608, %1794 : vector<1x128xi32>
    %c0_i32_898 = arith.constant 0 : i32
    %1796 = vector.broadcast %c0_i32_898 : i32 to vector<1x128xi32>
    %1797 = arith.cmpi sge, %1795, %1796 : vector<1x128xi32>
    %c0_i32_899 = arith.constant 0 : i32
    %1798 = vector.broadcast %c0_i32_899 : i32 to vector<1x128xi32>
    %1799 = arith.addi %1608, %1798 : vector<1x128xi32>
    %c4_i32_900 = arith.constant 4 : i32
    %1800 = vector.broadcast %c4_i32_900 : i32 to vector<1x128xi32>
    %1801 = arith.cmpi slt, %1799, %1800 : vector<1x128xi32>
    %1802 = arith.andi %1797, %1801 : vector<1x128xi1>
    %c1_i32_901 = arith.constant 1 : i32
    %1803 = vector.broadcast %c1_i32_901 : i32 to vector<1x128xi32>
    %1804 = arith.addi %1612, %1803 : vector<1x128xi32>
    %c0_i32_902 = arith.constant 0 : i32
    %1805 = vector.broadcast %c0_i32_902 : i32 to vector<1x128xi32>
    %1806 = arith.cmpi sge, %1804, %1805 : vector<1x128xi32>
    %1807 = arith.andi %1802, %1806 : vector<1x128xi1>
    %c1_i32_903 = arith.constant 1 : i32
    %1808 = vector.broadcast %c1_i32_903 : i32 to vector<1x128xi32>
    %1809 = arith.addi %1612, %1808 : vector<1x128xi32>
    %c4_i32_904 = arith.constant 4 : i32
    %1810 = vector.broadcast %c4_i32_904 : i32 to vector<1x128xi32>
    %1811 = arith.cmpi slt, %1809, %1810 : vector<1x128xi32>
    %1812 = arith.andi %1807, %1811 : vector<1x128xi1>
    %cst_905 = arith.constant 0.000000e+00 : f32
    %1813 = vector.shape_cast %1812 : vector<1x128xi1> to vector<1x128xi1>
    %1814 = vector.broadcast %1813 : vector<1x128xi1> to vector<12x128xi1>
    %1815 = vector.broadcast %cst_905 : f32 to vector<12x128xf32>
    %1816 = arith.select %1814, %1793, %1815 : vector<12x128xi1>, vector<12x128xf32>
    %c8_906 = arith.constant 8 : index
    %c7_907 = arith.constant 7 : index
    %c0_908 = arith.constant 0 : index
    %c0_909 = arith.constant 0 : index
    %1817 = vector.load %arg1[%c8_906, %c7_907, %c0_908, %c0_909] : memref<9x9x12x12xbf16, #tpu.memory_space<vmem>>, vector<1x1x12x12xbf16>
    %1818 = vector.shape_cast %1817 : vector<1x1x12x12xbf16> to vector<12x12xbf16>
    %1819 = arith.truncf %1816 : vector<12x128xf32> to vector<12x128xbf16>
    %cst_910 = arith.constant dense<0.000000e+00> : vector<12x128xf32>
    %1820 = tpu.matmul %1818, %1819, %cst_910 {dimension_numbers = #tpu.dot_dimension_numbers<[1], [0], [0], [1], [0, 0, 1, 1], [], []>} : vector<12x12xbf16>, vector<12x128xbf16>, vector<12x128xf32> -> vector<12x128xf32>
    %1821 = arith.addf %1792, %1820 : vector<12x128xf32>
    %c123_i32_911 = arith.constant 123 : i32
    %1822 = tpu.dynamic_rotate %1605 by %c123_i32_911 dim 1 : vector<12x128xf32>, i32 -> vector<12x128xf32>
    %c1_i32_912 = arith.constant 1 : i32
    %1823 = vector.broadcast %c1_i32_912 : i32 to vector<1x128xi32>
    %1824 = arith.addi %1608, %1823 : vector<1x128xi32>
    %c0_i32_913 = arith.constant 0 : i32
    %1825 = vector.broadcast %c0_i32_913 : i32 to vector<1x128xi32>
    %1826 = arith.cmpi sge, %1824, %1825 : vector<1x128xi32>
    %c1_i32_914 = arith.constant 1 : i32
    %1827 = vector.broadcast %c1_i32_914 : i32 to vector<1x128xi32>
    %1828 = arith.addi %1608, %1827 : vector<1x128xi32>
    %c4_i32_915 = arith.constant 4 : i32
    %1829 = vector.broadcast %c4_i32_915 : i32 to vector<1x128xi32>
    %1830 = arith.cmpi slt, %1828, %1829 : vector<1x128xi32>
    %1831 = arith.andi %1826, %1830 : vector<1x128xi1>
    %c1_i32_916 = arith.constant 1 : i32
    %1832 = vector.broadcast %c1_i32_916 : i32 to vector<1x128xi32>
    %1833 = arith.addi %1612, %1832 : vector<1x128xi32>
    %c0_i32_917 = arith.constant 0 : i32
    %1834 = vector.broadcast %c0_i32_917 : i32 to vector<1x128xi32>
    %1835 = arith.cmpi sge, %1833, %1834 : vector<1x128xi32>
    %1836 = arith.andi %1831, %1835 : vector<1x128xi1>
    %c1_i32_918 = arith.constant 1 : i32
    %1837 = vector.broadcast %c1_i32_918 : i32 to vector<1x128xi32>
    %1838 = arith.addi %1612, %1837 : vector<1x128xi32>
    %c4_i32_919 = arith.constant 4 : i32
    %1839 = vector.broadcast %c4_i32_919 : i32 to vector<1x128xi32>
    %1840 = arith.cmpi slt, %1838, %1839 : vector<1x128xi32>
    %1841 = arith.andi %1836, %1840 : vector<1x128xi1>
    %cst_920 = arith.constant 0.000000e+00 : f32
    %1842 = vector.shape_cast %1841 : vector<1x128xi1> to vector<1x128xi1>
    %1843 = vector.broadcast %1842 : vector<1x128xi1> to vector<12x128xi1>
    %1844 = vector.broadcast %cst_920 : f32 to vector<12x128xf32>
    %1845 = arith.select %1843, %1822, %1844 : vector<12x128xi1>, vector<12x128xf32>
    %c8_921 = arith.constant 8 : index
    %c8_922 = arith.constant 8 : index
    %c0_923 = arith.constant 0 : index
    %c0_924 = arith.constant 0 : index
    %1846 = vector.load %arg1[%c8_921, %c8_922, %c0_923, %c0_924] : memref<9x9x12x12xbf16, #tpu.memory_space<vmem>>, vector<1x1x12x12xbf16>
    %1847 = vector.shape_cast %1846 : vector<1x1x12x12xbf16> to vector<12x12xbf16>
    %1848 = arith.truncf %1845 : vector<12x128xf32> to vector<12x128xbf16>
    %cst_925 = arith.constant dense<0.000000e+00> : vector<12x128xf32>
    %1849 = tpu.matmul %1847, %1848, %cst_925 {dimension_numbers = #tpu.dot_dimension_numbers<[1], [0], [0], [1], [0, 0, 1, 1], [], []>} : vector<12x12xbf16>, vector<12x128xbf16>, vector<12x128xf32> -> vector<12x128xf32>
    %1850 = arith.addf %1821, %1849 : vector<12x128xf32>
    %c8_926 = arith.constant 8 : index
    %c0_927 = arith.constant 0 : index
    %c0_928 = arith.constant 0 : index
    %1851 = vector.load %arg2[%c8_926, %c0_927, %c0_928] : memref<9x12x1xf32, #tpu.memory_space<vmem>>, vector<1x12x1xf32>
    %1852 = vector.shape_cast %1851 : vector<1x12x1xf32> to vector<12x1xf32>
    %1853 = vector.broadcast %1852 : vector<12x1xf32> to vector<12x128xf32>
    %1854 = arith.addf %1850, %1853 : vector<12x128xf32>
    %cst_929 = arith.constant 0.000000e+00 : f32
    %1855 = vector.broadcast %cst_929 : f32 to vector<12x128xf32>
    %1856 = arith.maximumf %1854, %1855 : vector<12x128xf32>
    %1857 = tpu.iota {dimensions = array<i32: 0>} : vector<2x128xi32>
    %1858 = tpu.iota {dimensions = array<i32: 1>} : vector<2x128xi32>
    %c4_i32_930 = arith.constant 4 : i32
    %1859 = vector.broadcast %c4_i32_930 : i32 to vector<2x128xi32>
    %1860 = arith.shrsi %1858, %1859 : vector<2x128xi32>
    %1861 = arith.cmpi eq, %1860, %1857 : vector<2x128xi32>
    %cst_931 = arith.constant 6.250000e-02 : f32
    %cst_932 = arith.constant 0.000000e+00 : f32
    %1862 = vector.broadcast %cst_931 : f32 to vector<2x128xf32>
    %1863 = vector.broadcast %cst_932 : f32 to vector<2x128xf32>
    %1864 = arith.select %1861, %1862, %1863 : vector<2x128xi1>, vector<2x128xf32>
    %cst_933 = arith.constant dense<0.000000e+00> : vector<2x12xf32>
    %1865 = tpu.matmul %1864, %1856, %cst_933 {dimension_numbers = #tpu.dot_dimension_numbers<[1], [1], [0], [0], [0, 0, 1, 0], [], []>} : vector<2x128xf32>, vector<12x128xf32>, vector<2x12xf32> -> vector<2x12xf32>
    %1866 = vector.extract_strided_slice %1865 {offsets = [0, 0], sizes = [2, 10], strides = [1, 1]} : vector<2x12xf32> to vector<2x10xf32>
    %cst_934 = arith.constant dense<0xFF800000> : vector<2xf32>
    %1867 = vector.multi_reduction <maximumf>, %1866, %cst_934 [1] : vector<2x10xf32> to vector<2xf32>
    %1868 = vector.shape_cast %1867 : vector<2xf32> to vector<2x1xf32>
    %1869 = vector.broadcast %1868 : vector<2x1xf32> to vector<2x10xf32>
    %1870 = arith.subf %1866, %1869 : vector<2x10xf32>
    %1871 = math.exp %1870 : vector<2x10xf32>
    %cst_935 = arith.constant dense<0.000000e+00> : vector<2xf32>
    %1872 = vector.multi_reduction <add>, %1871, %cst_935 [1] : vector<2x10xf32> to vector<2xf32>
    %1873 = vector.shape_cast %1872 : vector<2xf32> to vector<2x1xf32>
    %1874 = math.log %1873 : vector<2x1xf32>
    %1875 = vector.broadcast %1874 : vector<2x1xf32> to vector<2x10xf32>
    %1876 = arith.subf %1870, %1875 : vector<2x10xf32>
    %c0_936 = arith.constant 0 : index
    %c0_937 = arith.constant 0 : index
    %1877 = vector.load %arg3[%c0_936, %c0_937] : memref<2x10xf32, #tpu.memory_space<vmem>>, vector<2x10xf32>
    tpu.vector_store %arg3[%c0_936, %c0_937], %1876 {strides = array<i32>} : memref<2x10xf32, #tpu.memory_space<vmem>>, vector<2x10xf32>,
    return
  }
}

</mosaic_0001>

<bundles_post_ra>
// kernel: forward.1
= control target key start
LH: loop header
LB: loop body
LE: loop exit
PB: predicated region body
PF: predicated region fallthrough
CT: control target
= control target key end

     0   :  { %8 = vsyncpa [#allocation3], 0  ;;  %s9792_s0 = inlined_call_operand.vmem [shape: f32[1,512], index: 0, kind: input, shape index: {}]   ;;  %s9793_s1 = inlined_call_operand.hbm [shape: bf16[9,9,12,12], index: 1, kind: input, shape index: {}]   ;;  %s9794_s2 = inlined_call_operand.vmem [shape: f32[9,12,1], index: 2, kind: input, shape index: {}]   ;;  %s9795_s3 = inlined_call_operand.hbm [shape: f32[2,10], index: 3, kind: output, shape index: {}]  }
   0x1   :  { %9 = vsyncpa [#allocation4], 0  ;;  %s7383_s12 = smov [#allocation2]  }
   0x2   :  { %s17_s13 = sshll.u32 %s7383_s12, 4  ;;  %s18_s13 = int_to_ptr.vmem [resolvable:$true] %s17_s13 }
   0x3   :  { %s7347_s14 = scalar_lea.vmem %s18_s13, 10368  ;;  %p7352_p1 = scmp.lt.s32.totalorder %s18_s13, %s18_s13 }
   0x4   :  { %p7348_p0 = scmp.ne.s32.totalorder %s18_s13, %s7347_s14  ;;  %p7353_p2 = scmp.lt.s32.totalorder %s7347_s14, %s7347_s14 }
   0x6   :  { %p7354_p3 = por %p7353_p2, %p7352_p1 }
   0x8   :  { %p7355_p4 = pnand %p7354_p3, %p7348_p0 }
   0xa   :  { %7358 = shalt.err (!%p7355_p4)
}
   0xb   :  { %s7384_s15 = smov 64   ;;  %s7385_s16 = smov 4  }
   0xc   :  { %23 = dma.hbm_to_vmem [thread:$0]  %s9793_s1, 10368, %s18_s13, [#allocation3], %s7384_s15, %s7384_s15, %s7385_s16  }
   0xd   :  { %7379 = dma.done.wait [#allocation3], 10368  }
   0xe   :  { %7380 = vsyncadd [#allocation3], 4294956928  ;;  %v31_v0 = vlaneseq  ;;  %v9809_v1 = vmov 0   ;;  %v30_v5 = vld [vmem:[%s9792_s0] sm:$0xf]  ;;  %s7387_s20 = smov 17  }
   0xf   :  { %6797 = vset.pattern.permute.xlu0 %v9809_v1  ;;  %6813 = vset.pattern.permute.xlu1 %v9809_v1  ;;  %v122_v6 = vld [vmem:[#allocation2] ss:$8 sps:$4 sm:$0xff]   ;;  %v123_v7 = vld [vmem:[#allocation2 + $0x4] sm:$0x3]  ;;  %v207_v11 = vld [vmem:[#allocation2 + $0xc] sm:$0x3] }
  0x10   :  { %v7438_v2 = vshrl.u32 %v31_v0, 7  ;;  %927 = vmatprep.mubr.bf16.mxu0 %v9809_v1  ;;  %970 = vmatprep.mubr.bf16.mxu1 %v9809_v1  ;;  %v124_v9 = vunpack.c.l.bf16 %v122_v6  ;;  %v125_v10 = vunpack.c.l.bf16 %v123_v7  ;;  %v208_v12 = vunpack.c.h.bf16 %v122_v6  ;;  %v294_v21 = vld [vmem:[#allocation2 + $0x10] ss:$8 sps:$4 sm:$0xff]   ;;  %v295_v22 = vld [vmem:[#allocation2 + $0x14] sm:$0x3]  ;;  %s7388_s0 = smov 16  }
  0x11   :  { %v209_v13 = vunpack.c.l.bf16 %v207_v11  ;;  %v296_v23 = vunpack.c.l.bf16 %v294_v21  ;;  %v297_v24 = vunpack.c.l.bf16 %v295_v22  ;;  %v375_v25 = vld [vmem:[#allocation2 + $0x1c] sm:$0x3]  ;;  %s7389_s21 = smov 15   ;;  %v376_v27 = vunpack.c.h.bf16 %v294_v21  ;;  %v477_v30 = vld [vmem:[#allocation2 + $0x20] ss:$8 sps:$4 sm:$0xff]   ;;  %s7390_s22 = smov 1  }
  0x12   :  { %9896 = vst [vmem:[#allocation8_spill] sm:$0xff] %v7438_v2  ;;  %v7443_v3 = vsub.s32 0, %v7438_v2  ;;  %v55_v4 = vsub.s32 1, %v7438_v2  ;;  %v6798_v14 = vpack.i.bf16 %v125_v10, %v124_v9  ;;  %v63_v16 = vsub.s32 3, %v7438_v2  ;;  %v478_v31 = vld [vmem:[#allocation2 + $0x2c] sm:$0x3] }
  0x13   :  { %v6803_v17 = vpack.i.bf16 %v209_v13, %v208_v12  ;;  %v59_v18 = vsub.s32 2, %v7438_v2  ;;  %v6808_v26 = vpack.i.bf16 %v297_v24, %v296_v23  ;;  %v377_v28 = vunpack.c.l.bf16 %v375_v25  ;;  %v422_v32 = vld [vmem:[#allocation2 + $0x24] sm:$0x3]  ;;  %v561_v39 = vld [vmem:[#allocation2 + $0x30] ss:$8 sps:$4 sm:$0xff]   ;;  %s7391_s23 = smov 127  }
  0x14   :  { %v7450_v8 = vrot.slane %v30_v5, %v7443_v3  ;;  %v7454_v15 = vrot.slane %v30_v5, %v55_v4  ;;  %6799 = vperm.xlu0 %6797, %v6798_v14   ;;  %v7460_v19 = vrot.slane %v30_v5, %v63_v16  ;;  %v479_v33 = vunpack.c.h.bf16 %v477_v30  ;;  %v562_v40 = vld [vmem:[#allocation2 + $0x34] sm:$0x3]  ;;  %v634_v43 = vld [vmem:[#allocation2 + $0x3c] sm:$0x3]  ;;  %s7392_s24 = smov 113   ;;  %s7393_s25 = smov 112  }
  0x15   :  { %v7462_v20 = vrot.slane %v30_v5, %v59_v18  ;;  %v6814_v29 = vpack.i.bf16 %v377_v28, %v376_v27  ;;  %v480_v34 = vunpack.c.l.bf16 %v478_v31  ;;  %v423_v35 = vunpack.c.l.bf16 %v477_v30  ;;  %v705_v48 = vld [vmem:[#allocation2 + $0x40] sm:$0xf]  ;;  %v706_v49 = vld [vmem:[#allocation2 + $0x44] sm:$0x3]  ;;  %s7394_s26 = smov 111   ;;  %s7398_s12 = smov 9  }
  0x16   :  { %69 = vrot.lane.b32.xlu1 %v7450_v8, %s7387_s20  ;;  %v424_v36 = vunpack.c.l.bf16 %v422_v32  ;;  %v563_v41 = vunpack.c.l.bf16 %v561_v39  ;;  %v564_v42 = vunpack.c.l.bf16 %v562_v40  ;;  %v635_v45 = vunpack.c.h.bf16 %v561_v39  ;;  %v751_v53 = vld [vmem:[%s9794_s2] sm:$0xff]  ;;  %v752_v54 = vld [vmem:[%s9794_s2 + $0x8] sm:$0xf]  ;;  %s7399_s13 = smov 8   ;;  %s7400_s14 = smov 7  }
  0x17   :  { %v6824_v37 = vpack.i.bf16 %v480_v34, %v479_v33  ;;  %v636_v46 = vunpack.c.l.bf16 %v634_v43  ;;  %v707_v50 = vunpack.c.l.bf16 %v705_v48  ;;  %v708_v51 = vunpack.c.l.bf16 %v706_v49  ;;  %s7401_s15 = smov 121   ;;  %s7402_s17 = smov 119  }
  0x18   :  { %6804 = vperm.xlu0 %6797, %v6803_v17   ;;  %v6819_v38 = vpack.i.bf16 %v424_v36, %v423_v35  ;;  %v6829_v44 = vpack.i.bf16 %v564_v42, %v563_v41  ;;  %v7533_v56 = vand.u32 127, %v31_v0  ;;  %v9900_v31 = vmov 0  ;;  %s7403_s18 = smov 120   ;;  %s7404_s4 = smov 5  }
  0x19   :  { %v6834_v47 = vpack.i.bf16 %v636_v46, %v635_v45  ;;  %v6839_v52 = vpack.i.bf16 %v708_v51, %v707_v50  ;;  %v9903_v32 = vmov 0  ;;  %v9906_v35 = vmov 0  ;;  %s7405_s5 = smov 3   ;;  %s7406_s6 = smov 125  }
  0x1a   :  { %71 = vrot.lane.b32.xlu1 %v7454_v15, %s7387_s20  ;;  %9897 = vst [vmem:[#allocation9_spill] sm:$0xff] %v7533_v56  ;;  %v33_v57 = vadd.s32 128, %v7533_v56  ;;  %v7539_v59 = vshra.s32 %v7533_v56, 4  ;;  %v34_v61 = vadd.s32 256, %v7533_v56  ;;  %v35_v4 = vadd.s32 384, %v7533_v56  ;;  %s7407_s7 = smov 123  }
  0x1b   :  { %v7548_v5 = vand.u32 15, %v7533_v56  ;;  %v9911_v43 = vmov 0  ;;  %v9917_v49 = vmov 0  ;;  %v9948_v1 = vmov 0  ;;  %s7408_s8 = smov 124  }
  0x1c   :  { %73 = vrot.lane.b32.xlu0 %v7462_v20, %s7387_s20  ;;  %9898 = vst [vmem:[#allocation10_spill] sm:$0xff] %v7539_v59  ;;  %v41_v60 = vshra.s32 %v33_v57, 4  ;;  %v7551_v0 = vand.u32 15, %v7539_v59  ;;  %v37_v6 = vand.u32 15, %v33_v57  ;;  %v42_v9 = vshra.s32 %v34_v61, 4 }
  0x1d   :  { %9899 = vst [vmem:[#allocation11_spill] sm:$0xff] %v7548_v5  ;;  %v43_v12 = vshra.s32 %v35_v4, 4  ;;  %v7560_v13 = vadd.s32 4294967295, %v7548_v5  ;;  %v38_v18 = vand.u32 15, %v34_v61  ;;  %v39_v22 = vand.u32 15, %v35_v4 }
  0x1e   :  { %75 = vrot.lane.b32.xlu1 %v7460_v19, %s7387_s20  ;;  %v7553_v7 = vand.u32 15, %v41_v60  ;;  %v7563_v14 = vadd.s32 4294967295, %v7551_v0  ;;  %v7565_v16 = vadd.s32 4294967295, %v37_v6  ;;  %v7570_v21 = vand.u32 15, %v42_v9 }
  0x1f   :  { %v7572_v23 = vand.u32 15, %v43_v12  ;;  %vm9796_vm0 = vcmp.ge.s32.totalorder %v7560_v13, 0  ;;  %v7590_v28 = vadd.s32 4294967295, %v39_v22  ;;  %v7626_v36 = vadd.s32 1, %v37_v6 }
  0x20   :  { %168 = vrot.lane.b32.xlu0 %v7450_v8, %s7388_s0  ;;  %v7568_v17 = vadd.s32 4294967295, %v7553_v7  ;;  %vm9801_vm1 = vcmp.ge.s32.totalorder %v7563_v14, 0  ;;  %vm9797_vm2 = vcmp.ge.s32.totalorder %v7565_v16, 0  ;;  %v7583_v27 = vadd.s32 4294967295, %v7570_v21 }
  0x21   :  { %vm106_vm4 = vmand %vm9796_vm0, %vm9801_vm1  ;;  %vm9799_vm5 = vcmp.lt.s32.totalorder %v7563_v14, 16  ;;  %vm9800_vm12 = vcmp.ge.s32.totalorder %v7590_v28, 0  ;;  %v7657_v41 = vadd.s32 1, %v7548_v5  ;;  %v7659_v42 = vadd.s32 1, %v39_v22 }
  0x22   :  { %170 = vrot.lane.b32.xlu1 %v7454_v15, %s7388_s0  ;;  %vm103_vm3 = vcmp.ge.s32.totalorder %v7568_v17, 0  ;;  %vm9802_vm7 = vcmp.lt.s32.totalorder %v7568_v17, 16  ;;  %vm7602_vm8 = vmand %vm106_vm4, %vm9799_vm5  ;;  %vm104_vm10 = vcmp.ge.s32.totalorder %v7583_v27, 0  ;;  %vm9804_vm4 = vcmp.lt.s32.totalorder %v7583_v27, 16 }
  0x23   :  { %vm107_vm6 = vmand %vm9797_vm2, %vm103_vm3  ;;  %v9901_v31 = vsel %vm7602_vm8, 4294967295, %v9900_v31  ;;  %v9930_v12 = vmov 0 }
  0x24   :  { %172 = vrot.lane.b32.xlu0 %v7462_v20, %s7388_s0  ;;  %9902 = vst [vmem:[#allocation12_spill] sm:$0xff] %v9901_v31  ;;  %vm7610_vm11 = vmand %vm107_vm6, %vm9802_vm7  ;;  %vm9807_vm6 = vcmp.lt.s32.totalorder %v7533_v56, 17 }
  0x25   :  { %v9904_v32 = vsel %vm7610_vm11, 4294967295, %v9903_v32  ;;  %vm7622_vm14 = vmand %vm9801_vm1, %vm9799_vm5  ;;  %vm9806_vm1 = vcmp.lt.s32.totalorder %v7626_v36, 16 }
  0x26   :  { %174 = vrot.lane.b32.xlu1 %v7460_v19, %s7388_s0  ;;  %9905 = vst [vmem:[#allocation13_spill] sm:$0xff] %v9904_v32  ;;  %v9907_v35 = vsel %vm7622_vm14, 4294967295, %v9906_v35  ;;  %vm7650_vm5 = vmand %vm103_vm3, %vm9802_vm7 }
  0x27   :  { %9908 = vst [vmem:[#allocation14_spill] sm:$0xff] %v9907_v35 }
  0x28   :  { %6809 = vperm.xlu0 %6797, %v6808_v26   ;;  %v7580_v26 = vadd.s32 4294967295, %v38_v18 }
  0x2a   :  { %252 = vrot.lane.b32.xlu1 %v7450_v8, %s7389_s21  ;;  %vm9798_vm9 = vcmp.ge.s32.totalorder %v7580_v26, 0 }
  0x2b   :  { %vm108_vm15 = vmand %vm9798_vm9, %vm104_vm10  ;;  %vm9805_vm9 = vcmp.lt.s32.totalorder %v7533_v56, 16 }
  0x2c   :  { %254 = vrot.lane.b32.xlu0 %v7454_v15, %s7389_s21 }
  0x2e   :  { %256 = vrot.lane.b32.xlu1 %v7462_v20, %s7389_s21 }
  0x30   :  { %258 = vrot.lane.b32.xlu0 %v7460_v19, %s7389_s21 }
  0x32   :  { %6815 = vperm.xlu1 %6813, %v6814_v29   ;;  %v7593_v29 = vadd.s32 4294967295, %v7572_v23 }
  0x34   :  { %340 = vrot.lane.b32.xlu0 %v7450_v8, %s7390_s22  ;;  %vm9803_vm13 = vcmp.ge.s32.totalorder %v7593_v29, 0  ;;  %vm9808_vm2 = vcmp.lt.s32.totalorder %v7593_v29, 16 }
  0x35   :  { %vm109_vm0 = vmand %vm9800_vm12, %vm9803_vm13 }
  0x36   :  { %342 = vrot.lane.b32.xlu1 %v7454_v15, %s7390_s22  ;;  %vm7663_vm12 = vmand %vm108_vm15, %vm9804_vm4  ;;  %vm9933_vm15 = vcmp.lt.s32.totalorder %v7533_v56, 16 }
  0x37   :  { %v9912_v43 = vsel %vm7663_vm12, 4294967295, %v9911_v43  ;;  %vm7670_vm7 = vmand %vm109_vm0, %vm9808_vm2 }
  0x38   :  { %344 = vrot.lane.b32.xlu0 %v7462_v20, %s7390_s22  ;;  %9913 = vst [vmem:[#allocation15_spill] sm:$0xff] %v9912_v43  ;;  %vm7689_vm0 = vmand %vm104_vm10, %vm9804_vm4 }
  0x39   :  { %v9918_v49 = vsel %vm7689_vm0, 4294967295, %v9917_v49  ;;  %vm7702_vm13 = vmand %vm9806_vm1, %vm103_vm3  ;;  %vm9922_vm3 = vcmp.ge.s32.totalorder %v7593_v29, 0 }
  0x3a   :  { %346 = vrot.lane.b32.xlu1 %v7460_v19, %s7390_s22  ;;  %9919 = vst [vmem:[#allocation17_spill] sm:$0xff] %v9918_v49  ;;  %vm7719_vm1 = vmand %vm9922_vm3, %vm9808_vm2  ;;  %vm9929_vm2 = vcmp.lt.s32.totalorder %v7568_v17, 16 }
  0x3b   :  { %vm7750_vm4 = vmand %vm7702_vm13, %vm9929_vm2  ;;  %vm9935_vm13 = vcmp.ge.s32.totalorder %v7563_v14, 0 }
  0x3c   :  { %6820 = vperm.xlu0 %6797, %v6819_v38   ;;  %v9931_v12 = vsel %vm7750_vm4, 4294967295, %v9930_v12  ;;  %vm9934_vm2 = vmmov %vm9933_vm15 }
  0x3d   :  { %9932 = vst [vmem:[#allocation19_spill] sm:$0xff] %v9931_v12 }
  0x3e   :  { %6825 = vperm.xlu1 %6813, %v6824_v37   ;;  %v7639_v37 = vadd.s32 1, %v38_v18  ;;  %v7757_v18 = vadd.s32 1, %v7551_v0 }
  0x40   :  { %451 = vrot.lane.b32.xlu0 %v7450_v8, %s7391_s23  ;;  %vm9926_vm3 = vcmp.lt.s32.totalorder %v7639_v37, 16 }
  0x42   :  { %453 = vrot.lane.b32.xlu1 %v7454_v15, %s7391_s23 }
  0x44   :  { %455 = vrot.lane.b32.xlu0 %v7462_v20, %s7391_s23 }
  0x46   :  { %457 = vrot.lane.b32.xlu1 %v7460_v19, %s7391_s23 }
  0x48   :  { %6830 = vperm.xlu0 %6797, %v6829_v44   ;;  %v9914_v44 = vmov 0 }
  0x49   :  { %v9915_v44 = vsel %vm7670_vm7, 4294967295, %v9914_v44 }
  0x4a   :  { %523 = vrot.lane.b32.xlu1 %v7450_v8, %s7392_s24  ;;  %9916 = vst [vmem:[#allocation16_spill] sm:$0xff] %v9915_v44 }
  0x4c   :  { %525 = vrot.lane.b32.xlu0 %v7454_v15, %s7392_s24 }
  0x4e   :  { %527 = vrot.lane.b32.xlu1 %v7462_v20, %s7392_s24 }
  0x50   :  { %529 = vrot.lane.b32.xlu0 %v7460_v19, %s7392_s24 }
  0x52   :  { %6835 = vperm.xlu1 %6813, %v6834_v47  }
  0x54   :  { %607 = vrot.lane.b32.xlu0 %v7450_v8, %s7393_s25 }
  0x56   :  { %609 = vrot.lane.b32.xlu1 %v7454_v15, %s7393_s25 }
  0x58   :  { %611 = vrot.lane.b32.xlu0 %v7462_v20, %s7393_s25 }
  0x5a   :  { %613 = vrot.lane.b32.xlu1 %v7460_v19, %s7393_s25 }
  0x5c   :  { %6840 = vperm.xlu0 %6797, %v6839_v52  }
  0x5e   :  { %679 = vrot.lane.b32.xlu1 %v7450_v8, %s7394_s26 }
  0x60   :  { %681 = vrot.lane.b32.xlu0 %v7454_v15, %s7394_s26 }
  0x62   :  { %683 = vrot.lane.b32.xlu1 %v7462_v20, %s7394_s26 }
  0x64   :  { %685 = vrot.lane.b32.xlu0 %v7460_v19, %s7394_s26 }
  0x66   :  { %755 = vperm.xlu1 %6813, %v751_v53  }
  0x68   :  { %760 = vperm.xlu0 %6797, %v752_v54  }
  0x88   :  { %v7530_v55 = vpop.permute.xlu1 %69 }
  0x8c   :  { %v7536_v58 = vpop.permute.xlu1 %71 }
  0x8d   :  { %v80_v50 = vsel %vm9807_vm6, %v7530_v55, %v7536_v58 }
  0x8e   :  { %v119_v6 = vsel %vm7610_vm11, %v80_v50, 0.0 }
  0x8f   :  { %v7544_v63 = vpop.permute.xlu0 %6799 }
  0x90   :  { %v7542_v62 = vpop.permute.xlu1 %75  ;;  %v6801_v60 = vunpack.i.l.bf16 %v7544_v63  ;;  %v6802_v9 = vunpack.i.h.bf16 %v7544_v63 }
  0x91   :  { %v81_v38 = vsel %vm9807_vm6, %v7542_v62, %v7530_v55  ;;  %v9923_v55 = vmov 0 }
  0x92   :  { %v118_v46 = vsel %vm7602_vm8, %v81_v38, 0.0  ;;  %v9924_v55 = vsel %vm7719_vm1, 4294967295, %v9923_v55 }
  0x93   :  { %v7557_v11 = vpop.permute.xlu0 %6804  ;;  %9925 = vst [vmem:[#allocation18_spill] sm:$0xff] %v9924_v55  ;;  %v139_v57 = vrot.slane %v118_v46, %v7443_v3 }
  0x94   :  { %v7555_v10 = vpop.permute.xlu1 %170  ;;  %v6806_v50 = vunpack.i.l.bf16 %v7557_v11 }
  0x95   :  { %v152_v51 = vmul.f32 %v6801_v60, %v139_v57 }
  0x97   :  { %v74_v24 = vpop.permute.xlu0 %73 }
  0x98   :  { %v7578_v25 = vpop.permute.xlu1 %174  ;;  %v78_v53 = vsel %vm9807_vm6, %v74_v24, %v7542_v62  ;;  %v79_v54 = vsel %vm9807_vm6, %v7536_v58, %v74_v24  ;;  %vm7735_vm6 = vmand %vm9926_vm3, %vm104_vm10  ;;  %vm9936_vm10 = vcmp.lt.s32.totalorder %v7657_v41, 16 }
  0x99   :  { %v120_v22 = vsel %vm7663_vm12, %v79_v54, 0.0  ;;  %v121_v63 = vsel %vm7670_vm7, %v78_v53, 0.0  ;;  %v7807_v54 = vadd.s32 1, %v7572_v23  ;;  %vm9952_vm12 = vcmp.ge.s32.totalorder %v7565_v16, 0 }
  0x9b   :  { %v169_v30 = vpop.permute.xlu0 %168 }
  0x9c   :  { %v7616_v33 = vpop.permute.xlu1 %252  ;;  %v179_v47 = vsel %vm9805_vm9, %v169_v30, %v7555_v10  ;;  %v180_v48 = vsel %vm9805_vm9, %v7578_v25, %v169_v30  ;;  %vm7773_vm9 = vmand %vm9936_vm10, %vm9935_vm13  ;;  %vm9943_vm10 = vcmp.ge.s32.totalorder %v7593_v29, 0  ;;  %vm9944_vm13 = vcmp.lt.s32.totalorder %v7659_v42, 16 }
  0x9d   :  { %v201_v61 = vsel %vm7622_vm14, %v180_v48, 0.0  ;;  %v202_v58 = vsel %vm7650_vm5, %v179_v47, 0.0  ;;  %v143_v48 = vrot.slane %v119_v6, %v7443_v3  ;;  %vm7800_vm3 = vmand %vm9944_vm13, %vm9943_vm10  ;;  %vm9951_vm13 = vcmp.ge.s32.totalorder %v7553_v7, 0 }
  0x9e   :  { %v223_v46 = vrot.slane %v201_v61, %v7443_v3  ;;  %v227_v47 = vrot.slane %v202_v58, %v7443_v3  ;;  %v147_v61 = vrot.slane %v120_v22, %v7443_v3  ;;  %v151_v58 = vrot.slane %v121_v63, %v7443_v3  ;;  %vm7829_vm8 = vmand %vm9952_vm12, %vm9951_vm13 }
  0x9f   :  { %v173_v34 = vpop.permute.xlu0 %172  ;;  %v6807_v22 = vunpack.i.h.bf16 %v7557_v11  ;;  %v153_v59 = vmul.f32 %v6801_v60, %v143_v48  ;;  %v156_v63 = vmul.f32 %v6802_v9, %v139_v57  ;;  %v157_v5 = vmul.f32 %v6802_v9, %v143_v48 }
  0xa0   :  { %v7674_v45 = vpop.permute.xlu1 %256  ;;  %v177_v17 = vsel %vm9933_vm15, %v173_v34, %v7578_v25  ;;  %v178_v24 = vsel %vm9934_vm2, %v7555_v10, %v173_v34  ;;  %vm9939_vm15 = vcmp.lt.s32.totalorder %v7583_v27, 16  ;;  %v9940_v10 = vmov 0 }
  0xa1   :  { %vm7784_vm2 = vmand %vm7735_vm6, %vm9939_vm15  ;;  %v7789_v25 = vadd.s32 1, %v7553_v7  ;;  %v7792_v34 = vadd.s32 1, %v7570_v21  ;;  %v203_v62 = vsel %vm7689_vm0, %v178_v24, 0.0  ;;  %v204_v6 = vsel %vm7719_vm1, %v177_v17, 0.0 }
  0xa2   :  { %v9941_v10 = vsel %vm7784_vm2, 4294967295, %v9940_v10  ;;  %vm9947_vm6 = vcmp.lt.s32.totalorder %v7563_v14, 16  ;;  %v236_v24 = vmul.f32 %v6806_v50, %v223_v46  ;;  %v237_v30 = vmul.f32 %v6806_v50, %v227_v47 }
  0xa3   :  { %v7654_v40 = vpop.permute.xlu0 %6809  ;;  %9942 = vst [vmem:[#allocation20_spill] sm:$0xff] %v9941_v10  ;;  %vm7819_vm15 = vmand %vm7773_vm9, %vm9947_vm6  ;;  %vm9955_vm9 = vcmp.lt.s32.totalorder %v7533_v56, 15  ;;  %vm9957_vm10 = vcmp.lt.s32.totalorder %v7593_v29, 16  ;;  %v9958_v57 = vmov 0  ;;  %v240_v48 = vmul.f32 %v6807_v22, %v223_v46 }
  0xa4   :  { %v9949_v1 = vsel %vm7819_vm15, 4294967295, %v9948_v1  ;;  %vm9956_vm6 = vmmov %vm9955_vm9  ;;  %v231_v43 = vrot.slane %v203_v62, %v7443_v3  ;;  %v235_v31 = vrot.slane %v204_v6, %v7443_v3  ;;  %vm9962_vm13 = vcmp.ge.s32.totalorder %v7551_v0, 0 }
  0xa5   :  { %9950 = vst [vmem:[#allocation21_spill] sm:$0xff] %v9949_v1  ;;  %vm7843_vm7 = vmand %vm7800_vm3, %vm9957_vm10  ;;  %v154_v27 = vmul.f32 %v6801_v60, %v147_v61  ;;  %v155_v32 = vmul.f32 %v6801_v60, %v151_v58  ;;  %v158_v46 = vmul.f32 %v6802_v9, %v147_v61  ;;  %vm9967_vm10 = vcmp.lt.s32.totalorder %v7553_v7, 16 }
  0xa6   :  { %v9959_v57 = vsel %vm7843_vm7, 4294967295, %v9958_v57  ;;  %vm9961_vm12 = vmmov %vm9956_vm6  ;;  %v159_v6 = vmul.f32 %v6802_v9, %v151_v58  ;;  %v241_v49 = vmul.f32 %v6807_v22, %v227_v47  ;;  %v7883_v61 = vadd.f32 %v236_v24, %v152_v51 }
  0xa7   :  { %v255_v52 = vpop.permute.xlu0 %254  ;;  %9960 = vst [vmem:[#allocation22_spill] sm:$0xff] %v9959_v57  ;;  %vm9966_vm3 = vmmov %vm9961_vm12  ;;  %v245_v17 = vadd.f32 %v237_v30, %v153_v59  ;;  %v7898_v58 = vadd.f32 %v240_v48, %v156_v63  ;;  %v238_v51 = vmul.f32 %v6806_v50, %v231_v43  ;;  %v239_v24 = vmul.f32 %v6806_v50, %v235_v31 }
  0xa8   :  { %v262_v2 = vsel %vm9955_vm9, %v255_v52, %v7674_v45  ;;  %v263_v11 = vsel %vm9956_vm6, %v7616_v33, %v255_v52  ;;  %vm9963_vm9 = vcmp.ge.s32.totalorder %v7560_v13, 0  ;;  %v9985_v48 = vmov 0 }
  0xa9   :  { %vm7856_vm6 = vmand %vm9963_vm9, %vm9962_vm13  ;;  %v290_v35 = vsel %vm7750_vm4, %v263_v11, 0.0  ;;  %v291_v60 = vsel %vm7784_vm2, %v262_v2, 0.0  ;;  %vm9970_vm13 = vcmp.ge.s32.totalorder %v7572_v23, 0  ;;  %vm9971_vm9 = vcmp.ge.s32.totalorder %v7590_v28, 0 }
  0xaa   :  { %v9976_v2 = vmov 0  ;;  %v315_v11 = vrot.slane %v290_v35, %v7443_v3  ;;  %v319_v63 = vrot.slane %v291_v60, %v7443_v3  ;;  %v6812_v10 = vunpack.i.h.bf16 %v7654_v40 }
  0xab   :  { %v259_v38 = vpop.permute.xlu0 %258  ;;  %v243_v1 = vmul.f32 %v6807_v22, %v235_v31  ;;  %v6811_v57 = vunpack.i.l.bf16 %v7654_v40  ;;  %v246_v55 = vadd.f32 %v238_v51, %v154_v27 }
  0xac   :  { %v264_v44 = vsel %vm9961_vm12, %v259_v38, %v7616_v33  ;;  %v261_v62 = vsel %vm9966_vm3, %v7674_v45, %v259_v38  ;;  %vm7867_vm12 = vmand %vm7829_vm8, %vm9967_vm10  ;;  %v9968_v33 = vmov 0  ;;  %vm9974_vm8 = vcmp.lt.s32.totalorder %v7533_v56, 1 }
  0xad   :  { %v7739_v4 = vpop.permute.xlu1 %6815  ;;  %v9969_v33 = vsel %vm7867_vm12, 4294967295, %v9968_v33  ;;  %vm7879_vm3 = vmand %vm9971_vm9, %vm9970_vm13  ;;  %v289_v9 = vsel %vm7819_vm15, %v264_v44, 0.0  ;;  %vm9975_vm10 = vcmp.lt.s32.totalorder %v7551_v0, 16  ;;  %v292_v59 = vsel %vm7843_vm7, %v261_v62, 0.0 }
  0xae   :  { %vm7894_vm2 = vmand %vm7856_vm6, %vm9975_vm10  ;;  %vm9979_vm13 = vcmp.ge.s32.totalorder %v7570_v21, 0  ;;  %vm9980_vm9 = vcmp.ge.s32.totalorder %v7580_v26, 0  ;;  %vm9983_vm6 = vcmp.lt.s32.totalorder %v7533_v56, 1  ;;  %vm9984_vm10 = vcmp.lt.s32.totalorder %v7572_v23, 16 }
  0xaf   :  { %v341_v14 = vpop.permute.xlu0 %340  ;;  %v9977_v2 = vsel %vm7894_vm2, 4294967295, %v9976_v2  ;;  %vm7920_vm15 = vmand %vm7879_vm3, %vm9984_vm10  ;;  %v249_v62 = vadd.f32 %v241_v49, %v157_v5  ;;  %v311_v35 = vrot.slane %v289_v9, %v7443_v3  ;;  %v242_v45 = vmul.f32 %v6807_v22, %v231_v43 }
  0xb0   :  { %9978 = vst [vmem:[#allocation23_spill] sm:$0xff] %v9977_v2  ;;  %v9986_v48 = vsel %vm7920_vm15, 4294967295, %v9985_v48  ;;  %v323_v12 = vrot.slane %v292_v59, %v7443_v3  ;;  %vm9989_vm3 = vcmp.lt.s32.totalorder %v7570_v21, 16  ;;  %v9990_v49 = vmov 0 }
  0xb1   :  { %v7804_v53 = vpop.permute.xlu1 %342  ;;  %9987 = vst [vmem:[#allocation24_spill] sm:$0xff] %v9986_v48  ;;  %v247_v22 = vadd.f32 %v239_v24, %v155_v32  ;;  %v326_v27 = vmul.f32 %v6811_v57, %v319_v63  ;;  %v330_v51 = vmul.f32 %v6812_v10, %v319_v63  ;;  %v6817_v59 = vunpack.i.l.bf16 %v7739_v4 }
  0xb2   :  { %v351_v47 = vsel %vm9974_vm8, %v341_v14, %v7804_v53  ;;  %vm7906_vm8 = vmand %vm9980_vm9, %vm9979_vm13  ;;  %v324_v44 = vmul.f32 %v6811_v57, %v311_v35  ;;  %v328_v63 = vmul.f32 %v6812_v10, %v311_v35  ;;  %vm10006_vm9 = vcmp.lt.s32.totalorder %v7626_v36, 16 }
  0xb3   :  { %v345_v38 = vpop.permute.xlu0 %344  ;;  %vm9988_vm13 = vmmov %vm9983_vm6  ;;  %v370_v60 = vsel %vm7867_vm12, %v351_v47, 0.0  ;;  %v329_v47 = vmul.f32 %v6812_v10, %v315_v11  ;;  %vm10014_vm12 = vcmp.lt.s32.totalorder %v7639_v37, 16 }
  0xb4   :  { %vm9993_vm10 = vmmov %vm9988_vm13  ;;  %v395_v9 = vrot.slane %v370_v60, %v7443_v3  ;;  %v331_v60 = vmul.f32 %v6812_v10, %v323_v12 }
  0xb5   :  { %v347_v52 = vpop.permute.xlu1 %346  ;;  %v350_v31 = vsel %vm9993_vm10, %v7804_v53, %v345_v38  ;;  %v327_v53 = vmul.f32 %v6811_v57, %v323_v12  ;;  %vm9995_vm10 = vcmp.lt.s32.totalorder %v7657_v41, 16 }
  0xb6   :  { %v352_v50 = vsel %vm9983_vm6, %v347_v52, %v341_v14  ;;  %v349_v29 = vsel %vm9988_vm13, %v345_v38, %v347_v52  ;;  %vm7941_vm6 = vmand %vm7906_vm8, %vm9989_vm3  ;;  %v325_v52 = vmul.f32 %v6811_v57, %v315_v11  ;;  %vm9994_vm3 = vcmp.ge.s32.totalorder %v7551_v0, 0 }
  0xb7   :  { %v7930_v14 = vpop.permute.xlu0 %6820  ;;  %v369_v5 = vsel %vm7894_vm2, %v352_v50, 0.0  ;;  %v9991_v49 = vsel %vm7941_vm6, 4294967295, %v9990_v49  ;;  %v372_v40 = vsel %vm7920_vm15, %v349_v29, 0.0  ;;  %v371_v29 = vsel %vm7941_vm6, %v350_v31, 0.0  ;;  %vm7964_vm13 = vmand %vm9995_vm10, %vm9994_vm3 }
  0xb8   :  { %9992 = vst [vmem:[#allocation25_spill] sm:$0xff] %v9991_v49  ;;  %v391_v38 = vrot.slane %v369_v5, %v7443_v3  ;;  %v403_v32 = vrot.slane %v372_v40, %v7443_v3  ;;  %v250_v11 = vadd.f32 %v242_v45, %v158_v46  ;;  %v6818_v57 = vunpack.i.h.bf16 %v7739_v4 }
  0xb9   :  { %v7910_v30 = vpop.permute.xlu1 %6825  ;;  %v251_v31 = vadd.f32 %v243_v1, %v159_v6  ;;  %v333_v40 = vadd.f32 %v325_v52, %v245_v17  ;;  %v334_v49 = vadd.f32 %v326_v27, %v246_v55  ;;  %v405_v2 = vmul.f32 %v6817_v59, %v395_v9 }
  0xba   :  { %vm9998_vm6 = vcmp.ge.s32.totalorder %v7572_v23, 0  ;;  %vm9999_vm3 = vcmp.lt.s32.totalorder %v7659_v42, 16  ;;  %v337_v4 = vadd.f32 %v329_v47, %v249_v62  ;;  %v338_v46 = vadd.f32 %v330_v51, %v250_v11 }
  0xbb   :  { %v452_v50 = vpop.permute.xlu0 %451  ;;  %vm7975_vm10 = vmand %vm9999_vm3, %vm9998_vm6  ;;  %v409_v12 = vmul.f32 %v6818_v57, %v395_v9  ;;  %v399_v10 = vrot.slane %v371_v29, %v7443_v3  ;;  %vm10002_vm8 = vcmp.lt.s32.totalorder %v7551_v0, 16  ;;  %v10003_v1 = vmov 0 }
  0xbc   :  { %vm7985_vm2 = vmand %vm7964_vm13, %vm10002_vm8  ;;  %v332_v6 = vadd.f32 %v324_v44, %v7883_v61  ;;  %v335_v17 = vadd.f32 %v327_v53, %v247_v22  ;;  %v404_v35 = vmul.f32 %v6817_v59, %v391_v38  ;;  %v407_v62 = vmul.f32 %v6817_v59, %v403_v32 }
  0xbd   :  { %v7950_v43 = vpop.permute.xlu1 %453  ;;  %v10004_v1 = vsel %vm7985_vm2, 4294967295, %v10003_v1  ;;  %vm10005_vm3 = vcmp.ge.s32.totalorder %v7553_v7, 0  ;;  %v336_v45 = vadd.f32 %v328_v63, %v7898_v58  ;;  %v339_v52 = vadd.f32 %v331_v60, %v251_v31 }
  0xbe   :  { %vm7995_vm15 = vmand %vm10006_vm9, %vm10005_vm3  ;;  %v8003_v61 = vunpack.i.h.bf16 %v7910_v30  ;;  %v6823_v22 = vunpack.i.h.bf16 %v7930_v14  ;;  %vm10009_vm6 = vcmp.lt.s32.totalorder %v7572_v23, 16  ;;  %v10010_v27 = vmov 0 }
  0xbf   :  { %v456_v55 = vpop.permute.xlu0 %455  ;;  %vm8010_vm9 = vmand %vm7975_vm10, %vm10009_vm6  ;;  %v413_v47 = vadd.f32 %v405_v2, %v333_v40  ;;  %v411_v58 = vmul.f32 %v6818_v57, %v403_v32  ;;  %v6822_v51 = vunpack.i.l.bf16 %v7930_v14  ;;  %vm10012_vm8 = vcmp.lt.s32.totalorder %v7533_v56, 127 }
  0xc0   :  { %v10011_v27 = vsel %vm8010_vm9, 4294967295, %v10010_v27  ;;  %v462_v44 = vsel %vm10012_vm8, %v452_v50, %v7950_v43  ;;  %vm10013_vm13 = vcmp.ge.s32.totalorder %v7570_v21, 0  ;;  %v417_v23 = vadd.f32 %v409_v12, %v337_v4 }
  0xc1   :  { %v458_v5 = vpop.permute.xlu1 %457  ;;  %vm466_vm10 = vmand %vm10014_vm12, %vm10013_vm13  ;;  %v408_v48 = vmul.f32 %v6818_v57, %v391_v38  ;;  %v406_v53 = vmul.f32 %v6817_v59, %v399_v10  ;;  %v8026_v29 = vunpack.i.l.bf16 %v7910_v30  ;;  %vm10015_vm6 = vcmp.lt.s32.totalorder %v7553_v7, 16 }
  0xc2   :  { %vm8032_vm3 = vmand %vm7995_vm15, %vm10015_vm6  ;;  %v10016_v2 = vmov 0  ;;  %v412_v32 = vadd.f32 %v404_v35, %v332_v6  ;;  %v410_v24 = vmul.f32 %v6818_v57, %v399_v10  ;;  %v415_v11 = vadd.f32 %v407_v62, %v335_v17 }
  0xc3   :  { %v10017_v2 = vsel %vm8032_vm3, 4294967295, %v10016_v2  ;;  %v8036_v14 = vpop.permute.xlu0 %6830  ;;  %vm10018_vm12 = vmmov %vm10012_vm8  ;;  %vm10019_vm13 = vcmp.ge.s32.totalorder %v7757_v18, 0  ;;  %vm10020_vm8 = vcmp.ge.s32.totalorder %v7560_v13, 0  ;;  %v439_v30 = vmul.f32 %v6823_v22, %v7450_v8 }
  0xc4   :  { %v463_v38 = vsel %vm10018_vm12, %v458_v5, %v452_v50  ;;  %vm8044_vm7 = vmand %vm10020_vm8, %vm10019_vm13  ;;  %v472_v59 = vsel %vm7985_vm2, %v462_v44, 0.0  ;;  %vm10023_vm15 = vcmp.lt.s32.totalorder %v7570_v21, 16  ;;  %v10024_v57 = vmov 0 }
  0xc5   :  { %v8014_v9 = vpop.permute.xlu1 %523  ;;  %vm8053_vm6 = vmand %vm466_vm10, %vm10023_vm15  ;;  %v460_v50 = vsel %vm10018_vm12, %v456_v55, %v458_v5  ;;  %v419_v60 = vadd.f32 %v411_v58, %v339_v52  ;;  %v442_v31 = vmul.f32 %v6823_v22, %v7460_v19  ;;  %v435_v40 = vmul.f32 %v6822_v51, %v7450_v8 }
  0xc6   :  { %v10025_v57 = vsel %vm8053_vm6, 4294967295, %v10024_v57  ;;  %vm10026_vm13 = vmmov %vm10018_vm12  ;;  %v438_v21 = vmul.f32 %v6822_v51, %v7460_v19  ;;  %vm10027_vm10 = vcmp.ge.s32.totalorder %v7789_v25, 0  ;;  %vm10028_vm15 = vcmp.ge.s32.totalorder %v7565_v16, 0 }
  0xc7   :  { %v461_v13 = vsel %vm10026_vm13, %v7950_v43, %v456_v55  ;;  %vm8070_vm2 = vmand %vm10028_vm15, %vm10027_vm10  ;;  %v416_v4 = vadd.f32 %v408_v48, %v336_v45  ;;  %v414_v43 = vadd.f32 %v406_v53, %v334_v49  ;;  %v440_v12 = vmul.f32 %v6823_v22, %v7454_v15  ;;  %v526_v19 = vpop.permute.xlu0 %525 }
  0xc8   :  { %v475_v10 = vsel %vm8010_vm9, %v463_v38, 0.0  ;;  %vm10031_vm12 = vcmp.lt.s32.totalorder %v7757_v18, 16  ;;  %v10032_v8 = vmov 0  ;;  %v436_v16 = vmul.f32 %v6822_v51, %v7454_v15 }
  0xc9   :  { %v528_v63 = vpop.permute.xlu1 %527  ;;  %vm8081_vm13 = vmand %vm8044_vm7, %vm10031_vm12  ;;  %v494_v55 = vrot.slane %v472_v59, %v7443_v3  ;;  %v473_v49 = vsel %vm8032_vm3, %v461_v13, 0.0  ;;  %v474_v6 = vsel %vm8053_vm6, %v460_v50, 0.0  ;;  %vm10034_vm10 = vcmp.ge.s32.totalorder %v7792_v34, 0 }
  0xca   :  { %v10033_v8 = vsel %vm8081_vm13, 4294967295, %v10032_v8  ;;  %vm10035_vm15 = vcmp.ge.s32.totalorder %v7580_v26, 0  ;;  %v418_v35 = vadd.f32 %v410_v24, %v338_v46  ;;  %v441_v62 = vmul.f32 %v6823_v22, %v7462_v20 }
  0xcb   :  { %vm8095_vm8 = vmand %vm10035_vm15, %vm10034_vm10  ;;  %v437_v15 = vmul.f32 %v6822_v51, %v7462_v20  ;;  %v447_v0 = vadd.f32 %v439_v30, %v416_v4  ;;  %vm10038_vm7 = vcmp.ge.s32.totalorder %v7807_v54, 0  ;;  %vm10039_vm12 = vcmp.ge.s32.totalorder %v7590_v28, 0  ;;  %v530_v53 = vpop.permute.xlu0 %529 }
  0xcc   :  { %vm547_vm6 = vmand %vm10039_vm12, %vm10038_vm7  ;;  %v443_v52 = vadd.f32 %v435_v40, %v412_v32  ;;  %v446_v58 = vadd.f32 %v438_v21, %v415_v11  ;;  %v450_v26 = vadd.f32 %v442_v31, %v419_v60  ;;  %v506_v44 = vrot.slane %v475_v10, %v7443_v3 }
  0xcd   :  { %v8101_v45 = vpop.permute.xlu1 %6835  ;;  %vm10040_vm10 = vcmp.lt.s32.totalorder %v7789_v25, 16  ;;  %v10041_v46 = vmov 0  ;;  %v498_v20 = vrot.slane %v473_v49, %v7443_v3  ;;  %v502_v22 = vrot.slane %v474_v6, %v7443_v3 }
  0xce   :  { %vm8112_vm15 = vmand %vm8070_vm2, %vm10040_vm10  ;;  %vm10043_vm3 = vcmp.lt.s32.totalorder %v7533_v56, 113  ;;  %vm10045_vm12 = vcmp.lt.s32.totalorder %v7792_v34, 16  ;;  %v10046_v48 = vmov 0  ;;  %v507_v32 = vmul.f32 %v8026_v29, %v494_v55 }
  0xcf   :  { %v10042_v46 = vsel %vm8112_vm15, 4294967295, %v10041_v46  ;;  %v533_v28 = vsel %vm10043_vm3, %v526_v19, %v528_v63  ;;  %vm10044_vm7 = vmmov %vm10043_vm3  ;;  %v444_v24 = vadd.f32 %v436_v16, %v413_v47  ;;  %vm10048_vm2 = vcmp.lt.s32.totalorder %v7807_v54, 16 }
  0xd0   :  { %v534_v51 = vsel %vm10044_vm7, %v8014_v9, %v526_v19  ;;  %vm8127_vm9 = vmand %vm8095_vm8, %vm10045_vm12  ;;  %v10049_v11 = vmov 0  ;;  %v532_v38 = vsel %vm10043_vm3, %v528_v63, %v530_v53  ;;  %v511_v30 = vmul.f32 %v8003_v61, %v494_v55 }
  0xd1   :  { %v10047_v48 = vsel %vm8127_vm9, 4294967295, %v10046_v48  ;;  %vm8134_vm10 = vmand %vm547_vm6, %vm10048_vm2  ;;  %v445_v59 = vadd.f32 %v437_v15, %v414_v43  ;;  %v448_v50 = vadd.f32 %v440_v12, %v417_v23  ;;  %v449_v13 = vadd.f32 %v441_v62, %v418_v35  ;;  %v610_v60 = vpop.permute.xlu1 %609  ;;  %v608_v43 = vpop.permute.xlu0 %607 }
  0xd2   :  { %v10050_v11 = vsel %vm8134_vm10, 4294967295, %v10049_v11  ;;  %vm10051_vm7 = vmmov %vm10043_vm3  ;;  %v510_v47 = vmul.f32 %v8026_v29, %v506_v44  ;;  %v514_v31 = vmul.f32 %v8003_v61, %v506_v44  ;;  %v556_v40 = vsel %vm8081_vm13, %v534_v51, 0.0 }
  0xd3   :  { %v535_v7 = vsel %vm10051_vm7, %v530_v53, %v8014_v9  ;;  %v557_v63 = vsel %vm8112_vm15, %v533_v28, 0.0  ;;  %vm10052_vm6 = vcmp.lt.s32.totalorder %v7757_v18, 16  ;;  %vm10053_vm8 = vcmp.ge.s32.totalorder %v7757_v18, 0 }
  0xd4   :  { %vm8154_vm12 = vmand %vm10053_vm8, %vm10052_vm6  ;;  %v10054_v9 = vmov 0  ;;  %v508_v23 = vmul.f32 %v8026_v29, %v498_v20  ;;  %v509_v21 = vmul.f32 %v8026_v29, %v502_v22  ;;  %v558_v5 = vsel %vm8127_vm9, %v532_v38, 0.0 }
  0xd5   :  { %v10055_v9 = vsel %vm8154_vm12, 4294967295, %v10054_v9  ;;  %v559_v4 = vsel %vm8134_vm10, %v535_v7, 0.0  ;;  %v515_v12 = vadd.f32 %v507_v32, %v443_v52  ;;  %v512_v10 = vmul.f32 %v8003_v61, %v498_v20  ;;  %v614_v17 = vpop.permute.xlu1 %613 }
  0xd6   :  { %v513_v19 = vmul.f32 %v8003_v61, %v502_v22  ;;  %vm10056_vm2 = vcmp.lt.s32.totalorder %v7533_v56, 112  ;;  %v519_v55 = vadd.f32 %v511_v30, %v447_v0  ;;  %v578_v49 = vrot.slane %v556_v40, %v7443_v3  ;;  %v7287_v40 = vld [vmem:[#allocation2 + $0x88] sm:$0x3f]  }
  0xd7   :  { %v618_v16 = vsel %vm10056_vm2, %v608_v43, %v610_v60  ;;  %v582_v29 = vrot.slane %v557_v63, %v7443_v3  ;;  %v518_v35 = vadd.f32 %v510_v47, %v446_v58  ;;  %v522_v62 = vadd.f32 %v514_v31, %v450_v26  ;;  %v612_v58 = vpop.permute.xlu0 %611 }
  0xd8   :  { %v628_v6 = vsel %vm8154_vm12, %v618_v16, 0.0  ;;  %v586_v15 = vrot.slane %v558_v5, %v7443_v3  ;;  %v590_v61 = vrot.slane %v559_v4, %v7443_v3  ;;  %v516_v52 = vadd.f32 %v508_v23, %v444_v24 }
  0xd9   :  { %v517_v44 = vadd.f32 %v509_v21, %v445_v59  ;;  %v6833_v0 = vunpack.i.h.bf16 %v8036_v14  ;;  %v6832_v20 = vunpack.i.l.bf16 %v8036_v14  ;;  %vm10057_vm7 = vcmp.lt.s32.totalorder %v7807_v54, 16  ;;  %v680_v59 = vpop.permute.xlu1 %679 }
  0xda   :  { %vm10058_vm6 = vcmp.ge.s32.totalorder %v7807_v54, 0  ;;  %v520_v26 = vadd.f32 %v512_v10, %v448_v50  ;;  %v521_v28 = vadd.f32 %v513_v19, %v449_v13  ;;  %v8186_v51 = vunpack.i.l.bf16 %v8101_v45 }
  0xdb   :  { %vm8181_vm8 = vmand %vm10058_vm6, %vm10057_vm7  ;;  %v650_v53 = vrot.slane %v628_v6, %v7443_v3  ;;  %vm10061_vm2 = vcmp.lt.s32.totalorder %v7789_v25, 16  ;;  %vm10062_vm3 = vcmp.ge.s32.totalorder %v7789_v25, 0  ;;  %v10063_v14 = vmov 0  ;;  %v6841_v4 = vpop.permute.xlu0 %6840 }
  0xdc   :  { %vm8193_vm12 = vmand %vm10062_vm3, %vm10061_vm2  ;;  %v591_v32 = vmul.f32 %v6832_v20, %v578_v49  ;;  %v592_v24 = vmul.f32 %v6832_v20, %v582_v29  ;;  %v595_v38 = vmul.f32 %v6833_v0, %v578_v49  ;;  %vm10065_vm7 = vcmp.lt.s32.totalorder %v7533_v56, 112 }
  0xdd   :  { %v10064_v14 = vsel %vm8193_vm12, 4294967295, %v10063_v14  ;;  %v619_v7 = vsel %vm10065_vm7, %v614_v17, %v608_v43  ;;  %vm10066_vm6 = vcmp.lt.s32.totalorder %v7792_v34, 16  ;;  %vm10067_vm9 = vcmp.ge.s32.totalorder %v7792_v34, 0  ;;  %vm10070_vm3 = vmmov %vm10065_vm7 }
  0xde   :  { %vm8203_vm13 = vmand %vm10067_vm9, %vm10066_vm6  ;;  %v10068_v30 = vmov 0  ;;  %v596_v50 = vmul.f32 %v6833_v0, %v582_v29  ;;  %v593_v13 = vmul.f32 %v6832_v20, %v586_v15  ;;  %v594_v47 = vmul.f32 %v6832_v20, %v590_v61 }
  0xdf   :  { %v10069_v30 = vsel %vm8203_vm13, 4294967295, %v10068_v30  ;;  %v617_v31 = vsel %vm10070_vm3, %v610_v60, %v612_v58  ;;  %vm10071_vm2 = vcmp.ge.s32.totalorder %v7757_v18, 0  ;;  %vm10072_vm15 = vcmp.lt.s32.totalorder %v7657_v41, 16  ;;  %vm10075_vm9 = vmmov %vm10070_vm3  ;;  %v682_v20 = vpop.permute.xlu0 %681 }
  0xe0   :  { %vm8213_vm7 = vmand %vm10072_vm15, %vm10071_vm2  ;;  %v6838_v63 = vunpack.i.h.bf16 %v8101_v45  ;;  %v597_v23 = vmul.f32 %v6833_v0, %v586_v15  ;;  %v616_v21 = vsel %vm10075_vm9, %v612_v58, %v614_v17  ;;  %v629_v5 = vsel %vm8193_vm12, %v617_v31, 0.0 }
  0xe1   :  { %vm10076_vm6 = vcmp.ge.s32.totalorder %v7789_v25, 0  ;;  %vm10077_vm3 = vcmp.lt.s32.totalorder %v7626_v36, 16  ;;  %v598_v41 = vmul.f32 %v6833_v0, %v590_v61  ;;  %v663_v60 = vmul.f32 %v8186_v51, %v650_v53  ;;  %v684_v0 = vpop.permute.xlu1 %683 }
  0xe2   :  { %vm693_vm10 = vmand %vm10077_vm3, %vm10076_vm6  ;;  %v631_v43 = vsel %vm8181_vm8, %v619_v7, 0.0  ;;  %v654_v45 = vrot.slane %v629_v5, %v7443_v3  ;;  %v599_v10 = vadd.f32 %v591_v32, %v515_v12  ;;  %v600_v19 = vadd.f32 %v592_v24, %v516_v52 }
  0xe3   :  { %v603_v16 = vadd.f32 %v595_v38, %v519_v55  ;;  %v667_v49 = vmul.f32 %v6838_v63, %v650_v53  ;;  %vm10078_vm15 = vcmp.lt.s32.totalorder %v7757_v18, 16  ;;  %v604_v36 = vadd.f32 %v596_v50, %v520_v26 }
  0xe4   :  { %vm8234_vm2 = vmand %vm8213_vm7, %vm10078_vm15  ;;  %v601_v6 = vadd.f32 %v593_v13, %v517_v44  ;;  %v602_v17 = vadd.f32 %v594_v47, %v518_v35  ;;  %v630_v15 = vsel %vm8203_vm13, %v616_v21, 0.0  ;;  %vm10081_vm9 = vcmp.lt.s32.totalorder %v7789_v25, 16 }
  0xe5   :  { %vm8242_vm6 = vmand %vm693_vm10, %vm10081_vm9  ;;  %v605_v55 = vadd.f32 %v597_v23, %v521_v28  ;;  %v662_v18 = vrot.slane %v631_v43, %v7443_v3  ;;  %v664_v61 = vmul.f32 %v8186_v51, %v654_v45  ;;  %v668_v52 = vmul.f32 %v6838_v63, %v654_v45 }
  0xe6   :  { %v606_v58 = vadd.f32 %v598_v41, %v522_v62  ;;  %v671_v44 = vadd.f32 %v663_v60, %v599_v10  ;;  %vm10084_vm7 = vcmp.lt.s32.totalorder %v7533_v56, 111  ;;  %vm10086_vm10 = vcmp.ge.s32.totalorder %v7792_v34, 0 }
  0xe7   :  { %v689_v35 = vsel %vm10084_vm7, %v682_v20, %v684_v0  ;;  %vm10085_vm3 = vmmov %vm10084_vm7  ;;  %vm10087_vm15 = vcmp.lt.s32.totalorder %v7639_v37, 16  ;;  %v675_v26 = vadd.f32 %v667_v49, %v603_v16  ;;  %v658_v28 = vrot.slane %v630_v15, %v7443_v3  ;;  %v756_v15 = vpop.permute.xlu1 %755 }
  0xe8   :  { %v690_v25 = vsel %vm10085_vm3, %v680_v59, %v682_v20  ;;  %vm694_vm9 = vmand %vm10087_vm15, %vm10086_vm10  ;;  %v701_v62 = vsel %vm8242_vm6, %v689_v35, 0.0  ;;  %vm10088_vm13 = vcmp.ge.s32.totalorder %v7807_v54, 0  ;;  %vm10089_vm7 = vcmp.lt.s32.totalorder %v7659_v42, 16  ;;  %v686_v42 = vpop.permute.xlu0 %685 }
  0xe9   :  { %v700_v53 = vsel %vm8234_vm2, %v690_v25, 0.0  ;;  %vm8265_vm12 = vmand %vm10089_vm7, %vm10088_vm13  ;;  %v6843_v24 = vunpack.i.h.bf16 %v6841_v4  ;;  %v6842_v37 = vunpack.i.l.bf16 %v6841_v4  ;;  %v726_v7 = vrot.slane %v701_v62, %v7443_v3 }
  0xea   :  { %v722_v38 = vrot.slane %v700_v53, %v7443_v3  ;;  %v666_v50 = vmul.f32 %v8186_v51, %v662_v18  ;;  %v670_v13 = vmul.f32 %v6838_v63, %v662_v18  ;;  %v672_v47 = vadd.f32 %v664_v61, %v600_v19 }
  0xeb   :  { %v676_v31 = vadd.f32 %v668_v52, %v604_v36  ;;  %vm10092_vm3 = vcmp.lt.s32.totalorder %v7792_v34, 16  ;;  %v736_v21 = vmul.f32 %v6842_v37, %v726_v7  ;;  %v740_v4 = vmul.f32 %v6843_v24, %v726_v7 }
  0xec   :  { %vm8274_vm10 = vmand %vm694_vm9, %vm10092_vm3  ;;  %v735_v23 = vmul.f32 %v6842_v37, %v722_v38  ;;  %v739_v5 = vmul.f32 %v6843_v24, %v722_v38  ;;  %vm10095_vm13 = vcmp.lt.s32.totalorder %v7807_v54, 16  ;;  %v665_v60 = vmul.f32 %v8186_v51, %v658_v28 }
  0xed   :  { %vm8282_vm15 = vmand %vm8265_vm12, %vm10095_vm13  ;;  %v669_v34 = vmul.f32 %v6838_v63, %v658_v28  ;;  %vm10098_vm9 = vcmp.lt.s32.totalorder %v7533_v56, 111  ;;  %v744_v19 = vadd.f32 %v736_v21, %v672_v47  ;;  %v748_v49 = vadd.f32 %v740_v4, %v676_v31  ;;  %v761_v63 = vpop.permute.xlu0 %760 }
  0xee   :  { %v688_v43 = vsel %vm10098_vm9, %v684_v0, %v686_v42  ;;  %vm10099_vm7 = vmmov %vm10098_vm9  ;;  %v743_v10 = vadd.f32 %v735_v23, %v671_v44  ;;  %v747_v16 = vadd.f32 %v739_v5, %v675_v26  ;;  %v674_v54 = vadd.f32 %v666_v50, %v602_v17 }
  0xef   :  { %v691_v45 = vsel %vm10099_vm7, %v686_v42, %v680_v59  ;;  %v678_v36 = vadd.f32 %v670_v13, %v606_v58  ;;  %v702_v18 = vsel %vm8274_vm10, %v688_v43, 0.0  ;;  %v764_v52 = vadd.f32 %v756_v15, %v744_v19  ;;  %v6120_v19 = vld [vmem:[%s9794_s2 + $0x18] sm:$0xf] }
  0xf0   :  { %v703_v51 = vsel %vm8282_vm15, %v691_v45, 0.0  ;;  %v763_v61 = vadd.f32 %v756_v15, %v743_v10  ;;  %v730_v0 = vrot.slane %v702_v18, %v7443_v3  ;;  %v673_v20 = vadd.f32 %v665_v60, %v601_v6 }
  0xf1   :  { %v734_v59 = vrot.slane %v703_v51, %v7443_v3  ;;  %v677_v44 = vadd.f32 %v669_v34, %v605_v55  ;;  %v767_v35 = vadd.f32 %v761_v63, %v747_v16  ;;  %v768_v25 = vadd.f32 %v761_v63, %v748_v49  ;;  %v6119_v16 = vld [vmem:[%s9794_s2 + $0x10] sm:$0xff] }
  0xf2   :  { %v771_v17 = vmax.f32 %v763_v61, 0.0  ;;  %v772_v58 = vmax.f32 %v764_v52, 0.0  ;;  %v737_v26 = vmul.f32 %v6842_v37, %v730_v0  ;;  %v741_v53 = vmul.f32 %v6843_v24, %v730_v0 }
  0xf3   :  { %v738_v28 = vmul.f32 %v6842_v37, %v734_v59  ;;  %v742_v62 = vmul.f32 %v6843_v24, %v734_v59  ;;  %v775_v32 = vmax.f32 %v767_v35, 0.0  ;;  %v776_v38 = vmax.f32 %v768_v25, 0.0 }
  0xf4   :  { %v745_v7 = vadd.f32 %v737_v26, %v673_v20  ;;  %v749_v13 = vadd.f32 %v741_v53, %v677_v44  ;;  %vm10100_vm12 = vcmp.lt.s32.totalorder %v7533_v56, 16  ;;  %vm882_vm13 = vcmask 1045504  }
  0xf5   :  { %v746_v50 = vadd.f32 %v738_v28, %v674_v54  ;;  %v750_v47 = vadd.f32 %v742_v62, %v678_v36  ;;  %v6849_v31 = vpack.i.bf16 %v776_v38, %v772_v58  ;;  %v6844_v42 = vpack.i.bf16 %v775_v32, %v771_v17  ;;  %vm10101_vm3 = vmmov %vm10100_vm12 }
  0xf6   :  { %v765_v23 = vadd.f32 %v756_v15, %v745_v7  ;;  %v769_v6 = vadd.f32 %v761_v63, %v749_v13  ;;  %v8301_v34 = vpack.c.bf16 %v776_v38, %v772_v58  ;;  %v8305_v45 = vpack.c.bf16 %v775_v32, %v771_v17  ;;  %vm10102_vm7 = vmmov %vm10101_vm3  ;;  %v10119_v38 = vld [vmem:[#allocation12_spill] sm:$0xff] }
  0xf7   :  { %v766_v3 = vadd.f32 %v756_v15, %v746_v50  ;;  %v770_v55 = vadd.f32 %v761_v63, %v750_v47  ;;  %6850 = vrot.lane.b32.xlu0 %v6849_v31, %s7388_s0  ;;  %6845 = vrot.lane.b32.xlu1 %v6844_v42, %s7388_s0  ;;  %vm878_vm9 = vcmask 97280  }
  0xf8   :  { %v773_v21 = vmax.f32 %v765_v23, 0.0  ;;  %v777_v5 = vmax.f32 %v769_v6, 0.0 }
  0xf9   :  { %v774_v37 = vmax.f32 %v766_v3, 0.0  ;;  %v778_v24 = vmax.f32 %v770_v55, 0.0 }
  0xfa   :  { %v6854_v60 = vpack.i.bf16 %v777_v5, %v773_v21  ;;  %v8307_v10 = vpack.c.bf16 %v777_v5, %v773_v21 }
  0xfb   :  { %v6859_v4 = vpack.i.bf16 %v778_v24, %v774_v37  ;;  %v8303_v43 = vpack.c.bf16 %v778_v24, %v774_v37 }
  0xfc   :  { %6855 = vrot.lane.b32.xlu1 %v6854_v60, %s7388_s0 }
  0xfd   :  { %6860 = vrot.lane.b32.xlu0 %v6859_v4, %s7388_s0 }
 0x100   :  { %6865 = vrot.lane.b32.xlu1 %v6844_v42, %s7387_s20 }
 0x101   :  { %6870 = vrot.lane.b32.xlu0 %v6849_v31, %s7387_s20 }
 0x104   :  { %6875 = vrot.lane.b32.xlu1 %v6854_v60, %s7387_s20 }
 0x105   :  { %6880 = vrot.lane.b32.xlu0 %v6859_v4, %s7387_s20 }
 0x108   :  { %6885 = vrot.lane.b32.xlu1 %v6844_v42, %s7389_s21 }
 0x109   :  { %6890 = vrot.lane.b32.xlu0 %v6849_v31, %s7389_s21 }
 0x10c   :  { %6895 = vrot.lane.b32.xlu1 %v6854_v60, %s7389_s21 }
 0x10d   :  { %6900 = vrot.lane.b32.xlu0 %v6859_v4, %s7389_s21 }
 0x110   :  { %6905 = vrot.lane.b32.xlu1 %v6844_v42, %s7390_s22 }
 0x111   :  { %6910 = vrot.lane.b32.xlu0 %v6849_v31, %s7390_s22 }
 0x114   :  { %6915 = vrot.lane.b32.xlu1 %v6854_v60, %s7390_s22 }
 0x115   :  { %6920 = vrot.lane.b32.xlu0 %v6859_v4, %s7390_s22 }
 0x118   :  { %6925 = vrot.lane.b32.xlu1 %v6844_v42, %s7391_s23 }
 0x119   :  { %6930 = vrot.lane.b32.xlu0 %v6849_v31, %s7391_s23 }
 0x11c   :  { %6935 = vrot.lane.b32.xlu1 %v6854_v60, %s7391_s23 }
 0x11d   :  { %6940 = vrot.lane.b32.xlu0 %v6859_v4, %s7391_s23 }
 0x120   :  { %6945 = vrot.lane.b32.xlu1 %v6844_v42, %s7392_s24 }
 0x121   :  { %6950 = vrot.lane.b32.xlu0 %v6849_v31, %s7392_s24 }
 0x124   :  { %6955 = vrot.lane.b32.xlu1 %v6854_v60, %s7392_s24 }
 0x125   :  { %6960 = vrot.lane.b32.xlu0 %v6859_v4, %s7392_s24 }
 0x128   :  { %6965 = vrot.lane.b32.xlu1 %v6844_v42, %s7393_s25 }
 0x129   :  { %6970 = vrot.lane.b32.xlu0 %v6849_v31, %s7393_s25 }
 0x12c   :  { %6975 = vrot.lane.b32.xlu1 %v6854_v60, %s7393_s25 }
 0x12d   :  { %6980 = vrot.lane.b32.xlu0 %v6859_v4, %s7393_s25 }
 0x130   :  { %6985 = vrot.lane.b32.xlu1 %v6844_v42, %s7394_s26 }
 0x131   :  { %6990 = vrot.lane.b32.xlu0 %v6849_v31, %s7394_s26 }
 0x134   :  { %6995 = vrot.lane.b32.xlu1 %v6854_v60, %s7394_s26  ;;  %v10126_v60 = vld [vmem:[#allocation15_spill] sm:$0xff] }
 0x135   :  { %7000 = vrot.lane.b32.xlu0 %v6859_v4, %s7394_s26 }
 0x138   :  { %2179 = vperm.xlu1 %6813, %v6119_v16  }
 0x139   :  { %2184 = vperm.xlu0 %6797, %v6120_v19  }
 0x169   :  { %v6851_v49 = vpop.permute.xlu0 %6850  ;;  %v6846_v54 = vpop.permute.xlu1 %6845 }
 0x16a   :  { %v6853_v36 = vunpack.i.h.bf16 %v6851_v49  ;;  %v6852_v15 = vunpack.i.l.bf16 %v6851_v49  ;;  %v6848_v18 = vunpack.i.h.bf16 %v6846_v54  ;;  %v6847_v51 = vunpack.i.l.bf16 %v6846_v54 }
 0x16c   :  { %v846_v63 = vsel %vm10100_vm12, %v6847_v51, %v6852_v15  ;;  %v847_v61 = vsel %vm10101_vm3, %v6848_v18, %v6853_v36  ;;  %vm10103_vm12 = vmmov %vm10101_vm3 }
 0x16d   :  { %v859_v52 = vsel %vm7650_vm5, %v846_v63, 0.0  ;;  %v863_v0 = vsel %vm7650_vm5, %v847_v61, 0.0  ;;  %vm10104_vm5 = vmmov %vm10101_vm3 }
 0x16e   :  { %v870_v59 = vpack.c.bf16 %v863_v0, %v859_v52  ;;  %v6856_v44 = vpop.permute.xlu1 %6855 }
 0x16f   :  { %v6861_v20 = vpop.permute.xlu0 %6860  ;;  %v6858_v17 = vunpack.i.h.bf16 %v6856_v44  ;;  %v6857_v58 = vunpack.i.l.bf16 %v6856_v44 }
 0x170   :  { %v6863_v35 = vunpack.i.h.bf16 %v6861_v20  ;;  %v6862_v25 = vunpack.i.l.bf16 %v6861_v20  ;;  %6075 = vmatprep.subr.msk.bf16.mxu0 %vm882_vm13, %v870_v59 }
 0x172   :  { %v842_v26 = vsel %vm10102_vm7, %v6857_v58, %v6862_v25  ;;  %v843_v28 = vsel %vm10103_vm12, %v6858_v17, %v6863_v35  ;;  %v848_v39 = vsel %vm10101_vm3, %v6862_v25, %v6847_v51  ;;  %v849_v53 = vsel %vm10104_vm5, %v6863_v35, %v6848_v18  ;;  %v6866_v32 = vpop.permute.xlu1 %6865  ;;  %vm10107_vm7 = vmmov %vm10101_vm3  ;;  %v7280_v51 = vld [vmem:[#allocation2 + $0x48] sm:$0x3f]  }
 0x173   :  { %v6871_v62 = vpop.permute.xlu0 %6870  ;;  %v861_v7 = vsel %vm7719_vm1, %v842_v26, 0.0  ;;  %v865_v50 = vsel %vm7719_vm1, %v843_v28, 0.0  ;;  %v858_v47 = vsel %vm7622_vm14, %v848_v39, 0.0  ;;  %v862_v31 = vsel %vm7622_vm14, %v849_v53, 0.0  ;;  %vm10108_vm12 = vmmov %vm10101_vm3  ;;  %v10117_v53 = vld [vmem:[#allocation16_spill] sm:$0xff] }
 0x174   :  { %v6873_v42 = vunpack.i.h.bf16 %v6871_v62  ;;  %v6872_v23 = vunpack.i.l.bf16 %v6871_v62  ;;  %v6868_v3 = vunpack.i.h.bf16 %v6866_v32  ;;  %v6867_v6 = vunpack.i.l.bf16 %v6866_v32 }
 0x175   :  { %v872_v55 = vpack.c.bf16 %v865_v50, %v861_v7  ;;  %v869_v21 = vpack.c.bf16 %v862_v31, %v858_v47  ;;  %v844_v37 = vsel %vm10107_vm7, %v6852_v15, %v6857_v58  ;;  %v845_v5 = vsel %vm10108_vm12, %v6853_v36, %v6858_v17  ;;  %v7279_v36 = vld [vmem:[#allocation2 + $0x50] sm:$0x3f]  }
 0x176   :  { %vm10109_vm1 = vcmp.lt.s32.totalorder %v7533_v56, 17  ;;  %v860_v19 = vsel %vm7689_vm0, %v844_v37, 0.0  ;;  %v864_v16 = vsel %vm7689_vm0, %v845_v5, 0.0  ;;  %v6876_v54 = vpop.permute.xlu1 %6875  ;;  %vm10120_vm12 = vnez %v10119_v38 }
 0x177   :  { %v800_v24 = vsel %vm10109_vm1, %v6868_v3, %v6873_v42  ;;  %vm10110_vm3 = vmmov %vm10109_vm1  ;;  %6077 = vmatprep.subr.msk.bf16.mxu1 %vm882_vm13, %v872_v55  ;;  %v6881_v49 = vpop.permute.xlu0 %6880  ;;  %v884_v15 = vsel %vm882_vm13, %v869_v21, 0  ;;  %v871_v18 = vpack.c.bf16 %v864_v16, %v860_v19  ;;  %v6878_v59 = vunpack.i.h.bf16 %v6876_v54 }
 0x178   :  { %v799_v4 = vsel %vm10110_vm3, %v6867_v6, %v6872_v23  ;;  %v816_v61 = vsel %vm7610_vm11, %v800_v24, 0.0  ;;  %v6883_v52 = vunpack.i.h.bf16 %v6881_v49  ;;  %v6882_v0 = vunpack.i.l.bf16 %v6881_v49  ;;  %910 = vmatpush1.bf16.msra.mxu0 %v884_v15  ;;  %vm10113_vm14 = vmmov %vm10109_vm1 }
 0x179   :  { %v812_v63 = vsel %vm7610_vm11, %v799_v4, 0.0  ;;  %v6877_v20 = vunpack.i.l.bf16 %v6876_v54  ;;  %v890_v44 = vsel %vm882_vm13, %v871_v18, 0  ;;  %vm10114_vm0 = vmmov %vm10109_vm1  ;;  %vm10118_vm11 = vnez %v10117_v53 }
 0x17a   :  { %v823_v35 = vpack.c.bf16 %v816_v61, %v812_v63  ;;  %v801_v25 = vsel %vm10113_vm14, %v6882_v0, %v6867_v6  ;;  %v802_v17 = vsel %vm10114_vm0, %v6883_v52, %v6868_v3  ;;  %vm10115_vm5 = vmmov %vm10114_vm0  ;;  %953 = vmatpush1.bf16.msra.mxu1 %v890_v44  ;;  %v6886_v39 = vpop.permute.xlu1 %6885  ;;  %v10121_v6 = vmov 0  }
 0x17b   :  { %v796_v58 = vsel %vm10115_vm5, %v6878_v59, %v6883_v52  ;;  %vm10116_vm7 = vmmov %vm10114_vm0  ;;  %6076 = vmatmul.mubr.msk.bf16.vlgmr.msra.gmra.mxu0 %vm878_vm9, %v7279_v36  ;;  %v6891_v28 = vpop.permute.xlu0 %6890  ;;  %v811_v7 = vsel %vm10120_vm12, %v801_v25, 0.0  ;;  %v815_v50 = vsel %vm10120_vm12, %v802_v17, 0.0  ;;  %v6888_v31 = vunpack.i.h.bf16 %v6886_v39 }
 0x17c   :  { %v795_v26 = vsel %vm10116_vm7, %v6877_v20, %v6882_v0  ;;  %6080 = vmatprep.subr.msk.bf16.mxu0 %vm882_vm13, %v823_v35  ;;  %v818_v32 = vsel %vm10118_vm11, %v796_v58, 0.0  ;;  %v6893_v13 = vunpack.i.h.bf16 %v6891_v28  ;;  %v6892_v47 = vunpack.i.l.bf16 %v6891_v28  ;;  %1033 = vmatprep.mubr.bf16.mxu0 %v10121_v6  ;;  %vm10122_vm1 = vmmov %vm10114_vm0  ;;  %v10133_v58 = vld [vmem:[#allocation22_spill] sm:$0xff] }
 0x17d   :  { %v814_v62 = vsel %vm10118_vm11, %v795_v26, 0.0  ;;  %v6887_v3 = vunpack.i.l.bf16 %v6886_v39  ;;  %6078 = vmatmul.mubr.msk.bf16.vlgmr.msra.gmra.mxu1 %vm878_vm9, %v7279_v36  ;;  %v822_v21 = vpack.c.bf16 %v815_v50, %v811_v7  ;;  %v797_v37 = vsel %vm10122_vm1, %v6872_v23, %v6877_v20  ;;  %vm10123_vm3 = vmmov %vm10114_vm0 }
 0x17e   :  { %v825_v55 = vpack.c.bf16 %v818_v32, %v814_v62  ;;  %v798_v5 = vsel %vm10123_vm3, %v6873_v42, %v6878_v59  ;;  %vm10124_vm14 = vcmp.lt.s32.totalorder %v7533_v56, 15  ;;  %vm10127_vm5 = vnez %v10126_v60  ;;  %1076 = vmatprep.mubr.bf16.mxu1 %v10121_v6  ;;  %v6896_v15 = vpop.permute.xlu1 %6895  ;;  %v10137_v32 = vld [vmem:[#allocation21_spill] sm:$0xff] }
 0x17f   :  { %v1108_v24 = vsel %vm10124_vm14, %v6888_v31, %v6893_v13  ;;  %vm10125_vm0 = vmmov %vm10124_vm14  ;;  %v813_v19 = vsel %vm10127_vm5, %v797_v37, 0.0  ;;  %v817_v16 = vsel %vm10127_vm5, %v798_v5, 0.0  ;;  %v6901_v54 = vpop.permute.xlu0 %6900  ;;  %v990_v18 = vsel %vm882_vm13, %v822_v21, 0  ;;  %v10139_v21 = vld [vmem:[#allocation20_spill] sm:$0xff] }
 0x180   :  { %v1107_v4 = vsel %vm10125_vm0, %v6887_v3, %v6892_v47  ;;  %v1124_v23 = vsel %vm7750_vm4, %v1108_v24, 0.0  ;;  %6082 = vmatprep.subr.msk.bf16.mxu1 %vm882_vm13, %v825_v55  ;;  %v824_v36 = vpack.c.bf16 %v817_v16, %v813_v19  ;;  %v6903_v63 = vunpack.i.h.bf16 %v6901_v54  ;;  %1016 = vmatpush1.bf16.msra.mxu0 %v990_v18  ;;  %vm10129_vm7 = vmmov %vm10125_vm0 }
 0x181   :  { %v1120_v42 = vsel %vm7750_vm4, %v1107_v4, 0.0  ;;  %v6902_v61 = vunpack.i.l.bf16 %v6901_v54  ;;  %v6898_v52 = vunpack.i.h.bf16 %v6896_v15  ;;  %v6897_v0 = vunpack.i.l.bf16 %v6896_v15  ;;  %vm10130_vm4 = vmmov %vm10125_vm0 }
 0x182   :  { %v996_v59 = vsel %vm882_vm13, %v824_v36, 0  ;;  %v1131_v20 = vpack.c.bf16 %v1124_v23, %v1120_v42  ;;  %v1110_v35 = vsel %vm10130_vm4, %v6903_v63, %v6888_v31  ;;  %vm10131_vm11 = vmmov %vm10125_vm0  ;;  %vm10134_vm1 = vnez %v10133_v58  ;;  %v6906_v62 = vpop.permute.xlu1 %6905 }
 0x183   :  { %v1109_v44 = vsel %vm10129_vm7, %v6902_v61, %v6887_v3  ;;  %v1104_v25 = vsel %vm10131_vm11, %v6898_v52, %v6903_v63  ;;  %vm10132_vm12 = vmmov %vm10125_vm0  ;;  %1059 = vmatpush1.bf16.msra.mxu1 %v996_v59  ;;  %6081 = vmatmul.mubr.msk.bf16.vlgmr.msra.gmra.mxu0 %vm878_vm9, %v7280_v51  ;;  %v6911_v53 = vpop.permute.xlu0 %6910  ;;  %v6908_v31 = vunpack.i.h.bf16 %v6906_v62  ;;  %vm10140_vm5 = vnez %v10139_v21 }
 0x184   :  { %v1106_v17 = vsel %vm10132_vm12, %v6893_v13, %v6898_v52  ;;  %v1126_v26 = vsel %vm10134_vm1, %v1104_v25, 0.0  ;;  %vm10135_vm3 = vmmov %vm10125_vm0  ;;  %6085 = vmatprep.subr.msk.bf16.mxu0 %vm882_vm13, %v1131_v20  ;;  %v6913_v50 = vunpack.i.h.bf16 %v6911_v53  ;;  %v6912_v13 = vunpack.i.l.bf16 %v6911_v53  ;;  %1186 = vmatprep.mubr.bf16.mxu0 %v10121_v6 }
 0x185   :  { %v1103_v28 = vsel %vm10135_vm3, %v6897_v0, %v6902_v61  ;;  %vm10136_vm14 = vmmov %vm10125_vm0  ;;  %vm10138_vm0 = vnez %v10137_v32  ;;  %vm10141_vm7 = vcmp.lt.s32.totalorder %v7533_v56, 1  ;;  %v1125_v4 = vsel %vm10140_vm5, %v1106_v17, 0.0  ;;  %v7281_v61 = vld [vmem:[#allocation2 + $0x58] sm:$0x3f]  }
 0x186   :  { %v1105_v39 = vsel %vm10136_vm14, %v6892_v47, %v6897_v0  ;;  %v1119_v38 = vsel %vm10138_vm0, %v1109_v44, 0.0  ;;  %v1122_v7 = vsel %vm10134_vm1, %v1103_v28, 0.0  ;;  %6083 = vmatmul.mubr.msk.bf16.vlgmr.msra.gmra.mxu1 %vm878_vm9, %v7280_v51  ;;  %v6907_v47 = vunpack.i.l.bf16 %v6906_v62  ;;  %vm10143_vm11 = vmmov %vm10141_vm7  ;;  %v6916_v49 = vpop.permute.xlu1 %6915  ;;  %v10148_v44 = vld [vmem:[#allocation24_spill] sm:$0xff]  ;;  %v10152_v28 = vld [vmem:[#allocation23_spill] sm:$0xff] }
 0x187   :  { %v1133_v3 = vpack.c.bf16 %v1126_v26, %v1122_v7  ;;  %v1123_v55 = vsel %vm10138_vm0, %v1110_v35, 0.0  ;;  %v1121_v37 = vsel %vm10140_vm5, %v1105_v39, 0.0  ;;  %v1269_v5 = vsel %vm10141_vm7, %v6908_v31, %v6913_v50  ;;  %1229 = vmatprep.mubr.bf16.mxu1 %v10121_v6  ;;  %v6921_v16 = vpop.permute.xlu0 %6920  ;;  %vm10144_vm12 = vmmov %vm10141_vm7 }
 0x188   :  { %v1130_v24 = vpack.c.bf16 %v1123_v55, %v1119_v38  ;;  %vm10142_vm4 = vnez %v9969_v33  ;;  %v1268_v19 = vsel %vm10143_vm11, %v6907_v47, %v6912_v13  ;;  %v1132_v23 = vpack.c.bf16 %v1125_v4, %v1121_v37  ;;  %vm10145_vm1 = vmmov %vm10141_vm7 }
 0x189   :  { %v1285_v60 = vsel %vm10142_vm4, %v1269_v5, 0.0  ;;  %6087 = vmatprep.subr.msk.bf16.mxu1 %vm882_vm13, %v1133_v3  ;;  %v1281_v42 = vsel %vm10142_vm4, %v1268_v19, 0.0  ;;  %v6923_v54 = vunpack.i.h.bf16 %v6921_v16  ;;  %v6922_v15 = vunpack.i.l.bf16 %v6921_v16  ;;  %vm10146_vm3 = vmmov %vm10145_vm1 }
 0x18a   :  { %v6918_v18 = vunpack.i.h.bf16 %v6916_v49  ;;  %v6917_v36 = vunpack.i.l.bf16 %v6916_v49  ;;  %v1143_v51 = vsel %vm882_vm13, %v1130_v24, 0  ;;  %v1149_v63 = vsel %vm882_vm13, %v1132_v23, 0  ;;  %vm10147_vm14 = vmmov %vm10145_vm1  ;;  %v6926_v26 = vpop.permute.xlu1 %6925 }
 0x18b   :  { %v1292_v52 = vpack.c.bf16 %v1285_v60, %v1281_v42  ;;  %v1270_v0 = vsel %vm10144_vm12, %v6922_v15, %v6907_v47  ;;  %v1271_v59 = vsel %vm10145_vm1, %v6923_v54, %v6908_v31  ;;  %1169 = vmatpush1.bf16.msra.mxu0 %v1143_v51  ;;  %vm10149_vm0 = vnez %v10148_v44  ;;  %vm10150_vm5 = vmmov %vm10145_vm1  ;;  %v6931_v58 = vpop.permute.xlu0 %6930  ;;  %v10154_v31 = vld [vmem:[#allocation25_spill] sm:$0xff] }
 0x18c   :  { %v1265_v33 = vsel %vm10146_vm3, %v6918_v18, %v6923_v54  ;;  %v1267_v20 = vsel %vm10147_vm14, %v6913_v50, %v6918_v18  ;;  %v1264_v25 = vsel %vm10150_vm5, %v6917_v36, %v6922_v15  ;;  %vm10151_vm7 = vmmov %vm10145_vm1  ;;  %1212 = vmatpush1.bf16.msra.mxu1 %v1149_v63  ;;  %vm10153_vm4 = vnez %v10152_v28  ;;  %v7282_v15 = vld [vmem:[#allocation2 + $0x60] sm:$0x3f]  }
 0x18d   :  { %v1287_v35 = vsel %vm10149_vm0, %v1265_v33, 0.0  ;;  %v1266_v17 = vsel %vm10151_vm7, %v6912_v13, %v6917_v36  ;;  %6090 = vmatprep.subr.msk.bf16.mxu0 %vm882_vm13, %v1292_v52  ;;  %v1280_v39 = vsel %vm10153_vm4, %v1270_v0, 0.0  ;;  %v1283_v53 = vsel %vm10149_vm0, %v1264_v25, 0.0 }
 0x18e   :  { %v6933_v62 = vunpack.i.h.bf16 %v6931_v58  ;;  %v6932_v32 = vunpack.i.l.bf16 %v6931_v58  ;;  %v6928_v38 = vunpack.i.h.bf16 %v6926_v26  ;;  %6086 = vmatmul.mubr.msk.bf16.vlgmr.msra.gmra.mxu0 %vm878_vm9, %v7281_v61  ;;  %v6927_v7 = vunpack.i.l.bf16 %v6926_v26  ;;  %v6936_v24 = vpop.permute.xlu1 %6935 }
 0x18f   :  { %v1294_v50 = vpack.c.bf16 %v1287_v35, %v1283_v53  ;;  %v1284_v13 = vsel %vm10153_vm4, %v1271_v59, 0.0  ;;  %vm10155_vm11 = vnez %v10154_v31  ;;  %6088 = vmatmul.mubr.msk.bf16.vlgmr.msra.gmra.mxu1 %vm878_vm9, %v7281_v61  ;;  %vm10156_vm12 = vcmp.lt.s32.totalorder %v7533_v56, 127  ;;  %1347 = vmatprep.mubr.bf16.mxu0 %v10121_v6  ;;  %v6941_v5 = vpop.permute.xlu0 %6940  ;;  %v7283_v31 = vld [vmem:[#allocation2 + $0x68] sm:$0x3f]  }
 0x190   :  { %v1282_v47 = vsel %vm10155_vm11, %v1266_v17, 0.0  ;;  %v1551_v3 = vsel %vm10156_vm12, %v6928_v38, %v6933_v62  ;;  %v1291_v55 = vpack.c.bf16 %v1284_v13, %v1280_v39  ;;  %v1286_v21 = vsel %vm10155_vm11, %v1267_v20, 0.0  ;;  %vm10157_vm1 = vmmov %vm10156_vm12  ;;  %1390 = vmatprep.mubr.bf16.mxu1 %v10121_v6 }
 0x191   :  { %v1550_v37 = vsel %vm10157_vm1, %v6927_v7, %v6932_v32  ;;  %6092 = vmatprep.subr.msk.bf16.mxu1 %vm882_vm13, %v1294_v50  ;;  %v1293_v4 = vpack.c.bf16 %v1286_v21, %v1282_v47  ;;  %v1425_v60 = vsel %vm882_vm13, %v8305_v45, 0  ;;  %v6943_v19 = vunpack.i.h.bf16 %v6941_v5  ;;  %vm10159_vm14 = vmmov %vm10157_vm1 }
 0x192   :  { %v6942_v16 = vunpack.i.l.bf16 %v6941_v5  ;;  %v6938_v49 = vunpack.i.h.bf16 %v6936_v24  ;;  %v6937_v23 = vunpack.i.l.bf16 %v6936_v24  ;;  %v1304_v42 = vsel %vm882_vm13, %v1291_v55, 0  ;;  %vm10160_vm0 = vmmov %vm10157_vm1  ;;  %v6946_v20 = vpop.permute.xlu1 %6945 }
 0x193   :  { %v1310_v54 = vsel %vm882_vm13, %v1293_v4, 0  ;;  %vm10158_vm3 = vnez %v10004_v1  ;;  %v1553_v45 = vsel %vm10160_vm0, %v6943_v19, %v6928_v38  ;;  %vm10161_vm5 = vmmov %vm10160_vm0  ;;  %1330 = vmatpush1.bf16.msra.mxu0 %v1304_v42  ;;  %vm10163_vm4 = vnez %v10011_v27  ;;  %v6951_v33 = vpop.permute.xlu0 %6950 }
 0x194   :  { %v1562_v18 = vsel %vm10158_vm3, %v1550_v37, 0.0  ;;  %v1566_v36 = vsel %vm10158_vm3, %v1551_v3, 0.0  ;;  %v1552_v51 = vsel %vm10159_vm14, %v6942_v16, %v6927_v7  ;;  %v1547_v63 = vsel %vm10161_vm5, %v6938_v49, %v6943_v19  ;;  %vm10162_vm7 = vmmov %vm10160_vm0  ;;  %1373 = vmatpush1.bf16.msra.mxu1 %v1310_v54  ;;  %6095 = vmatprep.subr.msk.bf16.mxu0 %vm882_vm13, %v8301_v34 }
 0x195   :  { %v1549_v61 = vsel %vm10162_vm7, %v6933_v62, %v6938_v49  ;;  %v1565_v52 = vsel %vm10163_vm4, %v1552_v51, 0.0  ;;  %v1569_v1 = vsel %vm10163_vm4, %v1553_v45, 0.0  ;;  %vm10164_vm11 = vnez %v10017_v2  ;;  %vm10165_vm12 = vmmov %vm10160_vm0  ;;  %6097 = vmatprep.subr.msk.bf16.mxu1 %vm882_vm13, %v8303_v43 }
 0x196   :  { %v1567_v0 = vsel %vm10164_vm11, %v1549_v61, 0.0  ;;  %v1546_v59 = vsel %vm10165_vm12, %v6937_v23, %v6942_v16  ;;  %vm10166_vm1 = vmmov %vm10160_vm0  ;;  %v6953_v27 = vunpack.i.h.bf16 %v6951_v33  ;;  %v6952_v35 = vunpack.i.l.bf16 %v6951_v33  ;;  %6091 = vmatmul.mubr.msk.bf16.vlgmr.msra.gmra.mxu0 %vm878_vm9, %v7282_v15  ;;  %v6956_v62 = vpop.permute.xlu1 %6955 }
 0x197   :  { %v1548_v44 = vsel %vm10166_vm1, %v6932_v32, %v6937_v23  ;;  %v6948_v25 = vunpack.i.h.bf16 %v6946_v20  ;;  %v6947_v58 = vunpack.i.l.bf16 %v6946_v20  ;;  %v1576_v26 = vpack.c.bf16 %v1569_v1, %v1565_v52  ;;  %6093 = vmatmul.mubr.msk.bf16.vlgmr.msra.gmra.mxu1 %vm878_vm9, %v7282_v15  ;;  %1451 = vmatpush1.bf16.msra.mxu0 %v1425_v60  ;;  %v6961_v53 = vpop.permute.xlu0 %6960 }
 0x198   :  { %v1563_v17 = vsel %vm10164_vm11, %v1548_v44, 0.0  ;;  %v1573_v28 = vpack.c.bf16 %v1566_v36, %v1562_v18  ;;  %v1431_v34 = vsel %vm882_vm13, %v8307_v10, 0  ;;  %vm10167_vm3 = vcmp.lt.s32.totalorder %v7533_v56, 113  ;;  %1468 = vmatprep.mubr.bf16.mxu0 %v10121_v6  ;;  %1511 = vmatprep.mubr.bf16.mxu1 %v10121_v6 }
 0x199   :  { %v1574_v39 = vpack.c.bf16 %v1567_v0, %v1563_v17  ;;  %v1712_v43 = vsel %vm10167_vm3, %v6948_v25, %v6953_v27  ;;  %1494 = vmatpush1.bf16.msra.mxu1 %v1431_v34  ;;  %vm10168_vm14 = vnez %v10025_v57  ;;  %v6963_v10 = vunpack.i.h.bf16 %v6961_v53  ;;  %vm10169_vm0 = vmmov %vm10167_vm3 }
 0x19a   :  { %v1564_v2 = vsel %vm10168_vm14, %v1546_v59, 0.0  ;;  %v1568_v32 = vsel %vm10168_vm14, %v1547_v63, 0.0  ;;  %6102 = vmatprep.subr.msk.bf16.mxu1 %vm882_vm13, %v1576_v26  ;;  %v6962_v38 = vunpack.i.l.bf16 %v6961_v53  ;;  %v6958_v7 = vunpack.i.h.bf16 %v6956_v62  ;;  %vm10170_vm5 = vmmov %vm10169_vm0  ;;  %v6966_v60 = vpop.permute.xlu1 %6965 }
 0x19b   :  { %6100 = vmatprep.subr.msk.bf16.mxu0 %vm882_vm13, %v1574_v39  ;;  %v6957_v50 = vunpack.i.l.bf16 %v6956_v62  ;;  %v1711_v13 = vsel %vm10169_vm0, %v6947_v58, %v6952_v35  ;;  %v1586_v47 = vsel %vm882_vm13, %v1573_v28, 0  ;;  %vm10171_vm7 = vmmov %vm10169_vm0  ;;  %v1575_v21 = vpack.c.bf16 %v1568_v32, %v1564_v2  ;;  %v6971_v4 = vpop.permute.xlu0 %6970 }
 0x19c   :  { %v1713_v57 = vsel %vm10170_vm5, %v6962_v38, %v6947_v58  ;;  %v1714_v3 = vsel %vm10171_vm7, %v6963_v10, %v6948_v25  ;;  %vm10172_vm4 = vmmov %vm10169_vm0  ;;  %vm10173_vm11 = vnez %v10050_v11  ;;  %vm10174_vm12 = vnez %v10042_v46 }
 0x19d   :  { %v1710_v55 = vsel %vm10172_vm4, %v6953_v27, %v6958_v7  ;;  %v1726_v37 = vsel %vm10173_vm11, %v1713_v57, 0.0  ;;  %v1730_v5 = vsel %vm10173_vm11, %v1714_v3, 0.0  ;;  %vm10175_vm1 = vnez %v10033_v8  ;;  %vm10176_vm3 = vmmov %vm10169_vm0  ;;  %v7284_v27 = vld [vmem:[#allocation2 + $0x70] sm:$0x3f]  }
 0x19e   :  { %v1728_v24 = vsel %vm10174_vm12, %v1710_v55, 0.0  ;;  %v1727_v19 = vsel %vm10175_vm1, %v1712_v43, 0.0  ;;  %v1708_v16 = vsel %vm10176_vm3, %v6958_v7, %v6963_v10  ;;  %vm10177_vm14 = vmmov %vm10169_vm0  ;;  %v1709_v23 = vsel %vm10169_vm0, %v6952_v35, %v6957_v50  ;;  %6096 = vmatmul.mubr.msk.bf16.vlgmr.msra.gmra.mxu0 %vm878_vm9, %v7283_v31  ;;  %v6976_v8 = vpop.permute.xlu1 %6975 }
 0x19f   :  { %v1707_v49 = vsel %vm10177_vm14, %v6957_v50, %v6962_v38  ;;  %v1723_v11 = vsel %vm10175_vm1, %v1711_v13, 0.0  ;;  %v1724_v42 = vsel %vm10174_vm12, %v1709_v23, 0.0  ;;  %v6973_v54 = vunpack.i.h.bf16 %v6971_v4  ;;  %6098 = vmatmul.mubr.msk.bf16.vlgmr.msra.gmra.mxu1 %vm878_vm9, %v7283_v31  ;;  %1612 = vmatpush1.bf16.msra.mxu0 %v1586_v47  ;;  %v6981_v61 = vpop.permute.xlu0 %6980 }
 0x1a0   :  { %v6968_v15 = vunpack.i.h.bf16 %v6966_v60  ;;  %v1737_v18 = vpack.c.bf16 %v1730_v5, %v1726_v37  ;;  %v1592_v36 = vsel %vm882_vm13, %v1575_v21, 0  ;;  %v6972_v51 = vunpack.i.l.bf16 %v6971_v4  ;;  %1629 = vmatprep.mubr.bf16.mxu0 %v10121_v6  ;;  %1672 = vmatprep.mubr.bf16.mxu1 %v10121_v6 }
 0x1a1   :  { %v1735_v45 = vpack.c.bf16 %v1728_v24, %v1724_v42  ;;  %1655 = vmatpush1.bf16.msra.mxu1 %v1592_v36  ;;  %v6967_v63 = vunpack.i.l.bf16 %v6966_v60  ;;  %v1734_v46 = vpack.c.bf16 %v1727_v19, %v1723_v11  ;;  %vm10178_vm5 = vnez %v10047_v48  ;;  %v7285_v19 = vld [vmem:[#allocation2 + $0x78] sm:$0x3f]  }
 0x1a2   :  { %v1725_v52 = vsel %vm10178_vm5, %v1707_v49, 0.0  ;;  %v1729_v1 = vsel %vm10178_vm5, %v1708_v16, 0.0  ;;  %6107 = vmatprep.subr.msk.bf16.mxu1 %vm882_vm13, %v1737_v18  ;;  %v6983_v0 = vunpack.i.h.bf16 %v6981_v61  ;;  %v6982_v59 = vunpack.i.l.bf16 %v6981_v61  ;;  %v6986_v43 = vpop.permute.xlu1 %6985 }
 0x1a3   :  { %6105 = vmatprep.subr.msk.bf16.mxu0 %vm882_vm13, %v1735_v45  ;;  %v6978_v33 = vunpack.i.h.bf16 %v6976_v8  ;;  %v6977_v20 = vunpack.i.l.bf16 %v6976_v8  ;;  %vm10179_vm7 = vcmp.lt.s32.totalorder %v7533_v56, 112  ;;  %v1736_v17 = vpack.c.bf16 %v1729_v1, %v1725_v52  ;;  %v6991_v39 = vpop.permute.xlu0 %6990 }
 0x1a4   :  { %v1873_v44 = vsel %vm10179_vm7, %v6968_v15, %v6973_v54  ;;  %vm10180_vm4 = vmmov %vm10179_vm7  ;;  %vm10184_vm3 = vnez %v10064_v14  ;;  %v1747_v32 = vsel %vm882_vm13, %v1734_v46, 0  ;;  %v6993_v10 = vunpack.i.h.bf16 %v6991_v39 }
 0x1a5   :  { %v1874_v35 = vsel %vm10180_vm4, %v6982_v59, %v6967_v63  ;;  %vm10181_vm11 = vmmov %vm10180_vm4  ;;  %v6988_v38 = vunpack.i.h.bf16 %v6986_v43  ;;  %v1753_v50 = vsel %vm882_vm13, %v1736_v17, 0  ;;  %v6992_v14 = vunpack.i.l.bf16 %v6991_v39 }
 0x1a6   :  { %v1875_v48 = vsel %vm10181_vm11, %v6983_v0, %v6968_v15  ;;  %vm10182_vm12 = vmmov %vm10180_vm4  ;;  %v1887_v26 = vsel %vm8181_vm8, %v1874_v35, 0.0  ;;  %6101 = vmatmul.mubr.msk.bf16.vlgmr.msra.gmra.mxu0 %vm878_vm9, %v7284_v27  ;;  %v6987_v57 = vunpack.i.l.bf16 %v6986_v43  ;;  %v6996_v55 = vpop.permute.xlu1 %6995  ;;  %vm10189_vm7 = vnez %v10069_v30 }
 0x1a7   :  { %v1871_v25 = vsel %vm10182_vm12, %v6973_v54, %v6978_v33  ;;  %vm10183_vm1 = vmmov %vm10180_vm4  ;;  %v1891_v28 = vsel %vm8181_vm8, %v1875_v48, 0.0  ;;  %6103 = vmatmul.mubr.msk.bf16.vlgmr.msra.gmra.mxu1 %vm878_vm9, %v7284_v27  ;;  %1773 = vmatpush1.bf16.msra.mxu0 %v1747_v32  ;;  %vm10188_vm8 = vnez %v10055_v9  ;;  %v7001_v3 = vpop.permute.xlu0 %7000  ;;  %v6998_v24 = vunpack.i.h.bf16 %v6996_v55 }
 0x1a8   :  { %v1872_v58 = vsel %vm10183_vm1, %v6967_v63, %v6972_v51  ;;  %v1889_v34 = vsel %vm10184_vm3, %v1871_v25, 0.0  ;;  %vm10185_vm14 = vmmov %vm10183_vm1  ;;  %v1898_v7 = vpack.c.bf16 %v1891_v28, %v1887_v26  ;;  %v1888_v47 = vsel %vm10188_vm8, %v1873_v44, 0.0  ;;  %1816 = vmatpush1.bf16.msra.mxu1 %v1753_v50  ;;  %1790 = vmatprep.mubr.bf16.mxu0 %v10121_v6  ;;  %v10198_v28 = vld [vmem:[#allocation8_spill] sm:$0xff] }
 0x1a9   :  { %v1869_v53 = vsel %vm10185_vm14, %v6978_v33, %v6983_v0  ;;  %vm10186_vm0 = vmmov %vm10183_vm1  ;;  %v1884_v31 = vsel %vm10188_vm8, %v1872_v58, 0.0  ;;  %v7003_v5 = vunpack.i.h.bf16 %v7001_v3  ;;  %v7002_v9 = vunpack.i.l.bf16 %v7001_v3  ;;  %1833 = vmatprep.mubr.bf16.mxu1 %v10121_v6 }
 0x1aa   :  { %v1868_v62 = vsel %vm10186_vm0, %v6977_v20, %v6982_v59  ;;  %vm10187_vm5 = vmmov %vm10186_vm0  ;;  %v1890_v37 = vsel %vm10189_vm7, %v1869_v53, 0.0  ;;  %6112 = vmatprep.subr.msk.bf16.mxu1 %vm882_vm13, %v1898_v7  ;;  %v6997_v4 = vunpack.i.l.bf16 %v6996_v55  ;;  %vm10190_vm4 = vcmp.lt.s32.totalorder %v7533_v56, 111  ;;  %v7286_v59 = vld [vmem:[#allocation2 + $0x80] sm:$0x3f]  }
 0x1ab   :  { %v1870_v2 = vsel %vm10187_vm5, %v6972_v51, %v6977_v20  ;;  %v1886_v21 = vsel %vm10189_vm7, %v1868_v62, 0.0  ;;  %v2034_v60 = vsel %vm10190_vm4, %v6988_v38, %v6993_v10  ;;  %v1895_v16 = vpack.c.bf16 %v1888_v47, %v1884_v31  ;;  %vm10191_vm11 = vmmov %vm10190_vm4 }
 0x1ac   :  { %v1885_v22 = vsel %vm10184_vm3, %v1870_v2, 0.0  ;;  %v2035_v49 = vsel %vm10191_vm11, %v7002_v9, %v6987_v57  ;;  %vm10192_vm12 = vmmov %vm10190_vm4  ;;  %v1897_v11 = vpack.c.bf16 %v1890_v37, %v1886_v21  ;;  %v2049_v1 = vsel %vm8234_vm2, %v2034_v60, 0.0 }
 0x1ad   :  { %v1896_v13 = vpack.c.bf16 %v1889_v34, %v1885_v22  ;;  %v2036_v30 = vsel %vm10192_vm12, %v7003_v5, %v6988_v38  ;;  %vm10193_vm1 = vmmov %vm10190_vm4  ;;  %v2048_v54 = vsel %vm8282_vm15, %v2035_v49, 0.0  ;;  %v1908_v41 = vsel %vm882_vm13, %v1895_v16, 0 }
 0x1ae   :  { %v2032_v23 = vsel %vm10193_vm1, %v6993_v10, %v6998_v24  ;;  %vm10194_vm3 = vmmov %vm10193_vm1  ;;  %v2052_v15 = vsel %vm8282_vm15, %v2036_v30, 0.0  ;;  %6106 = vmatmul.mubr.msk.bf16.vlgmr.msra.gmra.mxu0 %vm878_vm9, %v7285_v19  ;;  %v1914_v8 = vsel %vm882_vm13, %v1897_v11, 0  ;;  %v2364_v27 = vshra.s32 %v7533_v56, 6 }
 0x1af   :  { %6110 = vmatprep.subr.msk.bf16.mxu0 %vm882_vm13, %v1896_v13  ;;  %v2033_v42 = vsel %vm10194_vm3, %v6987_v57, %v6992_v14  ;;  %v2050_v18 = vsel %vm8242_vm6, %v2032_v23, 0.0  ;;  %vm10195_vm14 = vmmov %vm10193_vm1  ;;  %v2059_v63 = vpack.c.bf16 %v2052_v15, %v2048_v54  ;;  %6108 = vmatmul.mubr.msk.bf16.vlgmr.msra.gmra.mxu1 %vm878_vm9, %v7285_v19  ;;  %v2365_v35 = vand.u32 63, %v7533_v56 }
 0x1b0   :  { %v2030_v36 = vsel %vm10195_vm14, %v6998_v24, %v7003_v5  ;;  %vm10196_vm0 = vmmov %vm10193_vm1  ;;  %1934 = vmatpush1.bf16.msra.mxu0 %v1908_v41  ;;  %v2045_v52 = vsel %vm8234_vm2, %v2033_v42, 0.0  ;;  %1977 = vmatpush1.bf16.msra.mxu1 %v1914_v8  ;;  %v2366_v48 = vmul.u32 256, %v2364_v27  ;;  %v2330_v34 = vadd.s32 240, %v10198_v28 }
 0x1b1   :  { %v2029_v51 = vsel %vm10196_vm0, %v6997_v4, %v7002_v9  ;;  %vm10197_vm5 = vmmov %vm10196_vm0  ;;  %1951 = vmatprep.mubr.bf16.mxu0 %v10121_v6  ;;  %v2051_v0 = vsel %vm8274_vm10, %v2030_v36, 0.0  ;;  %6117 = vmatprep.subr.msk.bf16.mxu1 %vm882_vm13, %v2059_v63  ;;  %v2056_v33 = vpack.c.bf16 %v2049_v1, %v2045_v52  ;;  %v2367_v25 = vshra.s32 %v2365_v35, 3 }
 0x1b2   :  { %v2031_v45 = vsel %vm10197_vm5, %v6992_v14, %v6997_v4  ;;  %v2047_v12 = vsel %vm8274_vm10, %v2029_v51, 0.0  ;;  %1994 = vmatprep.mubr.bf16.mxu1 %v10121_v6  ;;  %v2370_v17 = vand.u32 7, %v2365_v35  ;;  %v2331_v39 = vadd.s32 248, %v10198_v28 }
 0x1b3   :  { %v2046_v61 = vsel %vm8242_vm6, %v2031_v45, 0.0  ;;  %v2058_v20 = vpack.c.bf16 %v2051_v0, %v2047_v12  ;;  %v2069_v29 = vsel %vm882_vm13, %v2056_v33, 0  ;;  %v2368_v58 = vmul.u32 32, %v2367_v25 }
 0x1b4   :  { %v2057_v46 = vpack.c.bf16 %v2050_v18, %v2046_v61  ;;  %v2371_v26 = vmul.u32 2, %v2370_v17  ;;  %v8681_v53 = vadd.s32 120, %v10198_v28  ;;  %v9887_v2 = vmov 1.0|1.0  }
 0x1b5   :  { %v2075_v44 = vsel %vm882_vm13, %v2058_v20, 0  ;;  %v2369_v43 = vadd.s32 %v2368_v58, %v2366_v48 }
 0x1b6   :  { %6115 = vmatprep.subr.msk.bf16.mxu0 %vm882_vm13, %v2057_v46  ;;  %6111 = vmatmul.mubr.msk.bf16.vlgmr.msra.gmra.mxu0 %vm878_vm9, %v7286_v59  ;;  %10200 = vst [vmem:[#allocation14_spill] sm:$0xff] %v8681_v53 }
 0x1b7   :  { %6113 = vmatmul.mubr.msk.bf16.vlgmr.msra.gmra.mxu1 %vm878_vm9, %v7286_v59  ;;  %2095 = vmatpush1.bf16.msra.mxu0 %v2069_v29  ;;  %v8683_v62 = vadd.s32 %v2371_v26, %v2369_v43 }
 0x1b8   :  { %2138 = vmatpush1.bf16.msra.mxu1 %v2075_v44  ;;  %2112 = vmatprep.mubr.bf16.mxu0 %v10121_v6 }
 0x1b9   :  { %2155 = vmatprep.mubr.bf16.mxu1 %v10121_v6  ;;  %v8678_v6 = vadd.s32 112, %v10198_v28  ;;  %10201 = vst [vmem:[#allocation17_spill] sm:$0xff] %v8683_v62  ;;  %vm2403_vm2 = vcmp.eq.s32.totalorder %v2330_v34, %v8683_v62  ;;  %vm2404_vm6 = vcmp.eq.s32.totalorder %v2331_v39, %v8683_v62  ;;  %vm2388_vm15 = vcmp.eq.s32.totalorder %v8681_v53, %v8683_v62 }
 0x1ba   :  { %vm6137_vm8 = vmpackc.low %vm2404_vm6, %vm2403_vm2 }
 0x1bb   :  { %10199 = vst [vmem:[#allocation18_spill] sm:$0xff] %v8678_v6  ;;  %vm2387_vm10 = vcmp.eq.s32.totalorder %v8678_v6, %v8683_v62  ;;  %6310 = vmatprep.subr.msk.bf16.mxu0 %vm6137_vm8, %v9887_v2 }
 0x1bc   :  { %vm6121_vm7 = vmpackc.low %vm2388_vm15, %vm2387_vm10 }
 0x1be   :  { %6116 = vmatmul.mubr.msk.bf16.vlgmr.msra.gmra.mxu0 %vm878_vm9, %v7287_v40 }
 0x1bf   :  { %6118 = vmatmul.mubr.msk.bf16.vlgmr.msra.gmra.mxu1 %vm878_vm9, %v7287_v40  ;;  %6311 = vmatpush3.bf16.msk.msra.mxu0 %vm6121_vm7, %v9887_v2 }
 0x23b   :  { %v929_v32 = vpop.f32.mrf.mxu0 }
 0x23d   :  { %v972_v22 = vpop.f32.mrf.mxu1  ;;  %v931_v10 = vpop.f32.mrf.mxu0 }
 0x23f   :  { %v974_v38 = vpop.f32.mrf.mxu1  ;;  %v933_v7 = vpop.f32.mrf.mxu0 }
 0x241   :  { %v976_v50 = vpop.f32.mrf.mxu1  ;;  %v935_v13 = vpop.f32.mrf.mxu0 }
 0x243   :  { %v978_v31 = vpop.f32.mrf.mxu1  ;;  %v1035_v47 = vpop.f32.mrf.mxu0 }
 0x244   :  { %v1036_v25 = vadd.f32 %v1035_v47, %v929_v32 }
 0x245   :  { %v1037_v57 = vpop.f32.mrf.mxu0 }
 0x246   :  { %v1078_v14 = vpop.f32.mrf.mxu1  ;;  %v1038_v58 = vadd.f32 %v1037_v57, %v931_v10 }
 0x247   :  { %v1039_v55 = vpop.f32.mrf.mxu0  ;;  %v1079_v17 = vadd.f32 %v1078_v14, %v972_v22 }
 0x248   :  { %v1080_v3 = vpop.f32.mrf.mxu1  ;;  %v1040_v39 = vadd.f32 %v1039_v55, %v933_v7 }
 0x249   :  { %v1041_v37 = vpop.f32.mrf.mxu0  ;;  %v1081_v26 = vadd.f32 %v1080_v3, %v974_v38 }
 0x24a   :  { %v1082_v21 = vpop.f32.mrf.mxu1  ;;  %v1042_v2 = vadd.f32 %v1041_v37, %v935_v13 }
 0x24b   :  { %v1083_v43 = vadd.f32 %v1082_v21, %v976_v50 }
 0x24c   :  { %v1084_v5 = vpop.f32.mrf.mxu1 }
 0x24d   :  { %v1085_v53 = vadd.f32 %v1084_v5, %v978_v31 }
 0x24e   :  { %v1188_v9 = vpop.f32.mrf.mxu0 }
 0x24f   :  { %v1231_v24 = vpop.f32.mrf.mxu1  ;;  %v1240_v56 = vadd.f32 %v1188_v9, %v1036_v25 }
 0x250   :  { %v1190_v4 = vpop.f32.mrf.mxu0  ;;  %v1242_v62 = vadd.f32 %v1231_v24, %v1079_v17 }
 0x251   :  { %v1233_v60 = vpop.f32.mrf.mxu1  ;;  %v1241_v28 = vadd.f32 %v1190_v4, %v1038_v58 }
 0x252   :  { %v1192_v19 = vpop.f32.mrf.mxu0  ;;  %v1243_v32 = vadd.f32 %v1233_v60, %v1081_v26 }
 0x253   :  { %v1235_v16 = vpop.f32.mrf.mxu1  ;;  %v1244_v14 = vadd.f32 %v1192_v19, %v1040_v39 }
 0x254   :  { %v1194_v49 = vpop.f32.mrf.mxu0  ;;  %v1246_v22 = vadd.f32 %v1235_v16, %v1083_v43  ;;  %v2180_v43 = vpop.permute.xlu1 %2179 }
 0x255   :  { %v1237_v30 = vpop.f32.mrf.mxu1  ;;  %v1245_v10 = vadd.f32 %v1194_v49, %v1042_v2 }
 0x256   :  { %v1349_v23 = vpop.f32.mrf.mxu0  ;;  %v1247_v57 = vadd.f32 %v1237_v30, %v1085_v53 }
 0x257   :  { %v1392_v11 = vpop.f32.mrf.mxu1  ;;  %v1401_v38 = vadd.f32 %v1349_v23, %v1240_v56 }
 0x258   :  { %v1351_v42 = vpop.f32.mrf.mxu0  ;;  %v1403_v7 = vadd.f32 %v1392_v11, %v1242_v62 }
 0x259   :  { %v1394_v54 = vpop.f32.mrf.mxu1  ;;  %v1402_v55 = vadd.f32 %v1351_v42, %v1241_v28 }
 0x25a   :  { %v1353_v15 = vpop.f32.mrf.mxu0  ;;  %v1404_v21 = vadd.f32 %v1394_v54, %v1243_v32 }
 0x25b   :  { %v1396_v18 = vpop.f32.mrf.mxu1  ;;  %v1405_v13 = vadd.f32 %v1353_v15, %v1244_v14  ;;  %v10203_v14 = vld [vmem:[#allocation17_spill] sm:$0xff] }
 0x25c   :  { %v1355_v36 = vpop.f32.mrf.mxu0  ;;  %v1407_v37 = vadd.f32 %v1396_v18, %v1246_v22 }
 0x25d   :  { %v1398_v51 = vpop.f32.mrf.mxu1  ;;  %v1406_v5 = vadd.f32 %v1355_v36, %v1245_v10 }
 0x25e   :  { %v1470_v45 = vpop.f32.mrf.mxu0  ;;  %v1408_v31 = vadd.f32 %v1398_v51, %v1247_v57 }
 0x25f   :  { %v1513_v63 = vpop.f32.mrf.mxu1  ;;  %v1522_v25 = vadd.f32 %v1470_v45, %v1401_v38 }
 0x260   :  { %v1472_v61 = vpop.f32.mrf.mxu0  ;;  %v1524_v24 = vadd.f32 %v1513_v63, %v1403_v7 }
 0x261   :  { %v1515_v41 = vpop.f32.mrf.mxu1  ;;  %v1523_v4 = vadd.f32 %v1472_v61, %v1402_v55 }
 0x262   :  { %v1474_v8 = vpop.f32.mrf.mxu0  ;;  %v1525_v60 = vadd.f32 %v1515_v41, %v1404_v21  ;;  %v10204_v21 = vmov 1.0|1.0  }
 0x263   :  { %v1517_v46 = vpop.f32.mrf.mxu1  ;;  %v1526_v19 = vadd.f32 %v1474_v8, %v1405_v13 }
 0x264   :  { %v1476_v52 = vpop.f32.mrf.mxu0  ;;  %v1528_v16 = vadd.f32 %v1517_v46, %v1407_v37 }
 0x265   :  { %v1519_v1 = vpop.f32.mrf.mxu1  ;;  %v1527_v2 = vadd.f32 %v1476_v52, %v1406_v5 }
 0x266   :  { %v1631_v12 = vpop.f32.mrf.mxu0  ;;  %v1529_v53 = vadd.f32 %v1519_v1, %v1408_v31 }
 0x267   :  { %v1674_v0 = vpop.f32.mrf.mxu1  ;;  %v1683_v56 = vadd.f32 %v1631_v12, %v1522_v25 }
 0x268   :  { %v1633_v59 = vpop.f32.mrf.mxu0  ;;  %v1685_v62 = vadd.f32 %v1674_v0, %v1524_v24  ;;  %v2185_v24 = vpop.permute.xlu0 %2184 }
 0x269   :  { %v1676_v33 = vpop.f32.mrf.mxu1  ;;  %v1684_v28 = vadd.f32 %v1633_v59, %v1523_v4 }
 0x26a   :  { %v1635_v20 = vpop.f32.mrf.mxu0  ;;  %v1686_v30 = vadd.f32 %v1676_v33, %v1525_v60 }
 0x26b   :  { %v1678_v29 = vpop.f32.mrf.mxu1  ;;  %v1687_v11 = vadd.f32 %v1635_v20, %v1526_v19 }
 0x26c   :  { %v1637_v44 = vpop.f32.mrf.mxu0  ;;  %v1689_v42 = vadd.f32 %v1678_v29, %v1528_v16 }
 0x26d   :  { %v1680_v40 = vpop.f32.mrf.mxu1  ;;  %v1688_v54 = vadd.f32 %v1637_v44, %v1527_v2  ;;  %v10202_v44 = vld [vmem:[#allocation8_spill] sm:$0xff] }
 0x26e   :  { %v1792_v27 = vpop.f32.mrf.mxu0  ;;  %v1690_v15 = vadd.f32 %v1680_v40, %v1529_v53  ;;  %v2362_v40 = vadd.s32 496, %v10202_v44  ;;  %v2347_v39 = vadd.s32 376, %v10202_v44  ;;  %v2329_v13 = vadd.s32 232, %v10202_v44 }
 0x26f   :  { %v1835_v35 = vpop.f32.mrf.mxu1  ;;  %v1844_v36 = vadd.f32 %v1792_v27, %v1683_v56  ;;  %v2363_v27 = vadd.s32 504, %v10202_v44  ;;  %v8713_v25 = vadd.s32 96, %v10202_v44 }
 0x270   :  { %v1794_v48 = vpop.f32.mrf.mxu0  ;;  %v1846_v51 = vadd.f32 %v1835_v35, %v1685_v62  ;;  %v2346_v35 = vadd.s32 368, %v10202_v44  ;;  %vm2435_vm4 = vcmp.eq.s32.totalorder %v2362_v40, %v10203_v14  ;;  %vm2420_vm3 = vcmp.eq.s32.totalorder %v2347_v39, %v10203_v14 }
 0x271   :  { %v1837_v34 = vpop.f32.mrf.mxu1  ;;  %v1845_v45 = vadd.f32 %v1794_v48, %v1684_v28  ;;  %vm2436_vm11 = vcmp.eq.s32.totalorder %v2363_v27, %v10203_v14  ;;  %vm2402_vm5 = vcmp.eq.s32.totalorder %v2329_v13, %v10203_v14  ;;  %vm2385_vm6 = vcmp.eq.s32.totalorder %v8713_v25, %v10203_v14 }
 0x272   :  { %v1796_v6 = vpop.f32.mrf.mxu0  ;;  %v1847_v63 = vadd.f32 %v1837_v34, %v1686_v30  ;;  %vm2419_vm12 = vcmp.eq.s32.totalorder %v2346_v35, %v10203_v14  ;;  %vm6169_vm1 = vmpackc.low %vm2436_vm11, %vm2435_vm4  ;;  %v8727_v30 = vadd.s32 104, %v10202_v44  ;;  %v2325_v40 = vadd.s32 200, %v10202_v44 }
 0x273   :  { %v1839_v47 = vpop.f32.mrf.mxu1  ;;  %v1848_v41 = vadd.f32 %v1796_v6, %v1687_v11  ;;  %6332 = vmatprep.subr.msk.bf16.mxu1 %vm6169_vm1, %v10204_v21  ;;  %vm6153_vm14 = vmpackc.low %vm2420_vm3, %vm2419_vm12  ;;  %v8809_v27 = vadd.s32 64, %v10202_v44  ;;  %v8812_v35 = vadd.s32 72, %v10202_v44  ;;  %v2322_v39 = vadd.s32 176, %v10202_v44 }
 0x274   :  { %v1798_v3 = vpop.f32.mrf.mxu0  ;;  %v1850_v8 = vadd.f32 %v1839_v47, %v1689_v42  ;;  %6333 = vmatpush3.bf16.msk.msra.mxu1 %vm6153_vm14, %v10204_v21  ;;  %v2360_v42 = vadd.s32 480, %v10202_v44  ;;  %vm2386_vm10 = vcmp.eq.s32.totalorder %v8727_v30, %v10203_v14  ;;  %v8878_v13 = vadd.s32 32, %v10202_v44 }
 0x275   :  { %v1841_v50 = vpop.f32.mrf.mxu1  ;;  %v1849_v46 = vadd.f32 %v1798_v3, %v1688_v54  ;;  %vm6123_vm15 = vmpackc.low %vm2386_vm10, %vm2385_vm6 }
 0x276   :  { %v1953_v9 = vpop.f32.mrf.mxu0  ;;  %v1851_v52 = vadd.f32 %v1841_v50, %v1690_v15  ;;  %v2328_v50 = vadd.s32 224, %v10202_v44  ;;  %vm2433_vm8 = vcmp.eq.s32.totalorder %v2360_v42, %v10203_v14  ;;  %v8915_v42 = vadd.s32 24, %v10202_v44 }
 0x277   :  { %v1996_v17 = vpop.f32.mrf.mxu1  ;;  %v2005_v12 = vadd.f32 %v1953_v9, %v1844_v36 }
 0x278   :  { %v1955_v49 = vpop.f32.mrf.mxu0  ;;  %v2007_v0 = vadd.f32 %v1996_v17, %v1846_v51  ;;  %vm2401_vm0 = vcmp.eq.s32.totalorder %v2328_v50, %v10203_v14  ;;  %v2321_v50 = vadd.s32 168, %v10202_v44 }
 0x279   :  { %v1998_v23 = vpop.f32.mrf.mxu1  ;;  %v2006_v59 = vadd.f32 %v1955_v49, %v1845_v45  ;;  %vm6139_vm2 = vmpackc.low %vm2402_vm5, %vm2401_vm0 }
 0x27a   :  { %v1957_v18 = vpop.f32.mrf.mxu0  ;;  %v2008_v33 = vadd.f32 %v1998_v23, %v1847_v63  ;;  %6312 = vmatprep.subr.msk.bf16.mxu0 %vm6139_vm2, %v10204_v21 }
 0x27b   :  { %v2000_v61 = vpop.f32.mrf.mxu1  ;;  %v2009_v20 = vadd.f32 %v1957_v18, %v1848_v41  ;;  %v2361_v18 = vadd.s32 488, %v10202_v44  ;;  %6313 = vmatpush3.bf16.msk.msra.mxu0 %vm6123_vm15, %v10204_v21 }
 0x27c   :  { %v1959_v1 = vpop.f32.mrf.mxu0  ;;  %v2011_v48 = vadd.f32 %v2000_v61, %v1850_v8  ;;  %v2344_v8 = vadd.s32 352, %v10202_v44 }
 0x27d   :  { %v2002_v58 = vpop.f32.mrf.mxu1  ;;  %v2010_v26 = vadd.f32 %v1959_v1, %v1849_v46  ;;  %vm2434_vm7 = vcmp.eq.s32.totalorder %v2361_v18, %v10203_v14  ;;  %v2345_v46 = vadd.s32 360, %v10202_v44  ;;  %v2327_v1 = vadd.s32 216, %v10202_v44 }
 0x27e   :  { %v2114_v29 = vpop.f32.mrf.mxu0  ;;  %v2012_v22 = vadd.f32 %v2002_v58, %v1851_v52  ;;  %vm6171_vm4 = vmpackc.low %vm2434_vm7, %vm2433_vm8  ;;  %v2326_v52 = vadd.s32 208, %v10202_v44  ;;  %vm2417_vm11 = vcmp.eq.s32.totalorder %v2344_v8, %v10203_v14  ;;  %v2342_v58 = vadd.s32 336, %v10202_v44  ;;  %v6185_v8 = vld [vmem:[%s9794_s2 + $0x20] sm:$0xff] }
 0x27f   :  { %v2166_v6 = vadd.f32 %v2114_v29, %v2005_v12  ;;  %v2157_v34 = vpop.f32.mrf.mxu1  ;;  %6334 = vmatprep.subr.msk.bf16.mxu1 %vm6171_vm4, %v10204_v21  ;;  %v8781_v12 = vadd.s32 80, %v10202_v44  ;;  %vm2418_vm12 = vcmp.eq.s32.totalorder %v2345_v46, %v10203_v14  ;;  %vm2400_vm3 = vcmp.eq.s32.totalorder %v2327_v1, %v10203_v14 }
 0x280   :  { %v2168_v32 = vadd.f32 %v2157_v34, %v2007_v0  ;;  %v2116_v47 = vpop.f32.mrf.mxu0  ;;  %v8784_v0 = vadd.s32 88, %v10202_v44  ;;  %vm2399_vm1 = vcmp.eq.s32.totalorder %v2326_v52, %v10203_v14  ;;  %vm6155_vm14 = vmpackc.low %vm2418_vm12, %vm2417_vm11  ;;  %v2324_v29 = vadd.s32 192, %v10202_v44  ;;  %v6186_v52 = vld [vmem:[%s9794_s2 + $0x28] sm:$0xf] }
 0x281   :  { %v8700_v10 = vadd.f32 %v2180_v43, %v2166_v6  ;;  %v2167_v57 = vadd.f32 %v2116_v47, %v2006_v59  ;;  %v2159_v3 = vpop.f32.mrf.mxu1  ;;  %v2358_v59 = vadd.s32 464, %v10202_v44  ;;  %vm2383_vm0 = vcmp.eq.s32.totalorder %v8781_v12, %v10203_v14  ;;  %6335 = vmatpush3.bf16.msk.msra.mxu1 %vm6155_vm14, %v10204_v21  ;;  %vm6141_vm10 = vmpackc.low %vm2400_vm3, %vm2399_vm1 }
 0x282   :  { %v8703_v38 = vadd.f32 %v2180_v43, %v2168_v32  ;;  %v2169_v7 = vadd.f32 %v2159_v3, %v2008_v33  ;;  %v2118_v55 = vpop.f32.mrf.mxu0  ;;  %v2359_v33 = vadd.s32 472, %v10202_v44  ;;  %vm2384_vm5 = vcmp.eq.s32.totalorder %v8784_v0, %v10203_v14  ;;  %6314 = vmatprep.subr.msk.bf16.mxu0 %vm6141_vm10, %v10204_v21 }
 0x283   :  { %v2195_v37 = vmax.f32 %v8700_v10, 0.0  ;;  %v8709_v5 = vadd.f32 %v2180_v43, %v2167_v57  ;;  %v2170_v31 = vadd.f32 %v2118_v55, %v2009_v20  ;;  %v2161_v9 = vpop.f32.mrf.mxu1  ;;  %vm2431_vm2 = vcmp.eq.s32.totalorder %v2358_v59, %v10203_v14  ;;  %vm6125_vm15 = vmpackc.low %vm2384_vm5, %vm2383_vm0 }
 0x284   :  { %v2197_v4 = vmax.f32 %v8703_v38, 0.0  ;;  %v8716_v60 = vadd.f32 %v2180_v43, %v2169_v7  ;;  %v2172_v17 = vadd.f32 %v2161_v9, %v2011_v48  ;;  %v2120_v19 = vpop.f32.mrf.mxu0  ;;  %vm2432_vm6 = vcmp.eq.s32.totalorder %v2359_v33, %v10203_v14  ;;  %6315 = vmatpush3.bf16.msk.msra.mxu0 %vm6125_vm15, %v10204_v21 }
 0x285   :  { %v2196_v16 = vmax.f32 %v8709_v5, 0.0  ;;  %v8720_v2 = vadd.f32 %v2185_v24, %v2170_v31  ;;  %v2171_v53 = vadd.f32 %v2120_v19, %v2010_v26  ;;  %v2163_v49 = vpop.f32.mrf.mxu1  ;;  %v2343_v20 = vadd.s32 344, %v10202_v44  ;;  %vm6173_vm8 = vmpackc.low %vm2432_vm6, %vm2431_vm2 }
 0x286   :  { %v2198_v56 = vmax.f32 %v8716_v60, 0.0  ;;  %v8724_v62 = vadd.f32 %v2185_v24, %v2172_v17  ;;  %v2173_v28 = vadd.f32 %v2163_v49, %v2012_v22  ;;  %v2356_v48 = vadd.s32 448, %v10202_v44  ;;  %6336 = vmatprep.subr.msk.bf16.mxu1 %vm6173_vm8, %v10204_v21 }
 0x287   :  { %v2199_v23 = vmax.f32 %v8720_v2, 0.0  ;;  %v8730_v11 = vadd.f32 %v2185_v24, %v2171_v53  ;;  %v2357_v26 = vadd.s32 456, %v10202_v44  ;;  %vm2415_vm7 = vcmp.eq.s32.totalorder %v2342_v58, %v10203_v14 }
 0x288   :  { %v2201_v54 = vmax.f32 %v8724_v62, 0.0  ;;  %v8737_v15 = vadd.f32 %v2185_v24, %v2173_v28  ;;  %vm2416_vm4 = vcmp.eq.s32.totalorder %v2343_v20, %v10203_v14  ;;  %vm2397_vm11 = vcmp.eq.s32.totalorder %v2324_v29, %v10203_v14 }
 0x289   :  { %v2200_v36 = vmax.f32 %v8730_v11, 0.0  ;;  %v8747_v51 = vpack.i.bf16 %v2199_v23, %v2195_v37  ;;  %v2340_v6 = vadd.s32 320, %v10202_v44  ;;  %vm6157_vm12 = vmpackc.low %vm2416_vm4, %vm2415_vm7  ;;  %vm2398_vm1 = vcmp.eq.s32.totalorder %v2325_v40, %v10203_v14 }
 0x28a   :  { %v2202_v45 = vmax.f32 %v8737_v15, 0.0  ;;  %v8754_v63 = vpack.i.bf16 %v2201_v54, %v2197_v4  ;;  %vm2381_vm3 = vcmp.eq.s32.totalorder %v8809_v27, %v10203_v14  ;;  %vm2382_vm14 = vcmp.eq.s32.totalorder %v8812_v35, %v10203_v14  ;;  %6337 = vmatpush3.bf16.msk.msra.mxu1 %vm6157_vm12, %v10204_v21  ;;  %vm6143_vm5 = vmpackc.low %vm2398_vm1, %vm2397_vm11 }
 0x28b   :  { %7005 = vrot.lane.b32.xlu1 %v8747_v51, %s7391_s23  ;;  %v8763_v61 = vpack.i.bf16 %v2200_v36, %v2196_v16  ;;  %vm2429_vm0 = vcmp.eq.s32.totalorder %v2356_v48, %v10203_v14  ;;  %vm2430_vm2 = vcmp.eq.s32.totalorder %v2357_v26, %v10203_v14  ;;  %v2341_v34 = vadd.s32 328, %v10202_v44  ;;  %6316 = vmatprep.subr.msk.bf16.mxu0 %vm6143_vm5, %v10204_v21  ;;  %vm6127_vm10 = vmpackc.low %vm2382_vm14, %vm2381_vm3 }
 0x28c   :  { %v8770_v41 = vpack.i.bf16 %v2202_v45, %v2198_v56  ;;  %vm2413_vm6 = vcmp.eq.s32.totalorder %v2340_v6, %v10203_v14  ;;  %v2323_v43 = vadd.s32 184, %v10202_v44  ;;  %v8844_v32 = vadd.s32 48, %v10202_v44  ;;  %6317 = vmatpush3.bf16.msk.msra.mxu0 %vm6127_vm10, %v10204_v21  ;;  %vm6175_vm15 = vmpackc.low %vm2430_vm2, %vm2429_vm0 }
 0x28d   :  { %7035 = vrot.lane.b32.xlu0 %v8763_v61, %s7391_s23  ;;  %v8847_v47 = vadd.s32 56, %v10202_v44  ;;  %v2354_v22 = vadd.s32 432, %v10202_v44  ;;  %vm2414_vm8 = vcmp.eq.s32.totalorder %v2341_v34, %v10203_v14  ;;  %vm2395_vm7 = vcmp.eq.s32.totalorder %v2322_v39, %v10203_v14  ;;  %6338 = vmatprep.subr.msk.bf16.mxu1 %vm6175_vm15, %v10204_v21 }
 0x28e   :  { %v2355_v57 = vadd.s32 440, %v10202_v44  ;;  %v2338_v3 = vadd.s32 304, %v10202_v44  ;;  %vm6159_vm4 = vmpackc.low %vm2414_vm8, %vm2413_vm6  ;;  %vm2396_vm11 = vcmp.eq.s32.totalorder %v2323_v43, %v10203_v14  ;;  %vm2379_vm12 = vcmp.eq.s32.totalorder %v8844_v32, %v10203_v14 }
 0x28f   :  { %7010 = vrot.lane.b32.xlu1 %v8754_v63, %s7391_s23  ;;  %vm2380_vm1 = vcmp.eq.s32.totalorder %v8847_v47, %v10203_v14  ;;  %vm2427_vm3 = vcmp.eq.s32.totalorder %v2354_v22, %v10203_v14  ;;  %6339 = vmatpush3.bf16.msk.msra.mxu1 %vm6159_vm4, %v10204_v21  ;;  %vm6145_vm14 = vmpackc.low %vm2396_vm11, %vm2395_vm7  ;;  %v2339_v7 = vadd.s32 312, %v10202_v44  ;;  %v2320_v55 = vadd.s32 160, %v10202_v44 }
 0x290   :  { %vm2428_vm0 = vcmp.eq.s32.totalorder %v2355_v57, %v10203_v14  ;;  %vm2411_vm5 = vcmp.eq.s32.totalorder %v2338_v3, %v10203_v14  ;;  %6318 = vmatprep.subr.msk.bf16.mxu0 %vm6145_vm14, %v10204_v21  ;;  %vm6129_vm2 = vmpackc.low %vm2380_vm1, %vm2379_vm12  ;;  %v8881_v31 = vadd.s32 40, %v10202_v44  ;;  %v2352_v9 = vadd.s32 416, %v10202_v44 }
 0x291   :  { %7040 = vrot.lane.b32.xlu0 %v8770_v41, %s7391_s23  ;;  %6319 = vmatpush3.bf16.msk.msra.mxu0 %vm6129_vm2, %v10204_v21  ;;  %vm6177_vm6 = vmpackc.low %vm2428_vm0, %vm2427_vm3  ;;  %vm2412_vm10 = vcmp.eq.s32.totalorder %v2339_v7, %v10203_v14  ;;  %vm2393_vm15 = vcmp.eq.s32.totalorder %v2320_v55, %v10203_v14  ;;  %v2353_v24 = vadd.s32 424, %v10202_v44  ;;  %v2336_v17 = vadd.s32 288, %v10202_v44  ;;  %v10205_v7 = vld [vmem:[#allocation9_spill] sm:$0xff] }
 0x292   :  { %6340 = vmatprep.subr.msk.bf16.mxu1 %vm6177_vm6, %v10204_v21  ;;  %vm6161_vm8 = vmpackc.low %vm2412_vm10, %vm2411_vm5  ;;  %vm2394_vm7 = vcmp.eq.s32.totalorder %v2321_v50, %v10203_v14  ;;  %vm2377_vm4 = vcmp.eq.s32.totalorder %v8878_v13, %v10203_v14  ;;  %vm2378_vm11 = vcmp.eq.s32.totalorder %v8881_v31, %v10203_v14  ;;  %vm2425_vm12 = vcmp.eq.s32.totalorder %v2352_v9, %v10203_v14 }
 0x293   :  { %7015 = vrot.lane.b32.xlu1 %v8747_v51, %s7393_s25  ;;  %6341 = vmatpush3.bf16.msk.msra.mxu1 %vm6161_vm8, %v10204_v21  ;;  %vm6147_vm1 = vmpackc.low %vm2394_vm7, %vm2393_vm15  ;;  %vm2426_vm3 = vcmp.eq.s32.totalorder %v2353_v24, %v10203_v14  ;;  %v2337_v19 = vadd.s32 296, %v10202_v44  ;;  %vm2409_vm14 = vcmp.eq.s32.totalorder %v2336_v17, %v10203_v14  ;;  %v2318_v53 = vadd.s32 144, %v10202_v44 }
 0x294   :  { %6320 = vmatprep.subr.msk.bf16.mxu0 %vm6147_vm1, %v10204_v21  ;;  %vm6131_vm0 = vmpackc.low %vm2378_vm11, %vm2377_vm4  ;;  %v2319_v49 = vadd.s32 152, %v10202_v44  ;;  %v8912_v28 = vadd.s32 16, %v10202_v44  ;;  %v2350_v18 = vadd.s32 400, %v10202_v44  ;;  %vm2376_vm7 = vcmp.eq.s32.totalorder %v8915_v42, %v10203_v14 }
 0x295   :  { %7045 = vrot.lane.b32.xlu0 %v8763_v61, %s7393_s25  ;;  %6321 = vmatpush3.bf16.msk.msra.mxu0 %vm6131_vm0, %v10204_v21  ;;  %vm6179_vm5 = vmpackc.low %vm2426_vm3, %vm2425_vm12  ;;  %vm2410_vm2 = vcmp.eq.s32.totalorder %v2337_v19, %v10203_v14  ;;  %vm2391_vm6 = vcmp.eq.s32.totalorder %v2318_v53, %v10203_v14  ;;  %v2316_v46 = vadd.s32 128, %v10202_v44  ;;  %v8952_v1 = vadd.s32 8, %v10202_v44 }
 0x296   :  { %6342 = vmatprep.subr.msk.bf16.mxu1 %vm6179_vm5, %v10204_v21  ;;  %vm6163_vm10 = vmpackc.low %vm2410_vm2, %vm2409_vm14  ;;  %vm2392_vm15 = vcmp.eq.s32.totalorder %v2319_v49, %v10203_v14  ;;  %vm2375_vm8 = vcmp.eq.s32.totalorder %v8912_v28, %v10203_v14  ;;  %vm2423_vm4 = vcmp.eq.s32.totalorder %v2350_v18, %v10203_v14  ;;  %vm2373_vm14 = vcmp.eq.s32.totalorder %v10202_v44, %v10203_v14 }
 0x297   :  { %7020 = vrot.lane.b32.xlu1 %v8754_v63, %s7393_s25  ;;  %6343 = vmatpush3.bf16.msk.msra.mxu1 %vm6163_vm10, %v10204_v21  ;;  %vm6149_vm11 = vmpackc.low %vm2392_vm15, %vm2391_vm6  ;;  %v2348_v59 = vadd.s32 384, %v10202_v44  ;;  %vm2389_vm2 = vcmp.eq.s32.totalorder %v2316_v46, %v10203_v14  ;;  %v2349_v33 = vadd.s32 392, %v10202_v44  ;;  %v2332_v58 = vadd.s32 256, %v10202_v44 }
 0x298   :  { %6322 = vmatprep.subr.msk.bf16.mxu0 %vm6149_vm11, %v10204_v21  ;;  %vm6133_vm3 = vmpackc.low %vm2376_vm7, %vm2375_vm8  ;;  %vm2374_vm15 = vcmp.eq.s32.totalorder %v8952_v1, %v10203_v14  ;;  %v2333_v20 = vadd.s32 264, %v10202_v44 }
 0x299   :  { %7050 = vrot.lane.b32.xlu0 %v8770_v41, %s7393_s25  ;;  %6323 = vmatpush3.bf16.msk.msra.mxu0 %vm6133_vm3, %v10204_v21  ;;  %vm2421_vm8 = vcmp.eq.s32.totalorder %v2348_v59, %v10203_v14  ;;  %vm2405_vm11 = vcmp.eq.s32.totalorder %v2332_v58, %v10203_v14 }
 0x29b   :  { %7025 = vrot.lane.b32.xlu1 %v8747_v51, %s7394_s26  ;;  %v2351_v51 = vadd.s32 408, %v10202_v44 }
 0x29d   :  { %7055 = vrot.lane.b32.xlu0 %v8763_v61, %s7394_s26  ;;  %v2334_v61 = vadd.s32 272, %v10202_v44  ;;  %vm2424_vm12 = vcmp.eq.s32.totalorder %v2351_v51, %v10203_v14 }
 0x29e   :  { %vm6181_vm0 = vmpackc.low %vm2424_vm12, %vm2423_vm4  ;;  %vm2422_vm4 = vcmp.eq.s32.totalorder %v2349_v33, %v10203_v14 }
 0x29f   :  { %7030 = vrot.lane.b32.xlu1 %v8754_v63, %s7394_s26  ;;  %v2335_v63 = vadd.s32 280, %v10202_v44  ;;  %vm2407_vm1 = vcmp.eq.s32.totalorder %v2334_v61, %v10203_v14  ;;  %6344 = vmatprep.subr.msk.bf16.mxu1 %vm6181_vm0, %v10204_v21  ;;  %vm6135_vm12 = vmpackc.low %vm2374_vm15, %vm2373_vm14  ;;  %vm10206_vm14 = vcmp.lt.s32.totalorder %v10205_v7, 127 }
 0x2a0   :  { %vm6183_vm3 = vmpackc.low %vm2422_vm4, %vm2421_vm8  ;;  %vm10214_vm4 = vcmp.lt.s32.totalorder %v10205_v7, 112 }
 0x2a1   :  { %7060 = vrot.lane.b32.xlu0 %v8770_v41, %s7394_s26  ;;  %v2317_v41 = vadd.s32 136, %v10202_v44  ;;  %vm2408_vm5 = vcmp.eq.s32.totalorder %v2335_v63, %v10203_v14 }
 0x2a2   :  { %vm6165_vm6 = vmpackc.low %vm2408_vm5, %vm2407_vm1  ;;  %vm2406_vm1 = vcmp.eq.s32.totalorder %v2333_v20, %v10203_v14 }
 0x2a3   :  { %2693 = vperm.xlu1 %6813, %v6185_v8   ;;  %vm2390_vm10 = vcmp.eq.s32.totalorder %v2317_v41, %v10203_v14  ;;  %6345 = vmatpush3.bf16.msk.msra.mxu1 %vm6165_vm6, %v10204_v21  ;;  %vm6167_vm0 = vmpackc.low %vm2406_vm1, %vm2405_vm11 }
 0x2a4   :  { %vm6151_vm7 = vmpackc.low %vm2390_vm10, %vm2389_vm2  ;;  %6346 = vmatprep.subr.msk.bf16.mxu1 %vm6183_vm3, %v10204_v21 }
 0x2a5   :  { %2698 = vperm.xlu0 %6797, %v6186_v52   ;;  %6324 = vmatprep.subr.msk.bf16.mxu0 %vm6151_vm7, %v10204_v21  ;;  %vm10207_vm5 = vmmov %vm10206_vm14 }
 0x2a6   :  { %6325 = vmatpush3.bf16.msk.msra.mxu0 %vm6135_vm12, %v10204_v21  ;;  %vm10208_vm2 = vmmov %vm10207_vm5 }
 0x2a7   :  { %6347 = vmatpush3.bf16.msk.msra.mxu1 %vm6167_vm0, %v10204_v21  ;;  %vm10209_vm6 = vmmov %vm10208_vm2 }
 0x2a8   :  { %vm10210_vm10 = vmmov %vm10208_vm2 }
 0x2a9   :  { %vm10211_vm15 = vmmov %vm10208_vm2 }
 0x2aa   :  { %vm10212_vm8 = vmmov %vm10208_vm2 }
 0x2ab   :  { %vm10213_vm7 = vmmov %vm10208_vm2 }
 0x2ac   :  { %vm10215_vm11 = vmmov %vm10214_vm4 }
 0x2ad   :  { %vm10216_vm12 = vmmov %vm10214_vm4 }
 0x2ae   :  { %vm10217_vm1 = vmmov %vm10214_vm4 }
 0x2af   :  { %vm10218_vm3 = vmmov %vm10217_vm1 }
 0x2b0   :  { %vm10219_vm0 = vmmov %vm10217_vm1 }
 0x2fd   :  { %v7006_v29 = vpop.permute.xlu1 %7005 }
 0x2fe   :  { %v7008_v34 = vunpack.i.h.bf16 %v7006_v29  ;;  %v7007_v14 = vunpack.i.l.bf16 %v7006_v29 }
 0x2ff   :  { %v7036_v40 = vpop.permute.xlu0 %7035 }
 0x300   :  { %v7038_v26 = vunpack.i.h.bf16 %v7036_v40  ;;  %v7037_v39 = vunpack.i.l.bf16 %v7036_v40 }
 0x301   :  { %v7011_v48 = vpop.permute.xlu1 %7010 }
 0x302   :  { %v7012_v43 = vunpack.i.l.bf16 %v7011_v48  ;;  %v7013_v57 = vunpack.i.h.bf16 %v7011_v48  ;;  %v2224_v55 = vsel %vm10206_vm14, %v7008_v34, %v7038_v26  ;;  %v2223_v24 = vsel %vm10207_vm5, %v7007_v14, %v7037_v39 }
 0x303   :  { %v7041_v6 = vpop.permute.xlu0 %7040  ;;  %v2279_v53 = vmax.f32 %v2199_v23, %v2224_v55  ;;  %v2275_v52 = vmax.f32 %v2195_v37, %v2223_v24  ;;  %vm10220_vm14 = vcmp.lt.s32.totalorder %v10205_v7, 111 }
 0x304   :  { %v7043_v3 = vunpack.i.h.bf16 %v7041_v6  ;;  %v7042_v50 = vunpack.i.l.bf16 %v7041_v6  ;;  %v2221_v17 = vsel %vm10208_vm2, %v7037_v39, %v7012_v43  ;;  %v2222_v49 = vsel %vm10209_vm6, %v7038_v26, %v7013_v57  ;;  %vm10221_vm5 = vmmov %vm10220_vm14 }
 0x305   :  { %v7016_v22 = vpop.permute.xlu1 %7015  ;;  %v2276_v2 = vmax.f32 %v2196_v16, %v2221_v17  ;;  %v2280_v40 = vmax.f32 %v2200_v36, %v2222_v49  ;;  %vm10222_vm2 = vmmov %vm10219_vm0 }
 0x306   :  { %v2220_v18 = vsel %vm10210_vm10, %v7013_v57, %v7043_v3  ;;  %v2226_v51 = vsel %vm10211_vm15, %v7043_v3, %v7008_v34  ;;  %v2219_v61 = vsel %vm10212_vm8, %v7012_v43, %v7042_v50  ;;  %v2225_v23 = vsel %vm10213_vm7, %v7042_v50, %v7007_v14  ;;  %vm10223_vm6 = vmmov %vm10219_vm0 }
 0x307   :  { %v7046_v9 = vpop.permute.xlu0 %7045  ;;  %v7018_v41 = vunpack.i.h.bf16 %v7016_v22  ;;  %v7017_v59 = vunpack.i.l.bf16 %v7016_v22  ;;  %v2281_v48 = vmax.f32 %v2201_v54, %v2220_v18  ;;  %v2282_v10 = vmax.f32 %v2202_v45, %v2226_v51  ;;  %vm10224_vm10 = vmmov %vm10221_vm5 }
 0x308   :  { %v7048_v8 = vunpack.i.h.bf16 %v7046_v9  ;;  %v7047_v63 = vunpack.i.l.bf16 %v7046_v9  ;;  %v2277_v37 = vmax.f32 %v2197_v4, %v2219_v61  ;;  %v2278_v5 = vmax.f32 %v2198_v56, %v2225_v23  ;;  %vm10225_vm15 = vmmov %vm10221_vm5 }
 0x309   :  { %v7021_v19 = vpop.permute.xlu1 %7020  ;;  %vm10226_vm8 = vmmov %vm10221_vm5 }
 0x30a   :  { %v7023_v33 = vunpack.i.h.bf16 %v7021_v19  ;;  %v7022_v58 = vunpack.i.l.bf16 %v7021_v19  ;;  %v2248_v16 = vsel %vm10214_vm4, %v7018_v41, %v7048_v8  ;;  %v2247_v26 = vsel %vm10215_vm11, %v7017_v59, %v7047_v63  ;;  %vm10227_vm7 = vmmov %vm10221_vm5 }
 0x30b   :  { %v7051_v46 = vpop.permute.xlu0 %7050  ;;  %vm10228_vm4 = vmmov %vm10221_vm5 }
 0x30c   :  { %v7053_v20 = vunpack.i.h.bf16 %v7051_v46  ;;  %v7052_v11 = vunpack.i.l.bf16 %v7051_v46  ;;  %v2245_v15 = vsel %vm10216_vm12, %v7047_v63, %v7022_v58  ;;  %v2246_v38 = vsel %vm10217_vm1, %v7048_v8, %v7023_v33  ;;  %vm10229_vm11 = vmmov %vm10228_vm4 }
 0x30d   :  { %v7026_v29 = vpop.permute.xlu1 %7025  ;;  %vm7397_vm12 = vmmov 0  }
 0x30e   :  { %v7028_v6 = vunpack.i.h.bf16 %v7026_v29  ;;  %v7027_v62 = vunpack.i.l.bf16 %v7026_v29  ;;  %v2244_v4 = vsel %vm10218_vm3, %v7023_v33, %v7053_v20  ;;  %v2250_v60 = vsel %vm10219_vm0, %v7053_v20, %v7018_v41 }
 0x30f   :  { %v7056_v36 = vpop.permute.xlu0 %7055  ;;  %v2243_v57 = vsel %vm10222_vm2, %v7022_v58, %v7052_v11  ;;  %v2249_v3 = vsel %vm10223_vm6, %v7052_v11, %v7017_v59 }
 0x310   :  { %v7058_v54 = vunpack.i.h.bf16 %v7056_v36  ;;  %v7057_v34 = vunpack.i.l.bf16 %v7056_v36 }
 0x311   :  { %v7031_v56 = vpop.permute.xlu1 %7030 }
 0x312   :  { %v2272_v45 = vsel %vm10220_vm14, %v7028_v6, %v7058_v54  ;;  %v2271_v39 = vsel %vm10221_vm5, %v7027_v62, %v7057_v34  ;;  %v7033_v43 = vunpack.i.h.bf16 %v7031_v56  ;;  %v7032_v22 = vunpack.i.l.bf16 %v7031_v56 }
 0x313   :  { %v2283_v14 = vmax.f32 %v2247_v26, %v2271_v39  ;;  %v2287_v55 = vmax.f32 %v2248_v16, %v2272_v45  ;;  %v7061_v50 = vpop.permute.xlu0 %7060 }
 0x314   :  { %v2269_v9 = vsel %vm10224_vm10, %v7057_v34, %v7032_v22  ;;  %v2270_v24 = vsel %vm10225_vm15, %v7058_v54, %v7033_v43  ;;  %v7063_v17 = vunpack.i.h.bf16 %v7061_v50  ;;  %v7062_v19 = vunpack.i.l.bf16 %v7061_v50 }
 0x315   :  { %v2291_v49 = vmax.f32 %v2275_v52, %v2283_v14  ;;  %v2295_v18 = vmax.f32 %v2279_v53, %v2287_v55  ;;  %v2284_v51 = vmax.f32 %v2245_v15, %v2269_v9  ;;  %v2288_v61 = vmax.f32 %v2246_v38, %v2270_v24 }
 0x316   :  { %v2268_v8 = vsel %vm10226_vm8, %v7033_v43, %v7063_v17  ;;  %v2274_v63 = vsel %vm10227_vm7, %v7063_v17, %v7028_v6  ;;  %v2267_v46 = vsel %vm10228_vm4, %v7032_v22, %v7062_v19  ;;  %v2273_v23 = vsel %vm10229_vm11, %v7062_v19, %v7027_v62 }
 0x317   :  { %v2285_v41 = vmax.f32 %v2243_v57, %v2267_v46  ;;  %v2286_v59 = vmax.f32 %v2249_v3, %v2273_v23  ;;  %v2289_v33 = vmax.f32 %v2244_v4, %v2268_v8  ;;  %v2290_v58 = vmax.f32 %v2250_v60, %v2274_v63  ;;  %v7288_v57 = vld [vmem:[#allocation2 + $0x90] sm:$0x3f]   ;;  %v6208_v8 = vld [vmem:[%s9794_s2 + $0x38] sm:$0xf] }
 0x318   :  { %v2292_v52 = vmax.f32 %v2276_v2, %v2284_v51  ;;  %v2296_v53 = vmax.f32 %v2280_v40, %v2288_v61  ;;  %v2598_v36 = vpack.c.bf16 %v2295_v18, %v2291_v49  ;;  %v7396_v34 = vmov 0.0   ;;  %v6207_v63 = vld [vmem:[%s9794_s2 + $0x30] sm:$0xff] }
 0x319   :  { %v2293_v20 = vmax.f32 %v2277_v37, %v2285_v41  ;;  %v2297_v29 = vmax.f32 %v2281_v48, %v2289_v33  ;;  %v2294_v16 = vmax.f32 %v2278_v5, %v2286_v59  ;;  %v2298_v26 = vmax.f32 %v2282_v10, %v2290_v58  ;;  %6460 = vmatprep.subr.bf16.mxu0 %v7396_v34 }
 0x31a   :  { %v2599_v11 = vpack.c.bf16 %v2296_v53, %v2292_v52  ;;  %6466 = vmatprep.subr.bf16.mxu1 %v7396_v34  ;;  %v2756_v46 = vshra.s32 %v10205_v7, 3  ;;  %v2755_v23 = vand.u32 7, %v10205_v7  ;;  %v7298_v52 = vld [vmem:[#allocation2 + $0x128] sm:$0x3f]  }
 0x31b   :  { %v2601_v54 = vpack.c.bf16 %v2298_v26, %v2294_v16  ;;  %v2600_v6 = vpack.c.bf16 %v2297_v29, %v2293_v20 }
 0x31c   :  { %2634 = vmatprep.mubr.bf16.mxu0 %v2599_v11  ;;  %v2757_v41 = vand.u32 7, %v2756_v46  ;;  %v9076_v59 = vadd.s32 4294967295, %v2755_v23  ;;  %v9079_v58 = vadd.s32 1, %v2755_v23 }
 0x31d   :  { %2635 = vmatmul.mubr.bf16.vlgmr.msra.gmra.mxu0 %v2598_v36  ;;  %2675 = vmatprep.mubr.bf16.mxu1 %v2601_v54 }
 0x31e   :  { %2676 = vmatmul.mubr.bf16.vlgmr.msra.gmra.mxu1 %v2600_v6  ;;  %6462 = vmatprep.mubr.msk.bf16.mxu0 %vm7397_vm12, %v7396_v34  ;;  %v2694_v14 = vpop.permute.xlu1 %2693  ;;  %v2766_v33 = vadd.s32 4294967295, %v2757_v41  ;;  %vm2763_vm1 = vcmp.ge.s32.totalorder %v9076_v59, 0  ;;  %vm2976_vm5 = vcmp.ge.s32.totalorder %v2757_v41, 0  ;;  %vm2906_vm6 = vcmp.lt.s32.totalorder %v9079_v58, 8 }
 0x31f   :  { %6468 = vmatprep.mubr.msk.bf16.mxu1 %vm7397_vm12, %v7396_v34  ;;  %vm2977_vm15 = vmand %vm2763_vm1, %vm2976_vm5  ;;  %vm2978_vm8 = vcmp.lt.s32.totalorder %v2757_v41, 8 }
 0x320   :  { %v2699_v9 = vpop.permute.xlu0 %2698  ;;  %vm2767_vm3 = vcmp.ge.s32.totalorder %v2766_v33, 0  ;;  %vm2769_vm14 = vcmp.lt.s32.totalorder %v2766_v33, 8  ;;  %vm9111_vm4 = vmand %vm2977_vm15, %vm2978_vm8 }
 0x321   :  { %vm2768_vm0 = vmand %vm2763_vm1, %vm2767_vm3 }
 0x322   :  { %vm9085_vm2 = vmand %vm2768_vm0, %vm2769_vm14 }
 0x323   :  { %vm9092_vm10 = vmand %vm2767_vm3, %vm2769_vm14 }
 0x324   :  { %vm2908_vm7 = vmand %vm2906_vm6, %vm2767_vm3 }
 0x325   :  { %vm9116_vm11 = vmand %vm2908_vm7, %vm2769_vm14 }
 0x326   :  { %vm3104_vm3 = vmand %vm2906_vm6, %vm2976_vm5 }
 0x327   :  { %vm9136_vm0 = vmand %vm3104_vm3, %vm2978_vm8 }
 0x3dd   :  { %v6326_v2 = vpop.f32.mrf.mxu0 }
 0x3de   :  { %v6348_v40 = vpop.f32.mrf.mxu1 }
 0x3df   :  { %v6327_v48 = vpop.f32.mrf.mxu0 }
 0x3e0   :  { %v6349_v10 = vpop.f32.mrf.mxu1  ;;  %v6328_v4 = vadd.f32 %v6327_v48, %v6326_v2 }
 0x3e1   :  { %v6329_v37 = vpop.f32.mrf.mxu0  ;;  %v6350_v62 = vadd.f32 %v6349_v10, %v6348_v40 }
 0x3e2   :  { %v6351_v5 = vpop.f32.mrf.mxu1 }
 0x3e3   :  { %v6330_v15 = vpop.f32.mrf.mxu0  ;;  %v2678_v45 = vadd.f32 %v6350_v62, %v6328_v4 }
 0x3e4   :  { %v6352_v38 = vpop.f32.mrf.mxu1  ;;  %v6331_v60 = vadd.f32 %v6330_v15, %v6329_v37 }
 0x3e5   :  { %v6353_v56 = vadd.f32 %v6352_v38, %v6351_v5  ;;  %v9120_v38 = vadd.s32 1, %v2757_v41 }
 0x3e7   :  { %v2681_v39 = vadd.f32 %v6353_v56, %v6331_v60  ;;  %vm3173_vm14 = vcmp.ge.s32.totalorder %v9120_v38, 0  ;;  %vm3175_vm15 = vcmp.lt.s32.totalorder %v9120_v38, 8 }
 0x3e8   :  { %vm3174_vm5 = vmand %vm2763_vm1, %vm3173_vm14 }
 0x3e9   :  { %v2687_v43 = vpack.c.bf16 %v2681_v39, %v2678_v45  ;;  %vm9164_vm1 = vmand %vm3174_vm5, %vm3175_vm15 }
 0x3ea   :  { %vm9172_vm8 = vmand %vm3173_vm14, %vm3175_vm15 }
 0x3eb   :  { %v2710_v22 = vsel %vm882_vm13, %v2687_v43, 0  ;;  %vm3311_vm7 = vmand %vm2906_vm6, %vm3173_vm14 }
 0x3ec   :  { %6461 = vmatpush3.bf16.msra.mxu0 %v2710_v22  ;;  %v7289_v22 = vld [vmem:[#allocation2 + $0xe0] sm:$0x3f]   ;;  %vm9201_vm3 = vmand %vm3311_vm7, %vm3175_vm15 }
 0x3ed   :  { %6472 = vmatprep.subr.bf16.mxu0 %v7396_v34 }
 0x3ef   :  { %6463 = vmatmul.mubr.msk.bf16.vlgmr.msra.gmra.mxu0 %vm878_vm9, %v7288_v57  ;;  %v7290_v57 = vld [vmem:[#allocation2 + $0xd8] sm:$0x3f]  }
 0x3f0   :  { %6474 = vmatprep.mubr.msk.bf16.mxu0 %vm7397_vm12, %v7396_v34 }
 0x4af   :  { %v2746_v3 = vpop.f32.mrf.mxu0 }
 0x4b0   :  { %v2747_v50 = vadd.f32 %v2746_v3, %v2694_v14 }
 0x4b1   :  { %v6464_v55 = vpop.f32.mrf.mxu0 }
 0x4b2   :  { %v2753_v49 = vmax.f32 %v2747_v50, 0.0 }
 0x4b3   :  { %v2749_v24 = vpop.f32.mrf.mxu0 }
 0x4b4   :  { %v2750_v17 = vadd.f32 %v2749_v24, %v2699_v9 }
 0x4b5   :  { %v6465_v19 = vpop.f32.mrf.mxu0 }
 0x4b6   :  { %v2754_v18 = vmax.f32 %v2750_v17, 0.0 }
 0x4b8   :  { %v7069_v51 = vpack.i.bf16 %v2754_v18, %v2753_v49  ;;  %v9060_v61 = vpack.c.bf16 %v2754_v18, %v2753_v49 }
 0x4ba   :  { %7070 = vrot.lane.b32.xlu0 %v7069_v51, %s7398_s12  ;;  %7065 = vrot.lane.b32.xlu1 %v7069_v51, %s7399_s13 }
 0x4be   :  { %7080 = vrot.lane.b32.xlu0 %v7069_v51, %s7390_s22  ;;  %7075 = vrot.lane.b32.xlu1 %v7069_v51, %s7400_s14 }
 0x4c2   :  { %7090 = vrot.lane.b32.xlu0 %v7069_v51, %s7401_s15  ;;  %7085 = vrot.lane.b32.xlu1 %v7069_v51, %s7391_s23 }
 0x4c6   :  { %7100 = vrot.lane.b32.xlu0 %v7069_v51, %s7402_s17  ;;  %7095 = vrot.lane.b32.xlu1 %v7069_v51, %s7403_s18 }
 0x4ca   :  { %3385 = vperm.xlu0 %6797, %v6208_v8   ;;  %3380 = vperm.xlu1 %6813, %v6207_v63  }
 0x52c   :  { %v7071_v20 = vpop.permute.xlu0 %7070  ;;  %v7066_v29 = vpop.permute.xlu1 %7065 }
 0x52d   :  { %v7073_v16 = vunpack.i.h.bf16 %v7071_v20  ;;  %v7072_v26 = vunpack.i.l.bf16 %v7071_v20  ;;  %v7068_v11 = vunpack.i.h.bf16 %v7066_v29  ;;  %v7067_v36 = vunpack.i.l.bf16 %v7066_v29  ;;  %v7291_v20 = vld [vmem:[#allocation2 + $0xe8] sm:$0x3f]   ;;  %v7292_v29 = vld [vmem:[#allocation2 + $0xf0] sm:$0x3f]  }
 0x52f   :  { %v2774_v54 = vsel %vm9085_vm2, %v7073_v16, 0.0  ;;  %v2773_v6 = vsel %vm9085_vm2, %v7072_v26, 0.0  ;;  %v2791_v2 = vsel %vm9092_vm10, %v7068_v11, 0.0  ;;  %v2790_v40 = vsel %vm9092_vm10, %v7067_v36, 0.0 }
 0x530   :  { %v2778_v10 = vpack.c.bf16 %v2774_v54, %v2773_v6  ;;  %v2795_v37 = vpack.c.bf16 %v2791_v2, %v2790_v40  ;;  %v7081_v5 = vpop.permute.xlu0 %7080  ;;  %v7076_v15 = vpop.permute.xlu1 %7075  ;;  %v3055_v6 = vsel %vm882_vm13, %v9060_v61, 0 }
 0x531   :  { %v7083_v4 = vunpack.i.h.bf16 %v7081_v5  ;;  %v7082_v60 = vunpack.i.l.bf16 %v7081_v5  ;;  %v7078_v56 = vunpack.i.h.bf16 %v7076_v15  ;;  %v7077_v45 = vunpack.i.l.bf16 %v7076_v15 }
 0x532   :  { %v2805_v39 = vsel %vm882_vm13, %v2795_v37, 0  ;;  %v2857_v43 = vsel %vm882_vm13, %v2778_v10, 0 }
 0x533   :  { %v2983_v3 = vsel %vm9111_vm4, %v7083_v4, 0.0  ;;  %v2982_v14 = vsel %vm9111_vm4, %v7082_v60, 0.0  ;;  %v2913_v55 = vsel %vm9116_vm11, %v7078_v56, 0.0  ;;  %v2912_v50 = vsel %vm9116_vm11, %v7077_v45, 0.0  ;;  %6467 = vmatpush3.bf16.msra.mxu1 %v2805_v39  ;;  %6473 = vmatpush3.bf16.msra.mxu0 %v2857_v43  ;;  %v7293_v60 = vld [vmem:[#allocation2 + $0xf8] sm:$0x3f]  }
 0x534   :  { %v2987_v9 = vpack.c.bf16 %v2983_v3, %v2982_v14  ;;  %v2917_v24 = vpack.c.bf16 %v2913_v55, %v2912_v50  ;;  %v7086_v19 = vpop.permute.xlu1 %7085  ;;  %6478 = vmatprep.subr.bf16.mxu1 %v7396_v34  ;;  %6484 = vmatprep.subr.bf16.mxu0 %v7396_v34  ;;  %v7091_v23 = vpop.permute.xlu0 %7090  ;;  %v7294_v56 = vld [vmem:[#allocation2 + $0x100] sm:$0x3f]   ;;  %v7295_v14 = vld [vmem:[#allocation2 + $0x108] sm:$0x3f]   ;;  %v7296_v55 = vld [vmem:[#allocation2 + $0x110] sm:$0x3f]  }
 0x535   :  { %v7088_v49 = vunpack.i.h.bf16 %v7086_v19  ;;  %v7087_v18 = vunpack.i.l.bf16 %v7086_v19  ;;  %v7093_v16 = vunpack.i.h.bf16 %v7091_v23  ;;  %v7092_v26 = vunpack.i.l.bf16 %v7091_v23 }
 0x536   :  { %6469 = vmatmul.mubr.msk.bf16.vlgmr.msra.gmra.mxu1 %vm878_vm9, %v7289_v22  ;;  %6475 = vmatmul.mubr.msk.bf16.vlgmr.msra.gmra.mxu0 %vm878_vm9, %v7290_v57  ;;  %v2927_v51 = vsel %vm882_vm13, %v2917_v24, 0  ;;  %v2997_v8 = vsel %vm882_vm13, %v2987_v9, 0  ;;  %v7297_v9 = vld [vmem:[#allocation2 + $0x118] sm:$0x3f]  }
 0x537   :  { %v3109_v63 = vsel %vm9136_vm0, %v7088_v49, 0.0  ;;  %v3108_v46 = vsel %vm9136_vm0, %v7087_v18, 0.0  ;;  %6479 = vmatpush3.bf16.msra.mxu1 %v2927_v51  ;;  %6485 = vmatpush3.bf16.msra.mxu0 %v2997_v8  ;;  %v3180_v40 = vsel %vm9164_vm1, %v7093_v16, 0.0  ;;  %v3179_v10 = vsel %vm9164_vm1, %v7092_v26, 0.0 }
 0x538   :  { %v7096_v41 = vpop.permute.xlu1 %7095  ;;  %6480 = vmatprep.mubr.msk.bf16.mxu1 %vm7397_vm12, %v7396_v34  ;;  %6486 = vmatprep.mubr.msk.bf16.mxu0 %vm7397_vm12, %v7396_v34  ;;  %v3113_v33 = vpack.c.bf16 %v3109_v63, %v3108_v46  ;;  %v7101_v15 = vpop.permute.xlu0 %7100  ;;  %v3184_v61 = vpack.c.bf16 %v3180_v40, %v3179_v10 }
 0x539   :  { %6490 = vmatprep.subr.bf16.mxu1 %v7396_v34  ;;  %6496 = vmatprep.subr.bf16.mxu0 %v7396_v34  ;;  %v7098_v11 = vunpack.i.h.bf16 %v7096_v41  ;;  %v7097_v36 = vunpack.i.l.bf16 %v7096_v41  ;;  %v7103_v45 = vunpack.i.h.bf16 %v7101_v15  ;;  %v7102_v39 = vunpack.i.l.bf16 %v7101_v15 }
 0x53a   :  { %v3123_v2 = vsel %vm882_vm13, %v3113_v33, 0  ;;  %v3194_v58 = vsel %vm882_vm13, %v3184_v61, 0 }
 0x53b   :  { %v3248_v37 = vsel %vm9172_vm8, %v7098_v11, 0.0  ;;  %v3247_v5 = vsel %vm9172_vm8, %v7097_v36, 0.0  ;;  %v3316_v57 = vsel %vm9201_vm3, %v7103_v45, 0.0  ;;  %v3315_v3 = vsel %vm9201_vm3, %v7102_v39, 0.0 }
 0x53c   :  { %v3252_v4 = vpack.c.bf16 %v3248_v37, %v3247_v5  ;;  %v3320_v38 = vpack.c.bf16 %v3316_v57, %v3315_v3 }
 0x53e   :  { %6481 = vmatmul.mubr.msk.bf16.vlgmr.msra.gmra.mxu1 %vm878_vm9, %v7291_v20  ;;  %6487 = vmatmul.mubr.msk.bf16.vlgmr.msra.gmra.mxu0 %vm878_vm9, %v7292_v29  ;;  %v3262_v22 = vsel %vm882_vm13, %v3252_v4, 0  ;;  %v3330_v50 = vsel %vm882_vm13, %v3320_v38, 0 }
 0x53f   :  { %6491 = vmatpush3.bf16.msra.mxu1 %v3055_v6  ;;  %6497 = vmatpush3.bf16.msra.mxu0 %v3123_v2 }
 0x540   :  { %6498 = vmatprep.mubr.msk.bf16.mxu0 %vm7397_vm12, %v7396_v34  ;;  %6492 = vmatprep.mubr.msk.bf16.mxu1 %vm7397_vm12, %v7396_v34 }
 0x541   :  { %6502 = vmatprep.subr.bf16.mxu1 %v7396_v34  ;;  %6508 = vmatprep.subr.bf16.mxu0 %v7396_v34 }
 0x546   :  { %6493 = vmatmul.mubr.msk.bf16.vlgmr.msra.gmra.mxu1 %vm878_vm9, %v7293_v60  ;;  %6499 = vmatmul.mubr.msk.bf16.vlgmr.msra.gmra.mxu0 %vm878_vm9, %v7294_v56 }
 0x547   :  { %6503 = vmatpush3.bf16.msra.mxu1 %v3194_v58  ;;  %6509 = vmatpush3.bf16.msra.mxu0 %v3262_v22 }
 0x548   :  { %6504 = vmatprep.mubr.msk.bf16.mxu1 %vm7397_vm12, %v7396_v34  ;;  %6510 = vmatprep.mubr.msk.bf16.mxu0 %vm7397_vm12, %v7396_v34 }
 0x549   :  { %6514 = vmatprep.subr.bf16.mxu1 %v7396_v34  ;;  %6520 = vmatprep.subr.bf16.mxu0 %v7396_v34 }
 0x54e   :  { %6505 = vmatmul.mubr.msk.bf16.vlgmr.msra.gmra.mxu1 %vm878_vm9, %v7295_v14  ;;  %6511 = vmatmul.mubr.msk.bf16.vlgmr.msra.gmra.mxu0 %vm878_vm9, %v7296_v55 }
 0x54f   :  { %6515 = vmatpush3.bf16.msra.mxu1 %v3330_v50  ;;  %6516 = vmatprep.mubr.msk.bf16.mxu1 %vm7397_vm12, %v7396_v34 }
 0x550   :  { %6526 = vmatprep.subr.bf16.mxu1 %v7396_v34  ;;  %6522 = vmatprep.mubr.msk.bf16.mxu0 %vm7397_vm12, %v7396_v34 }
 0x556   :  { %6517 = vmatmul.mubr.msk.bf16.vlgmr.msra.gmra.mxu1 %vm878_vm9, %v7297_v9 }
 0x557   :  { %6528 = vmatprep.mubr.msk.bf16.mxu1 %vm7397_vm12, %v7396_v34 }
 0x5f6   :  { %v2841_v24 = vpop.f32.mrf.mxu1  ;;  %v2893_v19 = vpop.f32.mrf.mxu0 }
 0x5f7   :  { %v2894_v26 = vadd.f32 %v2893_v19, %v2841_v24 }
 0x5f8   :  { %v6470_v49 = vpop.f32.mrf.mxu1  ;;  %v6476_v18 = vpop.f32.mrf.mxu0 }
 0x5fa   :  { %v2844_v51 = vpop.f32.mrf.mxu1  ;;  %v2896_v8 = vpop.f32.mrf.mxu0 }
 0x5fb   :  { %v2897_v10 = vadd.f32 %v2896_v8, %v2844_v51 }
 0x5fc   :  { %v6471_v63 = vpop.f32.mrf.mxu1  ;;  %v6477_v46 = vpop.f32.mrf.mxu0 }
 0x5fe   :  { %v2963_v23 = vpop.f32.mrf.mxu1  ;;  %v3033_v41 = vpop.f32.mrf.mxu0 }
 0x5ff   :  { %v2970_v6 = vadd.f32 %v2963_v23, %v2894_v26  ;;  %v3386_v26 = vpop.permute.xlu0 %3385 }
 0x600   :  { %v6482_v33 = vpop.f32.mrf.mxu1  ;;  %v6488_v20 = vpop.f32.mrf.mxu0 }
 0x601   :  { %v3040_v15 = vadd.f32 %v3033_v41, %v2970_v6  ;;  %v3381_v33 = vpop.permute.xlu1 %3380 }
 0x602   :  { %v2966_v29 = vpop.f32.mrf.mxu1  ;;  %v3036_v16 = vpop.f32.mrf.mxu0 }
 0x603   :  { %v2971_v61 = vadd.f32 %v2966_v29, %v2897_v10 }
 0x604   :  { %v6483_v11 = vpop.f32.mrf.mxu1  ;;  %v6489_v36 = vpop.f32.mrf.mxu0 }
 0x605   :  { %v3041_v58 = vadd.f32 %v3036_v16, %v2971_v61 }
 0x606   :  { %v3091_v2 = vpop.f32.mrf.mxu1  ;;  %v3159_v40 = vpop.f32.mrf.mxu0 }
 0x607   :  { %v3098_v56 = vadd.f32 %v3091_v2, %v3040_v15 }
 0x608   :  { %v6494_v37 = vpop.f32.mrf.mxu1  ;;  %v6500_v5 = vpop.f32.mrf.mxu0 }
 0x609   :  { %v3166_v3 = vadd.f32 %v3159_v40, %v3098_v56  ;;  %v6228_v37 = vld [vmem:[%s9794_s2 + $0x48] sm:$0xf]  ;;  %v6227_v5 = vld [vmem:[%s9794_s2 + $0x40] sm:$0xff] }
 0x60a   :  { %v3094_v4 = vpop.f32.mrf.mxu1  ;;  %v3162_v60 = vpop.f32.mrf.mxu0 }
 0x60b   :  { %v3099_v38 = vadd.f32 %v3094_v4, %v3041_v58 }
 0x60c   :  { %v6495_v45 = vpop.f32.mrf.mxu1  ;;  %v6501_v39 = vpop.f32.mrf.mxu0 }
 0x60d   :  { %v3167_v19 = vadd.f32 %v3162_v60, %v3099_v38 }
 0x60e   :  { %v3230_v22 = vpop.f32.mrf.mxu1  ;;  %v3298_v57 = vpop.f32.mrf.mxu0 }
 0x60f   :  { %v3237_v50 = vadd.f32 %v3230_v22, %v3166_v3 }
 0x610   :  { %v6506_v14 = vpop.f32.mrf.mxu1  ;;  %v6512_v55 = vpop.f32.mrf.mxu0 }
 0x611   :  { %v3305_v51 = vadd.f32 %v3298_v57, %v3237_v50 }
 0x612   :  { %v3233_v9 = vpop.f32.mrf.mxu1  ;;  %v3301_v24 = vpop.f32.mrf.mxu0 }
 0x613   :  { %v3238_v8 = vadd.f32 %v3233_v9, %v3167_v19 }
 0x614   :  { %v6507_v49 = vpop.f32.mrf.mxu1  ;;  %v6513_v18 = vpop.f32.mrf.mxu0 }
 0x615   :  { %v3306_v41 = vadd.f32 %v3301_v24, %v3238_v8 }
 0x616   :  { %v3366_v63 = vpop.f32.mrf.mxu1 }
 0x617   :  { %v3373_v46 = vadd.f32 %v3366_v63, %v3305_v51  ;;  %v7299_v51 = vld [vmem:[#allocation2 + $0x120] sm:$0x3f]  }
 0x618   :  { %v6518_v23 = vpop.f32.mrf.mxu1 }
 0x619   :  { %v3388_v29 = vadd.f32 %v3381_v33, %v3373_v46 }
 0x61a   :  { %v3369_v20 = vpop.f32.mrf.mxu1 }
 0x61b   :  { %v3374_v16 = vadd.f32 %v3369_v20, %v3306_v41  ;;  %v3390_v6 = vmax.f32 %v3388_v29, 0.0 }
 0x61c   :  { %v6519_v11 = vpop.f32.mrf.mxu1 }
 0x61d   :  { %v3389_v36 = vadd.f32 %v3386_v26, %v3374_v16 }
 0x61f   :  { %v3391_v2 = vmax.f32 %v3389_v36, 0.0 }
 0x621   :  { %v7109_v40 = vpack.i.bf16 %v3391_v2, %v3390_v6  ;;  %v9232_v10 = vpack.c.bf16 %v3391_v2, %v3390_v6  ;;  %v7300_v2 = vld [vmem:[#allocation2 + $0x130] sm:$0x3f]  }
 0x623   :  { %7110 = vrot.lane.b32.xlu0 %v7109_v40, %s7398_s12  ;;  %7105 = vrot.lane.b32.xlu1 %v7109_v40, %s7399_s13 }
 0x627   :  { %7120 = vrot.lane.b32.xlu0 %v7109_v40, %s7390_s22  ;;  %7115 = vrot.lane.b32.xlu1 %v7109_v40, %s7400_s14 }
 0x62b   :  { %7130 = vrot.lane.b32.xlu0 %v7109_v40, %s7401_s15  ;;  %7125 = vrot.lane.b32.xlu1 %v7109_v40, %s7391_s23 }
 0x62f   :  { %7140 = vrot.lane.b32.xlu0 %v7109_v40, %s7402_s17  ;;  %7135 = vrot.lane.b32.xlu1 %v7109_v40, %s7403_s18  ;;  %v7301_v40 = vld [vmem:[#allocation2 + $0x138] sm:$0x3f]  }
 0x633   :  { %3968 = vperm.xlu0 %6797, %v6228_v37   ;;  %3963 = vperm.xlu1 %6813, %v6227_v5  }
 0x695   :  { %v7111_v15 = vpop.permute.xlu0 %7110  ;;  %v7106_v61 = vpop.permute.xlu1 %7105 }
 0x696   :  { %v7113_v4 = vunpack.i.h.bf16 %v7111_v15  ;;  %v7112_v60 = vunpack.i.l.bf16 %v7111_v15  ;;  %v7108_v56 = vunpack.i.h.bf16 %v7106_v61  ;;  %v7107_v45 = vunpack.i.l.bf16 %v7106_v61 }
 0x697   :  { %v3657_v61 = vsel %vm882_vm13, %v9232_v10, 0 }
 0x698   :  { %v3397_v39 = vsel %vm9085_vm2, %v7113_v4, 0.0  ;;  %v3396_v58 = vsel %vm9085_vm2, %v7112_v60, 0.0  ;;  %v3407_v22 = vsel %vm9092_vm10, %v7108_v56, 0.0  ;;  %v3406_v57 = vsel %vm9092_vm10, %v7107_v45, 0.0 }
 0x699   :  { %v3401_v3 = vpack.c.bf16 %v3397_v39, %v3396_v58  ;;  %v3411_v38 = vpack.c.bf16 %v3407_v22, %v3406_v57  ;;  %v7121_v14 = vpop.permute.xlu0 %7120  ;;  %v7116_v55 = vpop.permute.xlu1 %7115  ;;  %v7302_v22 = vld [vmem:[#allocation2 + $0x140] sm:$0x3f]   ;;  %v7303_v57 = vld [vmem:[#allocation2 + $0x148] sm:$0x3f]   ;;  %vm4016_vm10 = vcmp.lt.s32.totalorder %v10205_v7, 32 }
 0x69a   :  { %v7123_v50 = vunpack.i.h.bf16 %v7121_v14  ;;  %v7122_v9 = vunpack.i.l.bf16 %v7121_v14  ;;  %v7118_v24 = vunpack.i.h.bf16 %v7116_v55  ;;  %v7117_v19 = vunpack.i.l.bf16 %v7116_v55 }
 0x69b   :  { %v3421_v49 = vsel %vm882_vm13, %v3411_v38, 0  ;;  %v3473_v18 = vsel %vm882_vm13, %v3401_v3, 0 }
 0x69c   :  { %v3585_v8 = vsel %vm9111_vm4, %v7123_v50, 0.0  ;;  %v3584_v53 = vsel %vm9111_vm4, %v7122_v9, 0.0  ;;  %v3521_v63 = vsel %vm9116_vm11, %v7118_v24, 0.0  ;;  %v3520_v46 = vsel %vm9116_vm11, %v7117_v19, 0.0  ;;  %6521 = vmatpush3.bf16.msra.mxu0 %v3421_v49  ;;  %6527 = vmatpush3.bf16.msra.mxu1 %v3473_v18  ;;  %v7304_v24 = vld [vmem:[#allocation2 + $0x150] sm:$0x3f]  }
 0x69d   :  { %v3589_v23 = vpack.c.bf16 %v3585_v8, %v3584_v53  ;;  %v3525_v41 = vpack.c.bf16 %v3521_v63, %v3520_v46  ;;  %v7126_v33 = vpop.permute.xlu1 %7125  ;;  %6532 = vmatprep.subr.bf16.mxu0 %v7396_v34  ;;  %6538 = vmatprep.subr.bf16.mxu1 %v7396_v34  ;;  %v7131_v11 = vpop.permute.xlu0 %7130  ;;  %v7305_v19 = vld [vmem:[#allocation2 + $0x158] sm:$0x3f]   ;;  %v7306_v49 = vld [vmem:[#allocation2 + $0x160] sm:$0x3f]  }
 0x69e   :  { %v7128_v20 = vunpack.i.h.bf16 %v7126_v33  ;;  %v7127_v29 = vunpack.i.l.bf16 %v7126_v33  ;;  %v7133_v37 = vunpack.i.h.bf16 %v7131_v11  ;;  %v7132_v17 = vunpack.i.l.bf16 %v7131_v11  ;;  %v10246_v18 = vld [vmem:[#allocation11_spill] sm:$0xff]  ;;  %v10248_v33 = vld [vmem:[#allocation18_spill] sm:$0xff] }
 0x69f   :  { %6523 = vmatmul.mubr.msk.bf16.vlgmr.msra.gmra.mxu0 %vm878_vm9, %v7298_v52  ;;  %6529 = vmatmul.mubr.msk.bf16.vlgmr.msra.gmra.mxu1 %vm878_vm9, %v7299_v51  ;;  %v3535_v48 = vsel %vm882_vm13, %v3525_v41, 0  ;;  %v3599_v62 = vsel %vm882_vm13, %v3589_v23, 0  ;;  %v3994_v52 = vshra.s32 %v10246_v18, 2  ;;  %v10247_v51 = vld [vmem:[#allocation10_spill] sm:$0xff]  ;;  %v3997_v63 = vand.u32 3, %v10246_v18 }
 0x6a0   :  { %v3707_v16 = vsel %vm9136_vm0, %v7128_v20, 0.0  ;;  %v3706_v26 = vsel %vm9136_vm0, %v7127_v29, 0.0  ;;  %6533 = vmatpush3.bf16.msra.mxu0 %v3535_v48  ;;  %6539 = vmatpush3.bf16.msra.mxu1 %v3599_v62  ;;  %v3771_v60 = vsel %vm9164_vm1, %v7133_v37, 0.0  ;;  %v3770_v56 = vsel %vm9164_vm1, %v7132_v17, 0.0  ;;  %v10249_v20 = vld [vmem:[#allocation14_spill] sm:$0xff] }
 0x6a1   :  { %v7136_v36 = vpop.permute.xlu1 %7135  ;;  %6534 = vmatprep.mubr.msk.bf16.mxu0 %vm7397_vm12, %v7396_v34  ;;  %6540 = vmatprep.mubr.msk.bf16.mxu1 %vm7397_vm12, %v7396_v34  ;;  %v3711_v6 = vpack.c.bf16 %v3707_v16, %v3706_v26  ;;  %v7141_v58 = vpop.permute.xlu0 %7140  ;;  %v3775_v59 = vpack.c.bf16 %v3771_v60, %v3770_v56  ;;  %v3993_v8 = vmul.u32 64, %v10247_v51  ;;  %v3995_v53 = vmul.u32 16, %v3994_v52 }
 0x6a2   :  { %6544 = vmatprep.subr.bf16.mxu0 %v7396_v34  ;;  %6550 = vmatprep.subr.bf16.mxu1 %v7396_v34  ;;  %v7138_v5 = vunpack.i.h.bf16 %v7136_v36  ;;  %v7137_v15 = vunpack.i.l.bf16 %v7136_v36  ;;  %v7143_v3 = vunpack.i.h.bf16 %v7141_v58  ;;  %v7142_v54 = vunpack.i.l.bf16 %v7141_v58 }
 0x6a3   :  { %v3721_v4 = vsel %vm882_vm13, %v3711_v6, 0  ;;  %v3785_v38 = vsel %vm882_vm13, %v3775_v59, 0  ;;  %v3996_v46 = vadd.s32 %v3995_v53, %v3993_v8  ;;  %v3998_v23 = vmul.u32 2, %v3997_v63 }
 0x6a4   :  { %v3835_v45 = vsel %vm9172_vm8, %v7138_v5, 0.0  ;;  %v3834_v39 = vsel %vm9172_vm8, %v7137_v15, 0.0  ;;  %v3899_v55 = vsel %vm9201_vm3, %v7143_v3, 0.0  ;;  %v3898_v50 = vsel %vm9201_vm3, %v7142_v54, 0.0 }
 0x6a5   :  { %v3839_v10 = vpack.c.bf16 %v3835_v45, %v3834_v39  ;;  %v3903_v9 = vpack.c.bf16 %v3899_v55, %v3898_v50  ;;  %v9327_v41 = vadd.s32 %v3998_v23, %v3996_v46 }
 0x6a7   :  { %6535 = vmatmul.mubr.msk.bf16.vlgmr.msra.gmra.mxu0 %vm878_vm9, %v7300_v2  ;;  %6541 = vmatmul.mubr.msk.bf16.vlgmr.msra.gmra.mxu1 %vm878_vm9, %v7301_v40  ;;  %v3849_v14 = vsel %vm882_vm13, %v3839_v10, 0  ;;  %v3913_v43 = vsel %vm882_vm13, %v3903_v9, 0  ;;  %vm4014_vm2 = vcmp.eq.s32.totalorder %v10248_v33, %v9327_v41  ;;  %vm4015_vm6 = vcmp.eq.s32.totalorder %v10249_v20, %v9327_v41 }
 0x6a8   :  { %6545 = vmatpush3.bf16.msra.mxu0 %v3657_v61  ;;  %6551 = vmatpush3.bf16.msra.mxu1 %v3721_v4  ;;  %vm4031_vm4 = vmand %vm4014_vm2, %vm4016_vm10  ;;  %vm4012_vm11 = vcmp.eq.s32.totalorder %v8713_v25, %v9327_v41  ;;  %vm4013_vm14 = vcmp.eq.s32.totalorder %v8727_v30, %v9327_v41  ;;  %vm4010_vm1 = vcmp.eq.s32.totalorder %v8781_v12, %v9327_v41 }
 0x6a9   :  { %6552 = vmatprep.mubr.msk.bf16.mxu1 %vm7397_vm12, %v7396_v34  ;;  %6546 = vmatprep.mubr.msk.bf16.mxu0 %vm7397_vm12, %v7396_v34  ;;  %vm4032_vm0 = vmand %vm4015_vm6, %vm4016_vm10  ;;  %vm4011_vm7 = vcmp.eq.s32.totalorder %v8784_v0, %v9327_v41  ;;  %vm4008_vm6 = vcmp.eq.s32.totalorder %v8809_v27, %v9327_v41 }
 0x6aa   :  { %6556 = vmatprep.subr.bf16.mxu0 %v7396_v34  ;;  %6562 = vmatprep.subr.bf16.mxu1 %v7396_v34  ;;  %vm6229_vm5 = vmpackc.low %vm4032_vm0, %vm4031_vm4 }
 0x6ab   :  { %vm4029_vm15 = vmand %vm4012_vm11, %vm4016_vm10  ;;  %vm4009_vm11 = vcmp.eq.s32.totalorder %v8812_v35, %v9327_v41 }
 0x6ac   :  { %vm4030_vm8 = vmand %vm4013_vm14, %vm4016_vm10 }
 0x6ad   :  { %vm6231_vm3 = vmpackc.low %vm4030_vm8, %vm4029_vm15 }
 0x6ae   :  { %vm4027_vm2 = vmand %vm4010_vm1, %vm4016_vm10  ;;  %vm4007_vm1 = vcmp.eq.s32.totalorder %v8847_v47, %v9327_v41  ;;  %v3964_v46 = vpop.permute.xlu1 %3963 }
 0x6af   :  { %6547 = vmatmul.mubr.msk.bf16.vlgmr.msra.gmra.mxu0 %vm878_vm9, %v7302_v22  ;;  %6553 = vmatmul.mubr.msk.bf16.vlgmr.msra.gmra.mxu1 %vm878_vm9, %v7303_v57  ;;  %vm4028_vm4 = vmand %vm4011_vm7, %vm4016_vm10 }
 0x6b0   :  { %6557 = vmatpush3.bf16.msra.mxu0 %v3785_v38  ;;  %6563 = vmatpush3.bf16.msra.mxu1 %v3849_v14  ;;  %vm6233_vm0 = vmpackc.low %vm4028_vm4, %vm4027_vm2  ;;  %vm4005_vm4 = vcmp.eq.s32.totalorder %v8881_v31, %v9327_v41 }
 0x6b1   :  { %6558 = vmatprep.mubr.msk.bf16.mxu0 %vm7397_vm12, %v7396_v34  ;;  %6564 = vmatprep.mubr.msk.bf16.mxu1 %vm7397_vm12, %v7396_v34  ;;  %vm4025_vm14 = vmand %vm4008_vm6, %vm4016_vm10  ;;  %vm4004_vm6 = vcmp.eq.s32.totalorder %v8878_v13, %v9327_v41 }
 0x6b2   :  { %6568 = vmatprep.subr.bf16.mxu0 %v7396_v34  ;;  %6574 = vmatprep.subr.bf16.mxu1 %v7396_v34  ;;  %vm4026_vm15 = vmand %vm4009_vm11, %vm4016_vm10 }
 0x6b3   :  { %vm6235_vm8 = vmpackc.low %vm4026_vm15, %vm4025_vm14  ;;  %vm4003_vm15 = vcmp.eq.s32.totalorder %v8915_v42, %v9327_v41  ;;  %v6246_v42 = vld [vmem:[%s9794_s2 + $0x58] sm:$0xf] }
 0x6b4   :  { %vm4021_vm11 = vmand %vm4004_vm6, %vm4016_vm10 }
 0x6b7   :  { %6559 = vmatmul.mubr.msk.bf16.vlgmr.msra.gmra.mxu0 %vm878_vm9, %v7304_v24  ;;  %6565 = vmatmul.mubr.msk.bf16.vlgmr.msra.gmra.mxu1 %vm878_vm9, %v7305_v19 }
 0x6b8   :  { %6569 = vmatpush3.bf16.msra.mxu0 %v3913_v43  ;;  %6570 = vmatprep.mubr.msk.bf16.mxu0 %vm7397_vm12, %v7396_v34 }
 0x6b9   :  { %6590 = vmatprep.mubr.msk.bf16.mxu1 %vm7397_vm12, %v7396_v34  ;;  %6594 = vmatprep.subr.bf16.mxu0 %v7396_v34 }
 0x6ba   :  { %6575 = vmatpush3.bf16.msk.msra.mxu1 %vm6229_vm5, %v10204_v21  ;;  %vm4006_vm5 = vcmp.eq.s32.totalorder %v8844_v32, %v9327_v41 }
 0x6bb   :  { %6576 = vmatprep.subr.bf16.mxu1 %v7396_v34  ;;  %vm4023_vm7 = vmand %vm4006_vm5, %vm4016_vm10  ;;  %vm4002_vm5 = vcmp.eq.s32.totalorder %v8912_v28, %v9327_v41  ;;  %v6245_v28 = vld [vmem:[%s9794_s2 + $0x50] sm:$0xff] }
 0x6be   :  { %6577 = vmatpush3.bf16.msk.msra.mxu1 %vm6231_vm3, %v10204_v21  ;;  %vm4024_vm3 = vmand %vm4007_vm1, %vm4016_vm10 }
 0x6bf   :  { %6571 = vmatmul.mubr.msk.bf16.vlgmr.msra.gmra.mxu0 %vm878_vm9, %v7306_v49  ;;  %6578 = vmatprep.subr.bf16.mxu1 %v7396_v34  ;;  %vm6237_vm2 = vmpackc.low %vm4024_vm3, %vm4023_vm7  ;;  %vm4001_vm3 = vcmp.eq.s32.totalorder %v8952_v1, %v9327_v41 }
 0x6c0   :  { %6596 = vmatprep.mubr.msk.bf16.mxu0 %vm7397_vm12, %v7396_v34  ;;  %vm4019_vm1 = vmand %vm4002_vm5, %vm4016_vm10 }
 0x6c1   :  { %vm4020_vm7 = vmand %vm4003_vm15, %vm4016_vm10 }
 0x6c2   :  { %6579 = vmatpush3.bf16.msk.msra.mxu1 %vm6233_vm0, %v10204_v21  ;;  %vm4022_vm0 = vmand %vm4005_vm4, %vm4016_vm10 }
 0x6c3   :  { %6580 = vmatprep.subr.bf16.mxu1 %v7396_v34  ;;  %vm6239_vm14 = vmpackc.low %vm4022_vm0, %vm4021_vm11 }
 0x6c4   :  { %vm4018_vm4 = vmand %vm4001_vm3, %vm4016_vm10 }
 0x6c6   :  { %6581 = vmatpush3.bf16.msk.msra.mxu1 %vm6235_vm8, %v10204_v21  ;;  %vm4000_vm8 = vcmp.eq.s32.totalorder %v10202_v44, %v9327_v41 }
 0x6c7   :  { %6582 = vmatprep.subr.bf16.mxu1 %v7396_v34  ;;  %vm4017_vm6 = vmand %vm4000_vm8, %vm4016_vm10 }
 0x6c8   :  { %vm6243_vm11 = vmpackc.low %vm4018_vm4, %vm4017_vm6 }
 0x6ca   :  { %6583 = vmatpush3.bf16.msk.msra.mxu1 %vm6237_vm2, %v10204_v21  ;;  %vm6241_vm2 = vmpackc.low %vm4020_vm7, %vm4019_vm1 }
 0x6cb   :  { %6584 = vmatprep.subr.bf16.mxu1 %v7396_v34 }
 0x6ce   :  { %6585 = vmatpush3.bf16.msk.msra.mxu1 %vm6239_vm14, %v10204_v21 }
 0x6cf   :  { %6586 = vmatprep.subr.bf16.mxu1 %v7396_v34 }
 0x6d2   :  { %6587 = vmatpush3.bf16.msk.msra.mxu1 %vm6241_vm2, %v10204_v21 }
 0x6d3   :  { %6588 = vmatprep.subr.bf16.mxu1 %v7396_v34 }
 0x6d6   :  { %6589 = vmatpush3.bf16.msk.msra.mxu1 %vm6243_vm11, %v10204_v21 }
 0x6d7   :  { %6618 = vmatprep.subr.bf16.mxu1 %v7396_v34 }
 0x75f   :  { %v3457_v25 = vpop.f32.mrf.mxu0  ;;  %v3509_v30 = vpop.f32.mrf.mxu1 }
 0x760   :  { %v3510_v36 = vadd.f32 %v3509_v30, %v3457_v25  ;;  %v3969_v25 = vpop.permute.xlu0 %3968 }
 0x761   :  { %v6524_v12 = vpop.f32.mrf.mxu0  ;;  %v6530_v0 = vpop.f32.mrf.mxu1 }
 0x763   :  { %v3460_v27 = vpop.f32.mrf.mxu0  ;;  %v3512_v35 = vpop.f32.mrf.mxu1 }
 0x764   :  { %v3513_v5 = vadd.f32 %v3512_v35, %v3460_v27 }
 0x765   :  { %v6525_v32 = vpop.f32.mrf.mxu0  ;;  %v6531_v47 = vpop.f32.mrf.mxu1 }
 0x767   :  { %v3571_v29 = vpop.f32.mrf.mxu0  ;;  %v3635_v48 = vpop.f32.mrf.mxu1 }
 0x768   :  { %v3578_v40 = vadd.f32 %v3571_v29, %v3510_v36 }
 0x769   :  { %v6536_v62 = vpop.f32.mrf.mxu0  ;;  %v6542_v16 = vpop.f32.mrf.mxu1 }
 0x76a   :  { %v3642_v4 = vadd.f32 %v3635_v48, %v3578_v40 }
 0x76b   :  { %v3574_v26 = vpop.f32.mrf.mxu0  ;;  %v3638_v11 = vpop.f32.mrf.mxu1 }
 0x76c   :  { %v3579_v60 = vadd.f32 %v3574_v26, %v3513_v5 }
 0x76d   :  { %v6537_v6 = vpop.f32.mrf.mxu0  ;;  %v6543_v2 = vpop.f32.mrf.mxu1 }
 0x76e   :  { %v3643_v10 = vadd.f32 %v3638_v11, %v3579_v60 }
 0x76f   :  { %v3693_v37 = vpop.f32.mrf.mxu0  ;;  %v3757_v17 = vpop.f32.mrf.mxu1 }
 0x770   :  { %v3700_v39 = vadd.f32 %v3693_v37, %v3642_v4  ;;  %v7307_v4 = vld [vmem:[#allocation2 + $0x168] sm:$0x3f]  }
 0x771   :  { %v6548_v15 = vpop.f32.mrf.mxu0  ;;  %v6554_v61 = vpop.f32.mrf.mxu1 }
 0x772   :  { %v3764_v3 = vadd.f32 %v3757_v17, %v3700_v39 }
 0x773   :  { %v3696_v56 = vpop.f32.mrf.mxu0  ;;  %v3760_v45 = vpop.f32.mrf.mxu1 }
 0x774   :  { %v3701_v54 = vadd.f32 %v3696_v56, %v3643_v10 }
 0x775   :  { %v6549_v58 = vpop.f32.mrf.mxu0  ;;  %v6555_v59 = vpop.f32.mrf.mxu1 }
 0x776   :  { %v3765_v24 = vadd.f32 %v3760_v45, %v3701_v54 }
 0x777   :  { %v3821_v22 = vpop.f32.mrf.mxu0  ;;  %v3885_v57 = vpop.f32.mrf.mxu1 }
 0x778   :  { %v3828_v55 = vadd.f32 %v3821_v22, %v3764_v3 }
 0x779   :  { %v6560_v38 = vpop.f32.mrf.mxu0  ;;  %v6566_v14 = vpop.f32.mrf.mxu1 }
 0x77a   :  { %v3892_v49 = vadd.f32 %v3885_v57, %v3828_v55  ;;  %v6268_v14 = vld [vmem:[%s9794_s2 + $0x68] sm:$0xf]  ;;  %v6267_v55 = vld [vmem:[%s9794_s2 + $0x60] sm:$0xff] }
 0x77b   :  { %v3824_v50 = vpop.f32.mrf.mxu0  ;;  %v3888_v9 = vpop.f32.mrf.mxu1 }
 0x77c   :  { %v3829_v18 = vadd.f32 %v3824_v50, %v3765_v24  ;;  %v4171_v50 = vshra.s32 %v10205_v7, 2 }
 0x77d   :  { %v6561_v19 = vpop.f32.mrf.mxu0  ;;  %v6567_v43 = vpop.f32.mrf.mxu1 }
 0x77e   :  { %v3893_v63 = vadd.f32 %v3888_v9, %v3829_v18  ;;  %v4170_v9 = vand.u32 3, %v10205_v7  ;;  %v4172_v24 = vand.u32 3, %v4171_v50  ;;  %v7312_v50 = vld [vmem:[#allocation2 + $0x1c0] sm:$0x3f]   ;;  %v7326_v18 = vld [vmem:[#allocation2 + $0x248] sm:$0x3f]  }
 0x77f   :  { %v3949_v52 = vpop.f32.mrf.mxu0 }
 0x780   :  { %v3956_v8 = vadd.f32 %v3949_v52, %v3892_v49  ;;  %v9444_v19 = vadd.s32 4294967295, %v4170_v9  ;;  %v4181_v43 = vadd.s32 4294967295, %v4172_v24  ;;  %v9450_v49 = vadd.s32 1, %v4170_v9 }
 0x781   :  { %v6572_v53 = vpop.f32.mrf.mxu0  ;;  %vm4391_vm15 = vcmp.ge.s32.totalorder %v4172_v24, 0  ;;  %vm4393_vm3 = vcmp.lt.s32.totalorder %v4172_v24, 4 }
 0x782   :  { %v3971_v33 = vadd.f32 %v3964_v46, %v3956_v8  ;;  %vm4178_vm10 = vcmp.ge.s32.totalorder %v9444_v19, 0  ;;  %vm4182_vm0 = vcmp.ge.s32.totalorder %v4181_v43, 0  ;;  %vm4184_vm5 = vcmp.lt.s32.totalorder %v4181_v43, 4 }
 0x783   :  { %v3952_v23 = vpop.f32.mrf.mxu0  ;;  %vm4183_vm14 = vmand %vm4178_vm10, %vm4182_vm0  ;;  %vm4321_vm2 = vcmp.lt.s32.totalorder %v9450_v49, 4 }
 0x784   :  { %v3957_v20 = vadd.f32 %v3952_v23, %v3893_v63  ;;  %v3973_v31 = vmax.f32 %v3971_v33, 0.0  ;;  %vm9453_vm1 = vmand %vm4183_vm14, %vm4184_vm5 }
 0x785   :  { %v6573_v30 = vpop.f32.mrf.mxu0  ;;  %vm9459_vm8 = vmand %vm4182_vm0, %vm4184_vm5 }
 0x786   :  { %v3972_v13 = vadd.f32 %v3969_v25, %v3957_v20  ;;  %vm4392_vm7 = vmand %vm4178_vm10, %vm4391_vm15 }
 0x787   :  { %vm9476_vm6 = vmand %vm4392_vm7, %vm4393_vm3 }
 0x788   :  { %v3974_v12 = vmax.f32 %v3972_v13, 0.0  ;;  %vm4323_vm4 = vmand %vm4321_vm2, %vm4182_vm0 }
 0x789   :  { %vm4519_vm11 = vmand %vm4321_vm2, %vm4391_vm15 }
 0x78a   :  { %v7149_v0 = vpack.i.bf16 %v3974_v12, %v3973_v31  ;;  %vm9494_vm0 = vmand %vm4323_vm4, %vm4184_vm5 }
 0x78b   :  { %vm9499_vm14 = vmand %vm4519_vm11, %vm4393_vm3 }
 0x78c   :  { %7150 = vrot.lane.b32.xlu0 %v7149_v0, %s7403_s18  ;;  %7145 = vrot.lane.b32.xlu1 %v7149_v0, %s7391_s23 }
 0x790   :  { %4108 = vperm.xlu0 %6797, %v6245_v28   ;;  %7155 = vrot.lane.b32.xlu1 %v7149_v0, %s7402_s17 }
 0x794   :  { %4113 = vperm.xlu1 %6813, %v6246_v42  }
 0x7fe   :  { %v7146_v1 = vpop.permute.xlu1 %7145  ;;  %v7151_v41 = vpop.permute.xlu0 %7150 }
 0x7ff   :  { %v7148_v27 = vunpack.i.h.bf16 %v7146_v1  ;;  %v7147_v35 = vunpack.i.l.bf16 %v7146_v1  ;;  %v7153_v47 = vunpack.i.h.bf16 %v7151_v41  ;;  %v7152_v29 = vunpack.i.l.bf16 %v7151_v41 }
 0x801   :  { %v3988_v21 = vmax.f32 %v3974_v12, %v7148_v27  ;;  %v3987_v16 = vmax.f32 %v3973_v31, %v7147_v35  ;;  %v9487_v27 = vadd.s32 1, %v4172_v24  ;;  %v7308_v35 = vld [vmem:[#allocation2 + $0x1b8] sm:$0x3f]  }
 0x802   :  { %v7156_v32 = vpop.permute.xlu1 %7155 }
 0x803   :  { %v7158_v48 = vunpack.i.h.bf16 %v7156_v32  ;;  %v7157_v62 = vunpack.i.l.bf16 %v7156_v32  ;;  %vm4588_vm15 = vcmp.ge.s32.totalorder %v9487_v27, 0  ;;  %vm4590_vm5 = vcmp.lt.s32.totalorder %v9487_v27, 4 }
 0x804   :  { %vm9521_vm7 = vmand %vm4588_vm15, %vm4590_vm5 }
 0x805   :  { %v3990_v26 = vmax.f32 %v7153_v47, %v7158_v48  ;;  %v3989_v11 = vmax.f32 %v7152_v29, %v7157_v62  ;;  %vm4589_vm3 = vmand %vm4178_vm10, %vm4588_vm15 }
 0x806   :  { %vm9553_vm4 = vmand %vm4589_vm3, %vm4590_vm5 }
 0x807   :  { %v3991_v36 = vmax.f32 %v3987_v16, %v3989_v11  ;;  %v3992_v6 = vmax.f32 %v3988_v21, %v3990_v26  ;;  %vm4726_vm10 = vmand %vm4321_vm2, %vm4588_vm15 }
 0x808   :  { %vm9577_vm11 = vmand %vm4726_vm10, %vm4590_vm5 }
 0x809   :  { %v4057_v2 = vpack.c.bf16 %v3992_v6, %v3991_v36 }
 0x80b   :  { %6591 = vmatmul.mubr.bf16.vlgmr.msra.gmra.mxu1 %v4057_v2  ;;  %v4109_v56 = vpop.permute.xlu0 %4108 }
 0x80c   :  { %6620 = vmatprep.mubr.msk.bf16.mxu1 %vm7397_vm12, %v7396_v34 }
 0x80f   :  { %v4114_v58 = vpop.permute.xlu1 %4113 }
 0x8cb   :  { %v4092_v40 = vpop.f32.mrf.mxu1 }
 0x8cd   :  { %v6592_v37 = vpop.f32.mrf.mxu1 }
 0x8cf   :  { %v4095_v17 = vpop.f32.mrf.mxu1 }
 0x8d0   :  { %v4102_v5 = vpack.c.bf16 %v4095_v17, %v4092_v40  ;;  %v7309_v40 = vld [vmem:[#allocation2 + $0x1c8] sm:$0x3f]  }
 0x8d1   :  { %v6593_v15 = vpop.f32.mrf.mxu1 }
 0x8d2   :  { %v4125_v61 = vsel %vm882_vm13, %v4102_v5, 0 }
 0x8d3   :  { %6595 = vmatpush3.bf16.msra.mxu0 %v4125_v61 }
 0x8d4   :  { %6600 = vmatprep.subr.bf16.mxu0 %v7396_v34 }
 0x8d6   :  { %6597 = vmatmul.mubr.msk.bf16.vlgmr.msra.gmra.mxu0 %vm878_vm9, %v7307_v4 }
 0x8d7   :  { %6602 = vmatprep.mubr.msk.bf16.mxu0 %vm7397_vm12, %v7396_v34 }
 0x996   :  { %v4161_v60 = vpop.f32.mrf.mxu0 }
 0x997   :  { %v4162_v39 = vadd.f32 %v4161_v60, %v4109_v56 }
 0x998   :  { %v6598_v45 = vpop.f32.mrf.mxu0 }
 0x999   :  { %v4168_v57 = vmax.f32 %v4162_v39, 0.0 }
 0x99a   :  { %v4164_v59 = vpop.f32.mrf.mxu0 }
 0x99b   :  { %v4165_v10 = vadd.f32 %v4164_v59, %v4114_v58  ;;  %v7310_v59 = vld [vmem:[#allocation2 + $0x1b0] sm:$0x3f]  }
 0x99c   :  { %v6599_v22 = vpop.f32.mrf.mxu0 }
 0x99d   :  { %v4169_v3 = vmax.f32 %v4165_v10, 0.0 }
 0x99f   :  { %v7164_v54 = vpack.i.bf16 %v4169_v3, %v4168_v57  ;;  %v9428_v38 = vpack.c.bf16 %v4169_v3, %v4168_v57 }
 0x9a1   :  { %7165 = vrot.lane.b32.xlu1 %v7164_v54, %s7404_s4  ;;  %7160 = vrot.lane.b32.xlu0 %v7164_v54, %s7385_s16  ;;  %v4470_v19 = vsel %vm882_vm13, %v9428_v38, 0 }
 0x9a5   :  { %7175 = vrot.lane.b32.xlu1 %v7164_v54, %s7390_s22  ;;  %7170 = vrot.lane.b32.xlu0 %v7164_v54, %s7405_s5 }
 0x9a9   :  { %7185 = vrot.lane.b32.xlu1 %v7164_v54, %s7406_s6  ;;  %7180 = vrot.lane.b32.xlu0 %v7164_v54, %s7391_s23 }
 0x9ad   :  { %7195 = vrot.lane.b32.xlu1 %v7164_v54, %s7407_s7  ;;  %7190 = vrot.lane.b32.xlu0 %v7164_v54, %s7408_s8  ;;  %v7311_v54 = vld [vmem:[#allocation2 + $0x1d8] sm:$0x3f]  }
 0x9b1   :  { %4800 = vperm.xlu1 %6813, %v6268_v14   ;;  %4795 = vperm.xlu0 %6797, %v6267_v55  }
 0xa13   :  { %v7166_v52 = vpop.permute.xlu1 %7165  ;;  %v7161_v8 = vpop.permute.xlu0 %7160 }
 0xa14   :  { %v7168_v53 = vunpack.i.h.bf16 %v7166_v52  ;;  %v7167_v63 = vunpack.i.l.bf16 %v7166_v52  ;;  %v7163_v46 = vunpack.i.h.bf16 %v7161_v8  ;;  %v7162_v23 = vunpack.i.l.bf16 %v7161_v8  ;;  %v7315_v52 = vld [vmem:[#allocation2 + $0x1e8] sm:$0x3f]  }
 0xa16   :  { %v4189_v33 = vsel %vm9453_vm1, %v7168_v53, 0.0  ;;  %v4188_v20 = vsel %vm9453_vm1, %v7167_v63, 0.0  ;;  %v4206_v25 = vsel %vm9459_vm8, %v7163_v46, 0.0  ;;  %v4205_v30 = vsel %vm9459_vm8, %v7162_v23, 0.0  ;;  %v7313_v46 = vld [vmem:[#allocation2 + $0x1d0] sm:$0x3f]  }
 0xa17   :  { %v4210_v31 = vpack.c.bf16 %v4206_v25, %v4205_v30  ;;  %v7176_v12 = vpop.permute.xlu1 %7175  ;;  %v7171_v0 = vpop.permute.xlu0 %7170  ;;  %v4193_v1 = vpack.c.bf16 %v4189_v33, %v4188_v20 }
 0xa18   :  { %v7178_v28 = vunpack.i.h.bf16 %v7176_v12  ;;  %v7177_v42 = vunpack.i.l.bf16 %v7176_v12  ;;  %v7173_v48 = vunpack.i.h.bf16 %v7171_v0  ;;  %v7172_v62 = vunpack.i.l.bf16 %v7171_v0  ;;  %v7314_v12 = vld [vmem:[#allocation2 + $0x1e0] sm:$0x3f]  }
 0xa19   :  { %v4220_v41 = vsel %vm882_vm13, %v4210_v31, 0  ;;  %v4272_v6 = vsel %vm882_vm13, %v4193_v1, 0 }
 0xa1a   :  { %v4398_v32 = vsel %vm9476_vm6, %v7178_v28, 0.0  ;;  %v4397_v47 = vsel %vm9476_vm6, %v7177_v42, 0.0  ;;  %6601 = vmatpush3.bf16.msra.mxu0 %v4220_v41  ;;  %v4328_v37 = vsel %vm9494_vm0, %v7173_v48, 0.0  ;;  %v4327_v17 = vsel %vm9494_vm0, %v7172_v62, 0.0  ;;  %v7316_v28 = vld [vmem:[#allocation2 + $0x1f0] sm:$0x3f]  }
 0xa1b   :  { %v4402_v21 = vpack.c.bf16 %v4398_v32, %v4397_v47  ;;  %v7181_v26 = vpop.permute.xlu0 %7180  ;;  %6606 = vmatprep.subr.bf16.mxu0 %v7396_v34  ;;  %v4332_v39 = vpack.c.bf16 %v4328_v37, %v4327_v17  ;;  %v7186_v14 = vpop.permute.xlu1 %7185 }
 0xa1c   :  { %v7183_v11 = vunpack.i.h.bf16 %v7181_v26  ;;  %v7182_v36 = vunpack.i.l.bf16 %v7181_v26  ;;  %v7188_v9 = vunpack.i.h.bf16 %v7186_v14  ;;  %v7187_v24 = vunpack.i.l.bf16 %v7186_v14 }
 0xa1d   :  { %6603 = vmatmul.mubr.msk.bf16.vlgmr.msra.gmra.mxu0 %vm878_vm9, %v7308_v35  ;;  %v4412_v2 = vsel %vm882_vm13, %v4402_v21, 0  ;;  %v4342_v3 = vsel %vm882_vm13, %v4332_v39, 0 }
 0xa1e   :  { %v4524_v5 = vsel %vm9499_vm14, %v7183_v11, 0.0  ;;  %v4523_v15 = vsel %vm9499_vm14, %v7182_v36, 0.0  ;;  %6607 = vmatpush3.bf16.msra.mxu0 %v4272_v6  ;;  %6619 = vmatpush3.bf16.msra.mxu1 %v4412_v2  ;;  %v4595_v8 = vsel %vm9553_vm4, %v7188_v9, 0.0  ;;  %v4594_v53 = vsel %vm9553_vm4, %v7187_v24, 0.0 }
 0xa1f   :  { %v4528_v61 = vpack.c.bf16 %v4524_v5, %v4523_v15  ;;  %v7191_v60 = vpop.permute.xlu0 %7190  ;;  %6630 = vmatprep.subr.bf16.mxu1 %v7396_v34  ;;  %6608 = vmatprep.mubr.msk.bf16.mxu0 %vm7397_vm12, %v7396_v34  ;;  %v7196_v63 = vpop.permute.xlu1 %7195  ;;  %v4599_v38 = vpack.c.bf16 %v4595_v8, %v4594_v53 }
 0xa20   :  { %v7193_v56 = vunpack.i.h.bf16 %v7191_v60  ;;  %v7192_v45 = vunpack.i.l.bf16 %v7191_v60  ;;  %6612 = vmatprep.subr.bf16.mxu0 %v7396_v34  ;;  %v7198_v23 = vunpack.i.h.bf16 %v7196_v63  ;;  %v7197_v33 = vunpack.i.l.bf16 %v7196_v63 }
 0xa21   :  { %6621 = vmatmul.mubr.msk.bf16.vlgmr.msra.gmra.mxu1 %vm878_vm9, %v7309_v40  ;;  %v4538_v58 = vsel %vm882_vm13, %v4528_v61, 0  ;;  %v4609_v49 = vsel %vm882_vm13, %v4599_v38, 0 }
 0xa22   :  { %v4663_v10 = vsel %vm9521_vm7, %v7193_v56, 0.0  ;;  %v4662_v22 = vsel %vm9521_vm7, %v7192_v45, 0.0  ;;  %6631 = vmatpush3.bf16.msra.mxu1 %v4538_v58  ;;  %6632 = vmatprep.mubr.msk.bf16.mxu1 %vm7397_vm12, %v7396_v34  ;;  %v4731_v25 = vsel %vm9577_vm11, %v7198_v23, 0.0  ;;  %v4730_v30 = vsel %vm9577_vm11, %v7197_v33, 0.0 }
 0xa23   :  { %6642 = vmatprep.subr.bf16.mxu1 %v7396_v34  ;;  %v4667_v57 = vpack.c.bf16 %v4663_v10, %v4662_v22  ;;  %v4735_v31 = vpack.c.bf16 %v4731_v25, %v4730_v30 }
 0xa25   :  { %6609 = vmatmul.mubr.msk.bf16.vlgmr.msra.gmra.mxu0 %vm878_vm9, %v7310_v59  ;;  %v4677_v55 = vsel %vm882_vm13, %v4667_v57, 0  ;;  %v4745_v0 = vsel %vm882_vm13, %v4735_v31, 0 }
 0xa26   :  { %6613 = vmatpush3.bf16.msra.mxu0 %v4342_v3  ;;  %6614 = vmatprep.mubr.msk.bf16.mxu0 %vm7397_vm12, %v7396_v34 }
 0xa27   :  { %6624 = vmatprep.subr.bf16.mxu0 %v7396_v34 }
 0xa29   :  { %6633 = vmatmul.mubr.msk.bf16.vlgmr.msra.gmra.mxu1 %vm878_vm9, %v7311_v54 }
 0xa2a   :  { %6643 = vmatpush3.bf16.msra.mxu1 %v4677_v55  ;;  %6644 = vmatprep.mubr.msk.bf16.mxu1 %vm7397_vm12, %v7396_v34 }
 0xa2b   :  { %6654 = vmatprep.subr.bf16.mxu1 %v7396_v34 }
 0xa2c   :  { %v4796_v31 = vpop.permute.xlu0 %4795 }
 0xa2d   :  { %6615 = vmatmul.mubr.msk.bf16.vlgmr.msra.gmra.mxu0 %vm878_vm9, %v7312_v50 }
 0xa2e   :  { %6625 = vmatpush3.bf16.msra.mxu0 %v4470_v19  ;;  %6626 = vmatprep.mubr.msk.bf16.mxu0 %vm7397_vm12, %v7396_v34 }
 0xa2f   :  { %6636 = vmatprep.subr.bf16.mxu0 %v7396_v34 }
 0xa31   :  { %6645 = vmatmul.mubr.msk.bf16.vlgmr.msra.gmra.mxu1 %vm878_vm9, %v7315_v52 }
 0xa32   :  { %6656 = vmatprep.mubr.msk.bf16.mxu1 %vm7397_vm12, %v7396_v34 }
 0xa35   :  { %6627 = vmatmul.mubr.msk.bf16.vlgmr.msra.gmra.mxu0 %vm878_vm9, %v7313_v46 }
 0xa36   :  { %6637 = vmatpush3.bf16.msra.mxu0 %v4609_v49  ;;  %6638 = vmatprep.mubr.msk.bf16.mxu0 %vm7397_vm12, %v7396_v34 }
 0xa37   :  { %6648 = vmatprep.subr.bf16.mxu0 %v7396_v34 }
 0xa3d   :  { %6639 = vmatmul.mubr.msk.bf16.vlgmr.msra.gmra.mxu0 %vm878_vm9, %v7314_v12 }
 0xa3e   :  { %6649 = vmatpush3.bf16.msra.mxu0 %v4745_v0  ;;  %6650 = vmatprep.mubr.msk.bf16.mxu0 %vm7397_vm12, %v7396_v34 }
 0xa3f   :  { %6660 = vmatprep.subr.bf16.mxu0 %v7396_v34 }
 0xa45   :  { %6651 = vmatmul.mubr.msk.bf16.vlgmr.msra.gmra.mxu0 %vm878_vm9, %v7316_v28 }
 0xa46   :  { %6662 = vmatprep.mubr.msk.bf16.mxu0 %vm7397_vm12, %v7396_v34 }
 0xadd   :  { %v4256_v42 = vpop.f32.mrf.mxu0 }
 0xadf   :  { %v6604_v1 = vpop.f32.mrf.mxu0 }
 0xae1   :  { %v4259_v41 = vpop.f32.mrf.mxu0  ;;  %v4448_v27 = vpop.f32.mrf.mxu1 }
 0xae3   :  { %v6605_v35 = vpop.f32.mrf.mxu0  ;;  %v6622_v32 = vpop.f32.mrf.mxu1 }
 0xae5   :  { %v4308_v47 = vpop.f32.mrf.mxu0  ;;  %v4451_v48 = vpop.f32.mrf.mxu1 }
 0xae6   :  { %v4309_v61 = vadd.f32 %v4308_v47, %v4256_v42  ;;  %v4801_v42 = vpop.permute.xlu1 %4800 }
 0xae7   :  { %v6610_v62 = vpop.f32.mrf.mxu0  ;;  %v6623_v21 = vpop.f32.mrf.mxu1 }
 0xae8   :  { %v6287_v62 = vld [vmem:[%s9794_s2 + $0x70] sm:$0xff] }
 0xae9   :  { %v4311_v26 = vpop.f32.mrf.mxu0  ;;  %v4574_v11 = vpop.f32.mrf.mxu1 }
 0xaea   :  { %v4312_v59 = vadd.f32 %v4311_v26, %v4259_v41 }
 0xaeb   :  { %v6611_v36 = vpop.f32.mrf.mxu0  ;;  %v6634_v6 = vpop.f32.mrf.mxu1 }
 0xaed   :  { %v4378_v2 = vpop.f32.mrf.mxu0  ;;  %v4577_v40 = vpop.f32.mrf.mxu1 }
 0xaee   :  { %v4385_v45 = vadd.f32 %v4378_v2, %v4309_v61 }
 0xaef   :  { %v6616_v37 = vpop.f32.mrf.mxu0  ;;  %v6635_v17 = vpop.f32.mrf.mxu1 }
 0xaf0   :  { %v4455_v57 = vadd.f32 %v4448_v27, %v4385_v45 }
 0xaf1   :  { %v4381_v5 = vpop.f32.mrf.mxu0  ;;  %v4713_v15 = vpop.f32.mrf.mxu1 }
 0xaf2   :  { %v4386_v3 = vadd.f32 %v4381_v5, %v4312_v59 }
 0xaf3   :  { %v6617_v60 = vpop.f32.mrf.mxu0  ;;  %v6646_v56 = vpop.f32.mrf.mxu1 }
 0xaf4   :  { %v4456_v50 = vadd.f32 %v4451_v48, %v4386_v3  ;;  %v6288_v48 = vld [vmem:[%s9794_s2 + $0x78] sm:$0xf] }
 0xaf5   :  { %v4506_v39 = vpop.f32.mrf.mxu0  ;;  %v4716_v58 = vpop.f32.mrf.mxu1  ;;  %v7318_v3 = vld [vmem:[#allocation2 + $0x1f8] sm:$0x3f]  }
 0xaf6   :  { %v4513_v14 = vadd.f32 %v4506_v39, %v4455_v57  ;;  %v7317_v57 = vld [vmem:[#allocation2 + $0x200] sm:$0x3f]  }
 0xaf7   :  { %v6628_v10 = vpop.f32.mrf.mxu0  ;;  %v6647_v22 = vpop.f32.mrf.mxu1 }
 0xaf8   :  { %v4581_v24 = vadd.f32 %v4574_v11, %v4513_v14 }
 0xaf9   :  { %v4509_v54 = vpop.f32.mrf.mxu0 }
 0xafa   :  { %v4514_v19 = vadd.f32 %v4509_v54, %v4456_v50 }
 0xafb   :  { %v6629_v55 = vpop.f32.mrf.mxu0 }
 0xafc   :  { %v4582_v63 = vadd.f32 %v4577_v40, %v4514_v19 }
 0xafd   :  { %v4645_v9 = vpop.f32.mrf.mxu0 }
 0xafe   :  { %v4652_v8 = vadd.f32 %v4645_v9, %v4581_v24 }
 0xaff   :  { %v6640_v52 = vpop.f32.mrf.mxu0 }
 0xb00   :  { %v4720_v46 = vadd.f32 %v4713_v15, %v4652_v8 }
 0xb01   :  { %v4648_v53 = vpop.f32.mrf.mxu0 }
 0xb02   :  { %v4653_v23 = vadd.f32 %v4648_v53, %v4582_v63 }
 0xb03   :  { %v6641_v38 = vpop.f32.mrf.mxu0 }
 0xb04   :  { %v4721_v30 = vadd.f32 %v4716_v58, %v4653_v23 }
 0xb05   :  { %v4781_v33 = vpop.f32.mrf.mxu0 }
 0xb06   :  { %v4788_v49 = vadd.f32 %v4781_v33, %v4720_v46 }
 0xb07   :  { %v6652_v25 = vpop.f32.mrf.mxu0 }
 0xb08   :  { %v4803_v0 = vadd.f32 %v4796_v31, %v4788_v49  ;;  %v7319_v25 = vld [vmem:[#allocation2 + $0x208] sm:$0x3f]  }
 0xb09   :  { %v4784_v12 = vpop.f32.mrf.mxu0 }
 0xb0a   :  { %v4789_v28 = vadd.f32 %v4784_v12, %v4721_v30  ;;  %v4805_v27 = vmax.f32 %v4803_v0, 0.0  ;;  %v7320_v30 = vld [vmem:[#allocation2 + $0x210] sm:$0x3f]  }
 0xb0b   :  { %v6653_v1 = vpop.f32.mrf.mxu0 }
 0xb0c   :  { %v4804_v41 = vadd.f32 %v4801_v42, %v4789_v28 }
 0xb0e   :  { %v4806_v35 = vmax.f32 %v4804_v41, 0.0 }
 0xb10   :  { %v7204_v32 = vpack.i.bf16 %v4806_v35, %v4805_v27  ;;  %v9600_v47 = vpack.c.bf16 %v4806_v35, %v4805_v27 }
 0xb12   :  { %7205 = vrot.lane.b32.xlu1 %v7204_v32, %s7404_s4  ;;  %7200 = vrot.lane.b32.xlu0 %v7204_v32, %s7385_s16  ;;  %v5072_v42 = vsel %vm882_vm13, %v9600_v47, 0 }
 0xb16   :  { %7215 = vrot.lane.b32.xlu1 %v7204_v32, %s7390_s22  ;;  %7210 = vrot.lane.b32.xlu0 %v7204_v32, %s7405_s5 }
 0xb1a   :  { %7225 = vrot.lane.b32.xlu1 %v7204_v32, %s7406_s6  ;;  %7220 = vrot.lane.b32.xlu0 %v7204_v32, %s7391_s23 }
 0xb1e   :  { %7235 = vrot.lane.b32.xlu1 %v7204_v32, %s7407_s7  ;;  %7230 = vrot.lane.b32.xlu0 %v7204_v32, %s7408_s8 }
 0xb22   :  { %5383 = vperm.xlu1 %6813, %v6288_v48   ;;  %5378 = vperm.xlu0 %6797, %v6287_v62  }
 0xb84   :  { %v7206_v21 = vpop.permute.xlu1 %7205  ;;  %v7201_v26 = vpop.permute.xlu0 %7200 }
 0xb85   :  { %v7208_v11 = vunpack.i.h.bf16 %v7206_v21  ;;  %v7207_v36 = vunpack.i.l.bf16 %v7206_v21  ;;  %v7203_v6 = vunpack.i.h.bf16 %v7201_v26  ;;  %v7202_v2 = vunpack.i.l.bf16 %v7201_v26  ;;  %v7321_v21 = vld [vmem:[#allocation2 + $0x218] sm:$0x3f]   ;;  %v7322_v26 = vld [vmem:[#allocation2 + $0x220] sm:$0x3f]  }
 0xb87   :  { %v4812_v40 = vsel %vm9453_vm1, %v7208_v11, 0.0  ;;  %v4811_v37 = vsel %vm9453_vm1, %v7207_v36, 0.0  ;;  %v4822_v17 = vsel %vm9459_vm8, %v7203_v6, 0.0  ;;  %v4821_v5 = vsel %vm9459_vm8, %v7202_v2, 0.0 }
 0xb88   :  { %v4816_v15 = vpack.c.bf16 %v4812_v40, %v4811_v37  ;;  %v4826_v61 = vpack.c.bf16 %v4822_v17, %v4821_v5  ;;  %v7216_v60 = vpop.permute.xlu1 %7215  ;;  %v7211_v56 = vpop.permute.xlu0 %7210  ;;  %v7323_v5 = vld [vmem:[#allocation2 + $0x228] sm:$0x3f]  }
 0xb89   :  { %v7218_v45 = vunpack.i.h.bf16 %v7216_v60  ;;  %v7217_v39 = vunpack.i.l.bf16 %v7216_v60  ;;  %v7213_v58 = vunpack.i.h.bf16 %v7211_v56  ;;  %v7212_v59 = vunpack.i.l.bf16 %v7211_v56  ;;  %v7325_v60 = vld [vmem:[#allocation2 + $0x238] sm:$0x3f]  }
 0xb8a   :  { %v4836_v10 = vsel %vm882_vm13, %v4826_v61, 0  ;;  %v4888_v22 = vsel %vm882_vm13, %v4816_v15, 0  ;;  %v7324_v15 = vld [vmem:[#allocation2 + $0x230] sm:$0x3f]  }
 0xb8b   :  { %v5000_v54 = vsel %vm9476_vm6, %v7218_v45, 0.0  ;;  %v4999_v14 = vsel %vm9476_vm6, %v7217_v39, 0.0  ;;  %v4936_v55 = vsel %vm9494_vm0, %v7213_v58, 0.0  ;;  %v4935_v50 = vsel %vm9494_vm0, %v7212_v59, 0.0  ;;  %6655 = vmatpush3.bf16.msra.mxu1 %v4836_v10  ;;  %6661 = vmatpush3.bf16.msra.mxu0 %v4888_v22 }
 0xb8c   :  { %v5004_v9 = vpack.c.bf16 %v5000_v54, %v4999_v14  ;;  %v4940_v24 = vpack.c.bf16 %v4936_v55, %v4935_v50  ;;  %v7221_v19 = vpop.permute.xlu0 %7220  ;;  %6666 = vmatprep.subr.bf16.mxu1 %v7396_v34  ;;  %6672 = vmatprep.subr.bf16.mxu0 %v7396_v34  ;;  %v7226_v23 = vpop.permute.xlu1 %7225 }
 0xb8d   :  { %v7223_v52 = vunpack.i.h.bf16 %v7221_v19  ;;  %v7222_v8 = vunpack.i.l.bf16 %v7221_v19  ;;  %v7228_v31 = vunpack.i.h.bf16 %v7226_v23  ;;  %v7227_v12 = vunpack.i.l.bf16 %v7226_v23 }
 0xb8e   :  { %6657 = vmatmul.mubr.msk.bf16.vlgmr.msra.gmra.mxu1 %vm878_vm9, %v7317_v57  ;;  %6663 = vmatmul.mubr.msk.bf16.vlgmr.msra.gmra.mxu0 %vm878_vm9, %v7318_v3  ;;  %v4950_v53 = vsel %vm882_vm13, %v4940_v24, 0  ;;  %v5014_v63 = vsel %vm882_vm13, %v5004_v9, 0 }
 0xb8f   :  { %v5122_v38 = vsel %vm9499_vm14, %v7223_v52, 0.0  ;;  %v5121_v46 = vsel %vm9499_vm14, %v7222_v8, 0.0  ;;  %6667 = vmatpush3.bf16.msra.mxu1 %v4950_v53  ;;  %6673 = vmatpush3.bf16.msra.mxu0 %v5014_v63  ;;  %v5186_v41 = vsel %vm9553_vm4, %v7228_v31, 0.0  ;;  %v5185_v27 = vsel %vm9553_vm4, %v7227_v12, 0.0 }
 0xb90   :  { %v7231_v33 = vpop.permute.xlu0 %7230  ;;  %6668 = vmatprep.mubr.msk.bf16.mxu1 %vm7397_vm12, %v7396_v34  ;;  %6674 = vmatprep.mubr.msk.bf16.mxu0 %vm7397_vm12, %v7396_v34  ;;  %v5126_v49 = vpack.c.bf16 %v5122_v38, %v5121_v46  ;;  %v7236_v48 = vpop.permute.xlu1 %7235  ;;  %v5190_v47 = vpack.c.bf16 %v5186_v41, %v5185_v27 }
 0xb91   :  { %6678 = vmatprep.subr.bf16.mxu1 %v7396_v34  ;;  %6684 = vmatprep.subr.bf16.mxu0 %v7396_v34  ;;  %v7233_v0 = vunpack.i.h.bf16 %v7231_v33  ;;  %v7232_v28 = vunpack.i.l.bf16 %v7231_v33  ;;  %v7238_v11 = vunpack.i.h.bf16 %v7236_v48  ;;  %v7237_v36 = vunpack.i.l.bf16 %v7236_v48 }
 0xb92   :  { %v5136_v1 = vsel %vm882_vm13, %v5126_v49, 0  ;;  %v5200_v6 = vsel %vm882_vm13, %v5190_v47, 0 }
 0xb93   :  { %v5250_v35 = vsel %vm9521_vm7, %v7233_v0, 0.0  ;;  %v5249_v32 = vsel %vm9521_vm7, %v7232_v28, 0.0  ;;  %v5314_v40 = vsel %vm9577_vm11, %v7238_v11, 0.0  ;;  %v5313_v37 = vsel %vm9577_vm11, %v7237_v36, 0.0 }
 0xb94   :  { %v5254_v62 = vpack.c.bf16 %v5250_v35, %v5249_v32  ;;  %v5318_v17 = vpack.c.bf16 %v5314_v40, %v5313_v37 }
 0xb96   :  { %6669 = vmatmul.mubr.msk.bf16.vlgmr.msra.gmra.mxu1 %vm878_vm9, %v7319_v25  ;;  %6675 = vmatmul.mubr.msk.bf16.vlgmr.msra.gmra.mxu0 %vm878_vm9, %v7320_v30  ;;  %v5264_v2 = vsel %vm882_vm13, %v5254_v62, 0  ;;  %v5328_v61 = vsel %vm882_vm13, %v5318_v17, 0 }
 0xb97   :  { %6679 = vmatpush3.bf16.msra.mxu1 %v5072_v42  ;;  %6685 = vmatpush3.bf16.msra.mxu0 %v5136_v1 }
 0xb98   :  { %6686 = vmatprep.mubr.msk.bf16.mxu0 %vm7397_vm12, %v7396_v34  ;;  %6680 = vmatprep.mubr.msk.bf16.mxu1 %vm7397_vm12, %v7396_v34 }
 0xb99   :  { %6690 = vmatprep.subr.bf16.mxu1 %v7396_v34  ;;  %6696 = vmatprep.subr.bf16.mxu0 %v7396_v34 }
 0xb9e   :  { %6681 = vmatmul.mubr.msk.bf16.vlgmr.msra.gmra.mxu1 %vm878_vm9, %v7321_v21  ;;  %6687 = vmatmul.mubr.msk.bf16.vlgmr.msra.gmra.mxu0 %vm878_vm9, %v7322_v26 }
 0xb9f   :  { %6691 = vmatpush3.bf16.msra.mxu1 %v5200_v6  ;;  %6697 = vmatpush3.bf16.msra.mxu0 %v5264_v2 }
 0xba0   :  { %6692 = vmatprep.mubr.msk.bf16.mxu1 %vm7397_vm12, %v7396_v34  ;;  %6698 = vmatprep.mubr.msk.bf16.mxu0 %vm7397_vm12, %v7396_v34 }
 0xba1   :  { %6702 = vmatprep.subr.bf16.mxu1 %v7396_v34  ;;  %6708 = vmatprep.subr.bf16.mxu0 %v7396_v34 }
 0xba6   :  { %6693 = vmatmul.mubr.msk.bf16.vlgmr.msra.gmra.mxu1 %vm878_vm9, %v7323_v5  ;;  %6699 = vmatmul.mubr.msk.bf16.vlgmr.msra.gmra.mxu0 %vm878_vm9, %v7324_v15  ;;  %v5379_v5 = vpop.permute.xlu0 %5378 }
 0xba7   :  { %6703 = vmatpush3.bf16.msra.mxu1 %v5328_v61  ;;  %6704 = vmatprep.mubr.msk.bf16.mxu1 %vm7397_vm12, %v7396_v34 }
 0xba8   :  { %6714 = vmatprep.subr.bf16.mxu1 %v7396_v34  ;;  %6710 = vmatprep.mubr.msk.bf16.mxu0 %vm7397_vm12, %v7396_v34 }
 0xbae   :  { %6705 = vmatmul.mubr.msk.bf16.vlgmr.msra.gmra.mxu1 %vm878_vm9, %v7325_v60 }
 0xbaf   :  { %6716 = vmatprep.mubr.msk.bf16.mxu1 %vm7397_vm12, %v7396_v34 }
 0xc4e   :  { %v4872_v56 = vpop.f32.mrf.mxu1  ;;  %v4924_v45 = vpop.f32.mrf.mxu0 }
 0xc4f   :  { %v4925_v24 = vadd.f32 %v4924_v45, %v4872_v56  ;;  %v5384_v56 = vpop.permute.xlu1 %5383 }
 0xc50   :  { %v6658_v39 = vpop.f32.mrf.mxu1  ;;  %v6664_v58 = vpop.f32.mrf.mxu0 }
 0xc52   :  { %v4875_v59 = vpop.f32.mrf.mxu1  ;;  %v4927_v10 = vpop.f32.mrf.mxu0 }
 0xc53   :  { %v4928_v38 = vadd.f32 %v4927_v10, %v4875_v59 }
 0xc54   :  { %v6659_v22 = vpop.f32.mrf.mxu1  ;;  %v6665_v57 = vpop.f32.mrf.mxu0 }
 0xc55   :  { %v6307_v57 = vld [vmem:[%s9794_s2 + $0x80] sm:$0xff] }
 0xc56   :  { %v4986_v3 = vpop.f32.mrf.mxu1  ;;  %v5050_v54 = vpop.f32.mrf.mxu0 }
 0xc57   :  { %v4993_v8 = vadd.f32 %v4986_v3, %v4925_v24  ;;  %v6308_v3 = vld [vmem:[%s9794_s2 + $0x88] sm:$0xf]  ;;  %s7410_s2 = smov [#allocation5]  }
 0xc58   :  { %v6670_v14 = vpop.f32.mrf.mxu1  ;;  %v6676_v55 = vpop.f32.mrf.mxu0 }
 0xc59   :  { %v5057_v33 = vadd.f32 %v5050_v54, %v4993_v8 }
 0xc5a   :  { %v4989_v50 = vpop.f32.mrf.mxu1  ;;  %v5053_v9 = vpop.f32.mrf.mxu0 }
 0xc5b   :  { %v4994_v49 = vadd.f32 %v4989_v50, %v4928_v38 }
 0xc5c   :  { %v6671_v19 = vpop.f32.mrf.mxu1  ;;  %v6677_v52 = vpop.f32.mrf.mxu0 }
 0xc5d   :  { %v5058_v28 = vadd.f32 %v5053_v9, %v4994_v49 }
 0xc5e   :  { %v5108_v53 = vpop.f32.mrf.mxu1  ;;  %v5172_v63 = vpop.f32.mrf.mxu0 }
 0xc5f   :  { %v5115_v31 = vadd.f32 %v5108_v53, %v5057_v33 }
 0xc60   :  { %v6682_v46 = vpop.f32.mrf.mxu1  ;;  %v6688_v23 = vpop.f32.mrf.mxu0 }
 0xc61   :  { %v5179_v41 = vadd.f32 %v5172_v63, %v5115_v31 }
 0xc62   :  { %v5111_v25 = vpop.f32.mrf.mxu1  ;;  %v5175_v30 = vpop.f32.mrf.mxu0 }
 0xc63   :  { %v5116_v27 = vadd.f32 %v5111_v25, %v5058_v28 }
 0xc64   :  { %v6683_v12 = vpop.f32.mrf.mxu1  ;;  %v6689_v0 = vpop.f32.mrf.mxu0 }
 0xc65   :  { %v5180_v21 = vadd.f32 %v5175_v30, %v5116_v27  ;;  %v7327_v0 = vld [vmem:[#allocation2 + $0x240] sm:$0x3f]  }
 0xc66   :  { %v5236_v42 = vpop.f32.mrf.mxu1  ;;  %v5300_v1 = vpop.f32.mrf.mxu0 }
 0xc67   :  { %v5243_v48 = vadd.f32 %v5236_v42, %v5179_v41 }
 0xc68   :  { %v6694_v35 = vpop.f32.mrf.mxu1  ;;  %v6700_v32 = vpop.f32.mrf.mxu0 }
 0xc69   :  { %v5307_v36 = vadd.f32 %v5300_v1, %v5243_v48 }
 0xc6a   :  { %v5239_v47 = vpop.f32.mrf.mxu1  ;;  %v5303_v62 = vpop.f32.mrf.mxu0 }
 0xc6b   :  { %v5244_v6 = vadd.f32 %v5239_v47, %v5180_v21 }
 0xc6c   :  { %v6695_v26 = vpop.f32.mrf.mxu1  ;;  %v6701_v11 = vpop.f32.mrf.mxu0 }
 0xc6d   :  { %v5308_v17 = vadd.f32 %v5303_v62, %v5244_v6  ;;  %v7329_v6 = vld [vmem:[#allocation2 + $0x258] sm:$0x3f]  }
 0xc6e   :  { %v5364_v2 = vpop.f32.mrf.mxu1 }
 0xc6f   :  { %v5371_v40 = vadd.f32 %v5364_v2, %v5307_v36  ;;  %v7328_v36 = vld [vmem:[#allocation2 + $0x250] sm:$0x3f]  }
 0xc70   :  { %v6706_v37 = vpop.f32.mrf.mxu1 }
 0xc71   :  { %v5386_v61 = vadd.f32 %v5379_v5, %v5371_v40 }
 0xc72   :  { %v5367_v15 = vpop.f32.mrf.mxu1 }
 0xc73   :  { %v5372_v60 = vadd.f32 %v5367_v15, %v5308_v17  ;;  %v5388_v58 = vmax.f32 %v5386_v61, 0.0 }
 0xc74   :  { %v6707_v45 = vpop.f32.mrf.mxu1 }
 0xc75   :  { %v5387_v39 = vadd.f32 %v5384_v56, %v5372_v60 }
 0xc77   :  { %v5389_v59 = vmax.f32 %v5387_v39, 0.0 }
 0xc79   :  { %v7244_v10 = vpack.i.bf16 %v5389_v59, %v5388_v58  ;;  %v9694_v22 = vpack.c.bf16 %v5389_v59, %v5388_v58  ;;  %v7330_v58 = vld [vmem:[#allocation2 + $0x260] sm:$0x3f]   ;;  %v7331_v59 = vld [vmem:[#allocation2 + $0x268] sm:$0x3f]  }
 0xc7b   :  { %7245 = vrot.lane.b32.xlu1 %v7244_v10, %s7404_s4  ;;  %7240 = vrot.lane.b32.xlu0 %v7244_v10, %s7385_s16  ;;  %v5655_v17 = vsel %vm882_vm13, %v9694_v22, 0 }
 0xc7f   :  { %7255 = vrot.lane.b32.xlu1 %v7244_v10, %s7390_s22  ;;  %7250 = vrot.lane.b32.xlu0 %v7244_v10, %s7405_s5  ;;  %s6065_s22 = sshll.u32 %s7410_s2, 4  ;;  %s6066_s22 = int_to_ptr.vmem [resolvable:$true] %s6065_s22 }
 0xc80   :  { %p7364_p6 = scmp.lt.s32.totalorder %s6066_s22, %s6066_s22 }
 0xc83   :  { %7265 = vrot.lane.b32.xlu1 %v7244_v10, %s7406_s6  ;;  %7260 = vrot.lane.b32.xlu0 %v7244_v10, %s7391_s23  ;;  %s7359_s23 = scalar_lea.vmem %s6066_s22, 32 }
 0xc84   :  { %p7360_p5 = scmp.ne.s32.totalorder %s6066_s22, %s7359_s23  ;;  %p7365_p7 = scmp.lt.s32.totalorder %s7359_s23, %s7359_s23 }
 0xc86   :  { %p7366_p8 = por %p7365_p7, %p7364_p6 }
 0xc87   :  { %7275 = vrot.lane.b32.xlu1 %v7244_v10, %s7407_s7  ;;  %7270 = vrot.lane.b32.xlu0 %v7244_v10, %s7408_s8 }
 0xc88   :  { %p7367_p9 = pnand %p7366_p8, %p7360_p5 }
 0xc8b   :  { %5961 = vperm.xlu1 %6813, %v6307_v57   ;;  %5966 = vperm.xlu0 %6797, %v6308_v3  }
 0xced   :  { %v7246_v54 = vpop.permute.xlu1 %7245  ;;  %v7241_v14 = vpop.permute.xlu0 %7240 }
 0xcee   :  { %v7248_v55 = vunpack.i.h.bf16 %v7246_v54  ;;  %v7247_v50 = vunpack.i.l.bf16 %v7246_v54  ;;  %v7243_v9 = vunpack.i.h.bf16 %v7241_v14  ;;  %v7242_v24 = vunpack.i.l.bf16 %v7241_v14 }
 0xcf0   :  { %v5395_v19 = vsel %vm9453_vm1, %v7248_v55, 0.0  ;;  %v5394_v52 = vsel %vm9453_vm1, %v7247_v50, 0.0  ;;  %v5405_v8 = vsel %vm9459_vm8, %v7243_v9, 0.0  ;;  %v5404_v53 = vsel %vm9459_vm8, %v7242_v24, 0.0  ;;  %v7332_v55 = vld [vmem:[#allocation2 + $0x270] sm:$0x3f]  }
 0xcf1   :  { %v5399_v63 = vpack.c.bf16 %v5395_v19, %v5394_v52  ;;  %v5409_v38 = vpack.c.bf16 %v5405_v8, %v5404_v53  ;;  %v7256_v46 = vpop.permute.xlu1 %7255  ;;  %v7251_v23 = vpop.permute.xlu0 %7250  ;;  %v7333_v50 = vld [vmem:[#allocation2 + $0x278] sm:$0x3f]   ;;  %v7334_v9 = vld [vmem:[#allocation2 + $0x280] sm:$0x3f]  }
 0xcf2   :  { %v7258_v33 = vunpack.i.h.bf16 %v7256_v46  ;;  %v7257_v49 = vunpack.i.l.bf16 %v7256_v46  ;;  %v7253_v25 = vunpack.i.h.bf16 %v7251_v23  ;;  %v7252_v30 = vunpack.i.l.bf16 %v7251_v23 }
 0xcf3   :  { %v5419_v31 = vsel %vm882_vm13, %v5409_v38, 0  ;;  %v5471_v12 = vsel %vm882_vm13, %v5399_v63, 0 }
 0xcf4   :  { %v5583_v28 = vsel %vm9476_vm6, %v7258_v33, 0.0  ;;  %v5582_v7 = vsel %vm9476_vm6, %v7257_v49, 0.0  ;;  %v5519_v42 = vsel %vm9494_vm0, %v7253_v25, 0.0  ;;  %v5518_v1 = vsel %vm9494_vm0, %v7252_v30, 0.0  ;;  %6709 = vmatpush3.bf16.msra.mxu0 %v5419_v31  ;;  %6715 = vmatpush3.bf16.msra.mxu1 %v5471_v12 }
 0xcf5   :  { %v5587_v41 = vpack.c.bf16 %v5583_v28, %v5582_v7  ;;  %v5523_v27 = vpack.c.bf16 %v5519_v42, %v5518_v1  ;;  %v7261_v35 = vpop.permute.xlu0 %7260  ;;  %6720 = vmatprep.subr.bf16.mxu0 %v7396_v34  ;;  %6726 = vmatprep.subr.bf16.mxu1 %v7396_v34  ;;  %v7266_v21 = vpop.permute.xlu1 %7265 }
 0xcf6   :  { %v7263_v32 = vunpack.i.h.bf16 %v7261_v35  ;;  %v7262_v48 = vunpack.i.l.bf16 %v7261_v35  ;;  %v7268_v2 = vunpack.i.h.bf16 %v7266_v21  ;;  %v7267_v16 = vunpack.i.l.bf16 %v7266_v21 }
 0xcf7   :  { %6711 = vmatmul.mubr.msk.bf16.vlgmr.msra.gmra.mxu0 %vm878_vm9, %v7326_v18  ;;  %6717 = vmatmul.mubr.msk.bf16.vlgmr.msra.gmra.mxu1 %vm878_vm9, %v7327_v0  ;;  %v5533_v13 = vsel %vm882_vm13, %v5523_v27, 0  ;;  %v5597_v29 = vsel %vm882_vm13, %v5587_v41, 0 }
 0xcf8   :  { %v5705_v47 = vsel %vm9499_vm14, %v7263_v32, 0.0  ;;  %v5704_v62 = vsel %vm9499_vm14, %v7262_v48, 0.0  ;;  %6721 = vmatpush3.bf16.msra.mxu0 %v5533_v13  ;;  %6727 = vmatpush3.bf16.msra.mxu1 %v5597_v29  ;;  %v5769_v15 = vsel %vm9553_vm4, %v7268_v2, 0.0  ;;  %v5768_v61 = vsel %vm9553_vm4, %v7267_v16, 0.0 }
 0xcf9   :  { %v7271_v26 = vpop.permute.xlu0 %7270  ;;  %6722 = vmatprep.mubr.msk.bf16.mxu0 %vm7397_vm12, %v7396_v34  ;;  %6728 = vmatprep.mubr.msk.bf16.mxu1 %vm7397_vm12, %v7396_v34  ;;  %v5709_v11 = vpack.c.bf16 %v5705_v47, %v5704_v62  ;;  %v7276_v45 = vpop.permute.xlu1 %7275  ;;  %v5773_v43 = vpack.c.bf16 %v5769_v15, %v5768_v61 }
 0xcfa   :  { %6732 = vmatprep.subr.bf16.mxu0 %v7396_v34  ;;  %6738 = vmatprep.subr.bf16.mxu1 %v7396_v34  ;;  %v7273_v40 = vunpack.i.h.bf16 %v7271_v26  ;;  %v7272_v37 = vunpack.i.l.bf16 %v7271_v26  ;;  %v7278_v10 = vunpack.i.h.bf16 %v7276_v45  ;;  %v7277_v4 = vunpack.i.l.bf16 %v7276_v45 }
 0xcfb   :  { %v5719_v5 = vsel %vm882_vm13, %v5709_v11, 0  ;;  %v5783_v22 = vsel %vm882_vm13, %v5773_v43, 0 }
 0xcfc   :  { %v5833_v60 = vsel %vm9521_vm7, %v7273_v40, 0.0  ;;  %v5832_v56 = vsel %vm9521_vm7, %v7272_v37, 0.0  ;;  %v5897_v3 = vsel %vm9577_vm11, %v7278_v10, 0.0  ;;  %v5896_v54 = vsel %vm9577_vm11, %v7277_v4, 0.0 }
 0xcfd   :  { %v5837_v39 = vpack.c.bf16 %v5833_v60, %v5832_v56  ;;  %v5901_v14 = vpack.c.bf16 %v5897_v3, %v5896_v54 }
 0xcff   :  { %6723 = vmatmul.mubr.msk.bf16.vlgmr.msra.gmra.mxu0 %vm878_vm9, %v7328_v36  ;;  %6729 = vmatmul.mubr.msk.bf16.vlgmr.msra.gmra.mxu1 %vm878_vm9, %v7329_v6  ;;  %v5847_v57 = vsel %vm882_vm13, %v5837_v39, 0  ;;  %v5911_v20 = vsel %vm882_vm13, %v5901_v14, 0  ;;  %vm5973_vm13 = vcmp.eq.s32.totalorder %v10247_v51, %v10202_v44 }
 0xd00   :  { %6733 = vmatpush3.bf16.msra.mxu0 %v5655_v17  ;;  %6739 = vmatpush3.bf16.msra.mxu1 %v5719_v5 }
 0xd01   :  { %6740 = vmatprep.mubr.msk.bf16.mxu1 %vm7397_vm12, %v7396_v34  ;;  %6734 = vmatprep.mubr.msk.bf16.mxu0 %vm7397_vm12, %v7396_v34 }
 0xd02   :  { %6744 = vmatprep.subr.bf16.mxu0 %v7396_v34  ;;  %6750 = vmatprep.subr.bf16.mxu1 %v7396_v34 }
 0xd06   :  { %v5967_v4 = vpop.permute.xlu0 %5966  ;;  %v5962_v3 = vpop.permute.xlu1 %5961 }
 0xd07   :  { %6735 = vmatmul.mubr.msk.bf16.vlgmr.msra.gmra.mxu0 %vm878_vm9, %v7330_v58  ;;  %6741 = vmatmul.mubr.msk.bf16.vlgmr.msra.gmra.mxu1 %vm878_vm9, %v7331_v59 }
 0xd08   :  { %6745 = vmatpush3.bf16.msra.mxu0 %v5783_v22  ;;  %6751 = vmatpush3.bf16.msra.mxu1 %v5847_v57 }
 0xd09   :  { %6746 = vmatprep.mubr.msk.bf16.mxu0 %vm7397_vm12, %v7396_v34  ;;  %6756 = vmatprep.subr.bf16.mxu0 %v7396_v34 }
 0xd0a   :  { %6752 = vmatprep.mubr.msk.bf16.mxu1 %vm7397_vm12, %v7396_v34  ;;  %6762 = vmatprep.subr.mxu1 %v7396_v34 }
 0xd0f   :  { %6747 = vmatmul.mubr.msk.bf16.vlgmr.msra.gmra.mxu0 %vm878_vm9, %v7332_v55  ;;  %6753 = vmatmul.mubr.msk.bf16.vlgmr.msra.gmra.mxu1 %vm878_vm9, %v7333_v50  ;;  %v7409_v50 = vmov 0.0625  }
 0xd10   :  { %6757 = vmatpush3.bf16.msra.mxu0 %v5911_v20  ;;  %6758 = vmatprep.mubr.msk.bf16.mxu0 %vm7397_vm12, %v7396_v34 }
 0xd11   :  { %6766 = vmatprep.mubr.msk.f32.mxu1 %vm7397_vm12, %v7396_v34 }
 0xd17   :  { %6759 = vmatmul.mubr.msk.bf16.vlgmr.msra.gmra.mxu0 %vm878_vm9, %v7334_v9  ;;  %vm6045_vm9 = vcmask 74752  }
 0xdb7   :  { %v5455_v24 = vpop.f32.mrf.mxu0  ;;  %v5507_v19 = vpop.f32.mrf.mxu1 }
 0xdb8   :  { %v5508_v7 = vadd.f32 %v5507_v19, %v5455_v24 }
 0xdb9   :  { %v6712_v52 = vpop.f32.mrf.mxu0  ;;  %v6718_v8 = vpop.f32.mrf.mxu1 }
 0xdbb   :  { %v5458_v53 = vpop.f32.mrf.mxu0  ;;  %v5510_v63 = vpop.f32.mrf.mxu1 }
 0xdbc   :  { %v5511_v42 = vadd.f32 %v5510_v63, %v5458_v53 }
 0xdbd   :  { %v6713_v38 = vpop.f32.mrf.mxu0  ;;  %v6719_v46 = vpop.f32.mrf.mxu1 }
 0xdbf   :  { %v5569_v23 = vpop.f32.mrf.mxu0  ;;  %v5633_v33 = vpop.f32.mrf.mxu1 }
 0xdc0   :  { %v5576_v27 = vadd.f32 %v5569_v23, %v5508_v7 }
 0xdc1   :  { %v6724_v49 = vpop.f32.mrf.mxu0  ;;  %v6730_v25 = vpop.f32.mrf.mxu1 }
 0xdc2   :  { %v5640_v47 = vadd.f32 %v5633_v33, %v5576_v27 }
 0xdc3   :  { %v5572_v30 = vpop.f32.mrf.mxu0  ;;  %v5636_v31 = vpop.f32.mrf.mxu1 }
 0xdc4   :  { %v5577_v35 = vadd.f32 %v5572_v30, %v5511_v42 }
 0xdc5   :  { %v6725_v12 = vpop.f32.mrf.mxu0  ;;  %v6731_v18 = vpop.f32.mrf.mxu1 }
 0xdc6   :  { %v5641_v62 = vadd.f32 %v5636_v31, %v5577_v35 }
 0xdc7   :  { %v5691_v0 = vpop.f32.mrf.mxu0  ;;  %v5755_v28 = vpop.f32.mrf.mxu1 }
 0xdc8   :  { %v5698_v11 = vadd.f32 %v5691_v0, %v5640_v47 }
 0xdc9   :  { %v6736_v1 = vpop.f32.mrf.mxu0  ;;  %v6742_v41 = vpop.f32.mrf.mxu1 }
 0xdca   :  { %v5762_v37 = vadd.f32 %v5755_v28, %v5698_v11 }
 0xdcb   :  { %v5694_v32 = vpop.f32.mrf.mxu0  ;;  %v5758_v48 = vpop.f32.mrf.mxu1 }
 0xdcc   :  { %v5699_v36 = vadd.f32 %v5694_v32, %v5641_v62 }
 0xdcd   :  { %v6737_v13 = vpop.f32.mrf.mxu0  ;;  %v6743_v29 = vpop.f32.mrf.mxu1 }
 0xdce   :  { %v5763_v17 = vadd.f32 %v5758_v48, %v5699_v36 }
 0xdcf   :  { %v5819_v21 = vpop.f32.mrf.mxu0  ;;  %v5883_v26 = vpop.f32.mrf.mxu1 }
 0xdd0   :  { %v5826_v61 = vadd.f32 %v5819_v21, %v5762_v37 }
 0xdd1   :  { %v6748_v6 = vpop.f32.mrf.mxu0  ;;  %v6754_v2 = vpop.f32.mrf.mxu1 }
 0xdd2   :  { %v5890_v43 = vadd.f32 %v5883_v26, %v5826_v61 }
 0xdd3   :  { %v5822_v16 = vpop.f32.mrf.mxu0  ;;  %v5886_v40 = vpop.f32.mrf.mxu1 }
 0xdd4   :  { %v5827_v60 = vadd.f32 %v5822_v16, %v5763_v17 }
 0xdd5   :  { %v6749_v5 = vpop.f32.mrf.mxu0  ;;  %v6755_v15 = vpop.f32.mrf.mxu1 }
 0xdd6   :  { %v5891_v39 = vadd.f32 %v5886_v40, %v5827_v60 }
 0xdd7   :  { %v5947_v56 = vpop.f32.mrf.mxu0 }
 0xdd8   :  { %v5954_v59 = vadd.f32 %v5947_v56, %v5890_v43 }
 0xdd9   :  { %v6760_v45 = vpop.f32.mrf.mxu0 }
 0xdda   :  { %v5969_v54 = vadd.f32 %v5962_v3, %v5954_v59 }
 0xddb   :  { %v5950_v58 = vpop.f32.mrf.mxu0 }
 0xddc   :  { %v5955_v10 = vadd.f32 %v5950_v58, %v5891_v39  ;;  %v5971_v55 = vmax.f32 %v5969_v54, 0.0 }
 0xddd   :  { %v6761_v22 = vpop.f32.mrf.mxu0 }
 0xdde   :  { %v5970_v57 = vadd.f32 %v5967_v4, %v5955_v10 }
 0xde0   :  { %v5972_v14 = vmax.f32 %v5970_v57, 0.0 }
 0xde2   :  { %6763 = vmatpush3.xpose.msra.mxu1 %v5972_v14 }
 0xde3   :  { %6764 = vmatprep.subr.mxu1 %v7396_v34 }
 0xde6   :  { %6765 = vmatpush3.xpose.msra.mxu1 %v5971_v55 }
 0xde9   :  { %6767 = vmatmul.mubr.msk.f32.vlgmr.msra.gmra.mxu1 %vm5973_vm13, %v7409_v50 }
 0xea9   :  { %v6041_v20 = vpop.f32.mrf.mxu1 }
 0xeaa   :  { %v6046_v9 = vsel %vm6045_vm9, %v6041_v20, -inf }
 0xeab   :  { %6047 = vmax.xlane.f32.xlu0 %v6046_v9  ;;  %v6768_v24 = vpop.f32.mrf.mxu1 }
 0xf34   :  { %v6048_v19 = vpop.xlane.xlu0 %6047 }
 0xf35   :  { %v6049_v52 = vsub.f32 %v6041_v20, %v6048_v19 }
 0xf37   :  { %v6050_v8 = vmul.f32 1.442695, %v6049_v52 }
 0xf39   :  { %7335 = vpow2.f32 %v6050_v8 }
 0xf46   :  { %v7336_v53 = vpop.eup %7335 }
 0xf47   :  { %v6052_v34 = vsel %vm6045_vm9, %v7336_v53, 0.0 }
 0xf48   :  { %6053 = vadd.xlane.f32.xlu1 %v6052_v34 }
 0xfd1   :  { %v6054_v63 = vpop.xlane.xlu1 %6053 }
 0xfd2   :  { %7337 = vlog2.f32 %v6054_v63 }
 0xfdf   :  { %v7338_v38 = vpop.eup %7337 }
 0xfe0   :  { %v6056_v44 = vmul.f32 0.6931472, %v7338_v38 }
 0xfe2   :  { %v6057_v51 = vsub.f32 %v6049_v52, %v6056_v44 }
 0xfe4   :  { %6058 = vst.msk [vmem:[#allocation5] sm:$0x3] %vm6045_vm9, %v6057_v51 }
 0xfe5   :  { %7370 = shalt.err (!%p7367_p9)
}
 0xfe6   :  { %6068 = dma.vmem_to_hbm [thread:$0]  %s6066_s22, 32, %s9795_s3, [#allocation4]  }
 0xfe7   :  { %7381 = dma.done.wait [#allocation4], 32  }
 0xfe8   :  { %7382 = vsyncadd [#allocation4], 4294967264 }
 0xfe9   :  { %6072 = vsyncpa [#allocation3], 1 }
 0xfea   :  { %6073 = vsyncpa [#allocation4], 1 }

</bundles_post_ra>
